<compile_context>
chip_gen: v6e
topology: v6e:2x2x1
jax: 0.10.0
libtpu: 0.0.40
codegen_flags: <defaults>
</compile_context>

<pallas_src>
import math

import jax
import jax.numpy as jnp
from jax.experimental import pallas as pl
from jax.experimental.pallas import tpu as pltpu

INPUT_DIM = 1024
HIDDEN = 128
NUM_LABELS = 4      # stand-in for config.num_labels
VMEM_LIMIT = 32 * 1024 * 1024


def _round_up(x, m):
    return (x + m - 1) // m * m


# ---------------------------------------------------------------------------
# Kernel 1: batched input projection  GX = X_flat @ W_cat + b_cat
#   X_flat : (T_pad*B_pad, 1024) bf16, rows in (t, b) order
#   W_cat  : (1024, 768) bf16   [fwd r|z|n | bwd r|z|n]
#   b_cat  : (1, 768)    f32    per direction: [bih_r+bhh_r, bih_z+bhh_z, bih_n]
# ---------------------------------------------------------------------------
def input_proj_kernel(x_ref, w_ref, b_ref, gx_ref):
    gx_ref[...] = (
        jnp.dot(x_ref[...], w_ref[...], preferred_element_type=jnp.float32)
        + b_ref[...]
    )


def input_projection(x_flat, w_cat, b_cat):
    m, _ = x_flat.shape
    g = 6 * HIDDEN
    pt = math.gcd(m, 512)          # m is a multiple of 64 -> pt in {64,...,512}
    return pl.pallas_call(
        input_proj_kernel,
        out_shape=jax.ShapeDtypeStruct((m, g), jnp.float32),
        grid=(m // pt,),
        in_specs=[
            pl.BlockSpec((pt, INPUT_DIM), lambda i: (i, 0)),
            pl.BlockSpec((INPUT_DIM, g), lambda i: (0, 0)),
            pl.BlockSpec((1, g), lambda i: (0, 0)),
        ],
        out_specs=pl.BlockSpec((pt, g), lambda i: (i, 0)),
        compiler_params=pltpu.CompilerParams(
            dimension_semantics=("parallel",),
            vmem_limit_bytes=VMEM_LIMIT),
    )(x_flat, w_cat, b_cat)


# ---------------------------------------------------------------------------
# Kernel 2: time-chunked bidirectional GRU recurrence + classifier head.
#   grid=(T_pad//TT,) "arbitrary".  Per grid step the forward chunk c and the
#   reversed backward chunk are streamed as (TT*B_pad, 3H) slabs; the TT-step
#   inner loop is statically unrolled; h = [hf|hb] persists in VMEM scratch.
# ---------------------------------------------------------------------------
def make_recurrence_call(T, T_pad, TT, B_pad):
    H = HIDDEN
    C = T_pad // TT
    rows = TT * B_pad

    def kernel(gxf_ref, gxb_ref, whh_ref, bhhn_ref, wcls_ref, bcls_ref,
               logits_ref, h_ref):
        c = pl.program_id(0)

        @pl.when(c == 0)
        def _():
            h_ref[...] = jnp.zeros_like(h_ref)

        whh = whh_ref[...]        # (2H, 6H) bf16, block-diagonal [Whh_f ; Whh_b]
        bhhn = bhhn_ref[...]      # (1, 6H)  f32, bhh_n in n-slots, zeros in r/z
        h = h_ref[...]            # (B_pad, 2H) f32, [hf | hb]

        for i in range(TT):       # static unroll: aligned, free slices
            # One MXU matmul for both directions' recurrent gates.
            gh = jnp.dot(h.astype(jnp.bfloat16), whh,
                         preferred_element_type=jnp.float32) + bhhn

            gxf = gxf_ref[i * B_pad:(i + 1) * B_pad, :]                # time c*TT+i
            gxb = gxb_ref[(TT - 1 - i) * B_pad:(TT - i) * B_pad, :]    # reversed

            hf = h[:, :H]
            hb = h[:, H:]

            rf = jax.nn.sigmoid(gxf[:, :H] + gh[:, :H])
            zf = jax.nn.sigmoid(gxf[:, H:2 * H] + gh[:, H:2 * H])
            nf = jnp.tanh(gxf[:, 2 * H:] + rf * gh[:, 2 * H:3 * H])

            rb = jax.nn.sigmoid(gxb[:, :H] + gh[:, 3 * H:4 * H])
            zb = jax.nn.sigmoid(gxb[:, H:2 * H] + gh[:, 4 * H:5 * H])
            nb = jnp.tanh(gxb[:, 2 * H:] + rb * gh[:, 5 * H:])

            hf_new = (1.0 - zf) * nf + zf * hf
            hb_new = (1.0 - zb) * nb + zb * hb

            if T != T_pad:  # mask padded timesteps (trace-time branch)
                step = c * TT + i
                hf_new = jnp.where(step < T, hf_new, hf)
                hb_new = jnp.where(step >= T_pad - T, hb_new, hb)

            h = jnp.concatenate([hf_new, hb_new], axis=1)

        h_ref[...] = h

        @pl.when(c == C - 1)
        def _():
            # h is exactly [h_fwd_final | h_bwd_final]  (Dropout is identity in eval)
            logits_ref[...] = (
                jnp.dot(h, wcls_ref[...], preferred_element_type=jnp.float32)
                + bcls_ref[...])

    return pl.pallas_call(
        kernel,
        out_shape=jax.ShapeDtypeStruct((B_pad, NUM_LABELS), jnp.float32),
        grid=(C,),
        in_specs=[
            pl.BlockSpec((rows, 3 * H), lambda c: (c, 0)),           # fwd chunk
            pl.BlockSpec((rows, 3 * H), lambda c: (C - 1 - c, 1)),   # bwd chunk
            pl.BlockSpec((2 * H, 6 * H), lambda c: (0, 0)),          # Whh_cat
            pl.BlockSpec((1, 6 * H), lambda c: (0, 0)),              # bhh_n (cat)
            pl.BlockSpec((2 * H, NUM_LABELS), lambda c: (0, 0)),     # classifier W
            pl.BlockSpec((1, NUM_LABELS), lambda c: (0, 0)),         # classifier b
        ],
        out_specs=pl.BlockSpec((B_pad, NUM_LABELS), lambda c: (0, 0)),
        scratch_shapes=[pltpu.VMEM((B_pad, 2 * H), jnp.float32)],
        compiler_params=pltpu.CompilerParams(
            dimension_semantics=("arbitrary",),
            vmem_limit_bytes=VMEM_LIMIT),
    )


def model_forward(x, params):
    """x: (B, T, 1024) float32 -> logits (B, NUM_LABELS) float32."""
    (wih_f, whh_f, bih_f, bhh_f,
     wih_b, whh_b, bih_b, bhh_b, wcls, bcls) = params
    B, T, D = x.shape
    assert D == INPUT_DIM
    H = HIDDEN

    # --- chunk / padding sizes (static) --------------------------------------
    t8 = _round_up(T, 8)
    TT = next(tt for tt in (32, 16, 8) if t8 % tt == 0)
    T_pad = _round_up(T, TT)
    B_pad = max(8, _round_up(B, 8))

    # --- one-time weight packing (folded into constants under jit) -----------
    w_cat = jnp.concatenate([wih_f, wih_b], axis=1).astype(jnp.bfloat16)  # (1024,768)

    def fold_rz_bias(bih, bhh):
        # r/z recurrent biases are constant w.r.t. h -> fold into projection bias.
        return jnp.concatenate([bih[:, :2 * H] + bhh[:, :2 * H],
                                bih[:, 2 * H:]], axis=1)                  # (1,384)

    b_cat = jnp.concatenate([fold_rz_bias(bih_f, bhh_f),
                             fold_rz_bias(bih_b, bhh_b)], axis=1)         # (1,768) f32

    zw = jnp.zeros((H, 3 * H), jnp.float32)
    whh_cat = jnp.concatenate(
        [jnp.concatenate([whh_f, zw], axis=1),
         jnp.concatenate([zw, whh_b], axis=1)], axis=0).astype(jnp.bfloat16)  # (256,768)

    z2h = jnp.zeros((1, 2 * H), jnp.float32)
    bhhn_cat = jnp.concatenate([z2h, bhh_f[:, 2 * H:],
                                z2h, bhh_b[:, 2 * H:]], axis=1)           # (1,768) f32

    # --- layout: (B,T,D) f32 -> (T_pad*B_pad, D) bf16, time-major rows -------
    xb = x.astype(jnp.bfloat16)
    xb = jnp.pad(xb, ((0, B_pad - B), (0, T_pad - T), (0, 0)))
    x_flat = jnp.transpose(xb, (1, 0, 2)).reshape(T_pad * B_pad, D)
    # TODO(synk): remove this transpose pass by fusing the projection into the
    #             recurrence kernel (x chunks read directly per direction).

    # --- batched input projection (bf16 MXU, f32 accumulate) ------------------
    gx = input_projection(x_flat, w_cat, b_cat)          # (T_pad*B_pad, 768) f32

    # --- time-chunked serial recurrence + classifier --------------------------
    recurrence = make_recurrence_call(T, T_pad, TT, B_pad)
    logits = recurrence(gx, gx, whh_cat, bhhn_cat, wcls, bcls)
    return logits[:B]


def init_params(key):
    """Deterministic init mimicking PyTorch's uniform(-1/sqrt(H), 1/sqrt(H))."""
    ks = jax.random.split(key, 16)
    kg = 1.0 / jnp.sqrt(jnp.float32(HIDDEN))

    def u(k, shape, bound):
        return jax.random.uniform(k, shape, jnp.float32, -bound, bound)

    # GRU weights stored pre-transposed: (in, 3H) / (H, 3H); biases as (1, 3H).
    wih_f = u(ks[0], (INPUT_DIM, 3 * HIDDEN), kg)
    whh_f = u(ks[1], (HIDDEN, 3 * HIDDEN), kg)
    bih_f = u(ks[2], (1, 3 * HIDDEN), kg)
    bhh_f = u(ks[3], (1, 3 * HIDDEN), kg)
    wih_b = u(ks[4], (INPUT_DIM, 3 * HIDDEN), kg)
    whh_b = u(ks[5], (HIDDEN, 3 * HIDDEN), kg)
    bih_b = u(ks[6], (1, 3 * HIDDEN), kg)
    bhh_b = u(ks[7], (1, 3 * HIDDEN), kg)

    kc = 1.0 / jnp.sqrt(jnp.float32(2 * HIDDEN))
    wcls = u(ks[8], (2 * HIDDEN, NUM_LABELS), kc)   # Linear weight, pre-transposed
    bcls = u(ks[9], (1, NUM_LABELS), kc)

    return (wih_f, whh_f, bih_f, bhh_f,
            wih_b, whh_b, bih_b, bhh_b,
            wcls, bcls)


def reference_forward(x, params):
    """Pure-JAX f32 reference of the same math (PyTorch GRU semantics)."""
    (wih_f, whh_f, bih_f, bhh_f,
     wih_b, whh_b, bih_b, bhh_b, wcls, bcls) = params
    B, T, _ = x.shape
    H = HIDDEN

    def step(h, x_t, wih, whh, bih, bhh):
        gx = x_t @ wih + bih
        gh = h @ whh + bhh
        r = jax.nn.sigmoid(gx[:, :H] + gh[:, :H])
        z = jax.nn.sigmoid(gx[:, H:2 * H] + gh[:, H:2 * H])
        n = jnp.tanh(gx[:, 2 * H:] + r * gh[:, 2 * H:])
        return (1.0 - z) * n + z * h

    hf = jnp.zeros((B, H), jnp.float32)
    hb = jnp.zeros((B, H), jnp.float32)
    for t in range(T):
        hf = step(hf, x[:, t, :], wih_f, whh_f, bih_f, bhh_f)
        hb = step(hb, x[:, T - 1 - t, :], wih_b, whh_b, bih_b, bhh_b)
    h = jnp.concatenate([hf, hb], axis=-1)
    return h @ wcls + bcls


if __name__ == "__main__":
    key = jax.random.PRNGKey(0)
    kx, kp = jax.random.split(key)

    B, T = 2, 8
    x = jax.random.normal(kx, (B, T, INPUT_DIM), jnp.float32)
    params = init_params(kp)

    forward = jax.jit(model_forward)
    logits = forward(x, params)
    logits = jax.block_until_ready(logits)

    ref = reference_forward(x, params)
    assert logits.shape == (B, NUM_LABELS)
    # Tolerance loosened vs. the pure-f32 version: matmul inputs are bf16
    # (f32 accumulation), so a small recurrent error accumulates over T.
    assert jnp.max(jnp.abs(logits - ref)) < 5e-2, "kernel/reference mismatch"

    print("KERNEL_OK")
</pallas_src>

<mosaic_0001>
module attributes {stable_mosaic.version = 11 : i64} {
  func.func @input_proj_kernel(%arg0: i32, %arg1: memref<64x1024xbf16, #tpu.memory_space<vmem>>, %arg2: memref<1024x768xbf16, #tpu.memory_space<vmem>>, %arg3: memref<1x768xf32, #tpu.memory_space<vmem>>, %arg4: memref<64x768xf32, #tpu.memory_space<vmem>>) attributes {dimension_semantics = [#tpu.dimension_semantics<parallel>], iteration_bounds = array<i64: 1>, scalar_prefetch = 0 : i64, scratch_operands = 0 : i64, tpu.core_type = #tpu.core_type<tc>, window_params = [{transform_indices = @transform_0, window_bounds = array<i64: 64, 1024>}, {pipeline_mode = #tpu.pipeline_mode<synchronous>, transform_indices = @transform_1, window_bounds = array<i64: 1024, 768>}, {pipeline_mode = #tpu.pipeline_mode<synchronous>, transform_indices = @transform_2, window_bounds = array<i64: 1, 768>}, {transform_indices = @transform_3, window_bounds = array<i64: 64, 768>}]} {
    %c0 = arith.constant 0 : index
    %c0_0 = arith.constant 0 : index
    %0 = vector.load %arg1[%c0, %c0_0] : memref<64x1024xbf16, #tpu.memory_space<vmem>>, vector<64x1024xbf16>
    %c0_1 = arith.constant 0 : index
    %c0_2 = arith.constant 0 : index
    %1 = vector.load %arg2[%c0_1, %c0_2] : memref<1024x768xbf16, #tpu.memory_space<vmem>>, vector<1024x768xbf16>
    %cst = arith.constant dense<0.000000e+00> : vector<64x768xf32>
    %2 = tpu.matmul %0, %1, %cst {dimension_numbers = #tpu.dot_dimension_numbers<[1], [0], [0], [1], [0, 0, 1, 1], [], []>} : vector<64x1024xbf16>, vector<1024x768xbf16>, vector<64x768xf32> -> vector<64x768xf32>
    %c0_3 = arith.constant 0 : index
    %c0_4 = arith.constant 0 : index
    %3 = vector.load %arg3[%c0_3, %c0_4] : memref<1x768xf32, #tpu.memory_space<vmem>>, vector<1x768xf32>
    %4 = vector.broadcast %3 : vector<1x768xf32> to vector<64x768xf32>
    %5 = arith.addf %2, %4 : vector<64x768xf32>
    %c0_5 = arith.constant 0 : index
    %c0_6 = arith.constant 0 : index
    %6 = vector.load %arg4[%c0_5, %c0_6] : memref<64x768xf32, #tpu.memory_space<vmem>>, vector<64x768xf32>
    tpu.vector_store %arg4[%c0_5, %c0_6], %5 {strides = array<i32>} : memref<64x768xf32, #tpu.memory_space<vmem>>, vector<64x768xf32>,
    return
  }
  func.func @transform_0(%arg0: i32) -> (i32, i32) {
    %c0_i32 = arith.constant 0 : i32
    %c0_i32_0 = arith.constant 0 : i32
    return %arg0, %c0_i32 : i32, i32
  }
  func.func @transform_1(%arg0: i32) -> (i32, i32) {
    %c0_i32 = arith.constant 0 : i32
    %c0_i32_0 = arith.constant 0 : i32
    %c0_i32_1 = arith.constant 0 : i32
    return %c0_i32, %c0_i32_0 : i32, i32
  }
  func.func @transform_2(%arg0: i32) -> (i32, i32) {
    %c0_i32 = arith.constant 0 : i32
    %c0_i32_0 = arith.constant 0 : i32
    %c0_i32_1 = arith.constant 0 : i32
    return %c0_i32, %c0_i32_0 : i32, i32
  }
  func.func @transform_3(%arg0: i32) -> (i32, i32) {
    %c0_i32 = arith.constant 0 : i32
    %c0_i32_0 = arith.constant 0 : i32
    return %arg0, %c0_i32 : i32, i32
  }
}

module attributes {stable_mosaic.version = 11 : i64} {
  func.func @kernel(%arg0: i32, %arg1: memref<64x384xf32, #tpu.memory_space<vmem>>, %arg2: memref<64x384xf32, #tpu.memory_space<vmem>>, %arg3: memref<256x768xbf16, #tpu.memory_space<vmem>>, %arg4: memref<1x768xf32, #tpu.memory_space<vmem>>, %arg5: memref<256x4xf32, #tpu.memory_space<vmem>>, %arg6: memref<1x4xf32, #tpu.memory_space<vmem>>, %arg7: memref<8x4xf32, #tpu.memory_space<vmem>>, %arg8: memref<8x256xf32, #tpu.memory_space<vmem>>) attributes {dimension_semantics = [#tpu.dimension_semantics<arbitrary>], iteration_bounds = array<i64: 1>, scalar_prefetch = 0 : i64, scratch_operands = 1 : i64, tpu.core_type = #tpu.core_type<tc>, window_params = [{transform_indices = @transform_0, window_bounds = array<i64: 64, 384>}, {transform_indices = @transform_1, window_bounds = array<i64: 64, 384>}, {pipeline_mode = #tpu.pipeline_mode<synchronous>, transform_indices = @transform_2, window_bounds = array<i64: 256, 768>}, {pipeline_mode = #tpu.pipeline_mode<synchronous>, transform_indices = @transform_3, window_bounds = array<i64: 1, 768>}, {pipeline_mode = #tpu.pipeline_mode<synchronous>, transform_indices = @transform_4, window_bounds = array<i64: 256, 4>}, {pipeline_mode = #tpu.pipeline_mode<synchronous>, transform_indices = @transform_5, window_bounds = array<i64: 1, 4>}, {pipeline_mode = #tpu.pipeline_mode<synchronous>, transform_indices = @transform_6, window_bounds = array<i64: 8, 4>}]} {
    %c0_i32 = arith.constant 0 : i32
    %0 = arith.cmpi eq, %arg0, %c0_i32 : i32
    %1 = arith.extui %0 : i1 to i32
    %c0_i32_0 = arith.constant 0 : i32
    %2 = arith.cmpi ne, %1, %c0_i32_0 : i32
    scf.if %2 {
      %cst_90 = arith.constant 0.000000e+00 : f32
      %498 = vector.broadcast %cst_90 : f32 to vector<8x256xf32>
      %c0_91 = arith.constant 0 : index
      %c0_92 = arith.constant 0 : index
      %499 = vector.load %arg8[%c0_91, %c0_92] : memref<8x256xf32, #tpu.memory_space<vmem>>, vector<8x256xf32>
      tpu.vector_store %arg8[%c0_91, %c0_92], %498 {strides = array<i32>} : memref<8x256xf32, #tpu.memory_space<vmem>>, vector<8x256xf32>,
    } else {
    }
    %c0 = arith.constant 0 : index
    %c0_1 = arith.constant 0 : index
    %3 = vector.load %arg3[%c0, %c0_1] : memref<256x768xbf16, #tpu.memory_space<vmem>>, vector<256x768xbf16>
    %c0_2 = arith.constant 0 : index
    %c0_3 = arith.constant 0 : index
    %4 = vector.load %arg4[%c0_2, %c0_3] : memref<1x768xf32, #tpu.memory_space<vmem>>, vector<1x768xf32>
    %c0_4 = arith.constant 0 : index
    %c0_5 = arith.constant 0 : index
    %5 = vector.load %arg8[%c0_4, %c0_5] : memref<8x256xf32, #tpu.memory_space<vmem>>, vector<8x256xf32>
    %6 = arith.truncf %5 : vector<8x256xf32> to vector<8x256xbf16>
    %cst = arith.constant dense<0.000000e+00> : vector<8x768xf32>
    %7 = tpu.matmul %6, %3, %cst {dimension_numbers = #tpu.dot_dimension_numbers<[1], [0], [0], [1], [0, 0, 1, 1], [], []>} : vector<8x256xbf16>, vector<256x768xbf16>, vector<8x768xf32> -> vector<8x768xf32>
    %8 = vector.broadcast %4 : vector<1x768xf32> to vector<8x768xf32>
    %9 = arith.addf %7, %8 : vector<8x768xf32>
    %c0_6 = arith.constant 0 : index
    %c0_7 = arith.constant 0 : index
    %10 = vector.load %arg1[%c0_6, %c0_7] : memref<64x384xf32, #tpu.memory_space<vmem>>, vector<8x384xf32>
    %c56 = arith.constant 56 : index
    %c0_8 = arith.constant 0 : index
    %11 = vector.load %arg2[%c56, %c0_8] : memref<64x384xf32, #tpu.memory_space<vmem>>, vector<8x384xf32>
    %12 = vector.extract_strided_slice %5 {offsets = [0, 0], sizes = [8, 128], strides = [1, 1]} : vector<8x256xf32> to vector<8x128xf32>
    %13 = vector.extract_strided_slice %5 {offsets = [0, 128], sizes = [8, 128], strides = [1, 1]} : vector<8x256xf32> to vector<8x128xf32>
    %14 = vector.extract_strided_slice %10 {offsets = [0, 0], sizes = [8, 128], strides = [1, 1]} : vector<8x384xf32> to vector<8x128xf32>
    %15 = vector.extract_strided_slice %9 {offsets = [0, 0], sizes = [8, 128], strides = [1, 1]} : vector<8x768xf32> to vector<8x128xf32>
    %16 = arith.addf %14, %15 : vector<8x128xf32>
    %17 = arith.negf %16 : vector<8x128xf32>
    %18 = math.exp %17 : vector<8x128xf32>
    %cst_9 = arith.constant 1.000000e+00 : f32
    %19 = vector.broadcast %cst_9 : f32 to vector<8x128xf32>
    %20 = arith.addf %19, %18 : vector<8x128xf32>
    %21 = arith.divf %19, %20 : vector<8x128xf32>
    %22 = vector.extract_strided_slice %10 {offsets = [0, 128], sizes = [8, 128], strides = [1, 1]} : vector<8x384xf32> to vector<8x128xf32>
    %23 = vector.extract_strided_slice %9 {offsets = [0, 128], sizes = [8, 128], strides = [1, 1]} : vector<8x768xf32> to vector<8x128xf32>
    %24 = arith.addf %22, %23 : vector<8x128xf32>
    %25 = arith.negf %24 : vector<8x128xf32>
    %26 = math.exp %25 : vector<8x128xf32>
    %cst_10 = arith.constant 1.000000e+00 : f32
    %27 = vector.broadcast %cst_10 : f32 to vector<8x128xf32>
    %28 = arith.addf %27, %26 : vector<8x128xf32>
    %29 = arith.divf %27, %28 : vector<8x128xf32>
    %30 = vector.extract_strided_slice %10 {offsets = [0, 256], sizes = [8, 128], strides = [1, 1]} : vector<8x384xf32> to vector<8x128xf32>
    %31 = vector.extract_strided_slice %9 {offsets = [0, 256], sizes = [8, 128], strides = [1, 1]} : vector<8x768xf32> to vector<8x128xf32>
    %32 = arith.mulf %21, %31 : vector<8x128xf32>
    %33 = arith.addf %30, %32 : vector<8x128xf32>
    %34 = math.tanh %33 : vector<8x128xf32>
    %35 = vector.extract_strided_slice %11 {offsets = [0, 0], sizes = [8, 128], strides = [1, 1]} : vector<8x384xf32> to vector<8x128xf32>
    %36 = vector.extract_strided_slice %9 {offsets = [0, 384], sizes = [8, 128], strides = [1, 1]} : vector<8x768xf32> to vector<8x128xf32>
    %37 = arith.addf %35, %36 : vector<8x128xf32>
    %38 = arith.negf %37 : vector<8x128xf32>
    %39 = math.exp %38 : vector<8x128xf32>
    %cst_11 = arith.constant 1.000000e+00 : f32
    %40 = vector.broadcast %cst_11 : f32 to vector<8x128xf32>
    %41 = arith.addf %40, %39 : vector<8x128xf32>
    %42 = arith.divf %40, %41 : vector<8x128xf32>
    %43 = vector.extract_strided_slice %11 {offsets = [0, 128], sizes = [8, 128], strides = [1, 1]} : vector<8x384xf32> to vector<8x128xf32>
    %44 = vector.extract_strided_slice %9 {offsets = [0, 512], sizes = [8, 128], strides = [1, 1]} : vector<8x768xf32> to vector<8x128xf32>
    %45 = arith.addf %43, %44 : vector<8x128xf32>
    %46 = arith.negf %45 : vector<8x128xf32>
    %47 = math.exp %46 : vector<8x128xf32>
    %cst_12 = arith.constant 1.000000e+00 : f32
    %48 = vector.broadcast %cst_12 : f32 to vector<8x128xf32>
    %49 = arith.addf %48, %47 : vector<8x128xf32>
    %50 = arith.divf %48, %49 : vector<8x128xf32>
    %51 = vector.extract_strided_slice %11 {offsets = [0, 256], sizes = [8, 128], strides = [1, 1]} : vector<8x384xf32> to vector<8x128xf32>
    %52 = vector.extract_strided_slice %9 {offsets = [0, 640], sizes = [8, 128], strides = [1, 1]} : vector<8x768xf32> to vector<8x128xf32>
    %53 = arith.mulf %42, %52 : vector<8x128xf32>
    %54 = arith.addf %51, %53 : vector<8x128xf32>
    %55 = math.tanh %54 : vector<8x128xf32>
    %cst_13 = arith.constant 1.000000e+00 : f32
    %56 = vector.broadcast %cst_13 : f32 to vector<8x128xf32>
    %57 = arith.subf %56, %29 : vector<8x128xf32>
    %58 = arith.mulf %57, %34 : vector<8x128xf32>
    %59 = arith.mulf %29, %12 : vector<8x128xf32>
    %60 = arith.addf %58, %59 : vector<8x128xf32>
    %cst_14 = arith.constant 1.000000e+00 : f32
    %61 = vector.broadcast %cst_14 : f32 to vector<8x128xf32>
    %62 = arith.subf %61, %50 : vector<8x128xf32>
    %63 = arith.mulf %62, %55 : vector<8x128xf32>
    %64 = arith.mulf %50, %13 : vector<8x128xf32>
    %65 = arith.addf %63, %64 : vector<8x128xf32>
    %66 = tpu.concatenate %60, %65 in 1 : vector<8x128xf32>, vector<8x128xf32> -> vector<8x256xf32>
    %67 = arith.truncf %66 : vector<8x256xf32> to vector<8x256xbf16>
    %cst_15 = arith.constant dense<0.000000e+00> : vector<8x768xf32>
    %68 = tpu.matmul %67, %3, %cst_15 {dimension_numbers = #tpu.dot_dimension_numbers<[1], [0], [0], [1], [0, 0, 1, 1], [], []>} : vector<8x256xbf16>, vector<256x768xbf16>, vector<8x768xf32> -> vector<8x768xf32>
    %69 = vector.broadcast %4 : vector<1x768xf32> to vector<8x768xf32>
    %70 = arith.addf %68, %69 : vector<8x768xf32>
    %c8 = arith.constant 8 : index
    %c0_16 = arith.constant 0 : index
    %71 = vector.load %arg1[%c8, %c0_16] : memref<64x384xf32, #tpu.memory_space<vmem>>, vector<8x384xf32>
    %c48 = arith.constant 48 : index
    %c0_17 = arith.constant 0 : index
    %72 = vector.load %arg2[%c48, %c0_17] : memref<64x384xf32, #tpu.memory_space<vmem>>, vector<8x384xf32>
    %73 = vector.extract_strided_slice %66 {offsets = [0, 0], sizes = [8, 128], strides = [1, 1]} : vector<8x256xf32> to vector<8x128xf32>
    %74 = vector.extract_strided_slice %66 {offsets = [0, 128], sizes = [8, 128], strides = [1, 1]} : vector<8x256xf32> to vector<8x128xf32>
    %75 = vector.extract_strided_slice %71 {offsets = [0, 0], sizes = [8, 128], strides = [1, 1]} : vector<8x384xf32> to vector<8x128xf32>
    %76 = vector.extract_strided_slice %70 {offsets = [0, 0], sizes = [8, 128], strides = [1, 1]} : vector<8x768xf32> to vector<8x128xf32>
    %77 = arith.addf %75, %76 : vector<8x128xf32>
    %78 = arith.negf %77 : vector<8x128xf32>
    %79 = math.exp %78 : vector<8x128xf32>
    %cst_18 = arith.constant 1.000000e+00 : f32
    %80 = vector.broadcast %cst_18 : f32 to vector<8x128xf32>
    %81 = arith.addf %80, %79 : vector<8x128xf32>
    %82 = arith.divf %80, %81 : vector<8x128xf32>
    %83 = vector.extract_strided_slice %71 {offsets = [0, 128], sizes = [8, 128], strides = [1, 1]} : vector<8x384xf32> to vector<8x128xf32>
    %84 = vector.extract_strided_slice %70 {offsets = [0, 128], sizes = [8, 128], strides = [1, 1]} : vector<8x768xf32> to vector<8x128xf32>
    %85 = arith.addf %83, %84 : vector<8x128xf32>
    %86 = arith.negf %85 : vector<8x128xf32>
    %87 = math.exp %86 : vector<8x128xf32>
    %cst_19 = arith.constant 1.000000e+00 : f32
    %88 = vector.broadcast %cst_19 : f32 to vector<8x128xf32>
    %89 = arith.addf %88, %87 : vector<8x128xf32>
    %90 = arith.divf %88, %89 : vector<8x128xf32>
    %91 = vector.extract_strided_slice %71 {offsets = [0, 256], sizes = [8, 128], strides = [1, 1]} : vector<8x384xf32> to vector<8x128xf32>
    %92 = vector.extract_strided_slice %70 {offsets = [0, 256], sizes = [8, 128], strides = [1, 1]} : vector<8x768xf32> to vector<8x128xf32>
    %93 = arith.mulf %82, %92 : vector<8x128xf32>
    %94 = arith.addf %91, %93 : vector<8x128xf32>
    %95 = math.tanh %94 : vector<8x128xf32>
    %96 = vector.extract_strided_slice %72 {offsets = [0, 0], sizes = [8, 128], strides = [1, 1]} : vector<8x384xf32> to vector<8x128xf32>
    %97 = vector.extract_strided_slice %70 {offsets = [0, 384], sizes = [8, 128], strides = [1, 1]} : vector<8x768xf32> to vector<8x128xf32>
    %98 = arith.addf %96, %97 : vector<8x128xf32>
    %99 = arith.negf %98 : vector<8x128xf32>
    %100 = math.exp %99 : vector<8x128xf32>
    %cst_20 = arith.constant 1.000000e+00 : f32
    %101 = vector.broadcast %cst_20 : f32 to vector<8x128xf32>
    %102 = arith.addf %101, %100 : vector<8x128xf32>
    %103 = arith.divf %101, %102 : vector<8x128xf32>
    %104 = vector.extract_strided_slice %72 {offsets = [0, 128], sizes = [8, 128], strides = [1, 1]} : vector<8x384xf32> to vector<8x128xf32>
    %105 = vector.extract_strided_slice %70 {offsets = [0, 512], sizes = [8, 128], strides = [1, 1]} : vector<8x768xf32> to vector<8x128xf32>
    %106 = arith.addf %104, %105 : vector<8x128xf32>
    %107 = arith.negf %106 : vector<8x128xf32>
    %108 = math.exp %107 : vector<8x128xf32>
    %cst_21 = arith.constant 1.000000e+00 : f32
    %109 = vector.broadcast %cst_21 : f32 to vector<8x128xf32>
    %110 = arith.addf %109, %108 : vector<8x128xf32>
    %111 = arith.divf %109, %110 : vector<8x128xf32>
    %112 = vector.extract_strided_slice %72 {offsets = [0, 256], sizes = [8, 128], strides = [1, 1]} : vector<8x384xf32> to vector<8x128xf32>
    %113 = vector.extract_strided_slice %70 {offsets = [0, 640], sizes = [8, 128], strides = [1, 1]} : vector<8x768xf32> to vector<8x128xf32>
    %114 = arith.mulf %103, %113 : vector<8x128xf32>
    %115 = arith.addf %112, %114 : vector<8x128xf32>
    %116 = math.tanh %115 : vector<8x128xf32>
    %cst_22 = arith.constant 1.000000e+00 : f32
    %117 = vector.broadcast %cst_22 : f32 to vector<8x128xf32>
    %118 = arith.subf %117, %90 : vector<8x128xf32>
    %119 = arith.mulf %118, %95 : vector<8x128xf32>
    %120 = arith.mulf %90, %73 : vector<8x128xf32>
    %121 = arith.addf %119, %120 : vector<8x128xf32>
    %cst_23 = arith.constant 1.000000e+00 : f32
    %122 = vector.broadcast %cst_23 : f32 to vector<8x128xf32>
    %123 = arith.subf %122, %111 : vector<8x128xf32>
    %124 = arith.mulf %123, %116 : vector<8x128xf32>
    %125 = arith.mulf %111, %74 : vector<8x128xf32>
    %126 = arith.addf %124, %125 : vector<8x128xf32>
    %127 = tpu.concatenate %121, %126 in 1 : vector<8x128xf32>, vector<8x128xf32> -> vector<8x256xf32>
    %128 = arith.truncf %127 : vector<8x256xf32> to vector<8x256xbf16>
    %cst_24 = arith.constant dense<0.000000e+00> : vector<8x768xf32>
    %129 = tpu.matmul %128, %3, %cst_24 {dimension_numbers = #tpu.dot_dimension_numbers<[1], [0], [0], [1], [0, 0, 1, 1], [], []>} : vector<8x256xbf16>, vector<256x768xbf16>, vector<8x768xf32> -> vector<8x768xf32>
    %130 = vector.broadcast %4 : vector<1x768xf32> to vector<8x768xf32>
    %131 = arith.addf %129, %130 : vector<8x768xf32>
    %c16 = arith.constant 16 : index
    %c0_25 = arith.constant 0 : index
    %132 = vector.load %arg1[%c16, %c0_25] : memref<64x384xf32, #tpu.memory_space<vmem>>, vector<8x384xf32>
    %c40 = arith.constant 40 : index
    %c0_26 = arith.constant 0 : index
    %133 = vector.load %arg2[%c40, %c0_26] : memref<64x384xf32, #tpu.memory_space<vmem>>, vector<8x384xf32>
    %134 = vector.extract_strided_slice %127 {offsets = [0, 0], sizes = [8, 128], strides = [1, 1]} : vector<8x256xf32> to vector<8x128xf32>
    %135 = vector.extract_strided_slice %127 {offsets = [0, 128], sizes = [8, 128], strides = [1, 1]} : vector<8x256xf32> to vector<8x128xf32>
    %136 = vector.extract_strided_slice %132 {offsets = [0, 0], sizes = [8, 128], strides = [1, 1]} : vector<8x384xf32> to vector<8x128xf32>
    %137 = vector.extract_strided_slice %131 {offsets = [0, 0], sizes = [8, 128], strides = [1, 1]} : vector<8x768xf32> to vector<8x128xf32>
    %138 = arith.addf %136, %137 : vector<8x128xf32>
    %139 = arith.negf %138 : vector<8x128xf32>
    %140 = math.exp %139 : vector<8x128xf32>
    %cst_27 = arith.constant 1.000000e+00 : f32
    %141 = vector.broadcast %cst_27 : f32 to vector<8x128xf32>
    %142 = arith.addf %141, %140 : vector<8x128xf32>
    %143 = arith.divf %141, %142 : vector<8x128xf32>
    %144 = vector.extract_strided_slice %132 {offsets = [0, 128], sizes = [8, 128], strides = [1, 1]} : vector<8x384xf32> to vector<8x128xf32>
    %145 = vector.extract_strided_slice %131 {offsets = [0, 128], sizes = [8, 128], strides = [1, 1]} : vector<8x768xf32> to vector<8x128xf32>
    %146 = arith.addf %144, %145 : vector<8x128xf32>
    %147 = arith.negf %146 : vector<8x128xf32>
    %148 = math.exp %147 : vector<8x128xf32>
    %cst_28 = arith.constant 1.000000e+00 : f32
    %149 = vector.broadcast %cst_28 : f32 to vector<8x128xf32>
    %150 = arith.addf %149, %148 : vector<8x128xf32>
    %151 = arith.divf %149, %150 : vector<8x128xf32>
    %152 = vector.extract_strided_slice %132 {offsets = [0, 256], sizes = [8, 128], strides = [1, 1]} : vector<8x384xf32> to vector<8x128xf32>
    %153 = vector.extract_strided_slice %131 {offsets = [0, 256], sizes = [8, 128], strides = [1, 1]} : vector<8x768xf32> to vector<8x128xf32>
    %154 = arith.mulf %143, %153 : vector<8x128xf32>
    %155 = arith.addf %152, %154 : vector<8x128xf32>
    %156 = math.tanh %155 : vector<8x128xf32>
    %157 = vector.extract_strided_slice %133 {offsets = [0, 0], sizes = [8, 128], strides = [1, 1]} : vector<8x384xf32> to vector<8x128xf32>
    %158 = vector.extract_strided_slice %131 {offsets = [0, 384], sizes = [8, 128], strides = [1, 1]} : vector<8x768xf32> to vector<8x128xf32>
    %159 = arith.addf %157, %158 : vector<8x128xf32>
    %160 = arith.negf %159 : vector<8x128xf32>
    %161 = math.exp %160 : vector<8x128xf32>
    %cst_29 = arith.constant 1.000000e+00 : f32
    %162 = vector.broadcast %cst_29 : f32 to vector<8x128xf32>
    %163 = arith.addf %162, %161 : vector<8x128xf32>
    %164 = arith.divf %162, %163 : vector<8x128xf32>
    %165 = vector.extract_strided_slice %133 {offsets = [0, 128], sizes = [8, 128], strides = [1, 1]} : vector<8x384xf32> to vector<8x128xf32>
    %166 = vector.extract_strided_slice %131 {offsets = [0, 512], sizes = [8, 128], strides = [1, 1]} : vector<8x768xf32> to vector<8x128xf32>
    %167 = arith.addf %165, %166 : vector<8x128xf32>
    %168 = arith.negf %167 : vector<8x128xf32>
    %169 = math.exp %168 : vector<8x128xf32>
    %cst_30 = arith.constant 1.000000e+00 : f32
    %170 = vector.broadcast %cst_30 : f32 to vector<8x128xf32>
    %171 = arith.addf %170, %169 : vector<8x128xf32>
    %172 = arith.divf %170, %171 : vector<8x128xf32>
    %173 = vector.extract_strided_slice %133 {offsets = [0, 256], sizes = [8, 128], strides = [1, 1]} : vector<8x384xf32> to vector<8x128xf32>
    %174 = vector.extract_strided_slice %131 {offsets = [0, 640], sizes = [8, 128], strides = [1, 1]} : vector<8x768xf32> to vector<8x128xf32>
    %175 = arith.mulf %164, %174 : vector<8x128xf32>
    %176 = arith.addf %173, %175 : vector<8x128xf32>
    %177 = math.tanh %176 : vector<8x128xf32>
    %cst_31 = arith.constant 1.000000e+00 : f32
    %178 = vector.broadcast %cst_31 : f32 to vector<8x128xf32>
    %179 = arith.subf %178, %151 : vector<8x128xf32>
    %180 = arith.mulf %179, %156 : vector<8x128xf32>
    %181 = arith.mulf %151, %134 : vector<8x128xf32>
    %182 = arith.addf %180, %181 : vector<8x128xf32>
    %cst_32 = arith.constant 1.000000e+00 : f32
    %183 = vector.broadcast %cst_32 : f32 to vector<8x128xf32>
    %184 = arith.subf %183, %172 : vector<8x128xf32>
    %185 = arith.mulf %184, %177 : vector<8x128xf32>
    %186 = arith.mulf %172, %135 : vector<8x128xf32>
    %187 = arith.addf %185, %186 : vector<8x128xf32>
    %188 = tpu.concatenate %182, %187 in 1 : vector<8x128xf32>, vector<8x128xf32> -> vector<8x256xf32>
    %189 = arith.truncf %188 : vector<8x256xf32> to vector<8x256xbf16>
    %cst_33 = arith.constant dense<0.000000e+00> : vector<8x768xf32>
    %190 = tpu.matmul %189, %3, %cst_33 {dimension_numbers = #tpu.dot_dimension_numbers<[1], [0], [0], [1], [0, 0, 1, 1], [], []>} : vector<8x256xbf16>, vector<256x768xbf16>, vector<8x768xf32> -> vector<8x768xf32>
    %191 = vector.broadcast %4 : vector<1x768xf32> to vector<8x768xf32>
    %192 = arith.addf %190, %191 : vector<8x768xf32>
    %c24 = arith.constant 24 : index
    %c0_34 = arith.constant 0 : index
    %193 = vector.load %arg1[%c24, %c0_34] : memref<64x384xf32, #tpu.memory_space<vmem>>, vector<8x384xf32>
    %c32 = arith.constant 32 : index
    %c0_35 = arith.constant 0 : index
    %194 = vector.load %arg2[%c32, %c0_35] : memref<64x384xf32, #tpu.memory_space<vmem>>, vector<8x384xf32>
    %195 = vector.extract_strided_slice %188 {offsets = [0, 0], sizes = [8, 128], strides = [1, 1]} : vector<8x256xf32> to vector<8x128xf32>
    %196 = vector.extract_strided_slice %188 {offsets = [0, 128], sizes = [8, 128], strides = [1, 1]} : vector<8x256xf32> to vector<8x128xf32>
    %197 = vector.extract_strided_slice %193 {offsets = [0, 0], sizes = [8, 128], strides = [1, 1]} : vector<8x384xf32> to vector<8x128xf32>
    %198 = vector.extract_strided_slice %192 {offsets = [0, 0], sizes = [8, 128], strides = [1, 1]} : vector<8x768xf32> to vector<8x128xf32>
    %199 = arith.addf %197, %198 : vector<8x128xf32>
    %200 = arith.negf %199 : vector<8x128xf32>
    %201 = math.exp %200 : vector<8x128xf32>
    %cst_36 = arith.constant 1.000000e+00 : f32
    %202 = vector.broadcast %cst_36 : f32 to vector<8x128xf32>
    %203 = arith.addf %202, %201 : vector<8x128xf32>
    %204 = arith.divf %202, %203 : vector<8x128xf32>
    %205 = vector.extract_strided_slice %193 {offsets = [0, 128], sizes = [8, 128], strides = [1, 1]} : vector<8x384xf32> to vector<8x128xf32>
    %206 = vector.extract_strided_slice %192 {offsets = [0, 128], sizes = [8, 128], strides = [1, 1]} : vector<8x768xf32> to vector<8x128xf32>
    %207 = arith.addf %205, %206 : vector<8x128xf32>
    %208 = arith.negf %207 : vector<8x128xf32>
    %209 = math.exp %208 : vector<8x128xf32>
    %cst_37 = arith.constant 1.000000e+00 : f32
    %210 = vector.broadcast %cst_37 : f32 to vector<8x128xf32>
    %211 = arith.addf %210, %209 : vector<8x128xf32>
    %212 = arith.divf %210, %211 : vector<8x128xf32>
    %213 = vector.extract_strided_slice %193 {offsets = [0, 256], sizes = [8, 128], strides = [1, 1]} : vector<8x384xf32> to vector<8x128xf32>
    %214 = vector.extract_strided_slice %192 {offsets = [0, 256], sizes = [8, 128], strides = [1, 1]} : vector<8x768xf32> to vector<8x128xf32>
    %215 = arith.mulf %204, %214 : vector<8x128xf32>
    %216 = arith.addf %213, %215 : vector<8x128xf32>
    %217 = math.tanh %216 : vector<8x128xf32>
    %218 = vector.extract_strided_slice %194 {offsets = [0, 0], sizes = [8, 128], strides = [1, 1]} : vector<8x384xf32> to vector<8x128xf32>
    %219 = vector.extract_strided_slice %192 {offsets = [0, 384], sizes = [8, 128], strides = [1, 1]} : vector<8x768xf32> to vector<8x128xf32>
    %220 = arith.addf %218, %219 : vector<8x128xf32>
    %221 = arith.negf %220 : vector<8x128xf32>
    %222 = math.exp %221 : vector<8x128xf32>
    %cst_38 = arith.constant 1.000000e+00 : f32
    %223 = vector.broadcast %cst_38 : f32 to vector<8x128xf32>
    %224 = arith.addf %223, %222 : vector<8x128xf32>
    %225 = arith.divf %223, %224 : vector<8x128xf32>
    %226 = vector.extract_strided_slice %194 {offsets = [0, 128], sizes = [8, 128], strides = [1, 1]} : vector<8x384xf32> to vector<8x128xf32>
    %227 = vector.extract_strided_slice %192 {offsets = [0, 512], sizes = [8, 128], strides = [1, 1]} : vector<8x768xf32> to vector<8x128xf32>
    %228 = arith.addf %226, %227 : vector<8x128xf32>
    %229 = arith.negf %228 : vector<8x128xf32>
    %230 = math.exp %229 : vector<8x128xf32>
    %cst_39 = arith.constant 1.000000e+00 : f32
    %231 = vector.broadcast %cst_39 : f32 to vector<8x128xf32>
    %232 = arith.addf %231, %230 : vector<8x128xf32>
    %233 = arith.divf %231, %232 : vector<8x128xf32>
    %234 = vector.extract_strided_slice %194 {offsets = [0, 256], sizes = [8, 128], strides = [1, 1]} : vector<8x384xf32> to vector<8x128xf32>
    %235 = vector.extract_strided_slice %192 {offsets = [0, 640], sizes = [8, 128], strides = [1, 1]} : vector<8x768xf32> to vector<8x128xf32>
    %236 = arith.mulf %225, %235 : vector<8x128xf32>
    %237 = arith.addf %234, %236 : vector<8x128xf32>
    %238 = math.tanh %237 : vector<8x128xf32>
    %cst_40 = arith.constant 1.000000e+00 : f32
    %239 = vector.broadcast %cst_40 : f32 to vector<8x128xf32>
    %240 = arith.subf %239, %212 : vector<8x128xf32>
    %241 = arith.mulf %240, %217 : vector<8x128xf32>
    %242 = arith.mulf %212, %195 : vector<8x128xf32>
    %243 = arith.addf %241, %242 : vector<8x128xf32>
    %cst_41 = arith.constant 1.000000e+00 : f32
    %244 = vector.broadcast %cst_41 : f32 to vector<8x128xf32>
    %245 = arith.subf %244, %233 : vector<8x128xf32>
    %246 = arith.mulf %245, %238 : vector<8x128xf32>
    %247 = arith.mulf %233, %196 : vector<8x128xf32>
    %248 = arith.addf %246, %247 : vector<8x128xf32>
    %249 = tpu.concatenate %243, %248 in 1 : vector<8x128xf32>, vector<8x128xf32> -> vector<8x256xf32>
    %250 = arith.truncf %249 : vector<8x256xf32> to vector<8x256xbf16>
    %cst_42 = arith.constant dense<0.000000e+00> : vector<8x768xf32>
    %251 = tpu.matmul %250, %3, %cst_42 {dimension_numbers = #tpu.dot_dimension_numbers<[1], [0], [0], [1], [0, 0, 1, 1], [], []>} : vector<8x256xbf16>, vector<256x768xbf16>, vector<8x768xf32> -> vector<8x768xf32>
    %252 = vector.broadcast %4 : vector<1x768xf32> to vector<8x768xf32>
    %253 = arith.addf %251, %252 : vector<8x768xf32>
    %c32_43 = arith.constant 32 : index
    %c0_44 = arith.constant 0 : index
    %254 = vector.load %arg1[%c32_43, %c0_44] : memref<64x384xf32, #tpu.memory_space<vmem>>, vector<8x384xf32>
    %c24_45 = arith.constant 24 : index
    %c0_46 = arith.constant 0 : index
    %255 = vector.load %arg2[%c24_45, %c0_46] : memref<64x384xf32, #tpu.memory_space<vmem>>, vector<8x384xf32>
    %256 = vector.extract_strided_slice %249 {offsets = [0, 0], sizes = [8, 128], strides = [1, 1]} : vector<8x256xf32> to vector<8x128xf32>
    %257 = vector.extract_strided_slice %249 {offsets = [0, 128], sizes = [8, 128], strides = [1, 1]} : vector<8x256xf32> to vector<8x128xf32>
    %258 = vector.extract_strided_slice %254 {offsets = [0, 0], sizes = [8, 128], strides = [1, 1]} : vector<8x384xf32> to vector<8x128xf32>
    %259 = vector.extract_strided_slice %253 {offsets = [0, 0], sizes = [8, 128], strides = [1, 1]} : vector<8x768xf32> to vector<8x128xf32>
    %260 = arith.addf %258, %259 : vector<8x128xf32>
    %261 = arith.negf %260 : vector<8x128xf32>
    %262 = math.exp %261 : vector<8x128xf32>
    %cst_47 = arith.constant 1.000000e+00 : f32
    %263 = vector.broadcast %cst_47 : f32 to vector<8x128xf32>
    %264 = arith.addf %263, %262 : vector<8x128xf32>
    %265 = arith.divf %263, %264 : vector<8x128xf32>
    %266 = vector.extract_strided_slice %254 {offsets = [0, 128], sizes = [8, 128], strides = [1, 1]} : vector<8x384xf32> to vector<8x128xf32>
    %267 = vector.extract_strided_slice %253 {offsets = [0, 128], sizes = [8, 128], strides = [1, 1]} : vector<8x768xf32> to vector<8x128xf32>
    %268 = arith.addf %266, %267 : vector<8x128xf32>
    %269 = arith.negf %268 : vector<8x128xf32>
    %270 = math.exp %269 : vector<8x128xf32>
    %cst_48 = arith.constant 1.000000e+00 : f32
    %271 = vector.broadcast %cst_48 : f32 to vector<8x128xf32>
    %272 = arith.addf %271, %270 : vector<8x128xf32>
    %273 = arith.divf %271, %272 : vector<8x128xf32>
    %274 = vector.extract_strided_slice %254 {offsets = [0, 256], sizes = [8, 128], strides = [1, 1]} : vector<8x384xf32> to vector<8x128xf32>
    %275 = vector.extract_strided_slice %253 {offsets = [0, 256], sizes = [8, 128], strides = [1, 1]} : vector<8x768xf32> to vector<8x128xf32>
    %276 = arith.mulf %265, %275 : vector<8x128xf32>
    %277 = arith.addf %274, %276 : vector<8x128xf32>
    %278 = math.tanh %277 : vector<8x128xf32>
    %279 = vector.extract_strided_slice %255 {offsets = [0, 0], sizes = [8, 128], strides = [1, 1]} : vector<8x384xf32> to vector<8x128xf32>
    %280 = vector.extract_strided_slice %253 {offsets = [0, 384], sizes = [8, 128], strides = [1, 1]} : vector<8x768xf32> to vector<8x128xf32>
    %281 = arith.addf %279, %280 : vector<8x128xf32>
    %282 = arith.negf %281 : vector<8x128xf32>
    %283 = math.exp %282 : vector<8x128xf32>
    %cst_49 = arith.constant 1.000000e+00 : f32
    %284 = vector.broadcast %cst_49 : f32 to vector<8x128xf32>
    %285 = arith.addf %284, %283 : vector<8x128xf32>
    %286 = arith.divf %284, %285 : vector<8x128xf32>
    %287 = vector.extract_strided_slice %255 {offsets = [0, 128], sizes = [8, 128], strides = [1, 1]} : vector<8x384xf32> to vector<8x128xf32>
    %288 = vector.extract_strided_slice %253 {offsets = [0, 512], sizes = [8, 128], strides = [1, 1]} : vector<8x768xf32> to vector<8x128xf32>
    %289 = arith.addf %287, %288 : vector<8x128xf32>
    %290 = arith.negf %289 : vector<8x128xf32>
    %291 = math.exp %290 : vector<8x128xf32>
    %cst_50 = arith.constant 1.000000e+00 : f32
    %292 = vector.broadcast %cst_50 : f32 to vector<8x128xf32>
    %293 = arith.addf %292, %291 : vector<8x128xf32>
    %294 = arith.divf %292, %293 : vector<8x128xf32>
    %295 = vector.extract_strided_slice %255 {offsets = [0, 256], sizes = [8, 128], strides = [1, 1]} : vector<8x384xf32> to vector<8x128xf32>
    %296 = vector.extract_strided_slice %253 {offsets = [0, 640], sizes = [8, 128], strides = [1, 1]} : vector<8x768xf32> to vector<8x128xf32>
    %297 = arith.mulf %286, %296 : vector<8x128xf32>
    %298 = arith.addf %295, %297 : vector<8x128xf32>
    %299 = math.tanh %298 : vector<8x128xf32>
    %cst_51 = arith.constant 1.000000e+00 : f32
    %300 = vector.broadcast %cst_51 : f32 to vector<8x128xf32>
    %301 = arith.subf %300, %273 : vector<8x128xf32>
    %302 = arith.mulf %301, %278 : vector<8x128xf32>
    %303 = arith.mulf %273, %256 : vector<8x128xf32>
    %304 = arith.addf %302, %303 : vector<8x128xf32>
    %cst_52 = arith.constant 1.000000e+00 : f32
    %305 = vector.broadcast %cst_52 : f32 to vector<8x128xf32>
    %306 = arith.subf %305, %294 : vector<8x128xf32>
    %307 = arith.mulf %306, %299 : vector<8x128xf32>
    %308 = arith.mulf %294, %257 : vector<8x128xf32>
    %309 = arith.addf %307, %308 : vector<8x128xf32>
    %310 = tpu.concatenate %304, %309 in 1 : vector<8x128xf32>, vector<8x128xf32> -> vector<8x256xf32>
    %311 = arith.truncf %310 : vector<8x256xf32> to vector<8x256xbf16>
    %cst_53 = arith.constant dense<0.000000e+00> : vector<8x768xf32>
    %312 = tpu.matmul %311, %3, %cst_53 {dimension_numbers = #tpu.dot_dimension_numbers<[1], [0], [0], [1], [0, 0, 1, 1], [], []>} : vector<8x256xbf16>, vector<256x768xbf16>, vector<8x768xf32> -> vector<8x768xf32>
    %313 = vector.broadcast %4 : vector<1x768xf32> to vector<8x768xf32>
    %314 = arith.addf %312, %313 : vector<8x768xf32>
    %c40_54 = arith.constant 40 : index
    %c0_55 = arith.constant 0 : index
    %315 = vector.load %arg1[%c40_54, %c0_55] : memref<64x384xf32, #tpu.memory_space<vmem>>, vector<8x384xf32>
    %c16_56 = arith.constant 16 : index
    %c0_57 = arith.constant 0 : index
    %316 = vector.load %arg2[%c16_56, %c0_57] : memref<64x384xf32, #tpu.memory_space<vmem>>, vector<8x384xf32>
    %317 = vector.extract_strided_slice %310 {offsets = [0, 0], sizes = [8, 128], strides = [1, 1]} : vector<8x256xf32> to vector<8x128xf32>
    %318 = vector.extract_strided_slice %310 {offsets = [0, 128], sizes = [8, 128], strides = [1, 1]} : vector<8x256xf32> to vector<8x128xf32>
    %319 = vector.extract_strided_slice %315 {offsets = [0, 0], sizes = [8, 128], strides = [1, 1]} : vector<8x384xf32> to vector<8x128xf32>
    %320 = vector.extract_strided_slice %314 {offsets = [0, 0], sizes = [8, 128], strides = [1, 1]} : vector<8x768xf32> to vector<8x128xf32>
    %321 = arith.addf %319, %320 : vector<8x128xf32>
    %322 = arith.negf %321 : vector<8x128xf32>
    %323 = math.exp %322 : vector<8x128xf32>
    %cst_58 = arith.constant 1.000000e+00 : f32
    %324 = vector.broadcast %cst_58 : f32 to vector<8x128xf32>
    %325 = arith.addf %324, %323 : vector<8x128xf32>
    %326 = arith.divf %324, %325 : vector<8x128xf32>
    %327 = vector.extract_strided_slice %315 {offsets = [0, 128], sizes = [8, 128], strides = [1, 1]} : vector<8x384xf32> to vector<8x128xf32>
    %328 = vector.extract_strided_slice %314 {offsets = [0, 128], sizes = [8, 128], strides = [1, 1]} : vector<8x768xf32> to vector<8x128xf32>
    %329 = arith.addf %327, %328 : vector<8x128xf32>
    %330 = arith.negf %329 : vector<8x128xf32>
    %331 = math.exp %330 : vector<8x128xf32>
    %cst_59 = arith.constant 1.000000e+00 : f32
    %332 = vector.broadcast %cst_59 : f32 to vector<8x128xf32>
    %333 = arith.addf %332, %331 : vector<8x128xf32>
    %334 = arith.divf %332, %333 : vector<8x128xf32>
    %335 = vector.extract_strided_slice %315 {offsets = [0, 256], sizes = [8, 128], strides = [1, 1]} : vector<8x384xf32> to vector<8x128xf32>
    %336 = vector.extract_strided_slice %314 {offsets = [0, 256], sizes = [8, 128], strides = [1, 1]} : vector<8x768xf32> to vector<8x128xf32>
    %337 = arith.mulf %326, %336 : vector<8x128xf32>
    %338 = arith.addf %335, %337 : vector<8x128xf32>
    %339 = math.tanh %338 : vector<8x128xf32>
    %340 = vector.extract_strided_slice %316 {offsets = [0, 0], sizes = [8, 128], strides = [1, 1]} : vector<8x384xf32> to vector<8x128xf32>
    %341 = vector.extract_strided_slice %314 {offsets = [0, 384], sizes = [8, 128], strides = [1, 1]} : vector<8x768xf32> to vector<8x128xf32>
    %342 = arith.addf %340, %341 : vector<8x128xf32>
    %343 = arith.negf %342 : vector<8x128xf32>
    %344 = math.exp %343 : vector<8x128xf32>
    %cst_60 = arith.constant 1.000000e+00 : f32
    %345 = vector.broadcast %cst_60 : f32 to vector<8x128xf32>
    %346 = arith.addf %345, %344 : vector<8x128xf32>
    %347 = arith.divf %345, %346 : vector<8x128xf32>
    %348 = vector.extract_strided_slice %316 {offsets = [0, 128], sizes = [8, 128], strides = [1, 1]} : vector<8x384xf32> to vector<8x128xf32>
    %349 = vector.extract_strided_slice %314 {offsets = [0, 512], sizes = [8, 128], strides = [1, 1]} : vector<8x768xf32> to vector<8x128xf32>
    %350 = arith.addf %348, %349 : vector<8x128xf32>
    %351 = arith.negf %350 : vector<8x128xf32>
    %352 = math.exp %351 : vector<8x128xf32>
    %cst_61 = arith.constant 1.000000e+00 : f32
    %353 = vector.broadcast %cst_61 : f32 to vector<8x128xf32>
    %354 = arith.addf %353, %352 : vector<8x128xf32>
    %355 = arith.divf %353, %354 : vector<8x128xf32>
    %356 = vector.extract_strided_slice %316 {offsets = [0, 256], sizes = [8, 128], strides = [1, 1]} : vector<8x384xf32> to vector<8x128xf32>
    %357 = vector.extract_strided_slice %314 {offsets = [0, 640], sizes = [8, 128], strides = [1, 1]} : vector<8x768xf32> to vector<8x128xf32>
    %358 = arith.mulf %347, %357 : vector<8x128xf32>
    %359 = arith.addf %356, %358 : vector<8x128xf32>
    %360 = math.tanh %359 : vector<8x128xf32>
    %cst_62 = arith.constant 1.000000e+00 : f32
    %361 = vector.broadcast %cst_62 : f32 to vector<8x128xf32>
    %362 = arith.subf %361, %334 : vector<8x128xf32>
    %363 = arith.mulf %362, %339 : vector<8x128xf32>
    %364 = arith.mulf %334, %317 : vector<8x128xf32>
    %365 = arith.addf %363, %364 : vector<8x128xf32>
    %cst_63 = arith.constant 1.000000e+00 : f32
    %366 = vector.broadcast %cst_63 : f32 to vector<8x128xf32>
    %367 = arith.subf %366, %355 : vector<8x128xf32>
    %368 = arith.mulf %367, %360 : vector<8x128xf32>
    %369 = arith.mulf %355, %318 : vector<8x128xf32>
    %370 = arith.addf %368, %369 : vector<8x128xf32>
    %371 = tpu.concatenate %365, %370 in 1 : vector<8x128xf32>, vector<8x128xf32> -> vector<8x256xf32>
    %372 = arith.truncf %371 : vector<8x256xf32> to vector<8x256xbf16>
    %cst_64 = arith.constant dense<0.000000e+00> : vector<8x768xf32>
    %373 = tpu.matmul %372, %3, %cst_64 {dimension_numbers = #tpu.dot_dimension_numbers<[1], [0], [0], [1], [0, 0, 1, 1], [], []>} : vector<8x256xbf16>, vector<256x768xbf16>, vector<8x768xf32> -> vector<8x768xf32>
    %374 = vector.broadcast %4 : vector<1x768xf32> to vector<8x768xf32>
    %375 = arith.addf %373, %374 : vector<8x768xf32>
    %c48_65 = arith.constant 48 : index
    %c0_66 = arith.constant 0 : index
    %376 = vector.load %arg1[%c48_65, %c0_66] : memref<64x384xf32, #tpu.memory_space<vmem>>, vector<8x384xf32>
    %c8_67 = arith.constant 8 : index
    %c0_68 = arith.constant 0 : index
    %377 = vector.load %arg2[%c8_67, %c0_68] : memref<64x384xf32, #tpu.memory_space<vmem>>, vector<8x384xf32>
    %378 = vector.extract_strided_slice %371 {offsets = [0, 0], sizes = [8, 128], strides = [1, 1]} : vector<8x256xf32> to vector<8x128xf32>
    %379 = vector.extract_strided_slice %371 {offsets = [0, 128], sizes = [8, 128], strides = [1, 1]} : vector<8x256xf32> to vector<8x128xf32>
    %380 = vector.extract_strided_slice %376 {offsets = [0, 0], sizes = [8, 128], strides = [1, 1]} : vector<8x384xf32> to vector<8x128xf32>
    %381 = vector.extract_strided_slice %375 {offsets = [0, 0], sizes = [8, 128], strides = [1, 1]} : vector<8x768xf32> to vector<8x128xf32>
    %382 = arith.addf %380, %381 : vector<8x128xf32>
    %383 = arith.negf %382 : vector<8x128xf32>
    %384 = math.exp %383 : vector<8x128xf32>
    %cst_69 = arith.constant 1.000000e+00 : f32
    %385 = vector.broadcast %cst_69 : f32 to vector<8x128xf32>
    %386 = arith.addf %385, %384 : vector<8x128xf32>
    %387 = arith.divf %385, %386 : vector<8x128xf32>
    %388 = vector.extract_strided_slice %376 {offsets = [0, 128], sizes = [8, 128], strides = [1, 1]} : vector<8x384xf32> to vector<8x128xf32>
    %389 = vector.extract_strided_slice %375 {offsets = [0, 128], sizes = [8, 128], strides = [1, 1]} : vector<8x768xf32> to vector<8x128xf32>
    %390 = arith.addf %388, %389 : vector<8x128xf32>
    %391 = arith.negf %390 : vector<8x128xf32>
    %392 = math.exp %391 : vector<8x128xf32>
    %cst_70 = arith.constant 1.000000e+00 : f32
    %393 = vector.broadcast %cst_70 : f32 to vector<8x128xf32>
    %394 = arith.addf %393, %392 : vector<8x128xf32>
    %395 = arith.divf %393, %394 : vector<8x128xf32>
    %396 = vector.extract_strided_slice %376 {offsets = [0, 256], sizes = [8, 128], strides = [1, 1]} : vector<8x384xf32> to vector<8x128xf32>
    %397 = vector.extract_strided_slice %375 {offsets = [0, 256], sizes = [8, 128], strides = [1, 1]} : vector<8x768xf32> to vector<8x128xf32>
    %398 = arith.mulf %387, %397 : vector<8x128xf32>
    %399 = arith.addf %396, %398 : vector<8x128xf32>
    %400 = math.tanh %399 : vector<8x128xf32>
    %401 = vector.extract_strided_slice %377 {offsets = [0, 0], sizes = [8, 128], strides = [1, 1]} : vector<8x384xf32> to vector<8x128xf32>
    %402 = vector.extract_strided_slice %375 {offsets = [0, 384], sizes = [8, 128], strides = [1, 1]} : vector<8x768xf32> to vector<8x128xf32>
    %403 = arith.addf %401, %402 : vector<8x128xf32>
    %404 = arith.negf %403 : vector<8x128xf32>
    %405 = math.exp %404 : vector<8x128xf32>
    %cst_71 = arith.constant 1.000000e+00 : f32
    %406 = vector.broadcast %cst_71 : f32 to vector<8x128xf32>
    %407 = arith.addf %406, %405 : vector<8x128xf32>
    %408 = arith.divf %406, %407 : vector<8x128xf32>
    %409 = vector.extract_strided_slice %377 {offsets = [0, 128], sizes = [8, 128], strides = [1, 1]} : vector<8x384xf32> to vector<8x128xf32>
    %410 = vector.extract_strided_slice %375 {offsets = [0, 512], sizes = [8, 128], strides = [1, 1]} : vector<8x768xf32> to vector<8x128xf32>
    %411 = arith.addf %409, %410 : vector<8x128xf32>
    %412 = arith.negf %411 : vector<8x128xf32>
    %413 = math.exp %412 : vector<8x128xf32>
    %cst_72 = arith.constant 1.000000e+00 : f32
    %414 = vector.broadcast %cst_72 : f32 to vector<8x128xf32>
    %415 = arith.addf %414, %413 : vector<8x128xf32>
    %416 = arith.divf %414, %415 : vector<8x128xf32>
    %417 = vector.extract_strided_slice %377 {offsets = [0, 256], sizes = [8, 128], strides = [1, 1]} : vector<8x384xf32> to vector<8x128xf32>
    %418 = vector.extract_strided_slice %375 {offsets = [0, 640], sizes = [8, 128], strides = [1, 1]} : vector<8x768xf32> to vector<8x128xf32>
    %419 = arith.mulf %408, %418 : vector<8x128xf32>
    %420 = arith.addf %417, %419 : vector<8x128xf32>
    %421 = math.tanh %420 : vector<8x128xf32>
    %cst_73 = arith.constant 1.000000e+00 : f32
    %422 = vector.broadcast %cst_73 : f32 to vector<8x128xf32>
    %423 = arith.subf %422, %395 : vector<8x128xf32>
    %424 = arith.mulf %423, %400 : vector<8x128xf32>
    %425 = arith.mulf %395, %378 : vector<8x128xf32>
    %426 = arith.addf %424, %425 : vector<8x128xf32>
    %cst_74 = arith.constant 1.000000e+00 : f32
    %427 = vector.broadcast %cst_74 : f32 to vector<8x128xf32>
    %428 = arith.subf %427, %416 : vector<8x128xf32>
    %429 = arith.mulf %428, %421 : vector<8x128xf32>
    %430 = arith.mulf %416, %379 : vector<8x128xf32>
    %431 = arith.addf %429, %430 : vector<8x128xf32>
    %432 = tpu.concatenate %426, %431 in 1 : vector<8x128xf32>, vector<8x128xf32> -> vector<8x256xf32>
    %433 = arith.truncf %432 : vector<8x256xf32> to vector<8x256xbf16>
    %cst_75 = arith.constant dense<0.000000e+00> : vector<8x768xf32>
    %434 = tpu.matmul %433, %3, %cst_75 {dimension_numbers = #tpu.dot_dimension_numbers<[1], [0], [0], [1], [0, 0, 1, 1], [], []>} : vector<8x256xbf16>, vector<256x768xbf16>, vector<8x768xf32> -> vector<8x768xf32>
    %435 = vector.broadcast %4 : vector<1x768xf32> to vector<8x768xf32>
    %436 = arith.addf %434, %435 : vector<8x768xf32>
    %c56_76 = arith.constant 56 : index
    %c0_77 = arith.constant 0 : index
    %437 = vector.load %arg1[%c56_76, %c0_77] : memref<64x384xf32, #tpu.memory_space<vmem>>, vector<8x384xf32>
    %c0_78 = arith.constant 0 : index
    %c0_79 = arith.constant 0 : index
    %438 = vector.load %arg2[%c0_78, %c0_79] : memref<64x384xf32, #tpu.memory_space<vmem>>, vector<8x384xf32>
    %439 = vector.extract_strided_slice %432 {offsets = [0, 0], sizes = [8, 128], strides = [1, 1]} : vector<8x256xf32> to vector<8x128xf32>
    %440 = vector.extract_strided_slice %432 {offsets = [0, 128], sizes = [8, 128], strides = [1, 1]} : vector<8x256xf32> to vector<8x128xf32>
    %441 = vector.extract_strided_slice %437 {offsets = [0, 0], sizes = [8, 128], strides = [1, 1]} : vector<8x384xf32> to vector<8x128xf32>
    %442 = vector.extract_strided_slice %436 {offsets = [0, 0], sizes = [8, 128], strides = [1, 1]} : vector<8x768xf32> to vector<8x128xf32>
    %443 = arith.addf %441, %442 : vector<8x128xf32>
    %444 = arith.negf %443 : vector<8x128xf32>
    %445 = math.exp %444 : vector<8x128xf32>
    %cst_80 = arith.constant 1.000000e+00 : f32
    %446 = vector.broadcast %cst_80 : f32 to vector<8x128xf32>
    %447 = arith.addf %446, %445 : vector<8x128xf32>
    %448 = arith.divf %446, %447 : vector<8x128xf32>
    %449 = vector.extract_strided_slice %437 {offsets = [0, 128], sizes = [8, 128], strides = [1, 1]} : vector<8x384xf32> to vector<8x128xf32>
    %450 = vector.extract_strided_slice %436 {offsets = [0, 128], sizes = [8, 128], strides = [1, 1]} : vector<8x768xf32> to vector<8x128xf32>
    %451 = arith.addf %449, %450 : vector<8x128xf32>
    %452 = arith.negf %451 : vector<8x128xf32>
    %453 = math.exp %452 : vector<8x128xf32>
    %cst_81 = arith.constant 1.000000e+00 : f32
    %454 = vector.broadcast %cst_81 : f32 to vector<8x128xf32>
    %455 = arith.addf %454, %453 : vector<8x128xf32>
    %456 = arith.divf %454, %455 : vector<8x128xf32>
    %457 = vector.extract_strided_slice %437 {offsets = [0, 256], sizes = [8, 128], strides = [1, 1]} : vector<8x384xf32> to vector<8x128xf32>
    %458 = vector.extract_strided_slice %436 {offsets = [0, 256], sizes = [8, 128], strides = [1, 1]} : vector<8x768xf32> to vector<8x128xf32>
    %459 = arith.mulf %448, %458 : vector<8x128xf32>
    %460 = arith.addf %457, %459 : vector<8x128xf32>
    %461 = math.tanh %460 : vector<8x128xf32>
    %462 = vector.extract_strided_slice %438 {offsets = [0, 0], sizes = [8, 128], strides = [1, 1]} : vector<8x384xf32> to vector<8x128xf32>
    %463 = vector.extract_strided_slice %436 {offsets = [0, 384], sizes = [8, 128], strides = [1, 1]} : vector<8x768xf32> to vector<8x128xf32>
    %464 = arith.addf %462, %463 : vector<8x128xf32>
    %465 = arith.negf %464 : vector<8x128xf32>
    %466 = math.exp %465 : vector<8x128xf32>
    %cst_82 = arith.constant 1.000000e+00 : f32
    %467 = vector.broadcast %cst_82 : f32 to vector<8x128xf32>
    %468 = arith.addf %467, %466 : vector<8x128xf32>
    %469 = arith.divf %467, %468 : vector<8x128xf32>
    %470 = vector.extract_strided_slice %438 {offsets = [0, 128], sizes = [8, 128], strides = [1, 1]} : vector<8x384xf32> to vector<8x128xf32>
    %471 = vector.extract_strided_slice %436 {offsets = [0, 512], sizes = [8, 128], strides = [1, 1]} : vector<8x768xf32> to vector<8x128xf32>
    %472 = arith.addf %470, %471 : vector<8x128xf32>
    %473 = arith.negf %472 : vector<8x128xf32>
    %474 = math.exp %473 : vector<8x128xf32>
    %cst_83 = arith.constant 1.000000e+00 : f32
    %475 = vector.broadcast %cst_83 : f32 to vector<8x128xf32>
    %476 = arith.addf %475, %474 : vector<8x128xf32>
    %477 = arith.divf %475, %476 : vector<8x128xf32>
    %478 = vector.extract_strided_slice %438 {offsets = [0, 256], sizes = [8, 128], strides = [1, 1]} : vector<8x384xf32> to vector<8x128xf32>
    %479 = vector.extract_strided_slice %436 {offsets = [0, 640], sizes = [8, 128], strides = [1, 1]} : vector<8x768xf32> to vector<8x128xf32>
    %480 = arith.mulf %469, %479 : vector<8x128xf32>
    %481 = arith.addf %478, %480 : vector<8x128xf32>
    %482 = math.tanh %481 : vector<8x128xf32>
    %cst_84 = arith.constant 1.000000e+00 : f32
    %483 = vector.broadcast %cst_84 : f32 to vector<8x128xf32>
    %484 = arith.subf %483, %456 : vector<8x128xf32>
    %485 = arith.mulf %484, %461 : vector<8x128xf32>
    %486 = arith.mulf %456, %439 : vector<8x128xf32>
    %487 = arith.addf %485, %486 : vector<8x128xf32>
    %cst_85 = arith.constant 1.000000e+00 : f32
    %488 = vector.broadcast %cst_85 : f32 to vector<8x128xf32>
    %489 = arith.subf %488, %477 : vector<8x128xf32>
    %490 = arith.mulf %489, %482 : vector<8x128xf32>
    %491 = arith.mulf %477, %440 : vector<8x128xf32>
    %492 = arith.addf %490, %491 : vector<8x128xf32>
    %493 = tpu.concatenate %487, %492 in 1 : vector<8x128xf32>, vector<8x128xf32> -> vector<8x256xf32>
    %c0_86 = arith.constant 0 : index
    %c0_87 = arith.constant 0 : index
    %494 = vector.load %arg8[%c0_86, %c0_87] : memref<8x256xf32, #tpu.memory_space<vmem>>, vector<8x256xf32>
    tpu.vector_store %arg8[%c0_86, %c0_87], %493 {strides = array<i32>} : memref<8x256xf32, #tpu.memory_space<vmem>>, vector<8x256xf32>,
    %c0_i32_88 = arith.constant 0 : i32
    %495 = arith.cmpi eq, %arg0, %c0_i32_88 : i32
    %496 = arith.extui %495 : i1 to i32
    %c0_i32_89 = arith.constant 0 : i32
    %497 = arith.cmpi ne, %496, %c0_i32_89 : i32
    scf.if %497 {
      %c0_90 = arith.constant 0 : index
      %c0_91 = arith.constant 0 : index
      %498 = vector.load %arg5[%c0_90, %c0_91] : memref<256x4xf32, #tpu.memory_space<vmem>>, vector<256x4xf32>
      %cst_92 = arith.constant dense<0.000000e+00> : vector<8x4xf32>
      %499 = tpu.matmul %493, %498, %cst_92 {dimension_numbers = #tpu.dot_dimension_numbers<[1], [0], [0], [1], [0, 0, 1, 1], [], []>} : vector<8x256xf32>, vector<256x4xf32>, vector<8x4xf32> -> vector<8x4xf32>
      %c0_93 = arith.constant 0 : index
      %c0_94 = arith.constant 0 : index
      %500 = vector.load %arg6[%c0_93, %c0_94] : memref<1x4xf32, #tpu.memory_space<vmem>>, vector<1x4xf32>
      %501 = vector.broadcast %500 : vector<1x4xf32> to vector<8x4xf32>
      %502 = arith.addf %499, %501 : vector<8x4xf32>
      %c0_95 = arith.constant 0 : index
      %c0_96 = arith.constant 0 : index
      %503 = vector.load %arg7[%c0_95, %c0_96] : memref<8x4xf32, #tpu.memory_space<vmem>>, vector<8x4xf32>
      tpu.vector_store %arg7[%c0_95, %c0_96], %502 {strides = array<i32>} : memref<8x4xf32, #tpu.memory_space<vmem>>, vector<8x4xf32>,
    } else {
    }
    return
  }
  func.func @transform_0(%arg0: i32) -> (i32, i32) {
    %c0_i32 = arith.constant 0 : i32
    %c0_i32_0 = arith.constant 0 : i32
    return %arg0, %c0_i32 : i32, i32
  }
  func.func @transform_1(%arg0: i32) -> (i32, i32) {
    %c0_i32 = arith.constant 0 : i32
    %0 = arith.subi %c0_i32, %arg0 : i32
    %c1_i32 = arith.constant 1 : i32
    %c0_i32_0 = arith.constant 0 : i32
    return %0, %c1_i32 : i32, i32
  }
  func.func @transform_2(%arg0: i32) -> (i32, i32) {
    %c0_i32 = arith.constant 0 : i32
    %c0_i32_0 = arith.constant 0 : i32
    %c0_i32_1 = arith.constant 0 : i32
    return %c0_i32, %c0_i32_0 : i32, i32
  }
  func.func @transform_3(%arg0: i32) -> (i32, i32) {
    %c0_i32 = arith.constant 0 : i32
    %c0_i32_0 = arith.constant 0 : i32
    %c0_i32_1 = arith.constant 0 : i32
    return %c0_i32, %c0_i32_0 : i32, i32
  }
  func.func @transform_4(%arg0: i32) -> (i32, i32) {
    %c0_i32 = arith.constant 0 : i32
    %c0_i32_0 = arith.constant 0 : i32
    %c0_i32_1 = arith.constant 0 : i32
    return %c0_i32, %c0_i32_0 : i32, i32
  }
  func.func @transform_5(%arg0: i32) -> (i32, i32) {
    %c0_i32 = arith.constant 0 : i32
    %c0_i32_0 = arith.constant 0 : i32
    %c0_i32_1 = arith.constant 0 : i32
    return %c0_i32, %c0_i32_0 : i32, i32
  }
  func.func @transform_6(%arg0: i32) -> (i32, i32) {
    %c0_i32 = arith.constant 0 : i32
    %c0_i32_0 = arith.constant 0 : i32
    %c0_i32_1 = arith.constant 0 : i32
    return %c0_i32, %c0_i32_0 : i32, i32
  }
}

</mosaic_0001>

<bundles_post_ra>
// kernel: model_forward.2
= control target key start
LH: loop header
LB: loop body
LE: loop exit
PB: predicated region body
PF: predicated region fallthrough
CT: control target
= control target key end

     0   :  { %s6321_s1 = inlined_call_operand.vmem [shape: bf16[1024,768], index: 1, kind: input, shape index: {}]   ;;  %s6322_s0 = inlined_call_operand.vmem [shape: bf16[64,1024], index: 0, kind: input, shape index: {}]   ;;  %s6323_s2 = inlined_call_operand.vmem [shape: f32[1,768], index: 2, kind: input, shape index: {}]   ;;  %s6324_s3 = inlined_call_operand.vmem [shape: f32[64,768], index: 3, kind: output, shape index: {}]  }
   0x1   :  { %v3886_v0 = vld [vmem:[%s6321_s1 + $0x154] ss:$24 sps:$4 sm:$0xff]   ;;  %v3890_v2 = vld [vmem:[%s6321_s1 + $0x150] ss:$24 sps:$4 sm:$0xff]   ;;  %v3892_v4 = vld [vmem:[%s6321_s1 + $0x124] ss:$24 sps:$4 sm:$0xff]  }
   0x2   :  { %v3888_v1 = vld [vmem:[%s6321_s1 + $0x454] ss:$24 sps:$4 sm:$0xff]   ;;  %2542 = vmatprep.subr.bf16.mxu0 %v3886_v0  ;;  %v3891_v3 = vld [vmem:[%s6321_s1 + $0x450] ss:$24 sps:$4 sm:$0xff]   ;;  %v3894_v5 = vld [vmem:[%s6321_s1 + $0x424] ss:$24 sps:$4 sm:$0xff]  }
   0x3   :  { %2615 = vmatprep.subr.bf16.mxu1 %v3888_v1  ;;  %2543 = vmatpush1.bf16.msra.mxu0 %v3890_v2  ;;  %v3896_v6 = vld [vmem:[%s6321_s1 + $0x120] ss:$24 sps:$4 sm:$0xff]   ;;  %v3898_v8 = vld [vmem:[%s6321_s1 + $0xf4] ss:$24 sps:$4 sm:$0xff]   ;;  %v3902_v10 = vld [vmem:[%s6321_s1 + $0xf0] ss:$24 sps:$4 sm:$0xff]  }
   0x4   :  { %2616 = vmatpush1.bf16.msra.mxu1 %v3891_v3  ;;  %2544 = vmatprep.subr.bf16.mxu0 %v3892_v4  ;;  %v3897_v7 = vld [vmem:[%s6321_s1 + $0x420] ss:$24 sps:$4 sm:$0xff]   ;;  %v3900_v9 = vld [vmem:[%s6321_s1 + $0x3f4] ss:$24 sps:$4 sm:$0xff]   ;;  %v3903_v11 = vld [vmem:[%s6321_s1 + $0x3f0] ss:$24 sps:$4 sm:$0xff]  }
   0x5   :  { %2617 = vmatprep.subr.bf16.mxu1 %v3894_v5  ;;  %v3904_v12 = vld [vmem:[%s6321_s1 + $0xc4] ss:$24 sps:$4 sm:$0xff]   ;;  %v3908_v14 = vld [vmem:[%s6321_s1 + $0xc0] ss:$24 sps:$4 sm:$0xff]   ;;  %v3910_v16 = vld [vmem:[%s6321_s1 + $0x94] ss:$24 sps:$4 sm:$0xff]  }
   0x6   :  { %v3906_v13 = vld [vmem:[%s6321_s1 + $0x3c4] ss:$24 sps:$4 sm:$0xff]   ;;  %v3909_v15 = vld [vmem:[%s6321_s1 + $0x3c0] ss:$24 sps:$4 sm:$0xff]   ;;  %v3912_v17 = vld [vmem:[%s6321_s1 + $0x394] ss:$24 sps:$4 sm:$0xff]  }
   0x7   :  { %2545 = vmatpush1.bf16.msra.mxu0 %v3896_v6  ;;  %v3914_v18 = vld [vmem:[%s6321_s1 + $0x90] ss:$24 sps:$4 sm:$0xff]   ;;  %v3916_v20 = vld [vmem:[%s6321_s1 + $0x64] ss:$24 sps:$4 sm:$0xff]   ;;  %v3920_v22 = vld [vmem:[%s6321_s1 + $0x60] ss:$24 sps:$4 sm:$0xff]  }
   0x8   :  { %2618 = vmatpush1.bf16.msra.mxu1 %v3897_v7  ;;  %2546 = vmatprep.subr.bf16.mxu0 %v3898_v8  ;;  %v3915_v19 = vld [vmem:[%s6321_s1 + $0x390] ss:$24 sps:$4 sm:$0xff]   ;;  %v3918_v21 = vld [vmem:[%s6321_s1 + $0x364] ss:$24 sps:$4 sm:$0xff]   ;;  %v3921_v23 = vld [vmem:[%s6321_s1 + $0x360] ss:$24 sps:$4 sm:$0xff]  }
   0x9   :  { %2619 = vmatprep.subr.bf16.mxu1 %v3900_v9  ;;  %v3922_v24 = vld [vmem:[%s6321_s1 + $0x34] ss:$24 sps:$4 sm:$0xff]   ;;  %v3926_v26 = vld [vmem:[%s6321_s1 + $0x30] ss:$24 sps:$4 sm:$0xff]   ;;  %v3928_v28 = vld [vmem:[%s6321_s1 + $0x4] ss:$24 sps:$4 sm:$0xff]  }
   0xa   :  { %v3924_v25 = vld [vmem:[%s6321_s1 + $0x334] ss:$24 sps:$4 sm:$0xff]   ;;  %v3927_v27 = vld [vmem:[%s6321_s1 + $0x330] ss:$24 sps:$4 sm:$0xff]   ;;  %v3930_v29 = vld [vmem:[%s6321_s1 + $0x304] ss:$24 sps:$4 sm:$0xff]  }
   0xb   :  { %2547 = vmatpush1.bf16.msra.mxu0 %v3902_v10  ;;  %v3932_v30 = vld [vmem:[%s6321_s1] ss:$24 sps:$4 sm:$0xff]   ;;  %v3934_v32 = vld [vmem:[%s6321_s1 + $0x2d4] ss:$24 sps:$4 sm:$0xff]   ;;  %v3938_v34 = vld [vmem:[%s6321_s1 + $0x2d0] ss:$24 sps:$4 sm:$0xff]  }
   0xc   :  { %2620 = vmatpush1.bf16.msra.mxu1 %v3903_v11  ;;  %2548 = vmatprep.subr.bf16.mxu0 %v3904_v12  ;;  %v3933_v31 = vld [vmem:[%s6321_s1 + $0x300] ss:$24 sps:$4 sm:$0xff]   ;;  %v3936_v33 = vld [vmem:[%s6321_s1 + $0x5d4] ss:$24 sps:$4 sm:$0xff]   ;;  %v3939_v35 = vld [vmem:[%s6321_s1 + $0x5d0] ss:$24 sps:$4 sm:$0xff]  }
   0xd   :  { %2621 = vmatprep.subr.bf16.mxu1 %v3906_v13  ;;  %v3940_v36 = vld [vmem:[%s6321_s1 + $0x2a4] ss:$24 sps:$4 sm:$0xff]   ;;  %v3944_v38 = vld [vmem:[%s6321_s1 + $0x2a0] ss:$24 sps:$4 sm:$0xff]   ;;  %v3946_v40 = vld [vmem:[%s6321_s1 + $0x274] ss:$24 sps:$4 sm:$0xff]  }
   0xe   :  { %v3942_v37 = vld [vmem:[%s6321_s1 + $0x5a4] ss:$24 sps:$4 sm:$0xff]   ;;  %v3945_v39 = vld [vmem:[%s6321_s1 + $0x5a0] ss:$24 sps:$4 sm:$0xff]   ;;  %v3948_v41 = vld [vmem:[%s6321_s1 + $0x574] ss:$24 sps:$4 sm:$0xff]  }
   0xf   :  { %2549 = vmatpush1.bf16.msra.mxu0 %v3908_v14  ;;  %v3950_v42 = vld [vmem:[%s6321_s1 + $0x270] ss:$24 sps:$4 sm:$0xff]   ;;  %v3952_v44 = vld [vmem:[%s6321_s1 + $0x244] ss:$24 sps:$4 sm:$0xff]   ;;  %v3956_v46 = vld [vmem:[%s6321_s1 + $0x240] ss:$24 sps:$4 sm:$0xff]  }
  0x10   :  { %2622 = vmatpush1.bf16.msra.mxu1 %v3909_v15  ;;  %2550 = vmatprep.subr.bf16.mxu0 %v3910_v16  ;;  %v3951_v43 = vld [vmem:[%s6321_s1 + $0x570] ss:$24 sps:$4 sm:$0xff]   ;;  %v3954_v45 = vld [vmem:[%s6321_s1 + $0x544] ss:$24 sps:$4 sm:$0xff]   ;;  %v3957_v47 = vld [vmem:[%s6321_s1 + $0x540] ss:$24 sps:$4 sm:$0xff]  }
  0x11   :  { %2623 = vmatprep.subr.bf16.mxu1 %v3912_v17  ;;  %v14_v48 = vld [vmem:[%s6322_s0] sm:$0xff]  ;;  %v15_v50 = vld [vmem:[%s6322_s0 + $0x8] sm:$0xff] }
  0x12   :  { %v18_v49 = vld [vmem:[%s6322_s0 + $0x20] sm:$0xff]  ;;  %v19_v51 = vld [vmem:[%s6322_s0 + $0x28] sm:$0xff] }
  0x13   :  { %2551 = vmatpush1.bf16.msra.mxu0 %v3914_v18  ;;  %v3958_v52 = vld [vmem:[%s6321_s1 + $0x214] ss:$24 sps:$4 sm:$0xff]   ;;  %v4641_v53 = vcombine.high %v14_v48, %v18_v49  ;;  %v4643_v54 = vcombine.high %v15_v50, %v19_v51  ;;  %v3962_v56 = vld [vmem:[%s6321_s1 + $0x210] ss:$24 sps:$4 sm:$0xff]   ;;  %v3964_v58 = vld [vmem:[%s6321_s1 + $0x1e4] ss:$24 sps:$4 sm:$0xff]   ;;  %v4698_v8 = vcombine.low %v14_v48, %v18_v49  ;;  %v4700_v9 = vcombine.low %v15_v50, %v19_v51 }
  0x14   :  { %2624 = vmatpush1.bf16.msra.mxu1 %v3915_v19  ;;  %2552 = vmatprep.subr.bf16.mxu0 %v3916_v20  ;;  %v3960_v55 = vld [vmem:[%s6321_s1 + $0x514] ss:$24 sps:$4 sm:$0xff]   ;;  %v3963_v57 = vld [vmem:[%s6321_s1 + $0x510] ss:$24 sps:$4 sm:$0xff]   ;;  %v3966_v59 = vld [vmem:[%s6321_s1 + $0x4e4] ss:$24 sps:$4 sm:$0xff]  }
  0x15   :  { %2625 = vmatprep.subr.bf16.mxu1 %v3918_v21  ;;  %2574 = vmatprep.mubr.bf16.mxu0 %v4641_v53  ;;  %v3968_v60 = vld [vmem:[%s6321_s1 + $0x1e0] ss:$24 sps:$4 sm:$0xff]   ;;  %v3970_v62 = vld [vmem:[%s6321_s1 + $0x1b4] ss:$24 sps:$4 sm:$0xff]   ;;  %v3974_v0 = vld [vmem:[%s6321_s1 + $0x1b0] ss:$24 sps:$4 sm:$0xff]  }
  0x16   :  { %2647 = vmatprep.mubr.bf16.mxu1 %v4643_v54  ;;  %v3969_v61 = vld [vmem:[%s6321_s1 + $0x4e0] ss:$24 sps:$4 sm:$0xff]   ;;  %v3972_v63 = vld [vmem:[%s6321_s1 + $0x4b4] ss:$24 sps:$4 sm:$0xff]   ;;  %v3975_v1 = vld [vmem:[%s6321_s1 + $0x4b0] ss:$24 sps:$4 sm:$0xff]  }
  0x17   :  { %2553 = vmatpush1.bf16.msra.mxu0 %v3920_v22  ;;  %v3976_v2 = vld [vmem:[%s6321_s1 + $0x184] ss:$24 sps:$4 sm:$0xff]   ;;  %v3980_v4 = vld [vmem:[%s6321_s1 + $0x180] ss:$24 sps:$4 sm:$0xff]   ;;  %v3984_v6 = vld [vmem:[%s6321_s1 + $0x754] ss:$24 sps:$4 sm:$0xff]  }
  0x18   :  { %2626 = vmatpush1.bf16.msra.mxu1 %v3921_v23  ;;  %2554 = vmatprep.subr.bf16.mxu0 %v3922_v24  ;;  %v3978_v3 = vld [vmem:[%s6321_s1 + $0x484] ss:$24 sps:$4 sm:$0xff]   ;;  %v3981_v5 = vld [vmem:[%s6321_s1 + $0x480] ss:$24 sps:$4 sm:$0xff]   ;;  %v3987_v7 = vld [vmem:[%s6321_s1 + $0xa54] ss:$24 sps:$4 sm:$0xff]  }
  0x19   :  { %2627 = vmatprep.subr.bf16.mxu1 %v3924_v25  ;;  %v3982_v10 = vld [vmem:[%s6321_s1 + $0x750] ss:$24 sps:$4 sm:$0xff]   ;;  %v3990_v12 = vld [vmem:[%s6321_s1 + $0x724] ss:$24 sps:$4 sm:$0xff]   ;;  %v3988_v14 = vld [vmem:[%s6321_s1 + $0x720] ss:$24 sps:$4 sm:$0xff]  }
  0x1a   :  { %v3985_v11 = vld [vmem:[%s6321_s1 + $0xa50] ss:$24 sps:$4 sm:$0xff]   ;;  %v3993_v13 = vld [vmem:[%s6321_s1 + $0xa24] ss:$24 sps:$4 sm:$0xff]   ;;  %v3991_v15 = vld [vmem:[%s6321_s1 + $0xa20] ss:$24 sps:$4 sm:$0xff]  }
  0x1b   :  { %2555 = vmatpush1.bf16.msra.mxu0 %v3926_v26  ;;  %v3996_v16 = vld [vmem:[%s6321_s1 + $0x6f4] ss:$24 sps:$4 sm:$0xff]   ;;  %v22_v18 = vld [vmem:[%s6322_s0 + $0x40] sm:$0xff]  ;;  %v3994_v24 = vld [vmem:[%s6321_s1 + $0x6f0] ss:$24 sps:$4 sm:$0xff]  }
  0x1c   :  { %2628 = vmatpush1.bf16.msra.mxu1 %v3927_v27  ;;  %2556 = vmatprep.subr.bf16.mxu0 %v3928_v28  ;;  %v3999_v17 = vld [vmem:[%s6321_s1 + $0x9f4] ss:$24 sps:$4 sm:$0xff]   ;;  %v26_v19 = vld [vmem:[%s6322_s0 + $0x60] sm:$0xff]  ;;  %v3997_v25 = vld [vmem:[%s6321_s1 + $0x9f0] ss:$24 sps:$4 sm:$0xff]  }
  0x1d   :  { %2629 = vmatprep.subr.bf16.mxu1 %v3930_v29  ;;  %v23_v20 = vld [vmem:[%s6322_s0 + $0x48] sm:$0xff]  ;;  %v4737_v21 = vcombine.high %v22_v18, %v26_v19  ;;  %v4751_v26 = vcombine.low %v22_v18, %v26_v19  ;;  %v4002_v28 = vld [vmem:[%s6321_s1 + $0x6c4] ss:$24 sps:$4 sm:$0xff]   ;;  %v4012_v51 = vld [vmem:[%s6321_s1 + $0x660] ss:$24 sps:$4 sm:$0xff]  }
  0x1e   :  { %v27_v22 = vld [vmem:[%s6322_s0 + $0x68] sm:$0xff]  ;;  %v4005_v29 = vld [vmem:[%s6321_s1 + $0x9c4] ss:$24 sps:$4 sm:$0xff]  }
  0x1f   :  { %2557 = vmatpush1.bf16.msra.mxu0 %v3932_v30  ;;  %v4742_v23 = vcombine.high %v23_v20, %v27_v22  ;;  %v4753_v27 = vcombine.low %v23_v20, %v27_v22  ;;  %v4000_v30 = vld [vmem:[%s6321_s1 + $0x6c0] ss:$24 sps:$4 sm:$0xff]   ;;  %v39_v49 = vld [vmem:[%s6322_s0 + $0xc8] sm:$0xff] }
  0x20   :  { %2630 = vmatpush1.bf16.msra.mxu1 %v3933_v31  ;;  %2558 = vmatprep.subr.bf16.mxu0 %v3934_v32  ;;  %v4003_v31 = vld [vmem:[%s6321_s1 + $0x9c0] ss:$24 sps:$4 sm:$0xff]   ;;  %v43_v50 = vld [vmem:[%s6322_s0 + $0xe8] sm:$0xff] }
  0x21   :  { %2631 = vmatprep.subr.bf16.mxu1 %v3936_v33  ;;  %v30_v32 = vld [vmem:[%s6322_s0 + $0x80] sm:$0xff]  ;;  %v4044_v18 = vld [vmem:[%s6321_s1 + $0x874] ss:$24 sps:$4 sm:$0xff]   ;;  %v4042_v20 = vld [vmem:[%s6321_s1 + $0x870] ss:$24 sps:$4 sm:$0xff]  }
  0x22   :  { %v34_v33 = vld [vmem:[%s6322_s0 + $0xa0] sm:$0xff]  ;;  %v4047_v19 = vld [vmem:[%s6321_s1 + $0xb74] ss:$24 sps:$4 sm:$0xff]   ;;  %v4045_v22 = vld [vmem:[%s6321_s1 + $0xb70] ss:$24 sps:$4 sm:$0xff]  }
  0x23   :  { %2559 = vmatpush2.bf16.msra.mxu0 %v3938_v34  ;;  %v31_v34 = vld [vmem:[%s6322_s0 + $0x88] sm:$0xff] }
  0x24   :  { %2632 = vmatpush2.bf16.msra.mxu1 %v3939_v35  ;;  %2560 = vmatprep.subr.bf16.mxu0 %v3940_v36  ;;  %v35_v35 = vld [vmem:[%s6322_s0 + $0xa8] sm:$0xff] }
  0x25   :  { %2633 = vmatprep.subr.bf16.mxu1 %v3942_v37  ;;  %v4008_v36 = vld [vmem:[%s6321_s1 + $0x694] ss:$24 sps:$4 sm:$0xff]   ;;  %v4785_v37 = vcombine.high %v30_v32, %v34_v33 }
  0x27   :  { %2561 = vmatpush2.bf16.msra.mxu0 %v3944_v38  ;;  %v4787_v38 = vcombine.high %v31_v34, %v35_v35 }
  0x28   :  { %2634 = vmatpush2.bf16.msra.mxu1 %v3945_v39  ;;  %2562 = vmatprep.subr.bf16.mxu0 %v3946_v40  ;;  %v4011_v39 = vld [vmem:[%s6321_s1 + $0x994] ss:$24 sps:$4 sm:$0xff]   ;;  %v4006_v40 = vld [vmem:[%s6321_s1 + $0x690] ss:$24 sps:$4 sm:$0xff]  }
  0x29   :  { %2635 = vmatprep.subr.bf16.mxu1 %v3948_v41  ;;  %v4009_v41 = vld [vmem:[%s6321_s1 + $0x990] ss:$24 sps:$4 sm:$0xff]  }
  0x2b   :  { %2563 = vmatpush2.bf16.msra.mxu0 %v3950_v42  ;;  %v4800_v42 = vcombine.low %v30_v32, %v34_v33  ;;  %v4054_v32 = vld [vmem:[%s6321_s1 + $0x810] ss:$24 sps:$4 sm:$0xff]  }
  0x2c   :  { %2636 = vmatpush2.bf16.msra.mxu1 %v3951_v43  ;;  %2564 = vmatprep.subr.bf16.mxu0 %v3952_v44  ;;  %v4802_v43 = vcombine.low %v31_v34, %v35_v35  ;;  %v4014_v44 = vld [vmem:[%s6321_s1 + $0x664] ss:$24 sps:$4 sm:$0xff]   ;;  %v4057_v33 = vld [vmem:[%s6321_s1 + $0xb10] ss:$24 sps:$4 sm:$0xff]  }
  0x2d   :  { %2637 = vmatprep.subr.bf16.mxu1 %v3954_v45  ;;  %v4017_v45 = vld [vmem:[%s6321_s1 + $0x964] ss:$24 sps:$4 sm:$0xff]  }
  0x2e   :  { %v4062_v34 = vld [vmem:[%s6321_s1 + $0x7e4] ss:$24 sps:$4 sm:$0xff]  }
  0x2f   :  { %2565 = vmatpush2.bf16.msra.mxu0 %v3956_v46  ;;  %v38_v46 = vld [vmem:[%s6322_s0 + $0xc0] sm:$0xff] }
  0x30   :  { %2638 = vmatpush2.bf16.msra.mxu1 %v3957_v47  ;;  %2566 = vmatprep.subr.bf16.mxu0 %v3958_v52  ;;  %v42_v47 = vld [vmem:[%s6322_s0 + $0xe0] sm:$0xff] }
  0x31   :  { %2639 = vmatprep.subr.bf16.mxu1 %v3960_v55  ;;  %v4816_v48 = vcombine.high %v38_v46, %v42_v47  ;;  %v4015_v52 = vld [vmem:[%s6321_s1 + $0x960] ss:$24 sps:$4 sm:$0xff]   ;;  %v4832_v55 = vcombine.high %v39_v49, %v43_v50  ;;  %v4065_v35 = vld [vmem:[%s6321_s1 + $0xae4] ss:$24 sps:$4 sm:$0xff]  }
  0x33   :  { %2567 = vmatpush2.bf16.msra.mxu0 %v3962_v56  ;;  %v4020_v56 = vld [vmem:[%s6321_s1 + $0x634] ss:$24 sps:$4 sm:$0xff]  }
  0x34   :  { %2640 = vmatpush2.bf16.msra.mxu1 %v3963_v57  ;;  %2568 = vmatprep.subr.bf16.mxu0 %v3964_v58  ;;  %v4023_v57 = vld [vmem:[%s6321_s1 + $0x934] ss:$24 sps:$4 sm:$0xff]   ;;  %v4018_v58 = vld [vmem:[%s6321_s1 + $0x630] ss:$24 sps:$4 sm:$0xff]  }
  0x35   :  { %2641 = vmatprep.subr.bf16.mxu1 %v3966_v59  ;;  %v4021_v59 = vld [vmem:[%s6321_s1 + $0x930] ss:$24 sps:$4 sm:$0xff]  }
  0x37   :  { %2569 = vmatpush2.bf16.msra.mxu0 %v3968_v60  ;;  %v4848_v60 = vcombine.low %v38_v46, %v42_v47  ;;  %v4074_v46 = vld [vmem:[%s6321_s1 + $0x784] ss:$24 sps:$4 sm:$0xff]  }
  0x38   :  { %2642 = vmatpush2.bf16.msra.mxu1 %v3969_v61  ;;  %2570 = vmatprep.subr.bf16.mxu0 %v3970_v62  ;;  %v4850_v61 = vcombine.low %v39_v49, %v43_v50  ;;  %v4026_v62 = vld [vmem:[%s6321_s1 + $0x604] ss:$24 sps:$4 sm:$0xff]   ;;  %v4072_v49 = vld [vmem:[%s6321_s1 + $0x780] ss:$24 sps:$4 sm:$0xff]  }
  0x39   :  { %2643 = vmatprep.subr.bf16.mxu1 %v3972_v63  ;;  %v4029_v63 = vld [vmem:[%s6321_s1 + $0x904] ss:$24 sps:$4 sm:$0xff]   ;;  %v4075_v50 = vld [vmem:[%s6321_s1 + $0xa80] ss:$24 sps:$4 sm:$0xff]  }
  0x3a   :  { %v4077_v47 = vld [vmem:[%s6321_s1 + $0xa84] ss:$24 sps:$4 sm:$0xff]  }
  0x3b   :  { %2571 = vmatpush2.bf16.msra.mxu0 %v3974_v0  ;;  %v4024_v0 = vld [vmem:[%s6321_s1 + $0x600] ss:$24 sps:$4 sm:$0xff]  }
  0x3c   :  { %2644 = vmatpush2.bf16.msra.mxu1 %v3975_v1  ;;  %2572 = vmatprep.subr.bf16.mxu0 %v3976_v2  ;;  %v4027_v1 = vld [vmem:[%s6321_s1 + $0x900] ss:$24 sps:$4 sm:$0xff]   ;;  %v4867_v2 = vld [vmem:[%s6322_s0 + $0x10] sm:$0xff] }
  0x3d   :  { %2645 = vmatprep.subr.bf16.mxu1 %v3978_v3  ;;  %v4874_v3 = vld [vmem:[%s6322_s0 + $0x30] sm:$0xff] }
  0x3f   :  { %2573 = vmatpush2.bf16.msra.mxu0 %v3980_v4  ;;  %v4879_v4 = vld [vmem:[%s6322_s0 + $0x18] sm:$0xff] }
  0x40   :  { %2646 = vmatpush2.bf16.msra.mxu1 %v3981_v5  ;;  %2688 = vmatprep.subr.bf16.mxu0 %v3984_v6  ;;  %v4884_v5 = vld [vmem:[%s6322_s0 + $0x38] sm:$0xff]  ;;  %v4032_v6 = vld [vmem:[%s6321_s1 + $0x8d4] ss:$24 sps:$4 sm:$0xff]  }
  0x41   :  { %2761 = vmatprep.subr.bf16.mxu1 %v3987_v7  ;;  %v4891_v7 = vcombine.high %v4867_v2, %v4874_v3 }
  0x42   :  { %2575 = vmatmul.mubr.bf16.vlgmr.msra.gmra.mxu0 %v4698_v8 }
  0x43   :  { %2648 = vmatmul.mubr.bf16.vlgmr.msra.gmra.mxu1 %v4700_v9  ;;  %2689 = vmatpush1.bf16.msra.mxu0 %v3982_v10  ;;  %v4035_v10 = vld [vmem:[%s6321_s1 + $0xbd4] ss:$24 sps:$4 sm:$0xff]  }
  0x44   :  { %2762 = vmatpush1.bf16.msra.mxu1 %v3985_v11  ;;  %2690 = vmatprep.subr.bf16.mxu0 %v3990_v12  ;;  %v4898_v11 = vcombine.high %v4879_v4, %v4884_v5  ;;  %v4030_v12 = vld [vmem:[%s6321_s1 + $0x8d0] ss:$24 sps:$4 sm:$0xff]  }
  0x45   :  { %2763 = vmatprep.subr.bf16.mxu1 %v3993_v13  ;;  %2584 = vmatprep.mubr.bf16.mxu0 %v4737_v21  ;;  %v4033_v13 = vld [vmem:[%s6321_s1 + $0xbd0] ss:$24 sps:$4 sm:$0xff]  }
  0x46   :  { %2657 = vmatprep.mubr.bf16.mxu1 %v4742_v23 }
  0x47   :  { %2691 = vmatpush1.bf16.msra.mxu0 %v3988_v14  ;;  %v4038_v14 = vld [vmem:[%s6321_s1 + $0x8a4] ss:$24 sps:$4 sm:$0xff]  }
  0x48   :  { %2764 = vmatpush1.bf16.msra.mxu1 %v3991_v15  ;;  %2692 = vmatprep.subr.bf16.mxu0 %v3996_v16  ;;  %v4041_v15 = vld [vmem:[%s6321_s1 + $0xba4] ss:$24 sps:$4 sm:$0xff]   ;;  %v4036_v16 = vld [vmem:[%s6321_s1 + $0x8a0] ss:$24 sps:$4 sm:$0xff]  }
  0x49   :  { %2765 = vmatprep.subr.bf16.mxu1 %v3999_v17  ;;  %v4039_v17 = vld [vmem:[%s6321_s1 + $0xba0] ss:$24 sps:$4 sm:$0xff]  }
  0x4a   :  { %2585 = vmatmul.mubr.bf16.gmra.mxu0 %v4751_v26 }
  0x4b   :  { %2658 = vmatmul.mubr.bf16.gmra.mxu1 %v4753_v27  ;;  %2693 = vmatpush1.bf16.msra.mxu0 %v3994_v24  ;;  %v4050_v24 = vld [vmem:[%s6321_s1 + $0x844] ss:$24 sps:$4 sm:$0xff]  }
  0x4c   :  { %2766 = vmatpush1.bf16.msra.mxu1 %v3997_v25  ;;  %2694 = vmatprep.subr.bf16.mxu0 %v4002_v28  ;;  %v4053_v25 = vld [vmem:[%s6321_s1 + $0xb44] ss:$24 sps:$4 sm:$0xff]   ;;  %v4048_v28 = vld [vmem:[%s6321_s1 + $0x840] ss:$24 sps:$4 sm:$0xff]  }
  0x4d   :  { %2767 = vmatprep.subr.bf16.mxu1 %v4005_v29  ;;  %2594 = vmatprep.mubr.bf16.mxu0 %v4785_v37  ;;  %v4051_v29 = vld [vmem:[%s6321_s1 + $0xb40] ss:$24 sps:$4 sm:$0xff]  }
  0x4e   :  { %2667 = vmatprep.mubr.bf16.mxu1 %v4787_v38 }
  0x4f   :  { %2695 = vmatpush1.bf16.msra.mxu0 %v4000_v30  ;;  %v4056_v30 = vld [vmem:[%s6321_s1 + $0x814] ss:$24 sps:$4 sm:$0xff]  }
  0x50   :  { %2768 = vmatpush1.bf16.msra.mxu1 %v4003_v31  ;;  %2696 = vmatprep.subr.bf16.mxu0 %v4008_v36  ;;  %v4059_v31 = vld [vmem:[%s6321_s1 + $0xb14] ss:$24 sps:$4 sm:$0xff]   ;;  %v4060_v36 = vld [vmem:[%s6321_s1 + $0x7e0] ss:$24 sps:$4 sm:$0xff]  }
  0x51   :  { %2769 = vmatprep.subr.bf16.mxu1 %v4011_v39  ;;  %v4063_v39 = vld [vmem:[%s6321_s1 + $0xae0] ss:$24 sps:$4 sm:$0xff]  }
  0x52   :  { %2595 = vmatmul.mubr.bf16.gmra.mxu0 %v4800_v42 }
  0x53   :  { %2668 = vmatmul.mubr.bf16.gmra.mxu1 %v4802_v43  ;;  %2697 = vmatpush1.bf16.msra.mxu0 %v4006_v40  ;;  %v4068_v40 = vld [vmem:[%s6321_s1 + $0x7b4] ss:$24 sps:$4 sm:$0xff]  }
  0x54   :  { %2770 = vmatpush1.bf16.msra.mxu1 %v4009_v41  ;;  %2698 = vmatprep.subr.bf16.mxu0 %v4014_v44  ;;  %v4071_v41 = vld [vmem:[%s6321_s1 + $0xab4] ss:$24 sps:$4 sm:$0xff]   ;;  %v4066_v44 = vld [vmem:[%s6321_s1 + $0x7b0] ss:$24 sps:$4 sm:$0xff]  }
  0x55   :  { %2771 = vmatprep.subr.bf16.mxu1 %v4017_v45  ;;  %2604 = vmatprep.mubr.bf16.mxu0 %v4816_v48  ;;  %v4069_v45 = vld [vmem:[%s6321_s1 + $0xab0] ss:$24 sps:$4 sm:$0xff]  }
  0x56   :  { %2677 = vmatprep.mubr.bf16.mxu1 %v4832_v55 }
  0x57   :  { %2699 = vmatpush1.bf16.msra.mxu0 %v4012_v51  ;;  %v4080_v51 = vld [vmem:[%s6321_s1 + $0x15c] ss:$24 sps:$4 sm:$0xff]  }
  0x58   :  { %2772 = vmatpush1.bf16.msra.mxu1 %v4015_v52  ;;  %2700 = vmatprep.subr.bf16.mxu0 %v4020_v56  ;;  %v4083_v52 = vld [vmem:[%s6321_s1 + $0x45c] ss:$24 sps:$4 sm:$0xff]   ;;  %v4078_v56 = vld [vmem:[%s6321_s1 + $0x158] ss:$24 sps:$4 sm:$0xff]  }
  0x59   :  { %2773 = vmatprep.subr.bf16.mxu1 %v4023_v57  ;;  %v4081_v57 = vld [vmem:[%s6321_s1 + $0x458] ss:$24 sps:$4 sm:$0xff]  }
  0x5a   :  { %2605 = vmatmul.mubr.bf16.gmra.mxu0 %v4848_v60 }
  0x5b   :  { %2678 = vmatmul.mubr.bf16.gmra.mxu1 %v4850_v61  ;;  %2701 = vmatpush1.bf16.msra.mxu0 %v4018_v58  ;;  %v24_v58 = vld [vmem:[%s6322_s0 + $0x50] sm:$0xff] }
  0x5c   :  { %2774 = vmatpush1.bf16.msra.mxu1 %v4021_v59  ;;  %2702 = vmatprep.subr.bf16.mxu0 %v4026_v62  ;;  %v28_v59 = vld [vmem:[%s6322_s0 + $0x70] sm:$0xff]  ;;  %v5012_v62 = vcombine.low %v4867_v2, %v4874_v3  ;;  %v4089_v2 = vld [vmem:[%s6321_s1 + $0x42c] ss:$24 sps:$4 sm:$0xff]  }
  0x5d   :  { %2775 = vmatprep.subr.bf16.mxu1 %v4029_v63  ;;  %2720 = vmatprep.mubr.bf16.mxu0 %v4891_v7  ;;  %v5016_v63 = vcombine.low %v4879_v4, %v4884_v5  ;;  %v5030_v3 = vcombine.high %v24_v58, %v28_v59  ;;  %v4084_v5 = vld [vmem:[%s6321_s1 + $0x128] ss:$24 sps:$4 sm:$0xff]  }
  0x5e   :  { %2793 = vmatprep.mubr.bf16.mxu1 %v4898_v11 }
  0x5f   :  { %2703 = vmatpush1.bf16.msra.mxu0 %v4024_v0  ;;  %v25_v0 = vld [vmem:[%s6322_s0 + $0x58] sm:$0xff] }
  0x60   :  { %2776 = vmatpush1.bf16.msra.mxu1 %v4027_v1  ;;  %2704 = vmatprep.subr.bf16.mxu0 %v4032_v6  ;;  %v29_v1 = vld [vmem:[%s6322_s0 + $0x78] sm:$0xff]  ;;  %v4086_v6 = vld [vmem:[%s6321_s1 + $0x12c] ss:$24 sps:$4 sm:$0xff]  }
  0x61   :  { %2777 = vmatprep.subr.bf16.mxu1 %v4035_v10  ;;  %v5032_v4 = vcombine.high %v25_v0, %v29_v1  ;;  %v4087_v10 = vld [vmem:[%s6321_s1 + $0x428] ss:$24 sps:$4 sm:$0xff]  }
  0x63   :  { %2705 = vmatpush2.bf16.msra.mxu0 %v4030_v12  ;;  %6340 = vst [vmem:[#allocation2_spill] sm:$0xff] %v5032_v4  ;;  %v4092_v12 = vld [vmem:[%s6321_s1 + $0xfc] ss:$24 sps:$4 sm:$0xff]  }
  0x64   :  { %2778 = vmatpush2.bf16.msra.mxu1 %v4033_v13  ;;  %2706 = vmatprep.subr.bf16.mxu0 %v4038_v14  ;;  %v4095_v13 = vld [vmem:[%s6321_s1 + $0x3fc] ss:$24 sps:$4 sm:$0xff]   ;;  %v4090_v14 = vld [vmem:[%s6321_s1 + $0xf8] ss:$24 sps:$4 sm:$0xff]  }
  0x65   :  { %2779 = vmatprep.subr.bf16.mxu1 %v4041_v15  ;;  %v4093_v15 = vld [vmem:[%s6321_s1 + $0x3f8] ss:$24 sps:$4 sm:$0xff]  }
  0x67   :  { %2707 = vmatpush2.bf16.msra.mxu0 %v4036_v16  ;;  %v32_v16 = vld [vmem:[%s6322_s0 + $0x90] sm:$0xff] }
  0x68   :  { %2780 = vmatpush2.bf16.msra.mxu1 %v4039_v17  ;;  %2708 = vmatprep.subr.bf16.mxu0 %v4044_v18  ;;  %v36_v17 = vld [vmem:[%s6322_s0 + $0xb0] sm:$0xff]  ;;  %v5062_v18 = vcombine.low %v24_v58, %v28_v59 }
  0x69   :  { %2781 = vmatprep.subr.bf16.mxu1 %v4047_v19  ;;  %v5064_v19 = vcombine.low %v25_v0, %v29_v1  ;;  %v4114_v59 = vld [vmem:[%s6321_s1 + $0x38] ss:$24 sps:$4 sm:$0xff]  }
  0x6a   :  { %6341 = vst [vmem:[#allocation3_spill] sm:$0xff] %v5062_v18  ;;  %v4117_v0 = vld [vmem:[%s6321_s1 + $0x338] ss:$24 sps:$4 sm:$0xff]  }
  0x6b   :  { %2709 = vmatpush2.bf16.msra.mxu0 %v4042_v20  ;;  %6342 = vst [vmem:[#allocation4_spill] sm:$0xff] %v5064_v19  ;;  %v33_v20 = vld [vmem:[%s6322_s0 + $0x98] sm:$0xff] }
  0x6c   :  { %2782 = vmatpush2.bf16.msra.mxu1 %v4045_v22  ;;  %2710 = vmatprep.subr.bf16.mxu0 %v4050_v24  ;;  %v37_v22 = vld [vmem:[%s6322_s0 + $0xb8] sm:$0xff]  ;;  %v4098_v24 = vld [vmem:[%s6321_s1 + $0xcc] ss:$24 sps:$4 sm:$0xff]  }
  0x6d   :  { %2783 = vmatprep.subr.bf16.mxu1 %v4053_v25  ;;  %v4101_v25 = vld [vmem:[%s6321_s1 + $0x3cc] ss:$24 sps:$4 sm:$0xff]  }
  0x6f   :  { %2711 = vmatpush2.bf16.msra.mxu0 %v4048_v28  ;;  %v5078_v28 = vcombine.high %v32_v16, %v36_v17 }
  0x70   :  { %2784 = vmatpush2.bf16.msra.mxu1 %v4051_v29  ;;  %2712 = vmatprep.subr.bf16.mxu0 %v4056_v30  ;;  %v5080_v29 = vcombine.high %v33_v20, %v37_v22  ;;  %v4096_v30 = vld [vmem:[%s6321_s1 + $0xc8] ss:$24 sps:$4 sm:$0xff]  }
  0x71   :  { %2785 = vmatprep.subr.bf16.mxu1 %v4059_v31  ;;  %6343 = vst [vmem:[#allocation5_spill] sm:$0xff] %v5078_v28  ;;  %v4099_v31 = vld [vmem:[%s6321_s1 + $0x3c8] ss:$24 sps:$4 sm:$0xff]  }
  0x72   :  { %6344 = vst [vmem:[#allocation6_spill] sm:$0xff] %v5080_v29 }
  0x73   :  { %2713 = vmatpush2.bf16.msra.mxu0 %v4054_v32  ;;  %v4104_v32 = vld [vmem:[%s6321_s1 + $0x9c] ss:$24 sps:$4 sm:$0xff]  }
  0x74   :  { %2786 = vmatpush2.bf16.msra.mxu1 %v4057_v33  ;;  %2714 = vmatprep.subr.bf16.mxu0 %v4062_v34  ;;  %v4107_v33 = vld [vmem:[%s6321_s1 + $0x39c] ss:$24 sps:$4 sm:$0xff]   ;;  %v4102_v34 = vld [vmem:[%s6321_s1 + $0x98] ss:$24 sps:$4 sm:$0xff]  }
  0x75   :  { %2787 = vmatprep.subr.bf16.mxu1 %v4065_v35  ;;  %v4105_v35 = vld [vmem:[%s6321_s1 + $0x398] ss:$24 sps:$4 sm:$0xff]  }
  0x77   :  { %2715 = vmatpush2.bf16.msra.mxu0 %v4060_v36  ;;  %v40_v36 = vld [vmem:[%s6322_s0 + $0xd0] sm:$0xff] }
  0x78   :  { %2788 = vmatpush2.bf16.msra.mxu1 %v4063_v39  ;;  %2716 = vmatprep.subr.bf16.mxu0 %v4068_v40  ;;  %v44_v39 = vld [vmem:[%s6322_s0 + $0xf0] sm:$0xff]  ;;  %v5110_v40 = vcombine.low %v32_v16, %v36_v17  ;;  %v4134_v16 = vld [vmem:[%s6321_s1 + $0x2ac] ss:$24 sps:$4 sm:$0xff]  }
  0x79   :  { %2789 = vmatprep.subr.bf16.mxu1 %v4071_v41  ;;  %v5112_v41 = vcombine.low %v33_v20, %v37_v22  ;;  %v5146_v58 = vcombine.low %v40_v36, %v44_v39  ;;  %v4137_v17 = vld [vmem:[%s6321_s1 + $0x5ac] ss:$24 sps:$4 sm:$0xff]   ;;  %v4132_v20 = vld [vmem:[%s6321_s1 + $0x2a8] ss:$24 sps:$4 sm:$0xff]  }
  0x7a   :  { %6345 = vst [vmem:[#allocation7_spill] sm:$0xff] %v5110_v40  ;;  %v4135_v22 = vld [vmem:[%s6321_s1 + $0x5a8] ss:$24 sps:$4 sm:$0xff]  }
  0x7b   :  { %2717 = vmatpush2.bf16.msra.mxu0 %v4066_v44  ;;  %6346 = vst [vmem:[#allocation8_spill] sm:$0xff] %v5112_v41  ;;  %v41_v44 = vld [vmem:[%s6322_s0 + $0xd8] sm:$0xff]  ;;  %6349 = vst [vmem:[#allocation11_spill] sm:$0xff] %v5146_v58 }
  0x7c   :  { %2790 = vmatpush2.bf16.msra.mxu1 %v4069_v45  ;;  %2718 = vmatprep.subr.bf16.mxu0 %v4074_v46  ;;  %v45_v45 = vld [vmem:[%s6322_s0 + $0xf8] sm:$0xff]  ;;  %v4110_v46 = vld [vmem:[%s6321_s1 + $0x6c] ss:$24 sps:$4 sm:$0xff]  }
  0x7d   :  { %2791 = vmatprep.subr.bf16.mxu1 %v4077_v47  ;;  %v4113_v47 = vld [vmem:[%s6321_s1 + $0x36c] ss:$24 sps:$4 sm:$0xff]   ;;  %v5154_v1 = vcombine.low %v41_v44, %v45_v45 }
  0x7f   :  { %2719 = vmatpush2.bf16.msra.mxu0 %v4072_v49  ;;  %v5126_v49 = vcombine.high %v40_v36, %v44_v39  ;;  %6350 = vst [vmem:[#allocation12_spill] sm:$0xff] %v5154_v1  ;;  %v4152_v36 = vld [vmem:[%s6321_s1 + $0x21c] ss:$24 sps:$4 sm:$0xff]  }
  0x80   :  { %2792 = vmatpush2.bf16.msra.mxu1 %v4075_v50  ;;  %2834 = vmatprep.subr.bf16.mxu0 %v4080_v51  ;;  %v5128_v50 = vcombine.high %v41_v44, %v45_v45  ;;  %v4108_v51 = vld [vmem:[%s6321_s1 + $0x68] ss:$24 sps:$4 sm:$0xff]   ;;  %v4155_v39 = vld [vmem:[%s6321_s1 + $0x51c] ss:$24 sps:$4 sm:$0xff]   ;;  %v4150_v44 = vld [vmem:[%s6321_s1 + $0x218] ss:$24 sps:$4 sm:$0xff]  }
  0x81   :  { %2907 = vmatprep.subr.bf16.mxu1 %v4083_v52  ;;  %6347 = vst [vmem:[#allocation9_spill] sm:$0xff] %v5126_v49  ;;  %v4111_v52 = vld [vmem:[%s6321_s1 + $0x368] ss:$24 sps:$4 sm:$0xff]   ;;  %v4153_v45 = vld [vmem:[%s6321_s1 + $0x518] ss:$24 sps:$4 sm:$0xff]  }
  0x82   :  { %2721 = vmatmul.mubr.bf16.vlgmr.msra.gmra.mxu0 %v5012_v62  ;;  %6348 = vst [vmem:[#allocation10_spill] sm:$0xff] %v5128_v50 }
  0x83   :  { %2794 = vmatmul.mubr.bf16.vlgmr.msra.gmra.mxu1 %v5016_v63  ;;  %2835 = vmatpush1.bf16.msra.mxu0 %v4078_v56  ;;  %v4116_v56 = vld [vmem:[%s6321_s1 + $0x3c] ss:$24 sps:$4 sm:$0xff]  }
  0x84   :  { %2908 = vmatpush1.bf16.msra.mxu1 %v4081_v57  ;;  %2836 = vmatprep.subr.bf16.mxu0 %v4086_v6  ;;  %v4119_v57 = vld [vmem:[%s6321_s1 + $0x33c] ss:$24 sps:$4 sm:$0xff]   ;;  %v4122_v6 = vld [vmem:[%s6321_s1 + $0xc] ss:$24 sps:$4 sm:$0xff]  }
  0x85   :  { %2909 = vmatprep.subr.bf16.mxu1 %v4089_v2  ;;  %2730 = vmatprep.mubr.bf16.mxu0 %v5030_v3  ;;  %v4125_v2 = vld [vmem:[%s6321_s1 + $0x30c] ss:$24 sps:$4 sm:$0xff]  }
  0x86   :  { %2803 = vmatprep.mubr.bf16.mxu1 %v5032_v4 }
  0x87   :  { %2837 = vmatpush1.bf16.msra.mxu0 %v4084_v5  ;;  %v4120_v5 = vld [vmem:[%s6321_s1 + $0x8] ss:$24 sps:$4 sm:$0xff]  }
  0x88   :  { %2910 = vmatpush1.bf16.msra.mxu1 %v4087_v10  ;;  %2838 = vmatprep.subr.bf16.mxu0 %v4092_v12  ;;  %v4123_v10 = vld [vmem:[%s6321_s1 + $0x308] ss:$24 sps:$4 sm:$0xff]   ;;  %v4128_v12 = vld [vmem:[%s6321_s1 + $0x2dc] ss:$24 sps:$4 sm:$0xff]  }
  0x89   :  { %2911 = vmatprep.subr.bf16.mxu1 %v4095_v13  ;;  %v4131_v13 = vld [vmem:[%s6321_s1 + $0x5dc] ss:$24 sps:$4 sm:$0xff]  }
  0x8a   :  { %2731 = vmatmul.mubr.bf16.gmra.mxu0 %v5062_v18 }
  0x8b   :  { %2804 = vmatmul.mubr.bf16.gmra.mxu1 %v5064_v19  ;;  %2839 = vmatpush1.bf16.msra.mxu0 %v4090_v14  ;;  %v4126_v14 = vld [vmem:[%s6321_s1 + $0x2d8] ss:$24 sps:$4 sm:$0xff]  }
  0x8c   :  { %2912 = vmatpush1.bf16.msra.mxu1 %v4093_v15  ;;  %2840 = vmatprep.subr.bf16.mxu0 %v4098_v24  ;;  %v4129_v15 = vld [vmem:[%s6321_s1 + $0x5d8] ss:$24 sps:$4 sm:$0xff]   ;;  %v4140_v24 = vld [vmem:[%s6321_s1 + $0x27c] ss:$24 sps:$4 sm:$0xff]  }
  0x8d   :  { %2913 = vmatprep.subr.bf16.mxu1 %v4101_v25  ;;  %2740 = vmatprep.mubr.bf16.mxu0 %v5078_v28  ;;  %v4143_v25 = vld [vmem:[%s6321_s1 + $0x57c] ss:$24 sps:$4 sm:$0xff]  }
  0x8e   :  { %2813 = vmatprep.mubr.bf16.mxu1 %v5080_v29 }
  0x8f   :  { %2841 = vmatpush1.bf16.msra.mxu0 %v4096_v30  ;;  %v4138_v30 = vld [vmem:[%s6321_s1 + $0x278] ss:$24 sps:$4 sm:$0xff]  }
  0x90   :  { %2914 = vmatpush1.bf16.msra.mxu1 %v4099_v31  ;;  %2842 = vmatprep.subr.bf16.mxu0 %v4104_v32  ;;  %v4141_v31 = vld [vmem:[%s6321_s1 + $0x578] ss:$24 sps:$4 sm:$0xff]   ;;  %v4146_v32 = vld [vmem:[%s6321_s1 + $0x24c] ss:$24 sps:$4 sm:$0xff]  }
  0x91   :  { %2915 = vmatprep.subr.bf16.mxu1 %v4107_v33  ;;  %v4149_v33 = vld [vmem:[%s6321_s1 + $0x54c] ss:$24 sps:$4 sm:$0xff]  }
  0x92   :  { %2741 = vmatmul.mubr.bf16.gmra.mxu0 %v5110_v40 }
  0x93   :  { %2814 = vmatmul.mubr.bf16.gmra.mxu1 %v5112_v41  ;;  %2843 = vmatpush1.bf16.msra.mxu0 %v4102_v34  ;;  %v4144_v34 = vld [vmem:[%s6321_s1 + $0x248] ss:$24 sps:$4 sm:$0xff]  }
  0x94   :  { %2916 = vmatpush1.bf16.msra.mxu1 %v4105_v35  ;;  %2844 = vmatprep.subr.bf16.mxu0 %v4110_v46  ;;  %v4147_v35 = vld [vmem:[%s6321_s1 + $0x548] ss:$24 sps:$4 sm:$0xff]   ;;  %v4158_v46 = vld [vmem:[%s6321_s1 + $0x1ec] ss:$24 sps:$4 sm:$0xff]  }
  0x95   :  { %2917 = vmatprep.subr.bf16.mxu1 %v4113_v47  ;;  %2750 = vmatprep.mubr.bf16.mxu0 %v5126_v49  ;;  %v4161_v47 = vld [vmem:[%s6321_s1 + $0x4ec] ss:$24 sps:$4 sm:$0xff]  }
  0x96   :  { %2823 = vmatprep.mubr.bf16.mxu1 %v5128_v50 }
  0x97   :  { %2845 = vmatpush1.bf16.msra.mxu0 %v4108_v51  ;;  %v4156_v51 = vld [vmem:[%s6321_s1 + $0x1e8] ss:$24 sps:$4 sm:$0xff]  }
  0x98   :  { %2918 = vmatpush1.bf16.msra.mxu1 %v4111_v52  ;;  %2846 = vmatprep.subr.bf16.mxu0 %v4116_v56  ;;  %v4159_v52 = vld [vmem:[%s6321_s1 + $0x4e8] ss:$24 sps:$4 sm:$0xff]   ;;  %v4164_v56 = vld [vmem:[%s6321_s1 + $0x1bc] ss:$24 sps:$4 sm:$0xff]  }
  0x99   :  { %2919 = vmatprep.subr.bf16.mxu1 %v4119_v57  ;;  %v4167_v57 = vld [vmem:[%s6321_s1 + $0x4bc] ss:$24 sps:$4 sm:$0xff]  }
  0x9a   :  { %2751 = vmatmul.mubr.bf16.gmra.mxu0 %v5146_v58 }
  0x9b   :  { %2824 = vmatmul.mubr.bf16.gmra.mxu1 %v5154_v1  ;;  %2847 = vmatpush1.bf16.msra.mxu0 %v4114_v59  ;;  %v4162_v59 = vld [vmem:[%s6321_s1 + $0x1b8] ss:$24 sps:$4 sm:$0xff]  }
  0x9c   :  { %2920 = vmatpush1.bf16.msra.mxu1 %v4117_v0  ;;  %2848 = vmatprep.subr.bf16.mxu0 %v4122_v6  ;;  %v4165_v0 = vld [vmem:[%s6321_s1 + $0x4b8] ss:$24 sps:$4 sm:$0xff]   ;;  %v4170_v6 = vld [vmem:[%s6321_s1 + $0x18c] ss:$24 sps:$4 sm:$0xff]  }
  0x9d   :  { %2921 = vmatprep.subr.bf16.mxu1 %v4125_v2  ;;  %2866 = vmatprep.mubr.bf16.mxu0 %v4641_v53  ;;  %v4173_v2 = vld [vmem:[%s6321_s1 + $0x48c] ss:$24 sps:$4 sm:$0xff]  }
  0x9e   :  { %2939 = vmatprep.mubr.bf16.mxu1 %v4643_v54 }
  0x9f   :  { %2849 = vmatpush1.bf16.msra.mxu0 %v4120_v5  ;;  %v4168_v5 = vld [vmem:[%s6321_s1 + $0x188] ss:$24 sps:$4 sm:$0xff]  }
  0xa0   :  { %2922 = vmatpush1.bf16.msra.mxu1 %v4123_v10  ;;  %2850 = vmatprep.subr.bf16.mxu0 %v4128_v12  ;;  %v4171_v10 = vld [vmem:[%s6321_s1 + $0x488] ss:$24 sps:$4 sm:$0xff]   ;;  %v4176_v12 = vld [vmem:[%s6321_s1 + $0x75c] ss:$24 sps:$4 sm:$0xff]  }
  0xa1   :  { %2923 = vmatprep.subr.bf16.mxu1 %v4131_v13  ;;  %v4179_v13 = vld [vmem:[%s6321_s1 + $0xa5c] ss:$24 sps:$4 sm:$0xff]  }
  0xa3   :  { %2851 = vmatpush2.bf16.msra.mxu0 %v4126_v14  ;;  %v4174_v14 = vld [vmem:[%s6321_s1 + $0x758] ss:$24 sps:$4 sm:$0xff]  }
  0xa4   :  { %2924 = vmatpush2.bf16.msra.mxu1 %v4129_v15  ;;  %2852 = vmatprep.subr.bf16.mxu0 %v4134_v16  ;;  %v4177_v15 = vld [vmem:[%s6321_s1 + $0xa58] ss:$24 sps:$4 sm:$0xff]   ;;  %v4182_v16 = vld [vmem:[%s6321_s1 + $0x72c] ss:$24 sps:$4 sm:$0xff]  }
  0xa5   :  { %2925 = vmatprep.subr.bf16.mxu1 %v4137_v17  ;;  %v4185_v17 = vld [vmem:[%s6321_s1 + $0xa2c] ss:$24 sps:$4 sm:$0xff]  }
  0xa7   :  { %2853 = vmatpush2.bf16.msra.mxu0 %v4132_v20  ;;  %v4180_v20 = vld [vmem:[%s6321_s1 + $0x728] ss:$24 sps:$4 sm:$0xff]  }
  0xa8   :  { %2926 = vmatpush2.bf16.msra.mxu1 %v4135_v22  ;;  %2854 = vmatprep.subr.bf16.mxu0 %v4140_v24  ;;  %v4183_v22 = vld [vmem:[%s6321_s1 + $0xa28] ss:$24 sps:$4 sm:$0xff]   ;;  %v4188_v24 = vld [vmem:[%s6321_s1 + $0x6fc] ss:$24 sps:$4 sm:$0xff]  }
  0xa9   :  { %2927 = vmatprep.subr.bf16.mxu1 %v4143_v25  ;;  %v4191_v25 = vld [vmem:[%s6321_s1 + $0x9fc] ss:$24 sps:$4 sm:$0xff]  }
  0xab   :  { %2855 = vmatpush2.bf16.msra.mxu0 %v4138_v30  ;;  %v4186_v30 = vld [vmem:[%s6321_s1 + $0x6f8] ss:$24 sps:$4 sm:$0xff]  }
  0xac   :  { %2928 = vmatpush2.bf16.msra.mxu1 %v4141_v31  ;;  %2856 = vmatprep.subr.bf16.mxu0 %v4146_v32  ;;  %v4189_v31 = vld [vmem:[%s6321_s1 + $0x9f8] ss:$24 sps:$4 sm:$0xff]   ;;  %v4194_v32 = vld [vmem:[%s6321_s1 + $0x6cc] ss:$24 sps:$4 sm:$0xff]  }
  0xad   :  { %2929 = vmatprep.subr.bf16.mxu1 %v4149_v33  ;;  %v4197_v33 = vld [vmem:[%s6321_s1 + $0x9cc] ss:$24 sps:$4 sm:$0xff]  }
  0xaf   :  { %2857 = vmatpush2.bf16.msra.mxu0 %v4144_v34  ;;  %v4192_v34 = vld [vmem:[%s6321_s1 + $0x6c8] ss:$24 sps:$4 sm:$0xff]  }
  0xb0   :  { %2930 = vmatpush2.bf16.msra.mxu1 %v4147_v35  ;;  %2858 = vmatprep.subr.bf16.mxu0 %v4152_v36  ;;  %v4195_v35 = vld [vmem:[%s6321_s1 + $0x9c8] ss:$24 sps:$4 sm:$0xff]   ;;  %v4200_v36 = vld [vmem:[%s6321_s1 + $0x69c] ss:$24 sps:$4 sm:$0xff]  }
  0xb1   :  { %2931 = vmatprep.subr.bf16.mxu1 %v4155_v39  ;;  %v4203_v39 = vld [vmem:[%s6321_s1 + $0x99c] ss:$24 sps:$4 sm:$0xff]  }
  0xb3   :  { %2859 = vmatpush2.bf16.msra.mxu0 %v4150_v44  ;;  %v4198_v44 = vld [vmem:[%s6321_s1 + $0x698] ss:$24 sps:$4 sm:$0xff]  }
  0xb4   :  { %2932 = vmatpush2.bf16.msra.mxu1 %v4153_v45  ;;  %2860 = vmatprep.subr.bf16.mxu0 %v4158_v46  ;;  %v4201_v45 = vld [vmem:[%s6321_s1 + $0x998] ss:$24 sps:$4 sm:$0xff]   ;;  %v4206_v46 = vld [vmem:[%s6321_s1 + $0x66c] ss:$24 sps:$4 sm:$0xff]  }
  0xb5   :  { %2933 = vmatprep.subr.bf16.mxu1 %v4161_v47  ;;  %v4209_v47 = vld [vmem:[%s6321_s1 + $0x96c] ss:$24 sps:$4 sm:$0xff]  }
  0xb7   :  { %2861 = vmatpush2.bf16.msra.mxu0 %v4156_v51  ;;  %v4204_v51 = vld [vmem:[%s6321_s1 + $0x668] ss:$24 sps:$4 sm:$0xff]  }
  0xb8   :  { %2934 = vmatpush2.bf16.msra.mxu1 %v4159_v52  ;;  %2862 = vmatprep.subr.bf16.mxu0 %v4164_v56  ;;  %v4207_v52 = vld [vmem:[%s6321_s1 + $0x968] ss:$24 sps:$4 sm:$0xff]   ;;  %v4212_v56 = vld [vmem:[%s6321_s1 + $0x63c] ss:$24 sps:$4 sm:$0xff]  }
  0xb9   :  { %2935 = vmatprep.subr.bf16.mxu1 %v4167_v57  ;;  %v4215_v57 = vld [vmem:[%s6321_s1 + $0x93c] ss:$24 sps:$4 sm:$0xff]  }
  0xbb   :  { %2863 = vmatpush2.bf16.msra.mxu0 %v4162_v59  ;;  %v4210_v59 = vld [vmem:[%s6321_s1 + $0x638] ss:$24 sps:$4 sm:$0xff]  }
  0xbc   :  { %2936 = vmatpush2.bf16.msra.mxu1 %v4165_v0  ;;  %2864 = vmatprep.subr.bf16.mxu0 %v4170_v6  ;;  %v4213_v0 = vld [vmem:[%s6321_s1 + $0x938] ss:$24 sps:$4 sm:$0xff]   ;;  %v4218_v6 = vld [vmem:[%s6321_s1 + $0x60c] ss:$24 sps:$4 sm:$0xff]  }
  0xbd   :  { %2937 = vmatprep.subr.bf16.mxu1 %v4173_v2  ;;  %v4221_v2 = vld [vmem:[%s6321_s1 + $0x90c] ss:$24 sps:$4 sm:$0xff]  }
  0xbf   :  { %2865 = vmatpush2.bf16.msra.mxu0 %v4168_v5  ;;  %v4216_v5 = vld [vmem:[%s6321_s1 + $0x608] ss:$24 sps:$4 sm:$0xff]  }
  0xc0   :  { %2938 = vmatpush2.bf16.msra.mxu1 %v4171_v10  ;;  %2980 = vmatprep.subr.bf16.mxu0 %v4176_v12  ;;  %v4219_v10 = vld [vmem:[%s6321_s1 + $0x908] ss:$24 sps:$4 sm:$0xff]   ;;  %v4224_v12 = vld [vmem:[%s6321_s1 + $0x8dc] ss:$24 sps:$4 sm:$0xff]  }
  0xc1   :  { %3053 = vmatprep.subr.bf16.mxu1 %v4179_v13  ;;  %v4227_v13 = vld [vmem:[%s6321_s1 + $0xbdc] ss:$24 sps:$4 sm:$0xff]  }
  0xc2   :  { %2867 = vmatmul.mubr.bf16.vlgmr.msra.gmra.mxu0 %v4698_v8 }
  0xc3   :  { %2940 = vmatmul.mubr.bf16.vlgmr.msra.gmra.mxu1 %v4700_v9  ;;  %2981 = vmatpush1.bf16.msra.mxu0 %v4174_v14  ;;  %v4222_v14 = vld [vmem:[%s6321_s1 + $0x8d8] ss:$24 sps:$4 sm:$0xff]  }
  0xc4   :  { %3054 = vmatpush1.bf16.msra.mxu1 %v4177_v15  ;;  %2982 = vmatprep.subr.bf16.mxu0 %v4182_v16  ;;  %v4225_v15 = vld [vmem:[%s6321_s1 + $0xbd8] ss:$24 sps:$4 sm:$0xff]   ;;  %v4230_v16 = vld [vmem:[%s6321_s1 + $0x8ac] ss:$24 sps:$4 sm:$0xff]  }
  0xc5   :  { %3055 = vmatprep.subr.bf16.mxu1 %v4185_v17  ;;  %2876 = vmatprep.mubr.bf16.mxu0 %v4737_v21  ;;  %v4233_v17 = vld [vmem:[%s6321_s1 + $0xbac] ss:$24 sps:$4 sm:$0xff]  }
  0xc6   :  { %2949 = vmatprep.mubr.bf16.mxu1 %v4742_v23 }
  0xc7   :  { %2983 = vmatpush1.bf16.msra.mxu0 %v4180_v20  ;;  %v4228_v20 = vld [vmem:[%s6321_s1 + $0x8a8] ss:$24 sps:$4 sm:$0xff]  }
  0xc8   :  { %3056 = vmatpush1.bf16.msra.mxu1 %v4183_v22  ;;  %2984 = vmatprep.subr.bf16.mxu0 %v4188_v24  ;;  %v4231_v22 = vld [vmem:[%s6321_s1 + $0xba8] ss:$24 sps:$4 sm:$0xff]   ;;  %v4236_v24 = vld [vmem:[%s6321_s1 + $0x87c] ss:$24 sps:$4 sm:$0xff]  }
  0xc9   :  { %3057 = vmatprep.subr.bf16.mxu1 %v4191_v25  ;;  %v4239_v25 = vld [vmem:[%s6321_s1 + $0xb7c] ss:$24 sps:$4 sm:$0xff]  }
  0xca   :  { %2877 = vmatmul.mubr.bf16.gmra.mxu0 %v4751_v26 }
  0xcb   :  { %2950 = vmatmul.mubr.bf16.gmra.mxu1 %v4753_v27  ;;  %2985 = vmatpush1.bf16.msra.mxu0 %v4186_v30  ;;  %v4234_v30 = vld [vmem:[%s6321_s1 + $0x878] ss:$24 sps:$4 sm:$0xff]  }
  0xcc   :  { %3058 = vmatpush1.bf16.msra.mxu1 %v4189_v31  ;;  %2986 = vmatprep.subr.bf16.mxu0 %v4194_v32  ;;  %v4237_v31 = vld [vmem:[%s6321_s1 + $0xb78] ss:$24 sps:$4 sm:$0xff]   ;;  %v4242_v32 = vld [vmem:[%s6321_s1 + $0x84c] ss:$24 sps:$4 sm:$0xff]  }
  0xcd   :  { %3059 = vmatprep.subr.bf16.mxu1 %v4197_v33  ;;  %2886 = vmatprep.mubr.bf16.mxu0 %v4785_v37  ;;  %v4245_v33 = vld [vmem:[%s6321_s1 + $0xb4c] ss:$24 sps:$4 sm:$0xff]  }
  0xce   :  { %2959 = vmatprep.mubr.bf16.mxu1 %v4787_v38 }
  0xcf   :  { %2987 = vmatpush1.bf16.msra.mxu0 %v4192_v34  ;;  %v4240_v34 = vld [vmem:[%s6321_s1 + $0x848] ss:$24 sps:$4 sm:$0xff]  }
  0xd0   :  { %3060 = vmatpush1.bf16.msra.mxu1 %v4195_v35  ;;  %2988 = vmatprep.subr.bf16.mxu0 %v4200_v36  ;;  %v4243_v35 = vld [vmem:[%s6321_s1 + $0xb48] ss:$24 sps:$4 sm:$0xff]   ;;  %v4248_v36 = vld [vmem:[%s6321_s1 + $0x81c] ss:$24 sps:$4 sm:$0xff]  }
  0xd1   :  { %3061 = vmatprep.subr.bf16.mxu1 %v4203_v39  ;;  %v4251_v39 = vld [vmem:[%s6321_s1 + $0xb1c] ss:$24 sps:$4 sm:$0xff]  }
  0xd2   :  { %2887 = vmatmul.mubr.bf16.gmra.mxu0 %v4800_v42 }
  0xd3   :  { %2960 = vmatmul.mubr.bf16.gmra.mxu1 %v4802_v43  ;;  %2989 = vmatpush1.bf16.msra.mxu0 %v4198_v44  ;;  %v4246_v44 = vld [vmem:[%s6321_s1 + $0x818] ss:$24 sps:$4 sm:$0xff]  }
  0xd4   :  { %3062 = vmatpush1.bf16.msra.mxu1 %v4201_v45  ;;  %2990 = vmatprep.subr.bf16.mxu0 %v4206_v46  ;;  %v4249_v45 = vld [vmem:[%s6321_s1 + $0xb18] ss:$24 sps:$4 sm:$0xff]   ;;  %v4254_v46 = vld [vmem:[%s6321_s1 + $0x7ec] ss:$24 sps:$4 sm:$0xff]  }
  0xd5   :  { %3063 = vmatprep.subr.bf16.mxu1 %v4209_v47  ;;  %2896 = vmatprep.mubr.bf16.mxu0 %v4816_v48  ;;  %v4257_v47 = vld [vmem:[%s6321_s1 + $0xaec] ss:$24 sps:$4 sm:$0xff]  }
  0xd6   :  { %2969 = vmatprep.mubr.bf16.mxu1 %v4832_v55 }
  0xd7   :  { %2991 = vmatpush1.bf16.msra.mxu0 %v4204_v51  ;;  %v4252_v51 = vld [vmem:[%s6321_s1 + $0x7e8] ss:$24 sps:$4 sm:$0xff]  }
  0xd8   :  { %3064 = vmatpush1.bf16.msra.mxu1 %v4207_v52  ;;  %2992 = vmatprep.subr.bf16.mxu0 %v4212_v56  ;;  %v4255_v52 = vld [vmem:[%s6321_s1 + $0xae8] ss:$24 sps:$4 sm:$0xff]   ;;  %v4260_v56 = vld [vmem:[%s6321_s1 + $0x7bc] ss:$24 sps:$4 sm:$0xff]  }
  0xd9   :  { %3065 = vmatprep.subr.bf16.mxu1 %v4215_v57  ;;  %v4263_v57 = vld [vmem:[%s6321_s1 + $0xabc] ss:$24 sps:$4 sm:$0xff]  }
  0xda   :  { %2897 = vmatmul.mubr.bf16.gmra.mxu0 %v4848_v60 }
  0xdb   :  { %2970 = vmatmul.mubr.bf16.gmra.mxu1 %v4850_v61  ;;  %2993 = vmatpush1.bf16.msra.mxu0 %v4210_v59  ;;  %v4258_v59 = vld [vmem:[%s6321_s1 + $0x7b8] ss:$24 sps:$4 sm:$0xff]  }
  0xdc   :  { %3066 = vmatpush1.bf16.msra.mxu1 %v4213_v0  ;;  %2994 = vmatprep.subr.bf16.mxu0 %v4218_v6  ;;  %v4261_v0 = vld [vmem:[%s6321_s1 + $0xab8] ss:$24 sps:$4 sm:$0xff]   ;;  %v4266_v6 = vld [vmem:[%s6321_s1 + $0x78c] ss:$24 sps:$4 sm:$0xff]  }
  0xdd   :  { %3067 = vmatprep.subr.bf16.mxu1 %v4221_v2  ;;  %3012 = vmatprep.mubr.bf16.mxu0 %v4891_v7  ;;  %v4269_v2 = vld [vmem:[%s6321_s1 + $0xa8c] ss:$24 sps:$4 sm:$0xff]  }
  0xde   :  { %3085 = vmatprep.mubr.bf16.mxu1 %v4898_v11 }
  0xdf   :  { %2995 = vmatpush1.bf16.msra.mxu0 %v4216_v5  ;;  %v4264_v5 = vld [vmem:[%s6321_s1 + $0x788] ss:$24 sps:$4 sm:$0xff]  }
  0xe0   :  { %3068 = vmatpush1.bf16.msra.mxu1 %v4219_v10  ;;  %2996 = vmatprep.subr.bf16.mxu0 %v4224_v12  ;;  %v4267_v10 = vld [vmem:[%s6321_s1 + $0xa88] ss:$24 sps:$4 sm:$0xff]   ;;  %v4272_v12 = vld [vmem:[%s6321_s1 + $0x164] ss:$24 sps:$4 sm:$0xff]  }
  0xe1   :  { %3069 = vmatprep.subr.bf16.mxu1 %v4227_v13  ;;  %v4275_v13 = vld [vmem:[%s6321_s1 + $0x464] ss:$24 sps:$4 sm:$0xff]  }
  0xe3   :  { %2997 = vmatpush2.bf16.msra.mxu0 %v4222_v14  ;;  %v4270_v14 = vld [vmem:[%s6321_s1 + $0x160] ss:$24 sps:$4 sm:$0xff]  }
  0xe4   :  { %3070 = vmatpush2.bf16.msra.mxu1 %v4225_v15  ;;  %2998 = vmatprep.subr.bf16.mxu0 %v4230_v16  ;;  %v4273_v15 = vld [vmem:[%s6321_s1 + $0x460] ss:$24 sps:$4 sm:$0xff]   ;;  %v4278_v16 = vld [vmem:[%s6321_s1 + $0x134] ss:$24 sps:$4 sm:$0xff]  }
  0xe5   :  { %3071 = vmatprep.subr.bf16.mxu1 %v4233_v17  ;;  %v4281_v17 = vld [vmem:[%s6321_s1 + $0x434] ss:$24 sps:$4 sm:$0xff]  }
  0xe7   :  { %2999 = vmatpush2.bf16.msra.mxu0 %v4228_v20  ;;  %v4276_v20 = vld [vmem:[%s6321_s1 + $0x130] ss:$24 sps:$4 sm:$0xff]  }
  0xe8   :  { %3072 = vmatpush2.bf16.msra.mxu1 %v4231_v22  ;;  %3000 = vmatprep.subr.bf16.mxu0 %v4236_v24  ;;  %v4279_v22 = vld [vmem:[%s6321_s1 + $0x430] ss:$24 sps:$4 sm:$0xff]   ;;  %v4284_v24 = vld [vmem:[%s6321_s1 + $0x104] ss:$24 sps:$4 sm:$0xff]  }
  0xe9   :  { %3073 = vmatprep.subr.bf16.mxu1 %v4239_v25  ;;  %v4287_v25 = vld [vmem:[%s6321_s1 + $0x404] ss:$24 sps:$4 sm:$0xff]  }
  0xeb   :  { %3001 = vmatpush2.bf16.msra.mxu0 %v4234_v30 }
  0xec   :  { %3074 = vmatpush2.bf16.msra.mxu1 %v4237_v31  ;;  %3002 = vmatprep.subr.bf16.mxu0 %v4242_v32  ;;  %v4282_v32 = vld [vmem:[%s6321_s1 + $0x100] ss:$24 sps:$4 sm:$0xff]  }
  0xed   :  { %3075 = vmatprep.subr.bf16.mxu1 %v4245_v33  ;;  %v4285_v33 = vld [vmem:[%s6321_s1 + $0x400] ss:$24 sps:$4 sm:$0xff]  }
  0xef   :  { %3003 = vmatpush2.bf16.msra.mxu0 %v4240_v34  ;;  %v4290_v34 = vld [vmem:[%s6321_s1 + $0xd4] ss:$24 sps:$4 sm:$0xff]  }
  0xf0   :  { %3076 = vmatpush2.bf16.msra.mxu1 %v4243_v35  ;;  %3004 = vmatprep.subr.bf16.mxu0 %v4248_v36  ;;  %v4293_v35 = vld [vmem:[%s6321_s1 + $0x3d4] ss:$24 sps:$4 sm:$0xff]  }
  0xf1   :  { %3077 = vmatprep.subr.bf16.mxu1 %v4251_v39 }
  0xf3   :  { %3005 = vmatpush2.bf16.msra.mxu0 %v4246_v44  ;;  %v4288_v44 = vld [vmem:[%s6321_s1 + $0xd0] ss:$24 sps:$4 sm:$0xff]  }
  0xf4   :  { %3078 = vmatpush2.bf16.msra.mxu1 %v4249_v45  ;;  %3006 = vmatprep.subr.bf16.mxu0 %v4254_v46  ;;  %v4291_v45 = vld [vmem:[%s6321_s1 + $0x3d0] ss:$24 sps:$4 sm:$0xff]   ;;  %v4296_v46 = vld [vmem:[%s6321_s1 + $0xa4] ss:$24 sps:$4 sm:$0xff]  }
  0xf5   :  { %3079 = vmatprep.subr.bf16.mxu1 %v4257_v47  ;;  %v4299_v47 = vld [vmem:[%s6321_s1 + $0x3a4] ss:$24 sps:$4 sm:$0xff]  }
  0xf7   :  { %3007 = vmatpush2.bf16.msra.mxu0 %v4252_v51 }
  0xf8   :  { %3080 = vmatpush2.bf16.msra.mxu1 %v4255_v52  ;;  %3008 = vmatprep.subr.bf16.mxu0 %v4260_v56  ;;  %v4294_v56 = vld [vmem:[%s6321_s1 + $0xa0] ss:$24 sps:$4 sm:$0xff]  }
  0xf9   :  { %3081 = vmatprep.subr.bf16.mxu1 %v4263_v57  ;;  %v4297_v57 = vld [vmem:[%s6321_s1 + $0x3a0] ss:$24 sps:$4 sm:$0xff]  }
  0xfb   :  { %3009 = vmatpush2.bf16.msra.mxu0 %v4258_v59  ;;  %v4302_v59 = vld [vmem:[%s6321_s1 + $0x74] ss:$24 sps:$4 sm:$0xff]  }
  0xfc   :  { %3082 = vmatpush2.bf16.msra.mxu1 %v4261_v0  ;;  %3010 = vmatprep.subr.bf16.mxu0 %v4266_v6  ;;  %v4305_v0 = vld [vmem:[%s6321_s1 + $0x374] ss:$24 sps:$4 sm:$0xff]  }
  0xfd   :  { %3083 = vmatprep.subr.bf16.mxu1 %v4269_v2 }
  0xff   :  { %3011 = vmatpush2.bf16.msra.mxu0 %v4264_v5  ;;  %v4300_v5 = vld [vmem:[%s6321_s1 + $0x70] ss:$24 sps:$4 sm:$0xff]  }
 0x100   :  { %3084 = vmatpush2.bf16.msra.mxu1 %v4267_v10  ;;  %3126 = vmatprep.subr.bf16.mxu0 %v4272_v12  ;;  %v4303_v10 = vld [vmem:[%s6321_s1 + $0x370] ss:$24 sps:$4 sm:$0xff]   ;;  %v4308_v12 = vld [vmem:[%s6321_s1 + $0x44] ss:$24 sps:$4 sm:$0xff]  }
 0x101   :  { %3199 = vmatprep.subr.bf16.mxu1 %v4275_v13  ;;  %v4311_v13 = vld [vmem:[%s6321_s1 + $0x344] ss:$24 sps:$4 sm:$0xff]  }
 0x102   :  { %3013 = vmatmul.mubr.bf16.vlgmr.msra.gmra.mxu0 %v5012_v62  ;;  %v5510_v30 = vpop.f32.mrf.mxu0 }
 0x103   :  { %3086 = vmatmul.mubr.bf16.vlgmr.msra.gmra.mxu1 %v5016_v63  ;;  %3127 = vmatpush1.bf16.msra.mxu0 %v4270_v14  ;;  %v5512_v31 = vpop.f32.mrf.mxu1 }
 0x104   :  { %3200 = vmatpush1.bf16.msra.mxu1 %v4273_v15  ;;  %3128 = vmatprep.subr.bf16.mxu0 %v4278_v16  ;;  %v5526_v36 = vpop.f32.mrf.mxu0  ;;  %v4306_v16 = vld [vmem:[%s6321_s1 + $0x40] ss:$24 sps:$4 sm:$0xff]  }
 0x105   :  { %3201 = vmatprep.subr.bf16.mxu1 %v4281_v17  ;;  %3022 = vmatprep.mubr.bf16.mxu0 %v5030_v3  ;;  %v5528_v39 = vpop.f32.mrf.mxu1  ;;  %v4309_v17 = vld [vmem:[%s6321_s1 + $0x340] ss:$24 sps:$4 sm:$0xff]  }
 0x106   :  { %3095 = vmatprep.mubr.bf16.mxu1 %v5032_v4  ;;  %v5546_v51 = vpop.f32.mrf.mxu0  ;;  %v4372_v4 = vld [vmem:[%s6321_s1 + $0x730] ss:$24 sps:$4 sm:$0xff]  }
 0x107   :  { %3129 = vmatpush1.bf16.msra.mxu0 %v4276_v20  ;;  %v5548_v52 = vpop.f32.mrf.mxu1  ;;  %v4314_v20 = vld [vmem:[%s6321_s1 + $0x14] ss:$24 sps:$4 sm:$0xff]  }
 0x108   :  { %3202 = vmatpush1.bf16.msra.mxu1 %v4279_v22  ;;  %3130 = vmatprep.subr.bf16.mxu0 %v4284_v24  ;;  %v5562_v6 = vpop.f32.mrf.mxu0  ;;  %v4317_v22 = vld [vmem:[%s6321_s1 + $0x314] ss:$24 sps:$4 sm:$0xff]  }
 0x109   :  { %3203 = vmatprep.subr.bf16.mxu1 %v4287_v25  ;;  %v5564_v2 = vpop.f32.mrf.mxu1 }
 0x10a   :  { %3023 = vmatmul.mubr.bf16.gmra.mxu0 %v5062_v18  ;;  %v5580_v14 = vpop.f32.mrf.mxu0 }
 0x10b   :  { %3096 = vmatmul.mubr.bf16.gmra.mxu1 %v5064_v19  ;;  %3131 = vmatpush1.bf16.msra.mxu0 %v4282_v32  ;;  %v5582_v15 = vpop.f32.mrf.mxu1  ;;  %v4312_v32 = vld [vmem:[%s6321_s1 + $0x10] ss:$24 sps:$4 sm:$0xff]  }
 0x10c   :  { %3204 = vmatpush1.bf16.msra.mxu1 %v4285_v33  ;;  %3132 = vmatprep.subr.bf16.mxu0 %v4290_v34  ;;  %v5598_v24 = vpop.f32.mrf.mxu0  ;;  %v4315_v33 = vld [vmem:[%s6321_s1 + $0x310] ss:$24 sps:$4 sm:$0xff]   ;;  %v4320_v34 = vld [vmem:[%s6321_s1 + $0x2e4] ss:$24 sps:$4 sm:$0xff]  }
 0x10d   :  { %3205 = vmatprep.subr.bf16.mxu1 %v4293_v35  ;;  %3032 = vmatprep.mubr.bf16.mxu0 %v5078_v28  ;;  %v5600_v25 = vpop.f32.mrf.mxu1  ;;  %v4323_v35 = vld [vmem:[%s6321_s1 + $0x5e4] ss:$24 sps:$4 sm:$0xff]  }
 0x10e   :  { %3105 = vmatprep.mubr.bf16.mxu1 %v5080_v29 }
 0x10f   :  { %3133 = vmatpush1.bf16.msra.mxu0 %v4288_v44  ;;  %v5616_v44 = vpop.f32.mrf.mxu0 }
 0x110   :  { %3206 = vmatpush1.bf16.msra.mxu1 %v4291_v45  ;;  %3134 = vmatprep.subr.bf16.mxu0 %v4296_v46  ;;  %v5618_v45 = vpop.f32.mrf.mxu1  ;;  %v4318_v46 = vld [vmem:[%s6321_s1 + $0x2e0] ss:$24 sps:$4 sm:$0xff]  }
 0x111   :  { %3207 = vmatprep.subr.bf16.mxu1 %v4299_v47  ;;  %v4321_v47 = vld [vmem:[%s6321_s1 + $0x5e0] ss:$24 sps:$4 sm:$0xff]  }
 0x112   :  { %3033 = vmatmul.mubr.bf16.gmra.mxu0 %v5110_v40 }
 0x113   :  { %3106 = vmatmul.mubr.bf16.gmra.mxu1 %v5112_v41  ;;  %3135 = vmatpush1.bf16.msra.mxu0 %v4294_v56  ;;  %v4326_v56 = vld [vmem:[%s6321_s1 + $0x2b4] ss:$24 sps:$4 sm:$0xff]  }
 0x114   :  { %3208 = vmatpush1.bf16.msra.mxu1 %v4297_v57  ;;  %3136 = vmatprep.subr.bf16.mxu0 %v4302_v59  ;;  %v5636_v57 = vpop.f32.mrf.mxu1  ;;  %v4324_v59 = vld [vmem:[%s6321_s1 + $0x2b0] ss:$24 sps:$4 sm:$0xff]  }
 0x115   :  { %3209 = vmatprep.subr.bf16.mxu1 %v4305_v0  ;;  %3042 = vmatprep.mubr.bf16.mxu0 %v5126_v49  ;;  %v4327_v0 = vld [vmem:[%s6321_s1 + $0x5b0] ss:$24 sps:$4 sm:$0xff]  }
 0x116   :  { %3115 = vmatprep.mubr.bf16.mxu1 %v5128_v50 }
 0x117   :  { %3137 = vmatpush1.bf16.msra.mxu0 %v4300_v5  ;;  %v4332_v5 = vld [vmem:[%s6321_s1 + $0x284] ss:$24 sps:$4 sm:$0xff]  }
 0x118   :  { %3210 = vmatpush1.bf16.msra.mxu1 %v4303_v10  ;;  %3138 = vmatprep.subr.bf16.mxu0 %v4308_v12  ;;  %v4335_v10 = vld [vmem:[%s6321_s1 + $0x584] ss:$24 sps:$4 sm:$0xff]  }
 0x119   :  { %3211 = vmatprep.subr.bf16.mxu1 %v4311_v13  ;;  %v5652_v13 = vpop.f32.mrf.mxu1 }
 0x11a   :  { %3043 = vmatmul.mubr.bf16.gmra.mxu0 %v5146_v58  ;;  %v4357_v58 = vld [vmem:[%s6321_s1 + $0x4c0] ss:$24 sps:$4 sm:$0xff]  }
 0x11b   :  { %3116 = vmatmul.mubr.bf16.gmra.mxu1 %v5154_v1  ;;  %3139 = vmatpush1.bf16.msra.mxu0 %v4306_v16  ;;  %v4330_v16 = vld [vmem:[%s6321_s1 + $0x280] ss:$24 sps:$4 sm:$0xff]  }
 0x11c   :  { %3212 = vmatpush1.bf16.msra.mxu1 %v4309_v17  ;;  %3140 = vmatprep.subr.bf16.mxu0 %v4314_v20  ;;  %v4333_v17 = vld [vmem:[%s6321_s1 + $0x580] ss:$24 sps:$4 sm:$0xff]   ;;  %v4338_v20 = vld [vmem:[%s6321_s1 + $0x254] ss:$24 sps:$4 sm:$0xff]  }
 0x11d   :  { %3213 = vmatprep.subr.bf16.mxu1 %v4317_v22  ;;  %3158 = vmatprep.mubr.bf16.mxu0 %v4641_v53  ;;  %v4329_v53 = vld [vmem:[%s6321_s1 + $0x5b4] ss:$24 sps:$4 sm:$0xff]   ;;  %v5724_v1 = vld [vmem:[%s6323_s2] sm:$0x3f] }
 0x11e   :  { %3231 = vmatprep.mubr.bf16.mxu1 %v4643_v54  ;;  %v5634_v54 = vpop.f32.mrf.mxu0  ;;  %v4341_v22 = vld [vmem:[%s6321_s1 + $0x554] ss:$24 sps:$4 sm:$0xff]   ;;  %6352 = vst [vmem:[#allocation14_spill] sm:$0xff] %v5724_v1 }
 0x11f   :  { %3141 = vmatpush1.bf16.msra.mxu0 %v4312_v32 }
 0x120   :  { %3214 = vmatpush1.bf16.msra.mxu1 %v4315_v33  ;;  %3142 = vmatprep.subr.bf16.mxu0 %v4320_v34  ;;  %v5650_v12 = vpop.f32.mrf.mxu0  ;;  %v5668_v33 = vpop.f32.mrf.mxu1  ;;  %v4336_v34 = vld [vmem:[%s6321_s1 + $0x250] ss:$24 sps:$4 sm:$0xff]  }
 0x121   :  { %3215 = vmatprep.subr.bf16.mxu1 %v4323_v35  ;;  %v4339_v35 = vld [vmem:[%s6321_s1 + $0x550] ss:$24 sps:$4 sm:$0xff]  }
 0x122   :  { %v5666_v32 = vpop.f32.mrf.mxu0 }
 0x123   :  { %3143 = vmatpush2.bf16.msra.mxu0 %v4318_v46 }
 0x124   :  { %3216 = vmatpush2.bf16.msra.mxu1 %v4321_v47  ;;  %3144 = vmatprep.subr.bf16.mxu0 %v4326_v56  ;;  %v5676_v46 = vpop.f32.mrf.mxu0  ;;  %v4344_v47 = vld [vmem:[%s6321_s1 + $0x224] ss:$24 sps:$4 sm:$0xff]  }
 0x125   :  { %3217 = vmatprep.subr.bf16.mxu1 %v4329_v53  ;;  %v4347_v56 = vld [vmem:[%s6321_s1 + $0x524] ss:$24 sps:$4 sm:$0xff]   ;;  %v5684_v53 = vpop.f32.mrf.mxu1 }
 0x127   :  { %3145 = vmatpush2.bf16.msra.mxu0 %v4324_v59  ;;  %v432_v59 = vlaneseq }
 0x128   :  { %3218 = vmatpush2.bf16.msra.mxu1 %v4327_v0  ;;  %3146 = vmatprep.subr.bf16.mxu0 %v4332_v5  ;;  %v4342_v0 = vld [vmem:[%s6321_s1 + $0x220] ss:$24 sps:$4 sm:$0xff]  }
 0x129   :  { %3219 = vmatprep.subr.bf16.mxu1 %v4335_v10  ;;  %v4345_v5 = vld [vmem:[%s6321_s1 + $0x520] ss:$24 sps:$4 sm:$0xff]   ;;  %v5692_v10 = vpop.f32.mrf.mxu0 }
 0x12b   :  { %3147 = vmatpush2.bf16.msra.mxu0 %v4330_v16  ;;  %v5694_v16 = vpop.f32.mrf.mxu1 }
 0x12c   :  { %3220 = vmatpush2.bf16.msra.mxu1 %v4333_v17  ;;  %3148 = vmatprep.subr.bf16.mxu0 %v4338_v20  ;;  %v4350_v17 = vld [vmem:[%s6321_s1 + $0x1f4] ss:$24 sps:$4 sm:$0xff]  }
 0x12d   :  { %3221 = vmatprep.subr.bf16.mxu1 %v4341_v22  ;;  %v4353_v20 = vld [vmem:[%s6321_s1 + $0x4f4] ss:$24 sps:$4 sm:$0xff]   ;;  %v5702_v22 = vshrl.u32 %v432_v59, 7  ;;  %v4356_v59 = vld [vmem:[%s6321_s1 + $0x1c4] ss:$24 sps:$4 sm:$0xff]  }
 0x12f   :  { %3149 = vmatpush2.bf16.msra.mxu0 %v4336_v34  ;;  %6351 = vst [vmem:[#allocation13_spill] sm:$0xff] %v5702_v22  ;;  %v4348_v34 = vld [vmem:[%s6321_s1 + $0x1f0] ss:$24 sps:$4 sm:$0xff]  }
 0x130   :  { %3222 = vmatpush2.bf16.msra.mxu1 %v4339_v35  ;;  %3150 = vmatprep.subr.bf16.mxu0 %v4344_v47  ;;  %v4351_v35 = vld [vmem:[%s6321_s1 + $0x4f0] ss:$24 sps:$4 sm:$0xff]   ;;  %v5710_v47 = vpop.f32.mrf.mxu0 }
 0x131   :  { %3223 = vmatprep.subr.bf16.mxu1 %v4347_v56  ;;  %v5712_v56 = vpop.f32.mrf.mxu1 }
 0x132   :  { %v5733_v50 = vpop.f32.mrf.mxu0 }
 0x133   :  { %3151 = vmatpush2.bf16.msra.mxu0 %v4342_v0  ;;  %v4359_v0 = vld [vmem:[%s6321_s1 + $0x4c4] ss:$24 sps:$4 sm:$0xff]   ;;  %v5735_v49 = vpop.f32.mrf.mxu1 }
 0x134   :  { %3224 = vmatpush2.bf16.msra.mxu1 %v4345_v5  ;;  %3152 = vmatprep.subr.bf16.mxu0 %v4350_v17  ;;  %v434_v5 = vsub.s32 0, %v5702_v22  ;;  %v438_v17 = vsub.s32 1, %v5702_v22  ;;  %v4362_v22 = vld [vmem:[%s6321_s1 + $0x194] ss:$24 sps:$4 sm:$0xff]   ;;  %v5755_v40 = vpop.f32.mrf.mxu0 }
 0x135   :  { %3225 = vmatprep.subr.bf16.mxu1 %v4353_v20  ;;  %v4354_v20 = vld [vmem:[%s6321_s1 + $0x1c0] ss:$24 sps:$4 sm:$0xff]   ;;  %v5757_v29 = vpop.f32.mrf.mxu1 }
 0x136   :  { %v5747_v41 = vrot.slane %v5724_v1, %v438_v17  ;;  %v5777_v28 = vpop.f32.mrf.mxu0 }
 0x137   :  { %3153 = vmatpush2.bf16.msra.mxu0 %v4348_v34  ;;  %v4365_v34 = vld [vmem:[%s6321_s1 + $0x494] ss:$24 sps:$4 sm:$0xff]   ;;  %v5779_v19 = vpop.f32.mrf.mxu1 }
 0x138   :  { %3226 = vmatpush2.bf16.msra.mxu1 %v4351_v35  ;;  %3154 = vmatprep.subr.bf16.mxu0 %v4356_v59  ;;  %v5744_v35 = vrot.slane %v5724_v1, %v434_v5  ;;  %v4360_v59 = vld [vmem:[%s6321_s1 + $0x190] ss:$24 sps:$4 sm:$0xff]   ;;  %v4368_v5 = vld [vmem:[%s6321_s1 + $0x764] ss:$24 sps:$4 sm:$0xff]  }
 0x139   :  { %3227 = vmatprep.subr.bf16.mxu1 %v4359_v0  ;;  %v4363_v0 = vld [vmem:[%s6321_s1 + $0x490] ss:$24 sps:$4 sm:$0xff]  }
 0x13a   :  { %v2577_v17 = vadd.f32 %v5510_v30, %v5744_v35  ;;  %v2581_v1 = vadd.f32 %v5546_v51, %v5744_v35  ;;  %v4374_v30 = vld [vmem:[%s6321_s1 + $0x734] ss:$24 sps:$4 sm:$0xff]  }
 0x13b   :  { %3155 = vmatpush2.bf16.msra.mxu0 %v4354_v20  ;;  %v2579_v20 = vadd.f32 %v5526_v36, %v5747_v41  ;;  %v4377_v36 = vld [vmem:[%s6321_s1 + $0xa34] ss:$24 sps:$4 sm:$0xff]  }
 0x13c   :  { %3228 = vmatpush2.bf16.msra.mxu1 %v4357_v58  ;;  %3156 = vmatprep.subr.bf16.mxu0 %v4362_v22  ;;  %v4371_v58 = vld [vmem:[%s6321_s1 + $0xa64] ss:$24 sps:$4 sm:$0xff]   ;;  %v4366_v22 = vld [vmem:[%s6321_s1 + $0x760] ss:$24 sps:$4 sm:$0xff]  }
 0x13d   :  { %3229 = vmatprep.subr.bf16.mxu1 %v4365_v34  ;;  %v4369_v34 = vld [vmem:[%s6321_s1 + $0xa60] ss:$24 sps:$4 sm:$0xff]   ;;  %v2652_v51 = vadd.f32 %v5528_v39, %v2579_v20  ;;  %v4380_v39 = vld [vmem:[%s6321_s1 + $0x704] ss:$24 sps:$4 sm:$0xff]   ;;  %v2587_v20 = vadd.f32 %v5580_v14, %v5744_v35 }
 0x13f   :  { %3157 = vmatpush2.bf16.msra.mxu0 %v4360_v59  ;;  %v2650_v59 = vadd.f32 %v5512_v31, %v2577_v17  ;;  %v4375_v31 = vld [vmem:[%s6321_s1 + $0xa30] ss:$24 sps:$4 sm:$0xff]  }
 0x140   :  { %3230 = vmatpush2.bf16.msra.mxu1 %v4363_v0  ;;  %3272 = vmatprep.subr.bf16.mxu0 %v4368_v5  ;;  %v2583_v5 = vadd.f32 %v5562_v6, %v5747_v41  ;;  %v4383_v6 = vld [vmem:[%s6321_s1 + $0xa04] ss:$24 sps:$4 sm:$0xff]  }
 0x141   :  { %3345 = vmatprep.subr.bf16.mxu1 %v4371_v58 }
 0x142   :  { %v2722_v0 = vpop.f32.mrf.mxu0  ;;  %3159 = vmatmul.mubr.bf16.vlgmr.msra.gmra.mxu0 %v4698_v8  ;;  %v2654_v8 = vadd.f32 %v5548_v52, %v2581_v1  ;;  %v2589_v1 = vadd.f32 %v5598_v24, %v5747_v41  ;;  %v4389_v24 = vld [vmem:[%s6321_s1 + $0x9d4] ss:$24 sps:$4 sm:$0xff]  }
 0x143   :  { %v2795_v18 = vpop.f32.mrf.mxu1  ;;  %3232 = vmatmul.mubr.bf16.vlgmr.msra.gmra.mxu1 %v4700_v9  ;;  %v2723_v58 = vadd.f32 %v2722_v0, %v2650_v59  ;;  %3273 = vmatpush1.bf16.msra.mxu0 %v4366_v22 }
 0x144   :  { %3346 = vmatpush1.bf16.msra.mxu1 %v4369_v34  ;;  %v2724_v17 = vpop.f32.mrf.mxu0  ;;  %3274 = vmatprep.subr.bf16.mxu0 %v4374_v30 }
 0x145   :  { %v2797_v9 = vpop.f32.mrf.mxu1  ;;  %3347 = vmatprep.subr.bf16.mxu1 %v4377_v36  ;;  %v2796_v22 = vadd.f32 %v2795_v18, %v2723_v58  ;;  %v2725_v34 = vadd.f32 %v2724_v17, %v2652_v51  ;;  %3168 = vmatprep.mubr.bf16.mxu0 %v4737_v21  ;;  %v2656_v36 = vadd.f32 %v5564_v2, %v2583_v5  ;;  %v4378_v21 = vld [vmem:[%s6321_s1 + $0x700] ss:$24 sps:$4 sm:$0xff]  }
 0x146   :  { %3241 = vmatprep.mubr.bf16.mxu1 %v4742_v23  ;;  %v2726_v52 = vpop.f32.mrf.mxu0  ;;  %v4381_v23 = vld [vmem:[%s6321_s1 + $0xa00] ss:$24 sps:$4 sm:$0xff]   ;;  %v2591_v18 = vadd.f32 %v5616_v44, %v5744_v35  ;;  %v2660_v51 = vadd.f32 %v5582_v15, %v2587_v20  ;;  %v2662_v58 = vadd.f32 %v5600_v25, %v2589_v1  ;;  %v2593_v17 = vadd.f32 %v5634_v54, %v5747_v41  ;;  %v4384_v25 = vld [vmem:[%s6321_s1 + $0x6d0] ss:$24 sps:$4 sm:$0xff]   ;;  %v4395_v20 = vld [vmem:[%s6321_s1 + $0x9a4] ss:$24 sps:$4 sm:$0xff]  }
 0x147   :  { %v2799_v30 = vpop.f32.mrf.mxu1  ;;  %3418 = vst [vmem:[%s6324_s3] sm:$0xff] %v2796_v22  ;;  %v2798_v59 = vadd.f32 %v2797_v9, %v2725_v34  ;;  %v2727_v0 = vadd.f32 %v2726_v52, %v2654_v8  ;;  %3275 = vmatpush1.bf16.msra.mxu0 %v4372_v4  ;;  %v4386_v4 = vld [vmem:[%s6321_s1 + $0x6d4] ss:$24 sps:$4 sm:$0xff]   ;;  %v2597_v22 = vadd.f32 %v5650_v12, %v5744_v35 }
 0x148   :  { %3348 = vmatpush1.bf16.msra.mxu1 %v4375_v31  ;;  %v2728_v2 = vpop.f32.mrf.mxu0  ;;  %3276 = vmatprep.subr.bf16.mxu0 %v4380_v39  ;;  %v2599_v1 = vadd.f32 %v5666_v32, %v5747_v41  ;;  %v2601_v32 = vadd.f32 %v5676_v46, %v5744_v35 }
 0x149   :  { %v2801_v14 = vpop.f32.mrf.mxu1  ;;  %3349 = vmatprep.subr.bf16.mxu1 %v4383_v6  ;;  %3419 = vst [vmem:[%s6324_s3 + $0x8] sm:$0xff] %v2798_v59  ;;  %v2800_v5 = vadd.f32 %v2799_v30, %v2727_v0  ;;  %v2729_v44 = vadd.f32 %v2728_v2, %v2656_v36  ;;  %v4392_v6 = vld [vmem:[%s6321_s1 + $0x6a4] ss:$24 sps:$4 sm:$0xff]   ;;  %v2666_v36 = vadd.f32 %v5636_v57, %v2593_v17 }
 0x14a   :  { %v2732_v31 = vpop.f32.mrf.mxu0  ;;  %3169 = vmatmul.mubr.bf16.gmra.mxu0 %v4751_v26  ;;  %v4387_v26 = vld [vmem:[%s6321_s1 + $0x9d0] ss:$24 sps:$4 sm:$0xff]  }
 0x14b   :  { %v2805_v8 = vpop.f32.mrf.mxu1  ;;  %3242 = vmatmul.mubr.bf16.gmra.mxu1 %v4753_v27  ;;  %3424 = vst [vmem:[%s6324_s3 + $0x30] sm:$0xff] %v2800_v5  ;;  %v2802_v15 = vadd.f32 %v2801_v14, %v2729_v44  ;;  %v2733_v9 = vadd.f32 %v2732_v31, %v2660_v51  ;;  %3277 = vmatpush1.bf16.msra.mxu0 %v4378_v21  ;;  %v4398_v21 = vld [vmem:[%s6321_s1 + $0x674] ss:$24 sps:$4 sm:$0xff]   ;;  %v4407_v31 = vld [vmem:[%s6321_s1 + $0x944] ss:$24 sps:$4 sm:$0xff]  }
 0x14c   :  { %3350 = vmatpush1.bf16.msra.mxu1 %v4381_v23  ;;  %v2664_v27 = vadd.f32 %v5618_v45, %v2591_v18  ;;  %v2734_v39 = vpop.f32.mrf.mxu0  ;;  %3278 = vmatprep.subr.bf16.mxu0 %v4386_v4  ;;  %v4401_v23 = vld [vmem:[%s6321_s1 + $0x974] ss:$24 sps:$4 sm:$0xff]   ;;  %v2670_v18 = vadd.f32 %v5652_v13, %v2597_v22  ;;  %v2672_v14 = vadd.f32 %v5668_v33, %v2599_v1  ;;  %v4396_v33 = vld [vmem:[%s6321_s1 + $0x670] ss:$24 sps:$4 sm:$0xff]  }
 0x14d   :  { %v2807_v54 = vpop.f32.mrf.mxu1  ;;  %3351 = vmatprep.subr.bf16.mxu1 %v4389_v24  ;;  %3425 = vst [vmem:[%s6324_s3 + $0x38] sm:$0xff] %v2802_v15  ;;  %v2735_v45 = vadd.f32 %v2734_v39, %v2662_v58  ;;  %v2806_v34 = vadd.f32 %v2805_v8, %v2733_v9  ;;  %3178 = vmatprep.mubr.bf16.mxu0 %v4785_v37  ;;  %v4390_v37 = vld [vmem:[%s6321_s1 + $0x6a0] ss:$24 sps:$4 sm:$0xff]   ;;  %v4404_v58 = vld [vmem:[%s6321_s1 + $0x644] ss:$24 sps:$4 sm:$0xff]  }
 0x14e   :  { %3251 = vmatprep.mubr.bf16.mxu1 %v4787_v38  ;;  %v2736_v52 = vpop.f32.mrf.mxu0  ;;  %v4393_v38 = vld [vmem:[%s6321_s1 + $0x9a0] ss:$24 sps:$4 sm:$0xff]   ;;  %v2603_v51 = vadd.f32 %v5692_v10, %v5747_v41  ;;  %v2607_v8 = vadd.f32 %v5710_v47, %v5744_v35  ;;  %v2609_v15 = vadd.f32 %v5733_v50, %v5747_v41 }
 0x14f   :  { %v2809_v30 = vpop.f32.mrf.mxu1  ;;  %3430 = vst [vmem:[%s6324_s3 + $0x60] sm:$0xff] %v2806_v34  ;;  %v2737_v12 = vadd.f32 %v2736_v52, %v2664_v27  ;;  %v2808_v59 = vadd.f32 %v2807_v54, %v2735_v45  ;;  %3279 = vmatpush1.bf16.msra.mxu0 %v4384_v25  ;;  %v4413_v54 = vld [vmem:[%s6321_s1 + $0x914] ss:$24 sps:$4 sm:$0xff]  }
 0x150   :  { %3352 = vmatpush1.bf16.msra.mxu1 %v4387_v26  ;;  %v2738_v57 = vpop.f32.mrf.mxu0  ;;  %3280 = vmatprep.subr.bf16.mxu0 %v4392_v6  ;;  %v2676_v26 = vadd.f32 %v5694_v16, %v2603_v51  ;;  %v4410_v16 = vld [vmem:[%s6321_s1 + $0x614] ss:$24 sps:$4 sm:$0xff]   ;;  %v2680_v6 = vadd.f32 %v5712_v56, %v2607_v8  ;;  %v2682_v34 = vadd.f32 %v5735_v49, %v2609_v15  ;;  %v4408_v49 = vld [vmem:[%s6321_s1 + $0x610] ss:$24 sps:$4 sm:$0xff]   ;;  %v4431_v51 = vld [vmem:[%s6321_s1 + $0xb84] ss:$24 sps:$4 sm:$0xff]  }
 0x151   :  { %v2811_v0 = vpop.f32.mrf.mxu1  ;;  %3353 = vmatprep.subr.bf16.mxu1 %v4395_v20  ;;  %3431 = vst [vmem:[%s6324_s3 + $0x68] sm:$0xff] %v2808_v59  ;;  %v2739_v2 = vadd.f32 %v2738_v57, %v2666_v36  ;;  %v2810_v46 = vadd.f32 %v2809_v30, %v2737_v12  ;;  %v2611_v20 = vadd.f32 %v5755_v40, %v5744_v35  ;;  %v4441_v8 = vld [vmem:[%s6321_s1 + $0xb20] ss:$24 sps:$4 sm:$0xff]   ;;  %v4444_v15 = vld [vmem:[%s6321_s1 + $0x7f0] ss:$24 sps:$4 sm:$0xff]  }
 0x152   :  { %v2742_v4 = vpop.f32.mrf.mxu0  ;;  %3179 = vmatmul.mubr.bf16.gmra.mxu0 %v4800_v42  ;;  %v4399_v42 = vld [vmem:[%s6321_s1 + $0x970] ss:$24 sps:$4 sm:$0xff]   ;;  %v2613_v56 = vadd.f32 %v5777_v28, %v5747_v41  ;;  %v4416_v28 = vld [vmem:[%s6321_s1 + $0x8e4] ss:$24 sps:$4 sm:$0xff]  }
 0x153   :  { %v2815_v24 = vpop.f32.mrf.mxu1  ;;  %3252 = vmatmul.mubr.bf16.gmra.mxu1 %v4802_v43  ;;  %3436 = vst [vmem:[%s6324_s3 + $0x90] sm:$0xff] %v2810_v46  ;;  %v2743_v13 = vadd.f32 %v2742_v4, %v2670_v18  ;;  %v2812_v5 = vadd.f32 %v2811_v0, %v2739_v2  ;;  %3281 = vmatpush1.bf16.msra.mxu0 %v4390_v37  ;;  %v4419_v41 = vld [vmem:[%s6321_s1 + $0xbe4] ss:$24 sps:$4 sm:$0xff]   ;;  %v4414_v0 = vld [vmem:[%s6321_s1 + $0x8e0] ss:$24 sps:$4 sm:$0xff]  }
 0x154   :  { %3354 = vmatpush1.bf16.msra.mxu1 %v4393_v38  ;;  %v2674_v43 = vadd.f32 %v5684_v53, %v2601_v32  ;;  %v2744_v44 = vpop.f32.mrf.mxu0  ;;  %3282 = vmatprep.subr.bf16.mxu0 %v4398_v21  ;;  %v2684_v36 = vadd.f32 %v5757_v29, %v2611_v20  ;;  %v2686_v32 = vadd.f32 %v5779_v19, %v2613_v56  ;;  %v4422_v19 = vld [vmem:[%s6321_s1 + $0x8b4] ss:$24 sps:$4 sm:$0xff]   ;;  %v4423_v4 = vld [vmem:[%s6321_s1 + $0xbb0] ss:$24 sps:$4 sm:$0xff]  }
 0x155   :  { %v2817_v10 = vpop.f32.mrf.mxu1  ;;  %3355 = vmatprep.subr.bf16.mxu1 %v4401_v23  ;;  %3437 = vst [vmem:[%s6324_s3 + $0x98] sm:$0xff] %v2812_v5  ;;  %v2745_v53 = vadd.f32 %v2744_v44, %v2672_v14  ;;  %v2816_v17 = vadd.f32 %v2815_v24, %v2743_v13  ;;  %3188 = vmatprep.mubr.bf16.mxu0 %v4816_v48  ;;  %v4402_v48 = vld [vmem:[%s6321_s1 + $0x640] ss:$24 sps:$4 sm:$0xff]   ;;  %v4425_v23 = vld [vmem:[%s6321_s1 + $0xbb4] ss:$24 sps:$4 sm:$0xff]  }
 0x156   :  { %3261 = vmatprep.mubr.bf16.mxu1 %v4832_v55  ;;  %v2746_v9 = vpop.f32.mrf.mxu0  ;;  %v4405_v55 = vld [vmem:[%s6321_s1 + $0x940] ss:$24 sps:$4 sm:$0xff]   ;;  %v4420_v14 = vld [vmem:[%s6321_s1 + $0x8b0] ss:$24 sps:$4 sm:$0xff]   ;;  %v4428_v24 = vld [vmem:[%s6321_s1 + $0x884] ss:$24 sps:$4 sm:$0xff]  }
 0x157   :  { %v2819_v25 = vpop.f32.mrf.mxu1  ;;  %3442 = vst [vmem:[%s6324_s3 + $0xc0] sm:$0xff] %v2816_v17  ;;  %v2747_v47 = vadd.f32 %v2746_v9, %v2674_v43  ;;  %v2818_v27 = vadd.f32 %v2817_v10, %v2745_v53  ;;  %3283 = vmatpush1.bf16.msra.mxu0 %v4396_v33  ;;  %v4426_v13 = vld [vmem:[%s6321_s1 + $0x880] ss:$24 sps:$4 sm:$0xff]   ;;  %v4434_v33 = vld [vmem:[%s6321_s1 + $0x854] ss:$24 sps:$4 sm:$0xff]  }
 0x158   :  { %3356 = vmatpush1.bf16.msra.mxu1 %v4399_v42  ;;  %v2748_v50 = vpop.f32.mrf.mxu0  ;;  %3284 = vmatprep.subr.bf16.mxu0 %v4404_v58  ;;  %v4429_v5 = vld [vmem:[%s6321_s1 + $0xb80] ss:$24 sps:$4 sm:$0xff]   ;;  %v4437_v42 = vld [vmem:[%s6321_s1 + $0xb54] ss:$24 sps:$4 sm:$0xff]   ;;  %v4432_v43 = vld [vmem:[%s6321_s1 + $0x850] ss:$24 sps:$4 sm:$0xff]  }
 0x159   :  { %v2821_v39 = vpop.f32.mrf.mxu1  ;;  %3357 = vmatprep.subr.bf16.mxu1 %v4407_v31  ;;  %3443 = vst [vmem:[%s6324_s3 + $0xc8] sm:$0xff] %v2818_v27  ;;  %v2749_v22 = vadd.f32 %v2748_v50, %v2676_v26  ;;  %v2820_v45 = vadd.f32 %v2819_v25, %v2747_v47  ;;  %v4435_v44 = vld [vmem:[%s6321_s1 + $0xb50] ss:$24 sps:$4 sm:$0xff]   ;;  %v4440_v10 = vld [vmem:[%s6321_s1 + $0x824] ss:$24 sps:$4 sm:$0xff]  }
 0x15a   :  { %v2752_v1 = vpop.f32.mrf.mxu0  ;;  %3189 = vmatmul.mubr.bf16.gmra.mxu0 %v4848_v60  ;;  %v4411_v60 = vld [vmem:[%s6321_s1 + $0x910] ss:$24 sps:$4 sm:$0xff]   ;;  %v4443_v58 = vld [vmem:[%s6321_s1 + $0xb24] ss:$24 sps:$4 sm:$0xff]   ;;  %v4438_v31 = vld [vmem:[%s6321_s1 + $0x820] ss:$24 sps:$4 sm:$0xff]  }
 0x15b   :  { %v2825_v52 = vpop.f32.mrf.mxu1  ;;  %3262 = vmatmul.mubr.bf16.gmra.mxu1 %v4850_v61  ;;  %3448 = vst [vmem:[%s6324_s3 + $0xf0] sm:$0xff] %v2820_v45  ;;  %v2753_v40 = vadd.f32 %v2752_v1, %v2680_v6  ;;  %v2822_v35 = vadd.f32 %v2821_v39, %v2749_v22  ;;  %3285 = vmatpush1.bf16.msra.mxu0 %v4402_v48  ;;  %v4446_v53 = vld [vmem:[%s6321_s1 + $0x7f4] ss:$24 sps:$4 sm:$0xff]   ;;  %v4447_v9 = vld [vmem:[%s6321_s1 + $0xaf0] ss:$24 sps:$4 sm:$0xff]   ;;  %v6356_v1 = vld [vmem:[#allocation5_spill] sm:$0xff] }
 0x15c   :  { %3358 = vmatpush1.bf16.msra.mxu1 %v4405_v55  ;;  %v2754_v61 = vpop.f32.mrf.mxu0  ;;  %3286 = vmatprep.subr.bf16.mxu0 %v4410_v16  ;;  %v4449_v17 = vld [vmem:[%s6321_s1 + $0xaf4] ss:$24 sps:$4 sm:$0xff]   ;;  %v4452_v25 = vld [vmem:[%s6321_s1 + $0x7c4] ss:$24 sps:$4 sm:$0xff]   ;;  %v4450_v47 = vld [vmem:[%s6321_s1 + $0x7c0] ss:$24 sps:$4 sm:$0xff]  }
 0x15d   :  { %v2827_v30 = vpop.f32.mrf.mxu1  ;;  %3359 = vmatprep.subr.bf16.mxu1 %v4413_v54  ;;  %3449 = vst [vmem:[%s6324_s3 + $0xf8] sm:$0xff] %v2822_v35  ;;  %v2755_v12 = vadd.f32 %v2754_v61, %v2682_v34  ;;  %v2826_v59 = vadd.f32 %v2825_v52, %v2753_v40  ;;  %3304 = vmatprep.mubr.bf16.mxu0 %v4891_v7  ;;  %v4417_v7 = vld [vmem:[%s6321_s1 + $0xbe0] ss:$24 sps:$4 sm:$0xff]   ;;  %v4455_v26 = vld [vmem:[%s6321_s1 + $0xac4] ss:$24 sps:$4 sm:$0xff]   ;;  %v6354_v45 = vld [vmem:[#allocation3_spill] sm:$0xff] }
 0x15e   :  { %3377 = vmatprep.mubr.bf16.mxu1 %v4898_v11  ;;  %v2756_v37 = vpop.f32.mrf.mxu0  ;;  %v4453_v27 = vld [vmem:[%s6321_s1 + $0xac0] ss:$24 sps:$4 sm:$0xff]   ;;  %v4458_v48 = vld [vmem:[%s6321_s1 + $0x794] ss:$24 sps:$4 sm:$0xff]   ;;  %v4456_v50 = vld [vmem:[%s6321_s1 + $0x790] ss:$24 sps:$4 sm:$0xff]  }
 0x15f   :  { %v2829_v38 = vpop.f32.mrf.mxu1  ;;  %3454 = vst [vmem:[%s6324_s3 + $0x120] sm:$0xff] %v2826_v59  ;;  %v2757_v57 = vadd.f32 %v2756_v37, %v2684_v36  ;;  %v2828_v29 = vadd.f32 %v2827_v30, %v2755_v12  ;;  %3287 = vmatpush1.bf16.msra.mxu0 %v4408_v49  ;;  %v4461_v55 = vld [vmem:[%s6321_s1 + $0xa94] ss:$24 sps:$4 sm:$0xff]   ;;  %v4459_v39 = vld [vmem:[%s6321_s1 + $0xa90] ss:$24 sps:$4 sm:$0xff]   ;;  %v6353_v16 = vld [vmem:[#allocation2_spill] sm:$0xff] }
 0x160   :  { %3360 = vmatpush1.bf16.msra.mxu1 %v4411_v60  ;;  %v2758_v11 = vpop.f32.mrf.mxu0  ;;  %3288 = vmatprep.subr.bf16.mxu0 %v4416_v28  ;;  %v6355_v34 = vld [vmem:[#allocation4_spill] sm:$0xff]  ;;  %v6357_v52 = vld [vmem:[#allocation6_spill] sm:$0xff]  ;;  %v6358_v35 = vld [vmem:[#allocation7_spill] sm:$0xff] }
 0x161   :  { %v2831_v21 = vpop.f32.mrf.mxu1  ;;  %3361 = vmatprep.subr.bf16.mxu1 %v4419_v41  ;;  %3455 = vst [vmem:[%s6324_s3 + $0x128] sm:$0xff] %v2828_v29  ;;  %v2759_v18 = vadd.f32 %v2758_v11, %v2686_v32  ;;  %v2830_v2 = vadd.f32 %v2829_v38, %v2757_v57  ;;  %v6360_v49 = vld [vmem:[#allocation9_spill] sm:$0xff]  ;;  %v6361_v60 = vld [vmem:[#allocation10_spill] sm:$0xff]  ;;  %v6362_v36 = vld [vmem:[#allocation11_spill] sm:$0xff] }
 0x162   :  { %v6363_v12 = vld [vmem:[#allocation12_spill] sm:$0xff] }
 0x163   :  { %3460 = vst [vmem:[%s6324_s3 + $0x150] sm:$0xff] %v2830_v2  ;;  %v2832_v46 = vadd.f32 %v2831_v21, %v2759_v18  ;;  %3289 = vmatpush2.bf16.msra.mxu0 %v4414_v0 }
 0x164   :  { %3362 = vmatpush2.bf16.msra.mxu1 %v4417_v7  ;;  %3290 = vmatprep.subr.bf16.mxu0 %v4422_v19 }
 0x165   :  { %3363 = vmatprep.subr.bf16.mxu1 %v4425_v23  ;;  %3461 = vst [vmem:[%s6324_s3 + $0x158] sm:$0xff] %v2832_v46  ;;  %v6364_v46 = vld [vmem:[#allocation13_spill] sm:$0xff] }
 0x167   :  { %3291 = vmatpush2.bf16.msra.mxu0 %v4420_v14  ;;  %v442_v14 = vsub.s32 2, %v6364_v46 }
 0x168   :  { %3364 = vmatpush2.bf16.msra.mxu1 %v4423_v4  ;;  %3292 = vmatprep.subr.bf16.mxu0 %v4428_v24  ;;  %v446_v4 = vsub.s32 3, %v6364_v46 }
 0x169   :  { %3365 = vmatprep.subr.bf16.mxu1 %v4431_v51 }
 0x16b   :  { %3293 = vmatpush2.bf16.msra.mxu0 %v4426_v13  ;;  %v6365_v13 = vld [vmem:[#allocation14_spill] sm:$0xff] }
 0x16c   :  { %3366 = vmatpush2.bf16.msra.mxu1 %v4429_v5  ;;  %3294 = vmatprep.subr.bf16.mxu0 %v4434_v33  ;;  %v6108_v5 = vrot.slane %v6365_v13, %v442_v14  ;;  %v6111_v33 = vrot.slane %v6365_v13, %v446_v4 }
 0x16d   :  { %3367 = vmatprep.subr.bf16.mxu1 %v4437_v42 }
 0x16f   :  { %3295 = vmatpush2.bf16.msra.mxu0 %v4432_v43 }
 0x170   :  { %3368 = vmatpush2.bf16.msra.mxu1 %v4435_v44  ;;  %3296 = vmatprep.subr.bf16.mxu0 %v4440_v10 }
 0x171   :  { %3369 = vmatprep.subr.bf16.mxu1 %v4443_v58 }
 0x173   :  { %3297 = vmatpush2.bf16.msra.mxu0 %v4438_v31 }
 0x174   :  { %3370 = vmatpush2.bf16.msra.mxu1 %v4441_v8  ;;  %3298 = vmatprep.subr.bf16.mxu0 %v4446_v53 }
 0x175   :  { %3371 = vmatprep.subr.bf16.mxu1 %v4449_v17 }
 0x177   :  { %3299 = vmatpush2.bf16.msra.mxu0 %v4444_v15 }
 0x178   :  { %3372 = vmatpush2.bf16.msra.mxu1 %v4447_v9  ;;  %3300 = vmatprep.subr.bf16.mxu0 %v4452_v25 }
 0x179   :  { %3373 = vmatprep.subr.bf16.mxu1 %v4455_v26 }
 0x17b   :  { %3301 = vmatpush2.bf16.msra.mxu0 %v4450_v47 }
 0x17c   :  { %3374 = vmatpush2.bf16.msra.mxu1 %v4453_v27  ;;  %3302 = vmatprep.subr.bf16.mxu0 %v4458_v48 }
 0x17d   :  { %3375 = vmatprep.subr.bf16.mxu1 %v4461_v55 }
 0x17f   :  { %3303 = vmatpush2.bf16.msra.mxu0 %v4456_v50 }
 0x180   :  { %3376 = vmatpush2.bf16.msra.mxu1 %v4459_v39 }
 0x182   :  { %3305 = vmatmul.mubr.bf16.vlgmr.msra.gmra.mxu0 %v5012_v62  ;;  %v2868_v54 = vpop.f32.mrf.mxu0 }
 0x183   :  { %3378 = vmatmul.mubr.bf16.vlgmr.msra.gmra.mxu1 %v5016_v63  ;;  %3314 = vmatprep.mubr.bf16.mxu0 %v5030_v3  ;;  %v2941_v6 = vpop.f32.mrf.mxu1  ;;  %v6359_v3 = vld [vmem:[#allocation8_spill] sm:$0xff]  ;;  %v2869_v44 = vadd.f32 %v2868_v54, %v6108_v5 }
 0x184   :  { %3387 = vmatprep.mubr.bf16.mxu1 %v6353_v16  ;;  %v2870_v20 = vpop.f32.mrf.mxu0 }
 0x185   :  { %v2943_v22 = vpop.f32.mrf.mxu1  ;;  %v2871_v10 = vadd.f32 %v2870_v20, %v6111_v33  ;;  %v2942_v8 = vadd.f32 %v2941_v6, %v2869_v44 }
 0x186   :  { %v2872_v56 = vpop.f32.mrf.mxu0 }
 0x187   :  { %v2945_v62 = vpop.f32.mrf.mxu1  ;;  %v2873_v53 = vadd.f32 %v2872_v56, %v6108_v5  ;;  %v2944_v9 = vadd.f32 %v2943_v22, %v2871_v10 }
 0x188   :  { %v2874_v40 = vpop.f32.mrf.mxu0 }
 0x189   :  { %v2947_v63 = vpop.f32.mrf.mxu1  ;;  %v2875_v25 = vadd.f32 %v2874_v40, %v6111_v33  ;;  %v2946_v48 = vadd.f32 %v2945_v62, %v2873_v53 }
 0x18a   :  { %3315 = vmatmul.mubr.bf16.gmra.mxu0 %v6354_v45  ;;  %v2878_v61 = vpop.f32.mrf.mxu0 }
 0x18b   :  { %3388 = vmatmul.mubr.bf16.gmra.mxu1 %v6355_v34  ;;  %3324 = vmatprep.mubr.bf16.mxu0 %v6356_v1  ;;  %v2951_v30 = vpop.f32.mrf.mxu1  ;;  %v2879_v55 = vadd.f32 %v2878_v61, %v6108_v5  ;;  %v2948_v20 = vadd.f32 %v2947_v63, %v2875_v25 }
 0x18c   :  { %3397 = vmatprep.mubr.bf16.mxu1 %v6357_v52  ;;  %v2880_v28 = vpop.f32.mrf.mxu0 }
 0x18d   :  { %v2953_v41 = vpop.f32.mrf.mxu1  ;;  %v2881_v6 = vadd.f32 %v2880_v28, %v6111_v33  ;;  %v2952_v52 = vadd.f32 %v2951_v30, %v2879_v55 }
 0x18e   :  { %v2882_v59 = vpop.f32.mrf.mxu0 }
 0x18f   :  { %v2955_v37 = vpop.f32.mrf.mxu1  ;;  %v2883_v56 = vadd.f32 %v2882_v59, %v6108_v5 }
 0x190   :  { %v2884_v38 = vpop.f32.mrf.mxu0 }
 0x191   :  { %v6081_v32 = vpop.f32.mrf.mxu1 }
 0x192   :  { %3325 = vmatmul.mubr.bf16.gmra.mxu0 %v6358_v35  ;;  %v2888_v57 = vpop.f32.mrf.mxu0 }
 0x193   :  { %3398 = vmatmul.mubr.bf16.gmra.mxu1 %v6359_v3  ;;  %3334 = vmatprep.mubr.bf16.mxu0 %v6360_v49  ;;  %v6083_v29 = vpop.f32.mrf.mxu1  ;;  %v2954_v3 = vadd.f32 %v2953_v41, %v2881_v6  ;;  %v2885_v49 = vadd.f32 %v2884_v38, %v6111_v33 }
 0x194   :  { %3407 = vmatprep.mubr.bf16.mxu1 %v6361_v60  ;;  %v6085_v0 = vpop.f32.mrf.mxu0 }
 0x195   :  { %v6087_v7 = vpop.f32.mrf.mxu1  ;;  %v2958_v38 = vadd.f32 %v6081_v32, %v2885_v49  ;;  %v2891_v44 = vadd.f32 %v6085_v0, %v6111_v33 }
 0x196   :  { %v6089_v11 = vpop.f32.mrf.mxu0 }
 0x197   :  { %v6091_v21 = vpop.f32.mrf.mxu1  ;;  %v2964_v25 = vadd.f32 %v6087_v7, %v2891_v44 }
 0x198   :  { %v6093_v19 = vpop.f32.mrf.mxu0 }
 0x199   :  { %v6095_v23 = vpop.f32.mrf.mxu1 }
 0x19a   :  { %3335 = vmatmul.mubr.bf16.gmra.mxu0 %v6362_v36  ;;  %v6097_v18 = vpop.f32.mrf.mxu0  ;;  %v2956_v36 = vadd.f32 %v2955_v37, %v2883_v56 }
 0x19b   :  { %3408 = vmatmul.mubr.bf16.gmra.mxu1 %v6363_v12  ;;  %v6099_v2 = vpop.f32.mrf.mxu1  ;;  %v2889_v12 = vadd.f32 %v2888_v57, %v6108_v5  ;;  %v2899_v55 = vadd.f32 %v6097_v18, %v6108_v5 }
 0x19c   :  { %v6103_v24 = vpop.f32.mrf.mxu0 }
 0x19d   :  { %v6105_v51 = vpop.f32.mrf.mxu1  ;;  %v2962_v53 = vadd.f32 %v6083_v29, %v2889_v12 }
 0x19e   :  { %v6113_v42 = vpop.f32.mrf.mxu0 }
 0x19f   :  { %v6115_v43 = vpop.f32.mrf.mxu1 }
 0x1a0   :  { %v6119_v58 = vpop.f32.mrf.mxu0 }
 0x1a1   :  { %v6121_v31 = vpop.f32.mrf.mxu1  ;;  %v2905_v56 = vadd.f32 %v6119_v58, %v6111_v33 }
 0x1c2   :  { %v3014_v17 = vpop.f32.mrf.mxu0 }
 0x1c3   :  { %v3087_v15 = vpop.f32.mrf.mxu1  ;;  %v3015_v26 = vadd.f32 %v3014_v17, %v2942_v8  ;;  %v2893_v17 = vadd.f32 %v6089_v11, %v6108_v5 }
 0x1c4   :  { %v3016_v47 = vpop.f32.mrf.mxu0 }
 0x1c5   :  { %v3089_v27 = vpop.f32.mrf.mxu1  ;;  %v3088_v50 = vadd.f32 %v3087_v15, %v3015_v26  ;;  %v3017_v39 = vadd.f32 %v3016_v47, %v2944_v9  ;;  %v2895_v26 = vadd.f32 %v6093_v19, %v6111_v33 }
 0x1c6   :  { %v3018_v16 = vpop.f32.mrf.mxu0 }
 0x1c7   :  { %v3091_v54 = vpop.f32.mrf.mxu1  ;;  %3420 = vst [vmem:[%s6324_s3 + $0x10] sm:$0xff] %v3088_v50  ;;  %v3090_v22 = vadd.f32 %v3089_v27, %v3017_v39  ;;  %v3019_v45 = vadd.f32 %v3018_v16, %v2946_v48  ;;  %v2966_v48 = vadd.f32 %v6091_v21, %v2893_v17  ;;  %v2968_v16 = vadd.f32 %v6095_v23, %v2895_v26 }
 0x1c8   :  { %v3020_v34 = vpop.f32.mrf.mxu0 }
 0x1c9   :  { %v3093_v1 = vpop.f32.mrf.mxu1  ;;  %3421 = vst [vmem:[%s6324_s3 + $0x18] sm:$0xff] %v3090_v22  ;;  %v3092_v62 = vadd.f32 %v3091_v54, %v3019_v45  ;;  %v3021_v40 = vadd.f32 %v3020_v34, %v2948_v20  ;;  %v2901_v54 = vadd.f32 %v6103_v24, %v6111_v33  ;;  %v2972_v22 = vadd.f32 %v6099_v2, %v2899_v55 }
 0x1ca   :  { %v3024_v63 = vpop.f32.mrf.mxu0  ;;  %v2903_v45 = vadd.f32 %v6113_v42, %v6108_v5  ;;  %v2978_v33 = vadd.f32 %v6121_v31, %v2905_v56  ;;  %v450_v55 = vsub.s32 4, %v6364_v46 }
 0x1cb   :  { %v3097_v35 = vpop.f32.mrf.mxu1  ;;  %3426 = vst [vmem:[%s6324_s3 + $0x40] sm:$0xff] %v3092_v62  ;;  %v3094_v60 = vadd.f32 %v3093_v1, %v3021_v40  ;;  %v3025_v61 = vadd.f32 %v3024_v63, %v2952_v52  ;;  %v2974_v52 = vadd.f32 %v6105_v51, %v2901_v54 }
 0x1cc   :  { %v3026_v30 = vpop.f32.mrf.mxu0  ;;  %v2976_v40 = vadd.f32 %v6115_v43, %v2903_v45 }
 0x1cd   :  { %v3099_v28 = vpop.f32.mrf.mxu1  ;;  %3427 = vst [vmem:[%s6324_s3 + $0x48] sm:$0xff] %v3094_v60  ;;  %v3027_v59 = vadd.f32 %v3026_v30, %v2954_v3  ;;  %v3098_v14 = vadd.f32 %v3097_v35, %v3025_v61 }
 0x1ce   :  { %v3028_v41 = vpop.f32.mrf.mxu0 }
 0x1cf   :  { %v3101_v4 = vpop.f32.mrf.mxu1  ;;  %3432 = vst [vmem:[%s6324_s3 + $0x70] sm:$0xff] %v3098_v14  ;;  %v3029_v37 = vadd.f32 %v3028_v41, %v2956_v36  ;;  %v3100_v10 = vadd.f32 %v3099_v28, %v3027_v59 }
 0x1d0   :  { %v3030_v57 = vpop.f32.mrf.mxu0 }
 0x1d1   :  { %v3103_v8 = vpop.f32.mrf.mxu1  ;;  %3433 = vst [vmem:[%s6324_s3 + $0x78] sm:$0xff] %v3100_v10  ;;  %v3031_v32 = vadd.f32 %v3030_v57, %v2958_v38  ;;  %v3102_v15 = vadd.f32 %v3101_v4, %v3029_v37 }
 0x1d2   :  { %v3034_v0 = vpop.f32.mrf.mxu0 }
 0x1d3   :  { %v3107_v9 = vpop.f32.mrf.mxu1  ;;  %3438 = vst [vmem:[%s6324_s3 + $0xa0] sm:$0xff] %v3102_v15  ;;  %v3035_v29 = vadd.f32 %v3034_v0, %v2962_v53  ;;  %v3104_v47 = vadd.f32 %v3103_v8, %v3031_v32 }
 0x1d4   :  { %v3036_v11 = vpop.f32.mrf.mxu0 }
 0x1d5   :  { %v3109_v27 = vpop.f32.mrf.mxu1  ;;  %3439 = vst [vmem:[%s6324_s3 + $0xa8] sm:$0xff] %v3104_v47  ;;  %v3037_v7 = vadd.f32 %v3036_v11, %v2964_v25  ;;  %v3108_v50 = vadd.f32 %v3107_v9, %v3035_v29 }
 0x1d6   :  { %v3038_v19 = vpop.f32.mrf.mxu0 }
 0x1d7   :  { %v3111_v39 = vpop.f32.mrf.mxu1  ;;  %3444 = vst [vmem:[%s6324_s3 + $0xd0] sm:$0xff] %v3108_v50  ;;  %v3039_v21 = vadd.f32 %v3038_v19, %v2966_v48  ;;  %v3110_v20 = vadd.f32 %v3109_v27, %v3037_v7  ;;  %v454_v7 = vsub.s32 5, %v6364_v46 }
 0x1d8   :  { %v3040_v18 = vpop.f32.mrf.mxu0 }
 0x1d9   :  { %v3113_v6 = vpop.f32.mrf.mxu1  ;;  %3445 = vst [vmem:[%s6324_s3 + $0xd8] sm:$0xff] %v3110_v20  ;;  %v3041_v23 = vadd.f32 %v3040_v18, %v2968_v16  ;;  %v3112_v34 = vadd.f32 %v3111_v39, %v3039_v21  ;;  %v6228_v39 = vrot.slane %v6365_v13, %v450_v55  ;;  %v6231_v16 = vrot.slane %v6365_v13, %v454_v7 }
 0x1da   :  { %v3044_v24 = vpop.f32.mrf.mxu0 }
 0x1db   :  { %v3117_v1 = vpop.f32.mrf.mxu1  ;;  %3450 = vst [vmem:[%s6324_s3 + $0x100] sm:$0xff] %v3112_v34  ;;  %v3045_v2 = vadd.f32 %v3044_v24, %v2972_v22  ;;  %v3114_v62 = vadd.f32 %v3113_v6, %v3041_v23 }
 0x1dc   :  { %v3046_v5 = vpop.f32.mrf.mxu0 }
 0x1dd   :  { %v3119_v42 = vpop.f32.mrf.mxu1  ;;  %3451 = vst [vmem:[%s6324_s3 + $0x108] sm:$0xff] %v3114_v62  ;;  %v3047_v63 = vadd.f32 %v3046_v5, %v2974_v52  ;;  %v3118_v35 = vadd.f32 %v3117_v1, %v3045_v2 }
 0x1de   :  { %v3048_v51 = vpop.f32.mrf.mxu0 }
 0x1df   :  { %v3121_v3 = vpop.f32.mrf.mxu1  ;;  %3456 = vst [vmem:[%s6324_s3 + $0x130] sm:$0xff] %v3118_v35  ;;  %v3049_v58 = vadd.f32 %v3048_v51, %v2976_v40  ;;  %v3120_v49 = vadd.f32 %v3119_v42, %v3047_v63 }
 0x1e0   :  { %v3050_v60 = vpop.f32.mrf.mxu0 }
 0x1e1   :  { %v3123_v61 = vpop.f32.mrf.mxu1  ;;  %3457 = vst [vmem:[%s6324_s3 + $0x138] sm:$0xff] %v3120_v49  ;;  %v3051_v43 = vadd.f32 %v3050_v60, %v2978_v33  ;;  %v3122_v30 = vadd.f32 %v3121_v3, %v3049_v58 }
 0x1e3   :  { %3462 = vst [vmem:[%s6324_s3 + $0x160] sm:$0xff] %v3122_v30  ;;  %v3124_v28 = vadd.f32 %v3123_v61, %v3051_v43 }
 0x1e5   :  { %3463 = vst [vmem:[%s6324_s3 + $0x168] sm:$0xff] %v3124_v28 }
 0x202   :  { %v3160_v31 = vpop.f32.mrf.mxu0 }
 0x203   :  { %v3233_v36 = vpop.f32.mrf.mxu1  ;;  %v3161_v20 = vadd.f32 %v3160_v31, %v6228_v39 }
 0x204   :  { %v3162_v12 = vpop.f32.mrf.mxu0 }
 0x205   :  { %v3235_v59 = vpop.f32.mrf.mxu1  ;;  %v3163_v18 = vadd.f32 %v3162_v12, %v6231_v16  ;;  %v3234_v22 = vadd.f32 %v3233_v36, %v3161_v20 }
 0x206   :  { %v3164_v14 = vpop.f32.mrf.mxu0 }
 0x207   :  { %v3237_v41 = vpop.f32.mrf.mxu1  ;;  %v3165_v45 = vadd.f32 %v3164_v14, %v6228_v39  ;;  %v3236_v24 = vadd.f32 %v3235_v59, %v3163_v18 }
 0x208   :  { %v3166_v4 = vpop.f32.mrf.mxu0 }
 0x209   :  { %v3239_v38 = vpop.f32.mrf.mxu1  ;;  %v3167_v13 = vadd.f32 %v3166_v4, %v6231_v16  ;;  %v3238_v2 = vadd.f32 %v3237_v41, %v3165_v45 }
 0x20a   :  { %v3170_v44 = vpop.f32.mrf.mxu0 }
 0x20b   :  { %v3243_v37 = vpop.f32.mrf.mxu1  ;;  %v3171_v62 = vadd.f32 %v3170_v44, %v6228_v39  ;;  %v3240_v35 = vadd.f32 %v3239_v38, %v3167_v13 }
 0x20c   :  { %v3172_v10 = vpop.f32.mrf.mxu0 }
 0x20d   :  { %v3245_v57 = vpop.f32.mrf.mxu1  ;;  %v3173_v51 = vadd.f32 %v3172_v10, %v6231_v16  ;;  %v3244_v60 = vadd.f32 %v3243_v37, %v3171_v62 }
 0x20e   :  { %v3174_v8 = vpop.f32.mrf.mxu0 }
 0x20f   :  { %v3247_v53 = vpop.f32.mrf.mxu1  ;;  %v3175_v61 = vadd.f32 %v3174_v8, %v6228_v39  ;;  %v3246_v36 = vadd.f32 %v3245_v57, %v3173_v51 }
 0x210   :  { %v3176_v17 = vpop.f32.mrf.mxu0 }
 0x211   :  { %v6201_v32 = vpop.f32.mrf.mxu1  ;;  %v3177_v12 = vadd.f32 %v3176_v17, %v6231_v16  ;;  %v3248_v38 = vadd.f32 %v3247_v53, %v3175_v61 }
 0x212   :  { %v3180_v15 = vpop.f32.mrf.mxu0 }
 0x213   :  { %v6203_v0 = vpop.f32.mrf.mxu1  ;;  %v3181_v44 = vadd.f32 %v3180_v15, %v6228_v39  ;;  %v3250_v17 = vadd.f32 %v6201_v32, %v3177_v12 }
 0x214   :  { %v6205_v9 = vpop.f32.mrf.mxu0 }
 0x215   :  { %v6207_v25 = vpop.f32.mrf.mxu1  ;;  %v3183_v55 = vadd.f32 %v6205_v9, %v6231_v16  ;;  %v3254_v18 = vadd.f32 %v6203_v0, %v3181_v44 }
 0x216   :  { %v6209_v26 = vpop.f32.mrf.mxu0 }
 0x217   :  { %v6211_v29 = vpop.f32.mrf.mxu1 }
 0x218   :  { %v6213_v47 = vpop.f32.mrf.mxu0 }
 0x219   :  { %v6215_v11 = vpop.f32.mrf.mxu1 }
 0x21a   :  { %v6217_v27 = vpop.f32.mrf.mxu0 }
 0x21b   :  { %v6219_v48 = vpop.f32.mrf.mxu1 }
 0x21c   :  { %v6223_v50 = vpop.f32.mrf.mxu0 }
 0x21d   :  { %v6225_v19 = vpop.f32.mrf.mxu1 }
 0x21e   :  { %v6233_v54 = vpop.f32.mrf.mxu0 }
 0x21f   :  { %v6235_v21 = vpop.f32.mrf.mxu1  ;;  %v3195_v51 = vadd.f32 %v6233_v54, %v6228_v39 }
 0x220   :  { %v6239_v6 = vpop.f32.mrf.mxu0 }
 0x221   :  { %v6241_v46 = vpop.f32.mrf.mxu1  ;;  %v3268_v61 = vadd.f32 %v6235_v21, %v3195_v51 }
 0x242   :  { %v3306_v23 = vpop.f32.mrf.mxu0 }
 0x243   :  { %v3379_v34 = vpop.f32.mrf.mxu1  ;;  %v3307_v1 = vadd.f32 %v3306_v23, %v3234_v22  ;;  %v3185_v22 = vadd.f32 %v6209_v26, %v6228_v39 }
 0x244   :  { %v3308_v52 = vpop.f32.mrf.mxu0 }
 0x245   :  { %v3381_v56 = vpop.f32.mrf.mxu1  ;;  %v3380_v5 = vadd.f32 %v3379_v34, %v3307_v1  ;;  %v3309_v42 = vadd.f32 %v3308_v52, %v3236_v24  ;;  %v3256_v34 = vadd.f32 %v6207_v25, %v3183_v55  ;;  %v3187_v24 = vadd.f32 %v6213_v47, %v6231_v16 }
 0x246   :  { %v3310_v40 = vpop.f32.mrf.mxu0  ;;  %v3258_v52 = vadd.f32 %v6211_v29, %v3185_v22 }
 0x247   :  { %v3383_v63 = vpop.f32.mrf.mxu1  ;;  %3422 = vst [vmem:[%s6324_s3 + $0x20] sm:$0xff] %v3380_v5  ;;  %v3382_v3 = vadd.f32 %v3381_v56, %v3309_v42  ;;  %v3311_v33 = vadd.f32 %v3310_v40, %v3238_v2  ;;  %v3191_v56 = vadd.f32 %v6217_v27, %v6228_v39  ;;  %v3260_v5 = vadd.f32 %v6215_v11, %v3187_v24 }
 0x248   :  { %v3312_v58 = vpop.f32.mrf.mxu0  ;;  %v3193_v42 = vadd.f32 %v6223_v50, %v6231_v16 }
 0x249   :  { %v3385_v49 = vpop.f32.mrf.mxu1  ;;  %3423 = vst [vmem:[%s6324_s3 + $0x28] sm:$0xff] %v3382_v3  ;;  %v3384_v43 = vadd.f32 %v3383_v63, %v3311_v33  ;;  %v3313_v30 = vadd.f32 %v3312_v58, %v3240_v35  ;;  %v3264_v35 = vadd.f32 %v6219_v48, %v3191_v56 }
 0x24a   :  { %v3316_v28 = vpop.f32.mrf.mxu0  ;;  %v3266_v58 = vadd.f32 %v6225_v19, %v3193_v42 }
 0x24b   :  { %v3389_v31 = vpop.f32.mrf.mxu1  ;;  %3428 = vst [vmem:[%s6324_s3 + $0x50] sm:$0xff] %v3384_v43  ;;  %v3386_v59 = vadd.f32 %v3385_v49, %v3313_v30  ;;  %v3317_v14 = vadd.f32 %v3316_v28, %v3244_v60  ;;  %v3197_v49 = vadd.f32 %v6239_v6, %v6231_v16 }
 0x24c   :  { %v3318_v41 = vpop.f32.mrf.mxu0 }
 0x24d   :  { %v3391_v4 = vpop.f32.mrf.mxu1  ;;  %3429 = vst [vmem:[%s6324_s3 + $0x58] sm:$0xff] %v3386_v59  ;;  %v3390_v37 = vadd.f32 %v3389_v31, %v3317_v14  ;;  %v3319_v10 = vadd.f32 %v3318_v41, %v3246_v36  ;;  %v3270_v16 = vadd.f32 %v6241_v46, %v3197_v49 }
 0x24e   :  { %v3320_v57 = vpop.f32.mrf.mxu0 }
 0x24f   :  { %v3393_v8 = vpop.f32.mrf.mxu1  ;;  %3434 = vst [vmem:[%s6324_s3 + $0x80] sm:$0xff] %v3390_v37  ;;  %v3392_v53 = vadd.f32 %v3391_v4, %v3319_v10  ;;  %v3321_v7 = vadd.f32 %v3320_v57, %v3248_v38 }
 0x250   :  { %v3322_v15 = vpop.f32.mrf.mxu0 }
 0x251   :  { %v3395_v20 = vpop.f32.mrf.mxu1  ;;  %3435 = vst [vmem:[%s6324_s3 + $0x88] sm:$0xff] %v3392_v53  ;;  %v3394_v32 = vadd.f32 %v3393_v8, %v3321_v7  ;;  %v3323_v45 = vadd.f32 %v3322_v15, %v3250_v17 }
 0x252   :  { %v3326_v9 = vpop.f32.mrf.mxu0 }
 0x253   :  { %v3399_v23 = vpop.f32.mrf.mxu1  ;;  %3440 = vst [vmem:[%s6324_s3 + $0xb0] sm:$0xff] %v3394_v32  ;;  %v3396_v0 = vadd.f32 %v3395_v20, %v3323_v45  ;;  %v3327_v13 = vadd.f32 %v3326_v9, %v3254_v18 }
 0x254   :  { %v3328_v26 = vpop.f32.mrf.mxu0 }
 0x255   :  { %v3401_v1 = vpop.f32.mrf.mxu1  ;;  %3441 = vst [vmem:[%s6324_s3 + $0xb8] sm:$0xff] %v3396_v0  ;;  %v3400_v25 = vadd.f32 %v3399_v23, %v3327_v13  ;;  %v3329_v2 = vadd.f32 %v3328_v26, %v3256_v34 }
 0x256   :  { %v3330_v47 = vpop.f32.mrf.mxu0 }
 0x257   :  { %v3403_v62 = vpop.f32.mrf.mxu1  ;;  %3446 = vst [vmem:[%s6324_s3 + $0xe0] sm:$0xff] %v3400_v25  ;;  %v3402_v29 = vadd.f32 %v3401_v1, %v3329_v2  ;;  %v3331_v40 = vadd.f32 %v3330_v47, %v3258_v52 }
 0x258   :  { %v3332_v27 = vpop.f32.mrf.mxu0 }
 0x259   :  { %v3405_v63 = vpop.f32.mrf.mxu1  ;;  %3447 = vst [vmem:[%s6324_s3 + $0xe8] sm:$0xff] %v3402_v29  ;;  %v3404_v11 = vadd.f32 %v3403_v62, %v3331_v40  ;;  %v3333_v3 = vadd.f32 %v3332_v27, %v3260_v5 }
 0x25a   :  { %v3336_v50 = vpop.f32.mrf.mxu0 }
 0x25b   :  { %v3409_v33 = vpop.f32.mrf.mxu1  ;;  %3452 = vst [vmem:[%s6324_s3 + $0x110] sm:$0xff] %v3404_v11  ;;  %v3406_v48 = vadd.f32 %v3405_v63, %v3333_v3  ;;  %v3337_v60 = vadd.f32 %v3336_v50, %v3264_v35 }
 0x25c   :  { %v3338_v39 = vpop.f32.mrf.mxu0 }
 0x25d   :  { %v3411_v54 = vpop.f32.mrf.mxu1  ;;  %3453 = vst [vmem:[%s6324_s3 + $0x118] sm:$0xff] %v3406_v48  ;;  %v3410_v43 = vadd.f32 %v3409_v33, %v3337_v60  ;;  %v3339_v30 = vadd.f32 %v3338_v39, %v3266_v58 }
 0x25e   :  { %v3340_v19 = vpop.f32.mrf.mxu0 }
 0x25f   :  { %v3413_v28 = vpop.f32.mrf.mxu1  ;;  %3458 = vst [vmem:[%s6324_s3 + $0x140] sm:$0xff] %v3410_v43  ;;  %v3412_v6 = vadd.f32 %v3411_v54, %v3339_v30  ;;  %v3341_v31 = vadd.f32 %v3340_v19, %v3268_v61 }
 0x260   :  { %v3342_v36 = vpop.f32.mrf.mxu0 }
 0x261   :  { %3459 = vst [vmem:[%s6324_s3 + $0x148] sm:$0xff] %v3412_v6  ;;  %v3414_v21 = vadd.f32 %v3413_v28, %v3341_v31  ;;  %v3343_v12 = vadd.f32 %v3342_v36, %v3270_v16  ;;  %v3415_v59 = vpop.f32.mrf.mxu1 }
 0x263   :  { %3464 = vst [vmem:[%s6324_s3 + $0x170] sm:$0xff] %v3414_v21  ;;  %v3416_v14 = vadd.f32 %v3415_v59, %v3343_v12 }
 0x265   :  { %3465 = vst [vmem:[%s6324_s3 + $0x178] sm:$0xff] %v3416_v14 }

// kernel: model_forward.3
= control target key start
LH: loop header
LB: loop body
LE: loop exit
PB: predicated region body
PF: predicated region fallthrough
CT: control target
= control target key end

     0   :  { %v5605_v2 = vmov 0.0|0.0   ;;  %vm2275_vm0 = vcmask 31744   ;;  %s5598_s0 = inlined_call_operand.vmem [shape: f32[64,768], index: 0, kind: input, shape index: {}, may-alias: {0,1}]   ;;  %s5599_s1 = inlined_call_operand.vmem [shape: f32[64,768], index: 1, kind: input, shape index: {}, may-alias: {0,1}]   ;;  %s5600_s2 = inlined_call_operand.vmem [shape: bf16[256,768], index: 2, kind: input, shape index: {}]   ;;  %s5601_s3 = inlined_call_operand.vmem [shape: f32[1,768], index: 3, kind: input, shape index: {}]   ;;  %s5602_s4 = inlined_call_operand.vmem [shape: f32[256,4], index: 4, kind: input, shape index: {}]   ;;  %s5603_s5 = inlined_call_operand.vmem [shape: f32[1,4], index: 5, kind: input, shape index: {}]   ;;  %s5604_s6 = inlined_call_operand.vmem [shape: f32[8,4], index: 6, kind: output, shape index: {}]  }
   0x1   :  { %v3017_v0 = vld [vmem:[%s5600_s2 + $0x154] ss:$24 sps:$4 sm:$0xff]   ;;  %v3022_v1 = vld [vmem:[%s5600_s2 + $0x150] ss:$24 sps:$4 sm:$0xff]   ;;  %811 = vmatprep.mubr.bf16.mxu0 %v5605_v2  ;;  %852 = vmatprep.mubr.bf16.mxu1 %v5605_v2  ;;  %v3030_v3 = vld [vmem:[%s5600_s2 + $0x124] ss:$24 sps:$4 sm:$0xff]  }
   0x2   :  { %779 = vmatprep.subr.bf16.mxu0 %v3017_v0  ;;  %v3036_v4 = vld [vmem:[%s5600_s2 + $0x120] ss:$24 sps:$4 sm:$0xff]   ;;  %v3042_v5 = vld [vmem:[%s5600_s2 + $0xf4] ss:$24 sps:$4 sm:$0xff]   ;;  %v3048_v6 = vld [vmem:[%s5600_s2 + $0xf0] ss:$24 sps:$4 sm:$0xff]  }
   0x3   :  { %780 = vmatpush1.bf16.msra.mxu0 %v3022_v1  ;;  %v3054_v7 = vld [vmem:[%s5600_s2 + $0xc4] ss:$24 sps:$4 sm:$0xff]   ;;  %v3059_v8 = vld [vmem:[%s5600_s2 + $0xc0] ss:$24 sps:$4 sm:$0xff]   ;;  %v3076_v11 = vld [vmem:[%s5600_s2 + $0x94] ss:$24 sps:$4 sm:$0xff]  }
   0x4   :  { %781 = vmatprep.subr.bf16.mxu0 %v3030_v3  ;;  %v3065_v9 = vld [vmem:[%s5600_s2 + $0x15c] ss:$24 sps:$4 sm:$0xff]   ;;  %v3070_v10 = vld [vmem:[%s5600_s2 + $0x158] ss:$24 sps:$4 sm:$0xff]   ;;  %v3083_v12 = vld [vmem:[%s5600_s2 + $0x12c] ss:$24 sps:$4 sm:$0xff]  }
   0x5   :  { %820 = vmatprep.subr.bf16.mxu1 %v3065_v9  ;;  %v3088_v13 = vld [vmem:[%s5600_s2 + $0x128] ss:$24 sps:$4 sm:$0xff]   ;;  %v3099_v15 = vld [vmem:[%s5600_s2 + $0x64] ss:$24 sps:$4 sm:$0xff]   ;;  %v3112_v17 = vld [vmem:[%s5600_s2 + $0xf8] ss:$24 sps:$4 sm:$0xff]  }
   0x6   :  { %821 = vmatpush1.bf16.msra.mxu1 %v3070_v10  ;;  %v3094_v14 = vld [vmem:[%s5600_s2 + $0x90] ss:$24 sps:$4 sm:$0xff]   ;;  %v3106_v16 = vld [vmem:[%s5600_s2 + $0xfc] ss:$24 sps:$4 sm:$0xff]   ;;  %v3118_v18 = vld [vmem:[%s5600_s2 + $0x60] ss:$24 sps:$4 sm:$0xff]  }
   0x7   :  { %782 = vmatpush1.bf16.msra.mxu0 %v3036_v4  ;;  %822 = vmatprep.subr.bf16.mxu1 %v3083_v12  ;;  %v3124_v19 = vld [vmem:[%s5600_s2 + $0xcc] ss:$24 sps:$4 sm:$0xff]   ;;  %v3136_v21 = vld [vmem:[%s5600_s2 + $0xc8] ss:$24 sps:$4 sm:$0xff]   ;;  %v3148_v23 = vld [vmem:[%s5600_s2 + $0x9c] ss:$24 sps:$4 sm:$0xff]  }
   0x8   :  { %783 = vmatprep.subr.bf16.mxu0 %v3042_v5  ;;  %v3130_v20 = vld [vmem:[%s5600_s2 + $0x34] ss:$24 sps:$4 sm:$0xff]   ;;  %5799 = vst [vmem:[#allocation5_spill] sm:$0xff] %v3136_v21  ;;  %v3142_v22 = vld [vmem:[%s5600_s2 + $0x30] ss:$24 sps:$4 sm:$0xff]   ;;  %5800 = vst [vmem:[#allocation6_spill] sm:$0xff] %v3148_v23 }
   0x9   :  { %v3154_v24 = vld [vmem:[%s5600_s2 + $0x4] ss:$24 sps:$4 sm:$0xff]   ;;  %v3160_v25 = vld [vmem:[%s5600_s2 + $0x98] ss:$24 sps:$4 sm:$0xff]   ;;  %v3178_v28 = vld [vmem:[%s5600_s2 + $0x2d4] ss:$24 sps:$4 sm:$0xff]  }
   0xa   :  { %823 = vmatpush1.bf16.msra.mxu1 %v3088_v13  ;;  %5801 = vst [vmem:[#allocation7_spill] sm:$0xff] %v3160_v25  ;;  %v3166_v26 = vld [vmem:[%s5600_s2] ss:$24 sps:$4 sm:$0xff]   ;;  %v3172_v27 = vld [vmem:[%s5600_s2 + $0x6c] ss:$24 sps:$4 sm:$0xff]  }
   0xb   :  { %784 = vmatpush1.bf16.msra.mxu0 %v3048_v6  ;;  %824 = vmatprep.subr.bf16.mxu1 %v3106_v16  ;;  %5802 = vst [vmem:[#allocation8_spill] sm:$0xff] %v3172_v27  ;;  %v3184_v29 = vld [vmem:[%s5600_s2 + $0x68] ss:$24 sps:$4 sm:$0xff]   ;;  %v3196_v31 = vld [vmem:[%s5600_s2 + $0x3c] ss:$24 sps:$4 sm:$0xff]  }
   0xc   :  { %785 = vmatprep.subr.bf16.mxu0 %v3054_v7  ;;  %5803 = vst [vmem:[#allocation9_spill] sm:$0xff] %v3184_v29  ;;  %v3190_v30 = vld [vmem:[%s5600_s2 + $0x2d0] ss:$24 sps:$4 sm:$0xff]   ;;  %5804 = vst [vmem:[#allocation10_spill] sm:$0xff] %v3196_v31  ;;  %v3202_v32 = vld [vmem:[%s5600_s2 + $0x2a4] ss:$24 sps:$4 sm:$0xff]  }
   0xd   :  { %v3208_v33 = vld [vmem:[%s5600_s2 + $0x38] ss:$24 sps:$4 sm:$0xff]   ;;  %v3220_v35 = vld [vmem:[%s5600_s2 + $0xc] ss:$24 sps:$4 sm:$0xff]   ;;  %v3232_v37 = vld [vmem:[%s5600_s2 + $0x8] ss:$24 sps:$4 sm:$0xff]  }
   0xe   :  { %825 = vmatpush1.bf16.msra.mxu1 %v3112_v17  ;;  %5805 = vst [vmem:[#allocation11_spill] sm:$0xff] %v3208_v33  ;;  %v3214_v34 = vld [vmem:[%s5600_s2 + $0x2a0] ss:$24 sps:$4 sm:$0xff]   ;;  %5806 = vst [vmem:[#allocation12_spill] sm:$0xff] %v3220_v35  ;;  %v3226_v36 = vld [vmem:[%s5600_s2 + $0x274] ss:$24 sps:$4 sm:$0xff]  }
   0xf   :  { %786 = vmatpush1.bf16.msra.mxu0 %v3059_v8  ;;  %826 = vmatprep.subr.bf16.mxu1 %v3124_v19  ;;  %5807 = vst [vmem:[#allocation13_spill] sm:$0xff] %v3232_v37  ;;  %v3238_v38 = vld [vmem:[%s5600_s2 + $0x270] ss:$24 sps:$4 sm:$0xff]   ;;  %v3244_v39 = vld [vmem:[%s5600_s2 + $0x2dc] ss:$24 sps:$4 sm:$0xff]  }
  0x10   :  { %787 = vmatprep.subr.bf16.mxu0 %v3076_v11  ;;  %5808 = vst [vmem:[#allocation14_spill] sm:$0xff] %v3244_v39  ;;  %v3250_v40 = vld [vmem:[%s5600_s2 + $0x244] ss:$24 sps:$4 sm:$0xff]   ;;  %v3256_v41 = vld [vmem:[%s5600_s2 + $0x2d8] ss:$24 sps:$4 sm:$0xff]  }
  0x11   :  { %5809 = vst [vmem:[#allocation15_spill] sm:$0xff] %v3256_v41  ;;  %v3262_v42 = vld [vmem:[%s5600_s2 + $0x240] ss:$24 sps:$4 sm:$0xff]   ;;  %v3268_v43 = vld [vmem:[%s5600_s2 + $0x2ac] ss:$24 sps:$4 sm:$0xff]  }
  0x12   :  { %827 = vmatpush1.bf16.msra.mxu1 %v3136_v21  ;;  %5810 = vst [vmem:[#allocation16_spill] sm:$0xff] %v3268_v43  ;;  %v3274_v44 = vld [vmem:[%s5600_s2 + $0x214] ss:$24 sps:$4 sm:$0xff]   ;;  %v3280_v45 = vld [vmem:[%s5600_s2 + $0x2a8] ss:$24 sps:$4 sm:$0xff]  }
  0x13   :  { %788 = vmatpush1.bf16.msra.mxu0 %v3094_v14  ;;  %828 = vmatprep.subr.bf16.mxu1 %v3148_v23  ;;  %5811 = vst [vmem:[#allocation17_spill] sm:$0xff] %v3280_v45  ;;  %v3286_v46 = vld [vmem:[%s5600_s2 + $0x210] ss:$24 sps:$4 sm:$0xff]   ;;  %v3292_v47 = vld [vmem:[%s5600_s2 + $0x27c] ss:$24 sps:$4 sm:$0xff]  }
  0x14   :  { %789 = vmatprep.subr.bf16.mxu0 %v3099_v15  ;;  %5812 = vst [vmem:[#allocation18_spill] sm:$0xff] %v3292_v47  ;;  %v3298_v48 = vld [vmem:[%s5600_s2 + $0x1e4] ss:$24 sps:$4 sm:$0xff]   ;;  %v3304_v49 = vld [vmem:[%s5600_s2 + $0x278] ss:$24 sps:$4 sm:$0xff]  }
  0x15   :  { %5813 = vst [vmem:[#allocation19_spill] sm:$0xff] %v3304_v49  ;;  %v3310_v50 = vld [vmem:[%s5600_s2 + $0x1e0] ss:$24 sps:$4 sm:$0xff]   ;;  %v3316_v51 = vld [vmem:[%s5600_s2 + $0x24c] ss:$24 sps:$4 sm:$0xff]  }
  0x16   :  { %829 = vmatpush1.bf16.msra.mxu1 %v3160_v25  ;;  %5814 = vst [vmem:[#allocation20_spill] sm:$0xff] %v3316_v51  ;;  %v3322_v52 = vld [vmem:[%s5600_s2 + $0x1b4] ss:$24 sps:$4 sm:$0xff]   ;;  %v3328_v53 = vld [vmem:[%s5600_s2 + $0x248] ss:$24 sps:$4 sm:$0xff]  }
  0x17   :  { %790 = vmatpush1.bf16.msra.mxu0 %v3118_v18  ;;  %830 = vmatprep.subr.bf16.mxu1 %v3172_v27  ;;  %5815 = vst [vmem:[#allocation21_spill] sm:$0xff] %v3328_v53  ;;  %v3334_v54 = vld [vmem:[%s5600_s2 + $0x1b0] ss:$24 sps:$4 sm:$0xff]   ;;  %v3340_v55 = vld [vmem:[%s5600_s2 + $0x21c] ss:$24 sps:$4 sm:$0xff]  }
  0x18   :  { %791 = vmatprep.subr.bf16.mxu0 %v3130_v20  ;;  %5816 = vst [vmem:[#allocation22_spill] sm:$0xff] %v3340_v55  ;;  %v3346_v56 = vld [vmem:[%s5600_s2 + $0x184] ss:$24 sps:$4 sm:$0xff]   ;;  %v3352_v57 = vld [vmem:[%s5600_s2 + $0x218] ss:$24 sps:$4 sm:$0xff]  }
  0x19   :  { %5817 = vst [vmem:[#allocation23_spill] sm:$0xff] %v3352_v57  ;;  %v3358_v58 = vld [vmem:[%s5600_s2 + $0x180] ss:$24 sps:$4 sm:$0xff]   ;;  %v3364_v59 = vld [vmem:[%s5600_s2 + $0x1ec] ss:$24 sps:$4 sm:$0xff]  }
  0x1a   :  { %831 = vmatpush1.bf16.msra.mxu1 %v3184_v29  ;;  %5818 = vst [vmem:[#allocation24_spill] sm:$0xff] %v3364_v59  ;;  %v3370_v60 = vld [vmem:[%s5600_s2 + $0x164] ss:$24 sps:$4 sm:$0xff]   ;;  %v3376_v61 = vld [vmem:[%s5600_s2 + $0x1e8] ss:$24 sps:$4 sm:$0xff]  }
  0x1b   :  { %792 = vmatpush1.bf16.msra.mxu0 %v3142_v22  ;;  %832 = vmatprep.subr.bf16.mxu1 %v3196_v31  ;;  %5819 = vst [vmem:[#allocation25_spill] sm:$0xff] %v3376_v61  ;;  %v3382_v62 = vld [vmem:[%s5600_s2 + $0x160] ss:$24 sps:$4 sm:$0xff]   ;;  %v3388_v63 = vld [vmem:[%s5600_s2 + $0x1bc] ss:$24 sps:$4 sm:$0xff]  }
  0x1c   :  { %793 = vmatprep.subr.bf16.mxu0 %v3154_v24  ;;  %5820 = vst [vmem:[#allocation26_spill] sm:$0xff] %v3382_v62  ;;  %5821 = vst [vmem:[#allocation27_spill] sm:$0xff] %v3388_v63  ;;  %v3394_v2 = vld [vmem:[%s5600_s2 + $0x134] ss:$24 sps:$4 sm:$0xff]  }
  0x1d   :  { %5822 = vst [vmem:[#allocation28_spill] sm:$0xff] %v3394_v2 }
  0x1e   :  { %833 = vmatpush1.bf16.msra.mxu1 %v3208_v33 }
  0x1f   :  { %794 = vmatpush1.bf16.msra.mxu0 %v3166_v26  ;;  %834 = vmatprep.subr.bf16.mxu1 %v3220_v35 }
  0x20   :  { %795 = vmatprep.subr.bf16.mxu0 %v3178_v28 }
  0x22   :  { %835 = vmatpush1.bf16.msra.mxu1 %v3232_v37 }
  0x23   :  { %796 = vmatpush2.bf16.msra.mxu0 %v3190_v30  ;;  %836 = vmatprep.subr.bf16.mxu1 %v3244_v39 }
  0x24   :  { %797 = vmatprep.subr.bf16.mxu0 %v3202_v32 }
  0x26   :  { %837 = vmatpush2.bf16.msra.mxu1 %v3256_v41 }
  0x27   :  { %798 = vmatpush2.bf16.msra.mxu0 %v3214_v34  ;;  %838 = vmatprep.subr.bf16.mxu1 %v3268_v43 }
  0x28   :  { %799 = vmatprep.subr.bf16.mxu0 %v3226_v36 }
  0x2a   :  { %839 = vmatpush2.bf16.msra.mxu1 %v3280_v45 }
  0x2b   :  { %800 = vmatpush2.bf16.msra.mxu0 %v3238_v38  ;;  %840 = vmatprep.subr.bf16.mxu1 %v3292_v47 }
  0x2c   :  { %801 = vmatprep.subr.bf16.mxu0 %v3250_v40 }
  0x2e   :  { %841 = vmatpush2.bf16.msra.mxu1 %v3304_v49 }
  0x2f   :  { %802 = vmatpush2.bf16.msra.mxu0 %v3262_v42  ;;  %842 = vmatprep.subr.bf16.mxu1 %v3316_v51 }
  0x30   :  { %803 = vmatprep.subr.bf16.mxu0 %v3274_v44 }
  0x32   :  { %843 = vmatpush2.bf16.msra.mxu1 %v3328_v53  ;;  %v3413_v53 = vld [vmem:[%s5600_s2 + $0x18c] ss:$24 sps:$4 sm:$0xff]  }
  0x33   :  { %804 = vmatpush2.bf16.msra.mxu0 %v3286_v46  ;;  %844 = vmatprep.subr.bf16.mxu1 %v3340_v55  ;;  %v3407_v55 = vld [vmem:[%s5600_s2 + $0x130] ss:$24 sps:$4 sm:$0xff]   ;;  %5826 = vst [vmem:[#allocation31_spill] sm:$0xff] %v3413_v53 }
  0x34   :  { %805 = vmatprep.subr.bf16.mxu0 %v3298_v48  ;;  %5825 = vst [vmem:[#allocation30_spill] sm:$0xff] %v3407_v55 }
  0x36   :  { %845 = vmatpush2.bf16.msra.mxu1 %v3352_v57  ;;  %v5823_v57 = vmov 0.0|0.0  }
  0x37   :  { %806 = vmatpush2.bf16.msra.mxu0 %v3310_v50  ;;  %846 = vmatprep.subr.bf16.mxu1 %v3364_v59  ;;  %v3401_v59 = vld [vmem:[%s5600_s2 + $0x1b8] ss:$24 sps:$4 sm:$0xff]  }
  0x38   :  { %807 = vmatprep.subr.bf16.mxu0 %v3322_v52  ;;  %5824 = vst [vmem:[#allocation29_spill] sm:$0xff] %v3401_v59 }
  0x3a   :  { %847 = vmatpush2.bf16.msra.mxu1 %v3376_v61  ;;  %v3419_v61 = vld [vmem:[%s5600_s2 + $0x104] ss:$24 sps:$4 sm:$0xff]  }
  0x3b   :  { %808 = vmatpush2.bf16.msra.mxu0 %v3334_v54  ;;  %848 = vmatprep.subr.bf16.mxu1 %v3388_v63  ;;  %5827 = vst [vmem:[#allocation32_spill] sm:$0xff] %v3419_v61 }
  0x3c   :  { %809 = vmatprep.subr.bf16.mxu0 %v3346_v56 }
  0x3e   :  { %849 = vmatpush2.bf16.msra.mxu1 %v3401_v59  ;;  %v3439_v59 = vld [vmem:[%s5600_s2 + $0xd4] ss:$24 sps:$4 sm:$0xff]  }
  0x3f   :  { %810 = vmatpush2.bf16.msra.mxu0 %v3358_v58  ;;  %850 = vmatprep.subr.bf16.mxu1 %v3413_v53  ;;  %5830 = vst [vmem:[#allocation35_spill] sm:$0xff] %v3439_v59 }
  0x40   :  { %861 = vmatprep.subr.bf16.mxu0 %v3370_v60 }
  0x42   :  { %812 = vmatmul.mubr.bf16.vlgmr.msra.gmra.mxu0 %v5823_v57 }
  0x43   :  { %862 = vmatpush1.bf16.msra.mxu0 %v3382_v62  ;;  %893 = vmatprep.mubr.bf16.mxu0 %v5823_v57  ;;  %v3426_v62 = vld [vmem:[%s5600_s2 + $0x188] ss:$24 sps:$4 sm:$0xff]  }
  0x44   :  { %863 = vmatprep.subr.bf16.mxu0 %v3394_v2  ;;  %5828 = vst [vmem:[#allocation33_spill] sm:$0xff] %v3426_v62  ;;  %v3432_v2 = vld [vmem:[%s5600_s2 + $0x100] ss:$24 sps:$4 sm:$0xff]   ;;  %851 = vmatpush2.bf16.msra.mxu1 %v3426_v62 }
  0x45   :  { %5829 = vst [vmem:[#allocation34_spill] sm:$0xff] %v3432_v2  ;;  %952 = vmatprep.subr.bf16.mxu1 %v3017_v0 }
  0x47   :  { %864 = vmatpush1.bf16.msra.mxu0 %v3407_v55  ;;  %v3446_v55 = vld [vmem:[%s5600_s2 + $0xd0] ss:$24 sps:$4 sm:$0xff]   ;;  %853 = vmatmul.mubr.bf16.vlgmr.msra.gmra.mxu1 %v5823_v57 }
  0x48   :  { %865 = vmatprep.subr.bf16.mxu0 %v3419_v61  ;;  %5831 = vst [vmem:[#allocation36_spill] sm:$0xff] %v3446_v55  ;;  %v3453_v61 = vld [vmem:[%s5600_s2 + $0xa4] ss:$24 sps:$4 sm:$0xff]   ;;  %953 = vmatpush1.bf16.msra.mxu1 %v3022_v1 }
  0x49   :  { %5832 = vst [vmem:[#allocation37_spill] sm:$0xff] %v3453_v61  ;;  %954 = vmatprep.subr.bf16.mxu1 %v3030_v3 }
  0x4b   :  { %866 = vmatpush1.bf16.msra.mxu0 %v3432_v2  ;;  %v3461_v2 = vld [vmem:[%s5600_s2 + $0xa0] ss:$24 sps:$4 sm:$0xff]  }
  0x4c   :  { %867 = vmatprep.subr.bf16.mxu0 %v3439_v59  ;;  %5833 = vst [vmem:[#allocation38_spill] sm:$0xff] %v3461_v2  ;;  %v3468_v59 = vld [vmem:[%s5600_s2 + $0x74] ss:$24 sps:$4 sm:$0xff]   ;;  %955 = vmatpush1.bf16.msra.mxu1 %v3036_v4 }
  0x4d   :  { %5834 = vst [vmem:[#allocation39_spill] sm:$0xff] %v3468_v59  ;;  %956 = vmatprep.subr.bf16.mxu1 %v3042_v5 }
  0x4f   :  { %868 = vmatpush1.bf16.msra.mxu0 %v3446_v55  ;;  %v3475_v55 = vld [vmem:[%s5600_s2 + $0x70] ss:$24 sps:$4 sm:$0xff]  }
  0x50   :  { %869 = vmatprep.subr.bf16.mxu0 %v3453_v61  ;;  %5835 = vst [vmem:[#allocation40_spill] sm:$0xff] %v3475_v55  ;;  %v3482_v61 = vld [vmem:[%s5600_s2 + $0x44] ss:$24 sps:$4 sm:$0xff]   ;;  %957 = vmatpush1.bf16.msra.mxu1 %v3048_v6 }
  0x51   :  { %5836 = vst [vmem:[#allocation41_spill] sm:$0xff] %v3482_v61  ;;  %958 = vmatprep.subr.bf16.mxu1 %v3054_v7 }
  0x53   :  { %870 = vmatpush1.bf16.msra.mxu0 %v3461_v2  ;;  %v3489_v2 = vld [vmem:[%s5600_s2 + $0x40] ss:$24 sps:$4 sm:$0xff]  }
  0x54   :  { %871 = vmatprep.subr.bf16.mxu0 %v3468_v59  ;;  %5837 = vst [vmem:[#allocation42_spill] sm:$0xff] %v3489_v2  ;;  %v3496_v59 = vld [vmem:[%s5600_s2 + $0x14] ss:$24 sps:$4 sm:$0xff]   ;;  %959 = vmatpush1.bf16.msra.mxu1 %v3059_v8 }
  0x55   :  { %5838 = vst [vmem:[#allocation43_spill] sm:$0xff] %v3496_v59  ;;  %960 = vmatprep.subr.bf16.mxu1 %v3076_v11 }
  0x57   :  { %872 = vmatpush1.bf16.msra.mxu0 %v3475_v55  ;;  %v3503_v55 = vld [vmem:[%s5600_s2 + $0x10] ss:$24 sps:$4 sm:$0xff]  }
  0x58   :  { %873 = vmatprep.subr.bf16.mxu0 %v3482_v61  ;;  %5839 = vst [vmem:[#allocation44_spill] sm:$0xff] %v3503_v55  ;;  %v3510_v61 = vld [vmem:[%s5600_s2 + $0x2e4] ss:$24 sps:$4 sm:$0xff]   ;;  %961 = vmatpush1.bf16.msra.mxu1 %v3094_v14 }
  0x59   :  { %5840 = vst [vmem:[#allocation45_spill] sm:$0xff] %v3510_v61  ;;  %962 = vmatprep.subr.bf16.mxu1 %v3099_v15 }
  0x5b   :  { %874 = vmatpush1.bf16.msra.mxu0 %v3489_v2  ;;  %v3517_v2 = vld [vmem:[%s5600_s2 + $0x2e0] ss:$24 sps:$4 sm:$0xff]  }
  0x5c   :  { %875 = vmatprep.subr.bf16.mxu0 %v3496_v59  ;;  %5841 = vst [vmem:[#allocation46_spill] sm:$0xff] %v3517_v2  ;;  %v3524_v59 = vld [vmem:[%s5600_s2 + $0x2b4] ss:$24 sps:$4 sm:$0xff]   ;;  %963 = vmatpush1.bf16.msra.mxu1 %v3118_v18 }
  0x5d   :  { %5842 = vst [vmem:[#allocation47_spill] sm:$0xff] %v3524_v59  ;;  %964 = vmatprep.subr.bf16.mxu1 %v3130_v20 }
  0x5f   :  { %876 = vmatpush1.bf16.msra.mxu0 %v3503_v55  ;;  %v3531_v55 = vld [vmem:[%s5600_s2 + $0x2b0] ss:$24 sps:$4 sm:$0xff]  }
  0x60   :  { %877 = vmatprep.subr.bf16.mxu0 %v3510_v61  ;;  %5843 = vst [vmem:[#allocation48_spill] sm:$0xff] %v3531_v55  ;;  %v3538_v61 = vld [vmem:[%s5600_s2 + $0x284] ss:$24 sps:$4 sm:$0xff]   ;;  %965 = vmatpush1.bf16.msra.mxu1 %v3142_v22 }
  0x61   :  { %5844 = vst [vmem:[#allocation49_spill] sm:$0xff] %v3538_v61  ;;  %966 = vmatprep.subr.bf16.mxu1 %v3154_v24 }
  0x63   :  { %878 = vmatpush2.bf16.msra.mxu0 %v3517_v2  ;;  %v3545_v2 = vld [vmem:[%s5600_s2 + $0x280] ss:$24 sps:$4 sm:$0xff]  }
  0x64   :  { %879 = vmatprep.subr.bf16.mxu0 %v3524_v59  ;;  %5845 = vst [vmem:[#allocation50_spill] sm:$0xff] %v3545_v2  ;;  %v3552_v59 = vld [vmem:[%s5600_s2 + $0x254] ss:$24 sps:$4 sm:$0xff]   ;;  %967 = vmatpush1.bf16.msra.mxu1 %v3166_v26 }
  0x65   :  { %5846 = vst [vmem:[#allocation51_spill] sm:$0xff] %v3552_v59  ;;  %968 = vmatprep.subr.bf16.mxu1 %v3178_v28 }
  0x67   :  { %880 = vmatpush2.bf16.msra.mxu0 %v3531_v55  ;;  %v3559_v55 = vld [vmem:[%s5600_s2 + $0x250] ss:$24 sps:$4 sm:$0xff]  }
  0x68   :  { %881 = vmatprep.subr.bf16.mxu0 %v3538_v61  ;;  %5847 = vst [vmem:[#allocation52_spill] sm:$0xff] %v3559_v55  ;;  %v3566_v61 = vld [vmem:[%s5600_s2 + $0x224] ss:$24 sps:$4 sm:$0xff]   ;;  %969 = vmatpush2.bf16.msra.mxu1 %v3190_v30 }
  0x69   :  { %5848 = vst [vmem:[#allocation53_spill] sm:$0xff] %v3566_v61  ;;  %970 = vmatprep.subr.bf16.mxu1 %v3202_v32 }
  0x6b   :  { %882 = vmatpush2.bf16.msra.mxu0 %v3545_v2  ;;  %v3573_v2 = vld [vmem:[%s5600_s2 + $0x220] ss:$24 sps:$4 sm:$0xff]  }
  0x6c   :  { %883 = vmatprep.subr.bf16.mxu0 %v3552_v59  ;;  %5849 = vst [vmem:[#allocation54_spill] sm:$0xff] %v3573_v2  ;;  %v3580_v59 = vld [vmem:[%s5600_s2 + $0x1f4] ss:$24 sps:$4 sm:$0xff]   ;;  %971 = vmatpush2.bf16.msra.mxu1 %v3214_v34 }
  0x6d   :  { %5850 = vst [vmem:[#allocation55_spill] sm:$0xff] %v3580_v59  ;;  %972 = vmatprep.subr.bf16.mxu1 %v3226_v36 }
  0x6f   :  { %884 = vmatpush2.bf16.msra.mxu0 %v3559_v55  ;;  %v3587_v55 = vld [vmem:[%s5600_s2 + $0x1f0] ss:$24 sps:$4 sm:$0xff]  }
  0x70   :  { %885 = vmatprep.subr.bf16.mxu0 %v3566_v61  ;;  %5851 = vst [vmem:[#allocation56_spill] sm:$0xff] %v3587_v55  ;;  %v3594_v61 = vld [vmem:[%s5600_s2 + $0x1c4] ss:$24 sps:$4 sm:$0xff]   ;;  %973 = vmatpush2.bf16.msra.mxu1 %v3238_v38 }
  0x71   :  { %974 = vmatprep.subr.bf16.mxu1 %v3250_v40 }
  0x73   :  { %886 = vmatpush2.bf16.msra.mxu0 %v3573_v2  ;;  %v3601_v2 = vld [vmem:[%s5600_s2 + $0x1c0] ss:$24 sps:$4 sm:$0xff]  }
  0x74   :  { %887 = vmatprep.subr.bf16.mxu0 %v3580_v59  ;;  %v3608_v59 = vld [vmem:[%s5600_s2 + $0x194] ss:$24 sps:$4 sm:$0xff]   ;;  %975 = vmatpush2.bf16.msra.mxu1 %v3262_v42 }
  0x75   :  { %976 = vmatprep.subr.bf16.mxu1 %v3274_v44 }
  0x77   :  { %888 = vmatpush2.bf16.msra.mxu0 %v3587_v55  ;;  %v3615_v55 = vld [vmem:[%s5600_s2 + $0x190] ss:$24 sps:$4 sm:$0xff]  }
  0x78   :  { %889 = vmatprep.subr.bf16.mxu0 %v3594_v61  ;;  %977 = vmatpush2.bf16.msra.mxu1 %v3286_v46 }
  0x79   :  { %978 = vmatprep.subr.bf16.mxu1 %v3298_v48 }
  0x7b   :  { %890 = vmatpush2.bf16.msra.mxu0 %v3601_v2 }
  0x7c   :  { %891 = vmatprep.subr.bf16.mxu0 %v3608_v59  ;;  %979 = vmatpush2.bf16.msra.mxu1 %v3310_v50 }
  0x7d   :  { %980 = vmatprep.subr.bf16.mxu1 %v3322_v52 }
  0x7f   :  { %892 = vmatpush2.bf16.msra.mxu0 %v3615_v55 }
  0x80   :  { %993 = vmatprep.subr.bf16.mxu0 %v3065_v9  ;;  %981 = vmatpush2.bf16.msra.mxu1 %v3334_v54 }
  0x81   :  { %982 = vmatprep.subr.bf16.mxu1 %v3346_v56 }
  0x82   :  { %894 = vmatmul.mubr.bf16.vlgmr.msra.gmra.mxu0 %v5823_v57  ;;  %v5852_v57 = vld [vmem:[#allocation21_spill] sm:$0xff] }
  0x83   :  { %994 = vmatpush1.bf16.msra.mxu0 %v3070_v10 }
  0x84   :  { %995 = vmatprep.subr.bf16.mxu0 %v3083_v12  ;;  %983 = vmatpush2.bf16.msra.mxu1 %v3358_v58 }
  0x85   :  { %1034 = vmatprep.subr.bf16.mxu1 %v3370_v60 }
  0x87   :  { %996 = vmatpush1.bf16.msra.mxu0 %v3088_v13 }
  0x88   :  { %997 = vmatprep.subr.bf16.mxu0 %v3106_v16 }
  0x8b   :  { %998 = vmatpush1.bf16.msra.mxu0 %v3112_v17 }
  0x8c   :  { %999 = vmatprep.subr.bf16.mxu0 %v3124_v19 }
  0x8f   :  { %1000 = vmatpush1.bf16.msra.mxu0 %v3136_v21 }
  0x90   :  { %1001 = vmatprep.subr.bf16.mxu0 %v3148_v23 }
  0x93   :  { %1002 = vmatpush1.bf16.msra.mxu0 %v3160_v25 }
  0x94   :  { %1003 = vmatprep.subr.bf16.mxu0 %v3172_v27 }
  0x97   :  { %1004 = vmatpush1.bf16.msra.mxu0 %v3184_v29 }
  0x98   :  { %1005 = vmatprep.subr.bf16.mxu0 %v3196_v31 }
  0x9b   :  { %1006 = vmatpush1.bf16.msra.mxu0 %v3208_v33  ;;  %v5853_v33 = vld [vmem:[#allocation22_spill] sm:$0xff] }
  0x9c   :  { %1007 = vmatprep.subr.bf16.mxu0 %v3220_v35  ;;  %v5854_v35 = vld [vmem:[#allocation23_spill] sm:$0xff] }
  0x9f   :  { %1008 = vmatpush1.bf16.msra.mxu0 %v3232_v37  ;;  %v5855_v37 = vld [vmem:[#allocation24_spill] sm:$0xff] }
  0xa0   :  { %1009 = vmatprep.subr.bf16.mxu0 %v3244_v39  ;;  %v5856_v39 = vld [vmem:[#allocation25_spill] sm:$0xff] }
  0xa3   :  { %1010 = vmatpush2.bf16.msra.mxu0 %v3256_v41 }
  0xa4   :  { %1011 = vmatprep.subr.bf16.mxu0 %v3268_v43  ;;  %v5857_v43 = vld [vmem:[#allocation29_spill] sm:$0xff] }
  0xa7   :  { %1012 = vmatpush2.bf16.msra.mxu0 %v3280_v45 }
  0xa8   :  { %1013 = vmatprep.subr.bf16.mxu0 %v3292_v47 }
  0xab   :  { %1014 = vmatpush2.bf16.msra.mxu0 %v3304_v49 }
  0xac   :  { %1015 = vmatprep.subr.bf16.mxu0 %v3316_v51 }
  0xaf   :  { %1016 = vmatpush2.bf16.msra.mxu0 %v5852_v57 }
  0xb0   :  { %1017 = vmatprep.subr.bf16.mxu0 %v5853_v33 }
  0xb3   :  { %1018 = vmatpush2.bf16.msra.mxu0 %v5854_v35  ;;  %v269_v35 = vlaneseq }
  0xb4   :  { %1019 = vmatprep.subr.bf16.mxu0 %v5855_v37 }
  0xb5   :  { %v270_v41 = vshrl.u32 %v269_v35, 7 }
  0xb7   :  { %1020 = vmatpush2.bf16.msra.mxu0 %v5856_v39  ;;  %v271_v31 = vsub.s32 0, %v270_v41  ;;  %v275_v27 = vsub.s32 1, %v270_v41 }
  0xb8   :  { %1021 = vmatprep.subr.bf16.mxu0 %v3388_v63 }
  0xbb   :  { %1022 = vmatpush2.bf16.msra.mxu0 %v5857_v43  ;;  %v263_v43 = vld [vmem:[%s5601_s3] sm:$0x3f] }
  0xbc   :  { %1023 = vmatprep.subr.bf16.mxu0 %v3413_v53  ;;  %v3665_v53 = vrot.slane %v263_v43, %v271_v31 }
  0xbe   :  { %5858 = vst [vmem:[#allocation57_spill] sm:$0xff] %v3665_v53 }
  0xbf   :  { %1024 = vmatpush2.bf16.msra.mxu0 %v3426_v62  ;;  %v283_v62 = vsub.s32 3, %v270_v41 }
  0xc0   :  { %1125 = vmatprep.subr.bf16.mxu0 %v3017_v0 }
 0x102   :  { %v813_v51 = vpop.f32.mrf.mxu0 }
 0x103   :  { %v814_v0 = vadd.f32 %v813_v51, %v3665_v53  ;;  %v3677_v51 = vrot.slane %v263_v43, %v275_v27  ;;  %v2315_v27 = vld [vmem:[%s5599_s1 + $0x170] sm:$0xff] }
 0x104   :  { %v815_v57 = vpop.f32.mrf.mxu0 }
 0x105   :  { %5860 = vst [vmem:[#allocation59_spill] sm:$0xff] %v3677_v51  ;;  %v816_v53 = vadd.f32 %v815_v57, %v3677_v51 }
 0x106   :  { %v817_v49 = vpop.f32.mrf.mxu0 }
 0x107   :  { %v854_v47 = vpop.f32.mrf.mxu1  ;;  %v3671_v49 = vrot.slane %v263_v43, %v283_v62  ;;  %v27_v62 = vld [vmem:[%s5598_s0 + $0x8] sm:$0xff] }
 0x108   :  { %v818_v33 = vpop.f32.mrf.mxu0 }
 0x109   :  { %v856_v45 = vpop.f32.mrf.mxu1  ;;  %v25_v33 = vld [vmem:[%s5598_s0] sm:$0xff]  ;;  %5859 = vst [vmem:[#allocation58_spill] sm:$0xff] %v3671_v49 }
 0x10a   :  { %v908_v63 = vadd.f32 %v814_v0, %v25_v33  ;;  %v857_v35 = vadd.f32 %v856_v45, %v3671_v49  ;;  %v915_v45 = vadd.f32 %v816_v53, %v27_v62  ;;  %v287_v49 = vsub.s32 4, %v270_v41 }
 0x10b   :  { %v858_v37 = vpop.f32.mrf.mxu1 }
 0x10c   :  { %v2314_v37 = vld [vmem:[%s5599_s1 + $0x168] sm:$0xff]  ;;  %v2414_v23 = vmul.f32 -1.442695, %v915_v45  ;;  %v291_v45 = vsub.s32 5, %v270_v41 }
 0x10d   :  { %v859_v39 = vpop.f32.mrf.mxu1  ;;  %v925_v29 = vadd.f32 %v2314_v37, %v857_v35  ;;  %v3683_v35 = vrot.slane %v263_v43, %v287_v49 }
 0x10e   :  { %v2413_v39 = vmul.f32 -1.442695, %v908_v63 }
 0x10f   :  { %v2415_v31 = vmul.f32 -1.442695, %v925_v29  ;;  %5861 = vst [vmem:[#allocation60_spill] sm:$0xff] %v3683_v35  ;;  %v279_v29 = vsub.s32 2, %v270_v41  ;;  %v2316_v41 = vld [vmem:[%s5599_s1 + $0x178] sm:$0xff] }
 0x110   :  { %2626 = vpow2.f32 %v2413_v39 }
 0x111   :  { %2628 = vpow2.f32 %v2415_v31  ;;  %v3689_v31 = vrot.slane %v263_v43, %v279_v29 }
 0x11d   :  { %v2627_v0 = vpop.eup %2626 }
 0x11e   :  { %v912_v33 = vadd.f32 1.0, %v2627_v0  ;;  %v2629_v25 = vpop.eup %2628 }
 0x11f   :  { %v929_v63 = vadd.f32 1.0, %v2629_v25 }
 0x120   :  { %2630 = vrcp.f32 %v912_v33  ;;  %v3692_v33 = vrot.slane %v263_v43, %v291_v45 }
 0x121   :  { %2632 = vpow2.f32 %v2414_v23  ;;  %v855_v23 = vadd.f32 %v854_v47, %v3689_v31 }
 0x122   :  { %2634 = vrcp.f32 %v929_v63  ;;  %v29_v63 = vld [vmem:[%s5598_s0 + $0x10] sm:$0xff] }
 0x12d   :  { %v2631_v49 = vpop.eup %2630 }
 0x12e   :  { %v2633_v51 = vpop.eup %2632  ;;  %v922_v21 = vmul.f32 %v2631_v49, %v855_v23 }
 0x12f   :  { %v2635_v29 = vpop.eup %2634 }
 0x142   :  { %v895_v57 = vpop.f32.mrf.mxu0 }
 0x143   :  { %v896_v37 = vadd.f32 %v895_v57, %v3683_v35  ;;  %v919_v57 = vadd.f32 1.0, %v2633_v51 }
 0x144   :  { %v897_v39 = vpop.f32.mrf.mxu0 }
 0x145   :  { %v932_v53 = vadd.f32 %v2315_v27, %v896_v37  ;;  %v898_v27 = vadd.f32 %v897_v39, %v3692_v33  ;;  %v923_v37 = vadd.f32 %v922_v21, %v29_v63 }
 0x146   :  { %v899_v62 = vpop.f32.mrf.mxu0 }
 0x147   :  { %v2416_v0 = vmul.f32 -1.442695, %v932_v53  ;;  %v939_v53 = vmul.f32 %v2635_v29, %v898_v27 }
 0x148   :  { %v900_v25 = vpop.f32.mrf.mxu0 }
 0x149   :  { %2636 = vpow2.f32 %v2416_v0  ;;  %v940_v62 = vadd.f32 %v2316_v41, %v939_v53  ;;  %v5862_v41 = vld [vmem:[#allocation26_spill] sm:$0xff] }
 0x14a   :  { %2638 = vrcp.f32 %v919_v57 }
 0x14b   :  { %2640 = vtanh.f32 %v923_v37 }
 0x156   :  { %v2637_v47 = vpop.eup %2636 }
 0x157   :  { %v936_v43 = vadd.f32 1.0, %v2637_v47  ;;  %v2639_v0 = vpop.eup %2638  ;;  %v5863_v47 = vld [vmem:[#allocation28_spill] sm:$0xff] }
 0x158   :  { %v2641_v45 = vpop.eup %2640  ;;  %v942_v25 = vsub.f32 1.0, %v2639_v0  ;;  %v944_v21 = vmul.f32 0.0, %v2639_v0  ;;  %v5866_v0 = vld [vmem:[#allocation34_spill] sm:$0xff] }
 0x159   :  { %2642 = vrcp.f32 %v936_v43  ;;  %v5864_v43 = vld [vmem:[#allocation30_spill] sm:$0xff] }
 0x15a   :  { %2644 = vtanh.f32 %v940_v62  ;;  %v943_v39 = vmul.f32 %v2641_v45, %v942_v25  ;;  %v5865_v62 = vld [vmem:[#allocation32_spill] sm:$0xff]  ;;  %v5867_v45 = vld [vmem:[#allocation35_spill] sm:$0xff] }
 0x15b   :  { %v5868_v25 = vld [vmem:[#allocation36_spill] sm:$0xff] }
 0x15c   :  { %v3701_v29 = vadd.f32 %v944_v21, %v943_v39  ;;  %v5902_v39 = vld [vmem:[#allocation18_spill] sm:$0xff]  ;;  %v5905_v21 = vld [vmem:[#allocation21_spill] sm:$0xff] }
 0x15e   :  { %v3709_v53 = vpack.c.bf16 %v3701_v29, %v3701_v29 }
 0x166   :  { %v2643_v23 = vpop.eup %2642 }
 0x167   :  { %v946_v49 = vsub.f32 1.0, %v2643_v23  ;;  %v2645_v51 = vpop.eup %2644  ;;  %v948_v27 = vmul.f32 0.0, %v2643_v23  ;;  %v5901_v23 = vld [vmem:[#allocation17_spill] sm:$0xff] }
 0x169   :  { %v947_v63 = vmul.f32 %v2645_v51, %v946_v49  ;;  %v5903_v49 = vld [vmem:[#allocation19_spill] sm:$0xff]  ;;  %v5904_v51 = vld [vmem:[#allocation20_spill] sm:$0xff] }
 0x16b   :  { %v3703_v57 = vadd.f32 %v948_v27, %v947_v63  ;;  %v5906_v63 = vld [vmem:[#allocation22_spill] sm:$0xff]  ;;  %v5907_v27 = vld [vmem:[#allocation23_spill] sm:$0xff] }
 0x16d   :  { %v951_v37 = vpack.c.bf16 %v3703_v57, %v3703_v57 }
 0x16f   :  { %984 = vmatprep.mubr.bf16.mxu1 %v951_v37  ;;  %1025 = vmatprep.mubr.bf16.mxu0 %v951_v37 }
 0x170   :  { %985 = vmatmul.mubr.bf16.vlgmr.msra.gmra.mxu1 %v3709_v53  ;;  %1026 = vmatmul.mubr.bf16.vlgmr.msra.gmra.mxu0 %v3709_v53 }
 0x171   :  { %1035 = vmatpush1.bf16.msra.mxu1 %v5862_v41  ;;  %1066 = vmatprep.mubr.bf16.mxu1 %v951_v37  ;;  %v5908_v37 = vld [vmem:[#allocation24_spill] sm:$0xff] }
 0x172   :  { %1036 = vmatprep.subr.bf16.mxu1 %v5863_v47  ;;  %1126 = vmatpush1.bf16.msra.mxu0 %v3022_v1  ;;  %v5869_v1 = vld [vmem:[#allocation37_spill] sm:$0xff] }
 0x173   :  { %1127 = vmatprep.subr.bf16.mxu0 %v3030_v3  ;;  %v5870_v3 = vld [vmem:[#allocation38_spill] sm:$0xff] }
 0x175   :  { %1037 = vmatpush1.bf16.msra.mxu1 %v5864_v43 }
 0x176   :  { %1038 = vmatprep.subr.bf16.mxu1 %v5865_v62  ;;  %1128 = vmatpush1.bf16.msra.mxu0 %v3036_v4  ;;  %v5871_v4 = vld [vmem:[#allocation39_spill] sm:$0xff] }
 0x177   :  { %1129 = vmatprep.subr.bf16.mxu0 %v3042_v5  ;;  %v5872_v5 = vld [vmem:[#allocation40_spill] sm:$0xff] }
 0x179   :  { %1039 = vmatpush1.bf16.msra.mxu1 %v5866_v0 }
 0x17a   :  { %1040 = vmatprep.subr.bf16.mxu1 %v5867_v45  ;;  %1130 = vmatpush1.bf16.msra.mxu0 %v3048_v6  ;;  %v5873_v6 = vld [vmem:[#allocation41_spill] sm:$0xff] }
 0x17b   :  { %1131 = vmatprep.subr.bf16.mxu0 %v3054_v7  ;;  %v5874_v7 = vld [vmem:[#allocation42_spill] sm:$0xff] }
 0x17d   :  { %1041 = vmatpush1.bf16.msra.mxu1 %v5868_v25 }
 0x17e   :  { %1042 = vmatprep.subr.bf16.mxu1 %v5869_v1  ;;  %1132 = vmatpush1.bf16.msra.mxu0 %v3059_v8  ;;  %v5875_v8 = vld [vmem:[#allocation43_spill] sm:$0xff] }
 0x17f   :  { %1133 = vmatprep.subr.bf16.mxu0 %v3076_v11  ;;  %v5876_v11 = vld [vmem:[#allocation44_spill] sm:$0xff] }
 0x181   :  { %1043 = vmatpush1.bf16.msra.mxu1 %v5870_v3 }
 0x182   :  { %1044 = vmatprep.subr.bf16.mxu1 %v5871_v4  ;;  %1134 = vmatpush1.bf16.msra.mxu0 %v3094_v14  ;;  %v5877_v14 = vld [vmem:[#allocation45_spill] sm:$0xff] }
 0x183   :  { %1135 = vmatprep.subr.bf16.mxu0 %v3099_v15  ;;  %v5878_v15 = vld [vmem:[#allocation46_spill] sm:$0xff] }
 0x185   :  { %1045 = vmatpush1.bf16.msra.mxu1 %v5872_v5 }
 0x186   :  { %1046 = vmatprep.subr.bf16.mxu1 %v5873_v6  ;;  %1136 = vmatpush1.bf16.msra.mxu0 %v3118_v18  ;;  %v5879_v18 = vld [vmem:[#allocation47_spill] sm:$0xff] }
 0x187   :  { %1137 = vmatprep.subr.bf16.mxu0 %v3130_v20  ;;  %v5880_v20 = vld [vmem:[#allocation48_spill] sm:$0xff] }
 0x189   :  { %1047 = vmatpush1.bf16.msra.mxu1 %v5874_v7 }
 0x18a   :  { %1048 = vmatprep.subr.bf16.mxu1 %v5875_v8  ;;  %1138 = vmatpush1.bf16.msra.mxu0 %v3142_v22  ;;  %v5881_v22 = vld [vmem:[#allocation49_spill] sm:$0xff] }
 0x18b   :  { %1139 = vmatprep.subr.bf16.mxu0 %v3154_v24  ;;  %v5882_v24 = vld [vmem:[#allocation50_spill] sm:$0xff] }
 0x18d   :  { %1049 = vmatpush1.bf16.msra.mxu1 %v5876_v11 }
 0x18e   :  { %1050 = vmatprep.subr.bf16.mxu1 %v5877_v14  ;;  %1140 = vmatpush1.bf16.msra.mxu0 %v3166_v26  ;;  %v5883_v26 = vld [vmem:[#allocation51_spill] sm:$0xff] }
 0x18f   :  { %1141 = vmatprep.subr.bf16.mxu0 %v3178_v28  ;;  %v5884_v28 = vld [vmem:[#allocation52_spill] sm:$0xff] }
 0x191   :  { %1051 = vmatpush2.bf16.msra.mxu1 %v5878_v15 }
 0x192   :  { %1052 = vmatprep.subr.bf16.mxu1 %v5879_v18  ;;  %1142 = vmatpush2.bf16.msra.mxu0 %v3190_v30  ;;  %v5885_v30 = vld [vmem:[#allocation53_spill] sm:$0xff] }
 0x193   :  { %1143 = vmatprep.subr.bf16.mxu0 %v3202_v32  ;;  %v5886_v32 = vld [vmem:[#allocation54_spill] sm:$0xff] }
 0x195   :  { %1053 = vmatpush2.bf16.msra.mxu1 %v5880_v20 }
 0x196   :  { %1054 = vmatprep.subr.bf16.mxu1 %v5881_v22  ;;  %1144 = vmatpush2.bf16.msra.mxu0 %v3214_v34  ;;  %v5887_v34 = vld [vmem:[#allocation55_spill] sm:$0xff] }
 0x197   :  { %1145 = vmatprep.subr.bf16.mxu0 %v3226_v36  ;;  %v5888_v36 = vld [vmem:[#allocation56_spill] sm:$0xff] }
 0x199   :  { %1055 = vmatpush2.bf16.msra.mxu1 %v5882_v24 }
 0x19a   :  { %1056 = vmatprep.subr.bf16.mxu1 %v5883_v26  ;;  %1146 = vmatpush2.bf16.msra.mxu0 %v3238_v38  ;;  %v5889_v38 = vld [vmem:[#allocation5_spill] sm:$0xff] }
 0x19b   :  { %1147 = vmatprep.subr.bf16.mxu0 %v3250_v40  ;;  %v5891_v40 = vld [vmem:[#allocation7_spill] sm:$0xff] }
 0x19d   :  { %1057 = vmatpush2.bf16.msra.mxu1 %v5884_v28 }
 0x19e   :  { %1058 = vmatprep.subr.bf16.mxu1 %v5885_v30  ;;  %1148 = vmatpush2.bf16.msra.mxu0 %v3262_v42  ;;  %v5892_v42 = vld [vmem:[#allocation8_spill] sm:$0xff] }
 0x19f   :  { %1149 = vmatprep.subr.bf16.mxu0 %v3274_v44  ;;  %v5893_v44 = vld [vmem:[#allocation9_spill] sm:$0xff] }
 0x1a1   :  { %1059 = vmatpush2.bf16.msra.mxu1 %v5886_v32 }
 0x1a2   :  { %1060 = vmatprep.subr.bf16.mxu1 %v5887_v34  ;;  %1150 = vmatpush2.bf16.msra.mxu0 %v3286_v46  ;;  %v5900_v46 = vld [vmem:[#allocation16_spill] sm:$0xff] }
 0x1a3   :  { %1151 = vmatprep.subr.bf16.mxu0 %v3298_v48 }
 0x1a5   :  { %1061 = vmatpush2.bf16.msra.mxu1 %v5888_v36 }
 0x1a6   :  { %1062 = vmatprep.subr.bf16.mxu1 %v3594_v61  ;;  %1152 = vmatpush2.bf16.msra.mxu0 %v3310_v50 }
 0x1a7   :  { %1153 = vmatprep.subr.bf16.mxu0 %v3322_v52 }
 0x1a9   :  { %1063 = vmatpush2.bf16.msra.mxu1 %v3601_v2 }
 0x1aa   :  { %1064 = vmatprep.subr.bf16.mxu1 %v3608_v59  ;;  %1154 = vmatpush2.bf16.msra.mxu0 %v3334_v54 }
 0x1ab   :  { %1155 = vmatprep.subr.bf16.mxu0 %v3346_v56 }
 0x1ad   :  { %1065 = vmatpush2.bf16.msra.mxu1 %v3615_v55 }
 0x1ae   :  { %1166 = vmatprep.subr.bf16.mxu1 %v3065_v9  ;;  %1156 = vmatpush2.bf16.msra.mxu0 %v3358_v58  ;;  %v5890_v9 = vld [vmem:[#allocation6_spill] sm:$0xff] }
 0x1af   :  { %1207 = vmatprep.subr.bf16.mxu0 %v3370_v60 }
 0x1b0   :  { %1067 = vmatmul.mubr.bf16.vlgmr.msra.gmra.mxu1 %v3709_v53  ;;  %v5909_v53 = vld [vmem:[#allocation25_spill] sm:$0xff] }
 0x1b1   :  { %1167 = vmatpush1.bf16.msra.mxu1 %v3070_v10  ;;  %v5894_v10 = vld [vmem:[#allocation10_spill] sm:$0xff] }
 0x1b2   :  { %1168 = vmatprep.subr.bf16.mxu1 %v3083_v12  ;;  %v5895_v12 = vld [vmem:[#allocation11_spill] sm:$0xff] }
 0x1b5   :  { %1169 = vmatpush1.bf16.msra.mxu1 %v3088_v13  ;;  %v5896_v13 = vld [vmem:[#allocation12_spill] sm:$0xff] }
 0x1b6   :  { %1170 = vmatprep.subr.bf16.mxu1 %v3106_v16  ;;  %v5897_v16 = vld [vmem:[#allocation13_spill] sm:$0xff] }
 0x1b9   :  { %1171 = vmatpush1.bf16.msra.mxu1 %v3112_v17  ;;  %v5898_v17 = vld [vmem:[#allocation14_spill] sm:$0xff] }
 0x1ba   :  { %1172 = vmatprep.subr.bf16.mxu1 %v3124_v19  ;;  %v5899_v19 = vld [vmem:[#allocation15_spill] sm:$0xff] }
 0x1bd   :  { %1173 = vmatpush1.bf16.msra.mxu1 %v5889_v38  ;;  %v5910_v38 = vld [vmem:[#allocation27_spill] sm:$0xff] }
 0x1be   :  { %1174 = vmatprep.subr.bf16.mxu1 %v5890_v9  ;;  %v5911_v9 = vld [vmem:[#allocation29_spill] sm:$0xff] }
 0x1c1   :  { %1175 = vmatpush1.bf16.msra.mxu1 %v5891_v40  ;;  %v5912_v40 = vld [vmem:[#allocation31_spill] sm:$0xff] }
 0x1c2   :  { %1176 = vmatprep.subr.bf16.mxu1 %v5892_v42  ;;  %v5913_v42 = vld [vmem:[#allocation33_spill] sm:$0xff] }
 0x1c5   :  { %1177 = vmatpush1.bf16.msra.mxu1 %v5893_v44  ;;  %v3812_v44 = vld [vmem:[%s5600_s2 + $0x154] ss:$24 sps:$4 sm:$0xff]  }
 0x1c6   :  { %1178 = vmatprep.subr.bf16.mxu1 %v5894_v10  ;;  %5914 = vst [vmem:[#allocation26_spill] sm:$0xff] %v3812_v44 }
 0x1c9   :  { %1179 = vmatpush1.bf16.msra.mxu1 %v5895_v12 }
 0x1ca   :  { %1180 = vmatprep.subr.bf16.mxu1 %v5896_v13 }
 0x1cd   :  { %1181 = vmatpush1.bf16.msra.mxu1 %v5897_v16 }
 0x1ce   :  { %1182 = vmatprep.subr.bf16.mxu1 %v5898_v17 }
 0x1d1   :  { %1183 = vmatpush2.bf16.msra.mxu1 %v5899_v19 }
 0x1d2   :  { %1184 = vmatprep.subr.bf16.mxu1 %v5900_v46 }
 0x1d5   :  { %1185 = vmatpush2.bf16.msra.mxu1 %v5901_v23 }
 0x1d6   :  { %1186 = vmatprep.subr.bf16.mxu1 %v5902_v39  ;;  %v5915_v39 = vld [vmem:[#allocation57_spill] sm:$0xff] }
 0x1d9   :  { %1187 = vmatpush2.bf16.msra.mxu1 %v5903_v49 }
 0x1da   :  { %1188 = vmatprep.subr.bf16.mxu1 %v5904_v51  ;;  %v31_v51 = vld [vmem:[%s5598_s0 + $0x30] sm:$0xff] }
 0x1dd   :  { %1189 = vmatpush2.bf16.msra.mxu1 %v5905_v21 }
 0x1de   :  { %1190 = vmatprep.subr.bf16.mxu1 %v5906_v63  ;;  %v5916_v63 = vld [vmem:[#allocation58_spill] sm:$0xff] }
 0x1e1   :  { %1191 = vmatpush2.bf16.msra.mxu1 %v5907_v27 }
 0x1e2   :  { %1192 = vmatprep.subr.bf16.mxu1 %v5908_v37 }
 0x1e5   :  { %1193 = vmatpush2.bf16.msra.mxu1 %v5909_v53 }
 0x1e6   :  { %1194 = vmatprep.subr.bf16.mxu1 %v5910_v38 }
 0x1e9   :  { %1195 = vmatpush2.bf16.msra.mxu1 %v5911_v9 }
 0x1ea   :  { %1196 = vmatprep.subr.bf16.mxu1 %v5912_v40 }
 0x1ed   :  { %1197 = vmatpush2.bf16.msra.mxu1 %v5913_v42 }
 0x1ee   :  { %1298 = vmatprep.subr.bf16.mxu1 %v3812_v44  ;;  %v2311_v44 = vld [vmem:[%s5599_s1 + $0x138] sm:$0xff] }
 0x230   :  { %v986_v10 = vpop.f32.mrf.mxu1  ;;  %v1027_v12 = vpop.f32.mrf.mxu0 }
 0x231   :  { %v987_v49 = vadd.f32 %v986_v10, %v5915_v39  ;;  %v33_v10 = vld [vmem:[%s5598_s0 + $0x38] sm:$0xff] }
 0x232   :  { %v988_v13 = vpop.f32.mrf.mxu1  ;;  %v1029_v16 = vpop.f32.mrf.mxu0 }
 0x233   :  { %v1081_v21 = vadd.f32 %v987_v49, %v31_v51  ;;  %v1030_v27 = vadd.f32 %v1029_v16, %v5916_v63 }
 0x234   :  { %v990_v17 = vpop.f32.mrf.mxu1  ;;  %v1031_v19 = vpop.f32.mrf.mxu0 }
 0x235   :  { %v2417_v42 = vmul.f32 -1.442695, %v1081_v21  ;;  %v1098_v40 = vadd.f32 %v2311_v44, %v1030_v27  ;;  %v5917_v19 = vld [vmem:[#allocation59_spill] sm:$0xff] }
 0x236   :  { %v991_v46 = vpop.f32.mrf.mxu1  ;;  %v1032_v23 = vpop.f32.mrf.mxu0 }
 0x237   :  { %2646 = vpow2.f32 %v2417_v42  ;;  %v2419_v17 = vmul.f32 -1.442695, %v1098_v40  ;;  %v989_v46 = vadd.f32 %v988_v13, %v5917_v19  ;;  %v2312_v42 = vld [vmem:[%s5599_s1 + $0x140] sm:$0xff] }
 0x239   :  { %2648 = vpow2.f32 %v2419_v17  ;;  %v1088_v39 = vadd.f32 %v989_v46, %v33_v10 }
 0x23b   :  { %v2418_v51 = vmul.f32 -1.442695, %v1088_v39  ;;  %v1028_v39 = vadd.f32 %v1027_v12, %v3689_v31 }
 0x244   :  { %v2647_v23 = vpop.eup %2646 }
 0x245   :  { %v1085_v49 = vadd.f32 1.0, %v2647_v23 }
 0x246   :  { %v2649_v16 = vpop.eup %2648 }
 0x247   :  { %2650 = vrcp.f32 %v1085_v49  ;;  %v1102_v21 = vadd.f32 1.0, %v2649_v16  ;;  %v35_v49 = vld [vmem:[%s5598_s0 + $0x40] sm:$0xff] }
 0x248   :  { %2652 = vpow2.f32 %v2418_v51 }
 0x249   :  { %2654 = vrcp.f32 %v1102_v21 }
 0x254   :  { %v2651_v46 = vpop.eup %2650 }
 0x255   :  { %v2653_v10 = vpop.eup %2652  ;;  %v1095_v23 = vmul.f32 %v2651_v46, %v1028_v39 }
 0x256   :  { %v1092_v16 = vadd.f32 1.0, %v2653_v10 }
 0x270   :  { %v1068_v40 = vpop.f32.mrf.mxu1 }
 0x271   :  { %v1069_v44 = vadd.f32 %v1068_v40, %v3683_v35  ;;  %v2655_v40 = vpop.eup %2654  ;;  %v1096_v35 = vadd.f32 %v1095_v23, %v35_v49 }
 0x272   :  { %v1070_v13 = vpop.f32.mrf.mxu1 }
 0x273   :  { %v1105_v27 = vadd.f32 %v2312_v42, %v1069_v44  ;;  %v1071_v51 = vadd.f32 %v1070_v13, %v3692_v33 }
 0x274   :  { %v1072_v17 = vpop.f32.mrf.mxu1 }
 0x275   :  { %v2420_v19 = vmul.f32 -1.442695, %v1105_v27  ;;  %v1112_v21 = vmul.f32 %v2655_v40, %v1071_v51 }
 0x276   :  { %v1073_v63 = vpop.f32.mrf.mxu1 }
 0x277   :  { %2656 = vpow2.f32 %v2420_v19  ;;  %v2313_v63 = vld [vmem:[%s5599_s1 + $0x148] sm:$0xff] }
 0x278   :  { %2658 = vrcp.f32 %v1092_v16  ;;  %v1113_v42 = vadd.f32 %v2313_v63, %v1112_v21  ;;  %v4135_v63 = vld [vmem:[%s5600_s2 + $0x8] ss:$24 sps:$4 sm:$0xff]  }
 0x279   :  { %2660 = vtanh.f32 %v1096_v35  ;;  %5938 = vst [vmem:[#allocation51_spill] sm:$0xff] %v4135_v63 }
 0x284   :  { %v2657_v19 = vpop.eup %2656 }
 0x285   :  { %v1109_v12 = vadd.f32 1.0, %v2657_v19  ;;  %v2659_v44 = vpop.eup %2658  ;;  %v4141_v19 = vld [vmem:[%s5600_s2 + $0x2dc] ss:$24 sps:$4 sm:$0xff]  }
 0x286   :  { %v2661_v27 = vpop.eup %2660  ;;  %v1115_v17 = vsub.f32 1.0, %v2659_v44  ;;  %v1117_v23 = vmul.f32 %v2659_v44, %v3701_v29  ;;  %v3858_v29 = vld [vmem:[%s5600_s2 + $0x150] ss:$24 sps:$4 sm:$0xff]   ;;  %5939 = vst [vmem:[#allocation52_spill] sm:$0xff] %v4141_v19 }
 0x287   :  { %2662 = vrcp.f32 %v1109_v12  ;;  %v4147_v12 = vld [vmem:[%s5600_s2 + $0x2d8] ss:$24 sps:$4 sm:$0xff]   ;;  %v4159_v44 = vld [vmem:[%s5600_s2 + $0x2a8] ss:$24 sps:$4 sm:$0xff]  }
 0x288   :  { %2664 = vtanh.f32 %v1113_v42  ;;  %v1116_v13 = vmul.f32 %v2661_v27, %v1115_v17  ;;  %5940 = vst [vmem:[#allocation53_spill] sm:$0xff] %v4147_v12  ;;  %v4153_v42 = vld [vmem:[%s5600_s2 + $0x2ac] ss:$24 sps:$4 sm:$0xff]   ;;  %5942 = vst [vmem:[#allocation55_spill] sm:$0xff] %v4159_v44  ;;  %v4165_v27 = vld [vmem:[%s5600_s2 + $0x27c] ss:$24 sps:$4 sm:$0xff]  }
 0x289   :  { %5941 = vst [vmem:[#allocation54_spill] sm:$0xff] %v4153_v42  ;;  %5943 = vst [vmem:[#allocation56_spill] sm:$0xff] %v4165_v27  ;;  %v4171_v17 = vld [vmem:[%s5600_s2 + $0x278] ss:$24 sps:$4 sm:$0xff]  }
 0x28a   :  { %v3841_v16 = vadd.f32 %v1117_v23, %v1116_v13  ;;  %5944 = vst [vmem:[#allocation5_spill] sm:$0xff] %v4171_v17  ;;  %v4183_v13 = vld [vmem:[%s5600_s2 + $0x248] ss:$24 sps:$4 sm:$0xff]   ;;  %v5949_v23 = vld [vmem:[#allocation31_spill] sm:$0xff] }
 0x28b   :  { %5946 = vst [vmem:[#allocation7_spill] sm:$0xff] %v4183_v13 }
 0x28c   :  { %v3849_v21 = vpack.c.bf16 %v3841_v16, %v3841_v16 }
 0x294   :  { %v2663_v46 = vpop.eup %2662 }
 0x295   :  { %v1119_v39 = vsub.f32 1.0, %v2663_v46  ;;  %v2665_v10 = vpop.eup %2664  ;;  %v1121_v51 = vmul.f32 %v2663_v46, %v3703_v57  ;;  %v3864_v57 = vld [vmem:[%s5600_s2 + $0x124] ss:$24 sps:$4 sm:$0xff]  }
 0x296   :  { %v4177_v46 = vld [vmem:[%s5600_s2 + $0x24c] ss:$24 sps:$4 sm:$0xff]  }
 0x297   :  { %v1120_v49 = vmul.f32 %v2665_v10, %v1119_v39  ;;  %5945 = vst [vmem:[#allocation6_spill] sm:$0xff] %v4177_v46  ;;  %v4189_v39 = vld [vmem:[%s5600_s2 + $0x21c] ss:$24 sps:$4 sm:$0xff]   ;;  %v4195_v10 = vld [vmem:[%s5600_s2 + $0x218] ss:$24 sps:$4 sm:$0xff]  }
 0x298   :  { %5947 = vst [vmem:[#allocation8_spill] sm:$0xff] %v4189_v39  ;;  %5948 = vst [vmem:[#allocation9_spill] sm:$0xff] %v4195_v10 }
 0x299   :  { %v3843_v40 = vadd.f32 %v1121_v51, %v1120_v49  ;;  %v5950_v49 = vld [vmem:[#allocation33_spill] sm:$0xff]  ;;  %v5951_v51 = vld [vmem:[#allocation26_spill] sm:$0xff] }
 0x29b   :  { %v1124_v35 = vpack.c.bf16 %v3843_v40, %v3843_v40 }
 0x29d   :  { %1157 = vmatprep.mubr.bf16.mxu0 %v1124_v35  ;;  %1198 = vmatprep.mubr.bf16.mxu1 %v1124_v35 }
 0x29e   :  { %1158 = vmatmul.mubr.bf16.vlgmr.msra.gmra.mxu0 %v3849_v21  ;;  %1199 = vmatmul.mubr.bf16.vlgmr.msra.gmra.mxu1 %v3849_v21 }
 0x29f   :  { %1208 = vmatpush1.bf16.msra.mxu0 %v5862_v41  ;;  %1239 = vmatprep.mubr.bf16.mxu0 %v1124_v35  ;;  %v3872_v41 = vld [vmem:[%s5600_s2 + $0x120] ss:$24 sps:$4 sm:$0xff]  }
 0x2a0   :  { %1209 = vmatprep.subr.bf16.mxu0 %v5863_v47  ;;  %1299 = vmatpush1.bf16.msra.mxu1 %v3858_v29  ;;  %v3878_v47 = vld [vmem:[%s5600_s2 + $0xf4] ss:$24 sps:$4 sm:$0xff]  }
 0x2a1   :  { %1300 = vmatprep.subr.bf16.mxu1 %v3864_v57 }
 0x2a3   :  { %1210 = vmatpush1.bf16.msra.mxu0 %v5864_v43  ;;  %v3886_v43 = vld [vmem:[%s5600_s2 + $0xf0] ss:$24 sps:$4 sm:$0xff]  }
 0x2a4   :  { %1211 = vmatprep.subr.bf16.mxu0 %v5865_v62  ;;  %1301 = vmatpush1.bf16.msra.mxu1 %v3872_v41  ;;  %v3892_v62 = vld [vmem:[%s5600_s2 + $0xc4] ss:$24 sps:$4 sm:$0xff]  }
 0x2a5   :  { %1302 = vmatprep.subr.bf16.mxu1 %v3878_v47 }
 0x2a7   :  { %1212 = vmatpush1.bf16.msra.mxu0 %v5866_v0  ;;  %v3900_v0 = vld [vmem:[%s5600_s2 + $0xc0] ss:$24 sps:$4 sm:$0xff]  }
 0x2a8   :  { %1213 = vmatprep.subr.bf16.mxu0 %v5867_v45  ;;  %1303 = vmatpush1.bf16.msra.mxu1 %v3886_v43  ;;  %v3906_v45 = vld [vmem:[%s5600_s2 + $0x94] ss:$24 sps:$4 sm:$0xff]  }
 0x2a9   :  { %1304 = vmatprep.subr.bf16.mxu1 %v3892_v62 }
 0x2ab   :  { %1214 = vmatpush1.bf16.msra.mxu0 %v5868_v25  ;;  %v3914_v25 = vld [vmem:[%s5600_s2 + $0x90] ss:$24 sps:$4 sm:$0xff]  }
 0x2ac   :  { %1215 = vmatprep.subr.bf16.mxu0 %v5869_v1  ;;  %1305 = vmatpush1.bf16.msra.mxu1 %v3900_v0  ;;  %v3920_v1 = vld [vmem:[%s5600_s2 + $0x64] ss:$24 sps:$4 sm:$0xff]  }
 0x2ad   :  { %1306 = vmatprep.subr.bf16.mxu1 %v3906_v45 }
 0x2af   :  { %1216 = vmatpush1.bf16.msra.mxu0 %v5870_v3  ;;  %v3928_v3 = vld [vmem:[%s5600_s2 + $0x60] ss:$24 sps:$4 sm:$0xff]  }
 0x2b0   :  { %1217 = vmatprep.subr.bf16.mxu0 %v5871_v4  ;;  %1307 = vmatpush1.bf16.msra.mxu1 %v3914_v25  ;;  %v3934_v4 = vld [vmem:[%s5600_s2 + $0x34] ss:$24 sps:$4 sm:$0xff]  }
 0x2b1   :  { %1308 = vmatprep.subr.bf16.mxu1 %v3920_v1 }
 0x2b3   :  { %1218 = vmatpush1.bf16.msra.mxu0 %v5872_v5  ;;  %v3942_v5 = vld [vmem:[%s5600_s2 + $0x30] ss:$24 sps:$4 sm:$0xff]  }
 0x2b4   :  { %1219 = vmatprep.subr.bf16.mxu0 %v5873_v6  ;;  %1309 = vmatpush1.bf16.msra.mxu1 %v3928_v3  ;;  %v3948_v6 = vld [vmem:[%s5600_s2 + $0x4] ss:$24 sps:$4 sm:$0xff]  }
 0x2b5   :  { %1310 = vmatprep.subr.bf16.mxu1 %v3934_v4 }
 0x2b7   :  { %1220 = vmatpush1.bf16.msra.mxu0 %v5874_v7  ;;  %v3956_v7 = vld [vmem:[%s5600_s2] ss:$24 sps:$4 sm:$0xff]  }
 0x2b8   :  { %1221 = vmatprep.subr.bf16.mxu0 %v5875_v8  ;;  %1311 = vmatpush1.bf16.msra.mxu1 %v3942_v5  ;;  %v3962_v8 = vld [vmem:[%s5600_s2 + $0x2d4] ss:$24 sps:$4 sm:$0xff]  }
 0x2b9   :  { %1312 = vmatprep.subr.bf16.mxu1 %v3948_v6  ;;  %5918 = vst [vmem:[#allocation28_spill] sm:$0xff] %v3962_v8 }
 0x2bb   :  { %1222 = vmatpush1.bf16.msra.mxu0 %v5876_v11  ;;  %v3970_v11 = vld [vmem:[%s5600_s2 + $0x2d0] ss:$24 sps:$4 sm:$0xff]  }
 0x2bc   :  { %1223 = vmatprep.subr.bf16.mxu0 %v5877_v14  ;;  %1313 = vmatpush1.bf16.msra.mxu1 %v3956_v7  ;;  %v3976_v14 = vld [vmem:[%s5600_s2 + $0x2a4] ss:$24 sps:$4 sm:$0xff]  }
 0x2bd   :  { %1314 = vmatprep.subr.bf16.mxu1 %v3962_v8  ;;  %5919 = vst [vmem:[#allocation30_spill] sm:$0xff] %v3976_v14 }
 0x2bf   :  { %1224 = vmatpush2.bf16.msra.mxu0 %v5878_v15  ;;  %v3984_v15 = vld [vmem:[%s5600_s2 + $0x2a0] ss:$24 sps:$4 sm:$0xff]  }
 0x2c0   :  { %1225 = vmatprep.subr.bf16.mxu0 %v5879_v18  ;;  %1315 = vmatpush2.bf16.msra.mxu1 %v3970_v11  ;;  %v3990_v18 = vld [vmem:[%s5600_s2 + $0x274] ss:$24 sps:$4 sm:$0xff]  }
 0x2c1   :  { %1316 = vmatprep.subr.bf16.mxu1 %v3976_v14  ;;  %5920 = vst [vmem:[#allocation32_spill] sm:$0xff] %v3990_v18 }
 0x2c3   :  { %1226 = vmatpush2.bf16.msra.mxu0 %v5880_v20  ;;  %v3998_v20 = vld [vmem:[%s5600_s2 + $0x270] ss:$24 sps:$4 sm:$0xff]  }
 0x2c4   :  { %1227 = vmatprep.subr.bf16.mxu0 %v5881_v22  ;;  %1317 = vmatpush2.bf16.msra.mxu1 %v3984_v15  ;;  %v4004_v22 = vld [vmem:[%s5600_s2 + $0x244] ss:$24 sps:$4 sm:$0xff]  }
 0x2c5   :  { %1318 = vmatprep.subr.bf16.mxu1 %v3990_v18  ;;  %5921 = vst [vmem:[#allocation34_spill] sm:$0xff] %v4004_v22 }
 0x2c7   :  { %1228 = vmatpush2.bf16.msra.mxu0 %v5882_v24  ;;  %v4012_v24 = vld [vmem:[%s5600_s2 + $0x240] ss:$24 sps:$4 sm:$0xff]  }
 0x2c8   :  { %1229 = vmatprep.subr.bf16.mxu0 %v5883_v26  ;;  %1319 = vmatpush2.bf16.msra.mxu1 %v3998_v20  ;;  %v4018_v26 = vld [vmem:[%s5600_s2 + $0x214] ss:$24 sps:$4 sm:$0xff]  }
 0x2c9   :  { %1320 = vmatprep.subr.bf16.mxu1 %v4004_v22  ;;  %5922 = vst [vmem:[#allocation35_spill] sm:$0xff] %v4018_v26 }
 0x2cb   :  { %1230 = vmatpush2.bf16.msra.mxu0 %v5884_v28  ;;  %v4026_v28 = vld [vmem:[%s5600_s2 + $0x210] ss:$24 sps:$4 sm:$0xff]  }
 0x2cc   :  { %1231 = vmatprep.subr.bf16.mxu0 %v5885_v30  ;;  %1321 = vmatpush2.bf16.msra.mxu1 %v4012_v24  ;;  %5923 = vst [vmem:[#allocation36_spill] sm:$0xff] %v4026_v28  ;;  %v4111_v30 = vld [vmem:[%s5600_s2 + $0x68] ss:$24 sps:$4 sm:$0xff]  }
 0x2cd   :  { %1322 = vmatprep.subr.bf16.mxu1 %v4018_v26  ;;  %5934 = vst [vmem:[#allocation47_spill] sm:$0xff] %v4111_v30 }
 0x2cf   :  { %1232 = vmatpush2.bf16.msra.mxu0 %v5886_v32  ;;  %v4117_v32 = vld [vmem:[%s5600_s2 + $0x3c] ss:$24 sps:$4 sm:$0xff]  }
 0x2d0   :  { %1233 = vmatprep.subr.bf16.mxu0 %v5887_v34  ;;  %1323 = vmatpush2.bf16.msra.mxu1 %v4026_v28  ;;  %5935 = vst [vmem:[#allocation48_spill] sm:$0xff] %v4117_v32  ;;  %v4123_v34 = vld [vmem:[%s5600_s2 + $0x38] ss:$24 sps:$4 sm:$0xff]  }
 0x2d1   :  { %1324 = vmatprep.subr.bf16.mxu1 %v3298_v48  ;;  %v4042_v48 = vld [vmem:[%s5600_s2 + $0x15c] ss:$24 sps:$4 sm:$0xff]   ;;  %5936 = vst [vmem:[#allocation49_spill] sm:$0xff] %v4123_v34 }
 0x2d3   :  { %1234 = vmatpush2.bf16.msra.mxu0 %v5888_v36  ;;  %v4129_v36 = vld [vmem:[%s5600_s2 + $0xc] ss:$24 sps:$4 sm:$0xff]  }
 0x2d4   :  { %1235 = vmatprep.subr.bf16.mxu0 %v3594_v61  ;;  %1325 = vmatpush2.bf16.msra.mxu1 %v3310_v50  ;;  %v4057_v50 = vld [vmem:[%s5600_s2 + $0x12c] ss:$24 sps:$4 sm:$0xff]   ;;  %5937 = vst [vmem:[#allocation50_spill] sm:$0xff] %v4129_v36 }
 0x2d5   :  { %1326 = vmatprep.subr.bf16.mxu1 %v3322_v52  ;;  %5925 = vst [vmem:[#allocation38_spill] sm:$0xff] %v4057_v50  ;;  %v4063_v52 = vld [vmem:[%s5600_s2 + $0x128] ss:$24 sps:$4 sm:$0xff]   ;;  %v4105_v61 = vld [vmem:[%s5600_s2 + $0x6c] ss:$24 sps:$4 sm:$0xff]  }
 0x2d6   :  { %5926 = vst [vmem:[#allocation39_spill] sm:$0xff] %v4063_v52  ;;  %5933 = vst [vmem:[#allocation46_spill] sm:$0xff] %v4105_v61 }
 0x2d7   :  { %1236 = vmatpush2.bf16.msra.mxu0 %v3601_v2  ;;  %v4051_v2 = vld [vmem:[%s5600_s2 + $0x158] ss:$24 sps:$4 sm:$0xff]  }
 0x2d8   :  { %1237 = vmatprep.subr.bf16.mxu0 %v3608_v59  ;;  %1327 = vmatpush2.bf16.msra.mxu1 %v3334_v54  ;;  %5924 = vst [vmem:[#allocation37_spill] sm:$0xff] %v4051_v2  ;;  %v4069_v54 = vld [vmem:[%s5600_s2 + $0xfc] ss:$24 sps:$4 sm:$0xff]  }
 0x2d9   :  { %1328 = vmatprep.subr.bf16.mxu1 %v3346_v56  ;;  %5927 = vst [vmem:[#allocation40_spill] sm:$0xff] %v4069_v54  ;;  %v4081_v56 = vld [vmem:[%s5600_s2 + $0xcc] ss:$24 sps:$4 sm:$0xff]   ;;  %v4093_v59 = vld [vmem:[%s5600_s2 + $0x9c] ss:$24 sps:$4 sm:$0xff]  }
 0x2da   :  { %5929 = vst [vmem:[#allocation42_spill] sm:$0xff] %v4081_v56  ;;  %5931 = vst [vmem:[#allocation44_spill] sm:$0xff] %v4093_v59 }
 0x2db   :  { %1238 = vmatpush2.bf16.msra.mxu0 %v3615_v55  ;;  %v4075_v55 = vld [vmem:[%s5600_s2 + $0xf8] ss:$24 sps:$4 sm:$0xff]  }
 0x2dc   :  { %1339 = vmatprep.subr.bf16.mxu0 %v4042_v48  ;;  %1329 = vmatpush2.bf16.msra.mxu1 %v3358_v58  ;;  %5928 = vst [vmem:[#allocation41_spill] sm:$0xff] %v4075_v55  ;;  %v4087_v58 = vld [vmem:[%s5600_s2 + $0xc8] ss:$24 sps:$4 sm:$0xff]  }
 0x2dd   :  { %1380 = vmatprep.subr.bf16.mxu1 %v3370_v60  ;;  %5930 = vst [vmem:[#allocation43_spill] sm:$0xff] %v4087_v58  ;;  %v4099_v60 = vld [vmem:[%s5600_s2 + $0x98] ss:$24 sps:$4 sm:$0xff]  }
 0x2de   :  { %1240 = vmatmul.mubr.bf16.vlgmr.msra.gmra.mxu0 %v3849_v21  ;;  %5932 = vst [vmem:[#allocation45_spill] sm:$0xff] %v4099_v60 }
 0x2df   :  { %1340 = vmatpush1.bf16.msra.mxu0 %v4051_v2 }
 0x2e0   :  { %1341 = vmatprep.subr.bf16.mxu0 %v4057_v50 }
 0x2e3   :  { %1342 = vmatpush1.bf16.msra.mxu0 %v4063_v52 }
 0x2e4   :  { %1343 = vmatprep.subr.bf16.mxu0 %v4069_v54 }
 0x2e7   :  { %1344 = vmatpush1.bf16.msra.mxu0 %v4075_v55 }
 0x2e8   :  { %1345 = vmatprep.subr.bf16.mxu0 %v4081_v56 }
 0x2eb   :  { %1346 = vmatpush1.bf16.msra.mxu0 %v4087_v58 }
 0x2ec   :  { %1347 = vmatprep.subr.bf16.mxu0 %v4093_v59 }
 0x2ef   :  { %1348 = vmatpush1.bf16.msra.mxu0 %v4099_v60 }
 0x2f0   :  { %1349 = vmatprep.subr.bf16.mxu0 %v4105_v61 }
 0x2f3   :  { %1350 = vmatpush1.bf16.msra.mxu0 %v4111_v30 }
 0x2f4   :  { %1351 = vmatprep.subr.bf16.mxu0 %v4117_v32 }
 0x2f7   :  { %1352 = vmatpush1.bf16.msra.mxu0 %v4123_v34 }
 0x2f8   :  { %1353 = vmatprep.subr.bf16.mxu0 %v4129_v36 }
 0x2fb   :  { %1354 = vmatpush1.bf16.msra.mxu0 %v4135_v63 }
 0x2fc   :  { %1355 = vmatprep.subr.bf16.mxu0 %v4141_v19 }
 0x2ff   :  { %1356 = vmatpush2.bf16.msra.mxu0 %v4147_v12 }
 0x300   :  { %1357 = vmatprep.subr.bf16.mxu0 %v4153_v42 }
 0x303   :  { %1358 = vmatpush2.bf16.msra.mxu0 %v4159_v44 }
 0x304   :  { %1359 = vmatprep.subr.bf16.mxu0 %v4165_v27  ;;  %v5952_v27 = vld [vmem:[#allocation57_spill] sm:$0xff] }
 0x307   :  { %1360 = vmatpush2.bf16.msra.mxu0 %v4171_v17 }
 0x308   :  { %1361 = vmatprep.subr.bf16.mxu0 %v4177_v46 }
 0x30b   :  { %1362 = vmatpush2.bf16.msra.mxu0 %v4183_v13 }
 0x30c   :  { %1363 = vmatprep.subr.bf16.mxu0 %v4189_v39 }
 0x30f   :  { %1364 = vmatpush2.bf16.msra.mxu0 %v4195_v10 }
 0x310   :  { %1365 = vmatprep.subr.bf16.mxu0 %v5908_v37 }
 0x313   :  { %1366 = vmatpush2.bf16.msra.mxu0 %v5909_v53 }
 0x314   :  { %1367 = vmatprep.subr.bf16.mxu0 %v5910_v38  ;;  %v37_v38 = vld [vmem:[%s5598_s0 + $0x60] sm:$0xff] }
 0x317   :  { %1368 = vmatpush2.bf16.msra.mxu0 %v5911_v9 }
 0x318   :  { %1369 = vmatprep.subr.bf16.mxu0 %v5949_v23  ;;  %v5953_v23 = vld [vmem:[#allocation58_spill] sm:$0xff] }
 0x31b   :  { %1370 = vmatpush2.bf16.msra.mxu0 %v5950_v49 }
 0x31c   :  { %1471 = vmatprep.subr.bf16.mxu0 %v5951_v51  ;;  %v2308_v51 = vld [vmem:[%s5599_s1 + $0x108] sm:$0xff] }
 0x35e   :  { %v1159_v35 = vpop.f32.mrf.mxu0  ;;  %v1200_v21 = vpop.f32.mrf.mxu1 }
 0x35f   :  { %v1160_v53 = vadd.f32 %v1159_v35, %v5952_v27  ;;  %v39_v35 = vld [vmem:[%s5598_s0 + $0x68] sm:$0xff] }
 0x360   :  { %v1161_v39 = vpop.f32.mrf.mxu0  ;;  %v1202_v13 = vpop.f32.mrf.mxu1 }
 0x361   :  { %v1254_v9 = vadd.f32 %v1160_v53, %v37_v38  ;;  %v1203_v44 = vadd.f32 %v1202_v13, %v5953_v23 }
 0x362   :  { %v1163_v46 = vpop.f32.mrf.mxu0  ;;  %v1204_v10 = vpop.f32.mrf.mxu1 }
 0x363   :  { %v2421_v49 = vmul.f32 -1.442695, %v1254_v9  ;;  %v1271_v42 = vadd.f32 %v2308_v51, %v1203_v44  ;;  %v2309_v44 = vld [vmem:[%s5599_s1 + $0x110] sm:$0xff]  ;;  %v5955_v51 = vld [vmem:[#allocation60_spill] sm:$0xff] }
 0x364   :  { %v1164_v17 = vpop.f32.mrf.mxu0  ;;  %v1205_v37 = vpop.f32.mrf.mxu1 }
 0x365   :  { %2666 = vpow2.f32 %v2421_v49  ;;  %v2423_v46 = vmul.f32 -1.442695, %v1271_v42  ;;  %v5954_v17 = vld [vmem:[#allocation59_spill] sm:$0xff] }
 0x366   :  { %v1162_v10 = vadd.f32 %v1161_v39, %v5954_v17 }
 0x367   :  { %2668 = vpow2.f32 %v2423_v46 }
 0x368   :  { %v1261_v27 = vadd.f32 %v1162_v10, %v39_v35 }
 0x36a   :  { %v2422_v38 = vmul.f32 -1.442695, %v1261_v27  ;;  %v1201_v27 = vadd.f32 %v1200_v21, %v3689_v31 }
 0x372   :  { %v2667_v37 = vpop.eup %2666 }
 0x373   :  { %v1258_v53 = vadd.f32 1.0, %v2667_v37 }
 0x374   :  { %v2669_v13 = vpop.eup %2668 }
 0x375   :  { %2670 = vrcp.f32 %v1258_v53  ;;  %v1275_v9 = vadd.f32 1.0, %v2669_v13  ;;  %v41_v53 = vld [vmem:[%s5598_s0 + $0x70] sm:$0xff] }
 0x376   :  { %2672 = vpow2.f32 %v2422_v38 }
 0x377   :  { %2674 = vrcp.f32 %v1275_v9 }
 0x382   :  { %v2671_v10 = vpop.eup %2670 }
 0x383   :  { %v2673_v35 = vpop.eup %2672  ;;  %v1268_v37 = vmul.f32 %v2671_v10, %v1201_v27 }
 0x384   :  { %v1265_v13 = vadd.f32 1.0, %v2673_v35 }
 0x39e   :  { %v1241_v42 = vpop.f32.mrf.mxu0 }
 0x39f   :  { %v1242_v49 = vadd.f32 %v1241_v42, %v5955_v51  ;;  %v2675_v42 = vpop.eup %2674  ;;  %v1269_v51 = vadd.f32 %v1268_v37, %v41_v53 }
 0x3a0   :  { %v1243_v39 = vpop.f32.mrf.mxu0 }
 0x3a1   :  { %v1278_v46 = vadd.f32 %v2309_v44, %v1242_v49  ;;  %v1244_v38 = vadd.f32 %v1243_v39, %v3692_v33 }
 0x3a2   :  { %v1245_v17 = vpop.f32.mrf.mxu0 }
 0x3a3   :  { %v2424_v23 = vmul.f32 -1.442695, %v1278_v46  ;;  %v1285_v9 = vmul.f32 %v2675_v42, %v1244_v38 }
 0x3a4   :  { %v1246_v12 = vpop.f32.mrf.mxu0 }
 0x3a5   :  { %2676 = vpow2.f32 %v2424_v23  ;;  %v2310_v12 = vld [vmem:[%s5599_s1 + $0x118] sm:$0xff] }
 0x3a6   :  { %2678 = vrcp.f32 %v1265_v13  ;;  %v1286_v17 = vadd.f32 %v2310_v12, %v1285_v9  ;;  %v4260_v12 = vld [vmem:[%s5600_s2 + $0x130] ss:$24 sps:$4 sm:$0xff]  }
 0x3a7   :  { %2680 = vtanh.f32 %v1269_v51 }
 0x3b2   :  { %v2677_v23 = vpop.eup %2676 }
 0x3b3   :  { %v1282_v21 = vadd.f32 1.0, %v2677_v23  ;;  %v2679_v44 = vpop.eup %2678  ;;  %v4266_v23 = vld [vmem:[%s5600_s2 + $0x104] ss:$24 sps:$4 sm:$0xff]  }
 0x3b4   :  { %v2681_v49 = vpop.eup %2680  ;;  %v1288_v46 = vsub.f32 1.0, %v2679_v44  ;;  %v1290_v37 = vmul.f32 %v2679_v44, %v3841_v16  ;;  %v4246_v16 = vld [vmem:[%s5600_s2 + $0x160] ss:$24 sps:$4 sm:$0xff]   ;;  %v4288_v44 = vld [vmem:[%s5600_s2 + $0xd0] ss:$24 sps:$4 sm:$0xff]  }
 0x3b5   :  { %2682 = vrcp.f32 %v1282_v21  ;;  %v4274_v21 = vld [vmem:[%s5600_s2 + $0x100] ss:$24 sps:$4 sm:$0xff]  }
 0x3b6   :  { %2684 = vtanh.f32 %v1286_v17  ;;  %v1289_v39 = vmul.f32 %v2681_v49, %v1288_v46  ;;  %v4280_v17 = vld [vmem:[%s5600_s2 + $0xd4] ss:$24 sps:$4 sm:$0xff]   ;;  %v4294_v49 = vld [vmem:[%s5600_s2 + $0xa4] ss:$24 sps:$4 sm:$0xff]   ;;  %v4302_v46 = vld [vmem:[%s5600_s2 + $0xa0] ss:$24 sps:$4 sm:$0xff]  }
 0x3b8   :  { %v4231_v13 = vadd.f32 %v1290_v37, %v1289_v39  ;;  %v4316_v39 = vld [vmem:[%s5600_s2 + $0x70] ss:$24 sps:$4 sm:$0xff]   ;;  %v4336_v37 = vld [vmem:[%s5600_s2 + $0x14] ss:$24 sps:$4 sm:$0xff]  }
 0x3ba   :  { %v4239_v9 = vpack.c.bf16 %v4231_v13, %v4231_v13 }
 0x3c2   :  { %v2683_v10 = vpop.eup %2682 }
 0x3c3   :  { %v1292_v27 = vsub.f32 1.0, %v2683_v10  ;;  %v2685_v35 = vpop.eup %2684  ;;  %v1294_v38 = vmul.f32 %v2683_v10, %v3843_v40  ;;  %v4252_v40 = vld [vmem:[%s5600_s2 + $0x134] ss:$24 sps:$4 sm:$0xff]  }
 0x3c4   :  { %v4308_v10 = vld [vmem:[%s5600_s2 + $0x74] ss:$24 sps:$4 sm:$0xff]  }
 0x3c5   :  { %v1293_v53 = vmul.f32 %v2685_v35, %v1292_v27  ;;  %v4322_v27 = vld [vmem:[%s5600_s2 + $0x44] ss:$24 sps:$4 sm:$0xff]   ;;  %v4330_v35 = vld [vmem:[%s5600_s2 + $0x40] ss:$24 sps:$4 sm:$0xff]  }
 0x3c7   :  { %v4233_v42 = vadd.f32 %v1294_v38, %v1293_v53  ;;  %v4344_v53 = vld [vmem:[%s5600_s2 + $0x10] ss:$24 sps:$4 sm:$0xff]   ;;  %v4350_v38 = vld [vmem:[%s5600_s2 + $0x2e4] ss:$24 sps:$4 sm:$0xff]  }
 0x3c8   :  { %5956 = vst [vmem:[#allocation10_spill] sm:$0xff] %v4344_v53 }
 0x3c9   :  { %v1297_v51 = vpack.c.bf16 %v4233_v42, %v4233_v42 }
 0x3cb   :  { %1330 = vmatprep.mubr.bf16.mxu1 %v1297_v51  ;;  %1371 = vmatprep.mubr.bf16.mxu0 %v1297_v51 }
 0x3cc   :  { %1331 = vmatmul.mubr.bf16.vlgmr.msra.gmra.mxu1 %v4239_v9  ;;  %1372 = vmatmul.mubr.bf16.vlgmr.msra.gmra.mxu0 %v4239_v9 }
 0x3cd   :  { %1381 = vmatpush1.bf16.msra.mxu1 %v4246_v16  ;;  %1412 = vmatprep.mubr.bf16.mxu1 %v1297_v51  ;;  %v4358_v51 = vld [vmem:[%s5600_s2 + $0x2e0] ss:$24 sps:$4 sm:$0xff]  }
 0x3ce   :  { %1382 = vmatprep.subr.bf16.mxu1 %v4252_v40  ;;  %1472 = vmatpush1.bf16.msra.mxu0 %v3858_v29  ;;  %5957 = vst [vmem:[#allocation11_spill] sm:$0xff] %v4358_v51 }
 0x3cf   :  { %1473 = vmatprep.subr.bf16.mxu0 %v3864_v57 }
 0x3d1   :  { %1383 = vmatpush1.bf16.msra.mxu1 %v4260_v12 }
 0x3d2   :  { %1384 = vmatprep.subr.bf16.mxu1 %v4266_v23  ;;  %1474 = vmatpush1.bf16.msra.mxu0 %v3872_v41 }
 0x3d3   :  { %1475 = vmatprep.subr.bf16.mxu0 %v3878_v47 }
 0x3d5   :  { %1385 = vmatpush1.bf16.msra.mxu1 %v4274_v21 }
 0x3d6   :  { %1386 = vmatprep.subr.bf16.mxu1 %v4280_v17  ;;  %1476 = vmatpush1.bf16.msra.mxu0 %v3886_v43 }
 0x3d7   :  { %1477 = vmatprep.subr.bf16.mxu0 %v3892_v62 }
 0x3d9   :  { %1387 = vmatpush1.bf16.msra.mxu1 %v4288_v44 }
 0x3da   :  { %1388 = vmatprep.subr.bf16.mxu1 %v4294_v49  ;;  %1478 = vmatpush1.bf16.msra.mxu0 %v3900_v0 }
 0x3db   :  { %1479 = vmatprep.subr.bf16.mxu0 %v3906_v45 }
 0x3dd   :  { %1389 = vmatpush1.bf16.msra.mxu1 %v4302_v46 }
 0x3de   :  { %1390 = vmatprep.subr.bf16.mxu1 %v4308_v10  ;;  %1480 = vmatpush1.bf16.msra.mxu0 %v3914_v25 }
 0x3df   :  { %1481 = vmatprep.subr.bf16.mxu0 %v3920_v1 }
 0x3e1   :  { %1391 = vmatpush1.bf16.msra.mxu1 %v4316_v39 }
 0x3e2   :  { %1392 = vmatprep.subr.bf16.mxu1 %v4322_v27  ;;  %1482 = vmatpush1.bf16.msra.mxu0 %v3928_v3 }
 0x3e3   :  { %1483 = vmatprep.subr.bf16.mxu0 %v3934_v4 }
 0x3e5   :  { %1393 = vmatpush1.bf16.msra.mxu1 %v4330_v35 }
 0x3e6   :  { %1394 = vmatprep.subr.bf16.mxu1 %v4336_v37  ;;  %1484 = vmatpush1.bf16.msra.mxu0 %v3942_v5 }
 0x3e7   :  { %1485 = vmatprep.subr.bf16.mxu0 %v3948_v6 }
 0x3e9   :  { %1395 = vmatpush1.bf16.msra.mxu1 %v4344_v53  ;;  %v4364_v53 = vld [vmem:[%s5600_s2 + $0x2b4] ss:$24 sps:$4 sm:$0xff]  }
 0x3ea   :  { %1396 = vmatprep.subr.bf16.mxu1 %v4350_v38  ;;  %1486 = vmatpush1.bf16.msra.mxu0 %v3956_v7 }
 0x3eb   :  { %1487 = vmatprep.subr.bf16.mxu0 %v3962_v8  ;;  %v4372_v8 = vld [vmem:[%s5600_s2 + $0x2b0] ss:$24 sps:$4 sm:$0xff]  }
 0x3ec   :  { %5958 = vst [vmem:[#allocation12_spill] sm:$0xff] %v4372_v8 }
 0x3ed   :  { %1397 = vmatpush2.bf16.msra.mxu1 %v4358_v51  ;;  %v4378_v51 = vld [vmem:[%s5600_s2 + $0x284] ss:$24 sps:$4 sm:$0xff]  }
 0x3ee   :  { %1398 = vmatprep.subr.bf16.mxu1 %v4364_v53  ;;  %1488 = vmatpush2.bf16.msra.mxu0 %v3970_v11 }
 0x3ef   :  { %1489 = vmatprep.subr.bf16.mxu0 %v3976_v14  ;;  %v4386_v14 = vld [vmem:[%s5600_s2 + $0x280] ss:$24 sps:$4 sm:$0xff]  }
 0x3f0   :  { %5959 = vst [vmem:[#allocation13_spill] sm:$0xff] %v4386_v14 }
 0x3f1   :  { %1399 = vmatpush2.bf16.msra.mxu1 %v4372_v8  ;;  %v4392_v8 = vld [vmem:[%s5600_s2 + $0x254] ss:$24 sps:$4 sm:$0xff]  }
 0x3f2   :  { %1400 = vmatprep.subr.bf16.mxu1 %v4378_v51  ;;  %1490 = vmatpush2.bf16.msra.mxu0 %v3984_v15 }
 0x3f3   :  { %1491 = vmatprep.subr.bf16.mxu0 %v3990_v18  ;;  %v4400_v18 = vld [vmem:[%s5600_s2 + $0x250] ss:$24 sps:$4 sm:$0xff]  }
 0x3f4   :  { %5960 = vst [vmem:[#allocation14_spill] sm:$0xff] %v4400_v18 }
 0x3f5   :  { %1401 = vmatpush2.bf16.msra.mxu1 %v4386_v14  ;;  %v4406_v14 = vld [vmem:[%s5600_s2 + $0x224] ss:$24 sps:$4 sm:$0xff]  }
 0x3f6   :  { %1402 = vmatprep.subr.bf16.mxu1 %v4392_v8  ;;  %1492 = vmatpush2.bf16.msra.mxu0 %v3998_v20 }
 0x3f7   :  { %1493 = vmatprep.subr.bf16.mxu0 %v4004_v22  ;;  %v4414_v22 = vld [vmem:[%s5600_s2 + $0x220] ss:$24 sps:$4 sm:$0xff]  }
 0x3f8   :  { %5961 = vst [vmem:[#allocation15_spill] sm:$0xff] %v4414_v22 }
 0x3f9   :  { %1403 = vmatpush2.bf16.msra.mxu1 %v4400_v18  ;;  %v4420_v18 = vld [vmem:[%s5600_s2 + $0x1f4] ss:$24 sps:$4 sm:$0xff]  }
 0x3fa   :  { %1404 = vmatprep.subr.bf16.mxu1 %v4406_v14  ;;  %1494 = vmatpush2.bf16.msra.mxu0 %v4012_v24  ;;  %5962 = vst [vmem:[#allocation16_spill] sm:$0xff] %v4420_v18 }
 0x3fb   :  { %1495 = vmatprep.subr.bf16.mxu0 %v4018_v26  ;;  %v4427_v26 = vld [vmem:[%s5600_s2 + $0x1e4] ss:$24 sps:$4 sm:$0xff]  }
 0x3fc   :  { %5963 = vst [vmem:[#allocation17_spill] sm:$0xff] %v4427_v26 }
 0x3fd   :  { %1405 = vmatpush2.bf16.msra.mxu1 %v4414_v22  ;;  %v4433_v22 = vld [vmem:[%s5600_s2 + $0x1f0] ss:$24 sps:$4 sm:$0xff]  }
 0x3fe   :  { %1406 = vmatprep.subr.bf16.mxu1 %v4420_v18  ;;  %1496 = vmatpush2.bf16.msra.mxu0 %v4026_v28  ;;  %5964 = vst [vmem:[#allocation18_spill] sm:$0xff] %v4433_v22  ;;  %v4439_v18 = vld [vmem:[%s5600_s2 + $0x1c4] ss:$24 sps:$4 sm:$0xff]   ;;  %v4445_v28 = vld [vmem:[%s5600_s2 + $0x1e0] ss:$24 sps:$4 sm:$0xff]  }
 0x3ff   :  { %1497 = vmatprep.subr.bf16.mxu0 %v4427_v26  ;;  %5965 = vst [vmem:[#allocation19_spill] sm:$0xff] %v4439_v18  ;;  %5966 = vst [vmem:[#allocation20_spill] sm:$0xff] %v4445_v28  ;;  %v4451_v26 = vld [vmem:[%s5600_s2 + $0x1b4] ss:$24 sps:$4 sm:$0xff]  }
 0x400   :  { %5967 = vst [vmem:[#allocation21_spill] sm:$0xff] %v4451_v26 }
 0x401   :  { %1407 = vmatpush2.bf16.msra.mxu1 %v4433_v22  ;;  %v4457_v22 = vld [vmem:[%s5600_s2 + $0x1c0] ss:$24 sps:$4 sm:$0xff]  }
 0x402   :  { %1408 = vmatprep.subr.bf16.mxu1 %v4439_v18  ;;  %1498 = vmatpush2.bf16.msra.mxu0 %v4445_v28  ;;  %5968 = vst [vmem:[#allocation22_spill] sm:$0xff] %v4457_v22  ;;  %v4463_v18 = vld [vmem:[%s5600_s2 + $0x194] ss:$24 sps:$4 sm:$0xff]   ;;  %v4469_v28 = vld [vmem:[%s5600_s2 + $0x1b0] ss:$24 sps:$4 sm:$0xff]  }
 0x403   :  { %1499 = vmatprep.subr.bf16.mxu0 %v4451_v26  ;;  %5969 = vst [vmem:[#allocation23_spill] sm:$0xff] %v4469_v28  ;;  %v4475_v26 = vld [vmem:[%s5600_s2 + $0x184] ss:$24 sps:$4 sm:$0xff]  }
 0x404   :  { %5970 = vst [vmem:[#allocation24_spill] sm:$0xff] %v4475_v26 }
 0x405   :  { %1409 = vmatpush2.bf16.msra.mxu1 %v4457_v22  ;;  %v4481_v22 = vld [vmem:[%s5600_s2 + $0x190] ss:$24 sps:$4 sm:$0xff]  }
 0x406   :  { %1410 = vmatprep.subr.bf16.mxu1 %v4463_v18  ;;  %1500 = vmatpush2.bf16.msra.mxu0 %v4469_v28  ;;  %v4488_v28 = vld [vmem:[%s5600_s2 + $0x180] ss:$24 sps:$4 sm:$0xff]  }
 0x407   :  { %1501 = vmatprep.subr.bf16.mxu0 %v4475_v26  ;;  %v4494_v26 = vld [vmem:[%s5600_s2 + $0x164] ss:$24 sps:$4 sm:$0xff]  }
 0x408   :  { %5971 = vst [vmem:[#allocation25_spill] sm:$0xff] %v4494_v26 }
 0x409   :  { %1411 = vmatpush2.bf16.msra.mxu1 %v4481_v22 }
 0x40a   :  { %1512 = vmatprep.subr.bf16.mxu1 %v4042_v48  ;;  %1502 = vmatpush2.bf16.msra.mxu0 %v4488_v28 }
 0x40b   :  { %1553 = vmatprep.subr.bf16.mxu0 %v4494_v26 }
 0x40c   :  { %1413 = vmatmul.mubr.bf16.vlgmr.msra.gmra.mxu1 %v4239_v9  ;;  %v5972_v9 = vld [vmem:[#allocation53_spill] sm:$0xff] }
 0x40d   :  { %1513 = vmatpush1.bf16.msra.mxu1 %v4051_v2 }
 0x40e   :  { %1514 = vmatprep.subr.bf16.mxu1 %v4057_v50 }
 0x411   :  { %1515 = vmatpush1.bf16.msra.mxu1 %v4063_v52  ;;  %v5989_v52 = vld [vmem:[#allocation58_spill] sm:$0xff] }
 0x412   :  { %1516 = vmatprep.subr.bf16.mxu1 %v4069_v54 }
 0x415   :  { %1517 = vmatpush1.bf16.msra.mxu1 %v4075_v55 }
 0x416   :  { %1518 = vmatprep.subr.bf16.mxu1 %v4081_v56  ;;  %v5988_v56 = vld [vmem:[#allocation57_spill] sm:$0xff] }
 0x419   :  { %1519 = vmatpush1.bf16.msra.mxu1 %v4087_v58  ;;  %v5973_v58 = vld [vmem:[#allocation54_spill] sm:$0xff] }
 0x41a   :  { %1520 = vmatprep.subr.bf16.mxu1 %v4093_v59  ;;  %v5974_v59 = vld [vmem:[#allocation55_spill] sm:$0xff] }
 0x41d   :  { %1521 = vmatpush1.bf16.msra.mxu1 %v4099_v60  ;;  %v5975_v60 = vld [vmem:[#allocation56_spill] sm:$0xff] }
 0x41e   :  { %1522 = vmatprep.subr.bf16.mxu1 %v4105_v61  ;;  %v5976_v61 = vld [vmem:[#allocation5_spill] sm:$0xff] }
 0x421   :  { %1523 = vmatpush1.bf16.msra.mxu1 %v4111_v30  ;;  %v5977_v30 = vld [vmem:[#allocation6_spill] sm:$0xff] }
 0x422   :  { %1524 = vmatprep.subr.bf16.mxu1 %v4117_v32  ;;  %v5978_v32 = vld [vmem:[#allocation7_spill] sm:$0xff] }
 0x425   :  { %1525 = vmatpush1.bf16.msra.mxu1 %v4123_v34  ;;  %v5979_v34 = vld [vmem:[#allocation8_spill] sm:$0xff] }
 0x426   :  { %1526 = vmatprep.subr.bf16.mxu1 %v4129_v36  ;;  %v5980_v36 = vld [vmem:[#allocation9_spill] sm:$0xff] }
 0x429   :  { %1527 = vmatpush1.bf16.msra.mxu1 %v4135_v63 }
 0x42a   :  { %1528 = vmatprep.subr.bf16.mxu1 %v4141_v19 }
 0x42d   :  { %1529 = vmatpush2.bf16.msra.mxu1 %v5972_v9  ;;  %v4526_v9 = vld [vmem:[%s5600_s2 + $0x1ec] ss:$24 sps:$4 sm:$0xff]  }
 0x42e   :  { %1530 = vmatprep.subr.bf16.mxu1 %v5973_v58  ;;  %5981 = vst [vmem:[#allocation27_spill] sm:$0xff] %v4526_v9 }
 0x431   :  { %1531 = vmatpush2.bf16.msra.mxu1 %v5974_v59 }
 0x432   :  { %1532 = vmatprep.subr.bf16.mxu1 %v5975_v60  ;;  %v4532_v60 = vld [vmem:[%s5600_s2 + $0x1e8] ss:$24 sps:$4 sm:$0xff]  }
 0x433   :  { %5982 = vst [vmem:[#allocation29_spill] sm:$0xff] %v4532_v60 }
 0x435   :  { %1533 = vmatpush2.bf16.msra.mxu1 %v5976_v61 }
 0x436   :  { %1534 = vmatprep.subr.bf16.mxu1 %v5977_v30 }
 0x439   :  { %1535 = vmatpush2.bf16.msra.mxu1 %v5978_v32 }
 0x43a   :  { %1536 = vmatprep.subr.bf16.mxu1 %v5979_v34  ;;  %v4538_v34 = vld [vmem:[%s5600_s2 + $0x1bc] ss:$24 sps:$4 sm:$0xff]  }
 0x43b   :  { %5983 = vst [vmem:[#allocation31_spill] sm:$0xff] %v4538_v34 }
 0x43d   :  { %1537 = vmatpush2.bf16.msra.mxu1 %v5980_v36  ;;  %v4544_v36 = vld [vmem:[%s5600_s2 + $0x1b8] ss:$24 sps:$4 sm:$0xff]  }
 0x43e   :  { %1538 = vmatprep.subr.bf16.mxu1 %v4526_v9  ;;  %5984 = vst [vmem:[#allocation33_spill] sm:$0xff] %v4544_v36  ;;  %v4550_v9 = vld [vmem:[%s5600_s2 + $0x18c] ss:$24 sps:$4 sm:$0xff]  }
 0x43f   :  { %5985 = vst [vmem:[#allocation61_spill] sm:$0xff] %v4550_v9 }
 0x441   :  { %1539 = vmatpush2.bf16.msra.mxu1 %v4532_v60  ;;  %v4556_v60 = vld [vmem:[%s5600_s2 + $0x188] ss:$24 sps:$4 sm:$0xff]  }
 0x442   :  { %1540 = vmatprep.subr.bf16.mxu1 %v4538_v34  ;;  %5986 = vst [vmem:[#allocation62_spill] sm:$0xff] %v4556_v60  ;;  %v5987_v34 = vld [vmem:[#allocation26_spill] sm:$0xff] }
 0x445   :  { %1541 = vmatpush2.bf16.msra.mxu1 %v4544_v36 }
 0x446   :  { %1542 = vmatprep.subr.bf16.mxu1 %v4550_v9  ;;  %v43_v9 = vld [vmem:[%s5598_s0 + $0x90] sm:$0xff] }
 0x449   :  { %1543 = vmatpush2.bf16.msra.mxu1 %v4556_v60 }
 0x44a   :  { %1644 = vmatprep.subr.bf16.mxu1 %v5987_v34  ;;  %v2305_v34 = vld [vmem:[%s5599_s1 + $0xd8] sm:$0xff] }
 0x48c   :  { %v1332_v32 = vpop.f32.mrf.mxu1  ;;  %v1373_v30 = vpop.f32.mrf.mxu0 }
 0x48d   :  { %v1333_v55 = vadd.f32 %v1332_v32, %v5988_v56  ;;  %v45_v32 = vld [vmem:[%s5598_s0 + $0x98] sm:$0xff] }
 0x48e   :  { %v1334_v61 = vpop.f32.mrf.mxu1  ;;  %v1375_v36 = vpop.f32.mrf.mxu0 }
 0x48f   :  { %v1427_v54 = vadd.f32 %v1333_v55, %v43_v9  ;;  %v1376_v50 = vadd.f32 %v1375_v36, %v5989_v52 }
 0x490   :  { %v1336_v59 = vpop.f32.mrf.mxu1  ;;  %v1377_v58 = vpop.f32.mrf.mxu0 }
 0x491   :  { %v2425_v60 = vmul.f32 -1.442695, %v1427_v54  ;;  %v1444_v2 = vadd.f32 %v2305_v34, %v1376_v50  ;;  %v5990_v58 = vld [vmem:[#allocation59_spill] sm:$0xff]  ;;  %v2306_v50 = vld [vmem:[%s5599_s1 + $0xe0] sm:$0xff] }
 0x492   :  { %v1337_v19 = vpop.f32.mrf.mxu1  ;;  %v1378_v63 = vpop.f32.mrf.mxu0 }
 0x493   :  { %2686 = vpow2.f32 %v2425_v60  ;;  %v2427_v59 = vmul.f32 -1.442695, %v1444_v2  ;;  %v1335_v63 = vadd.f32 %v1334_v61, %v5990_v58  ;;  %v5991_v60 = vld [vmem:[#allocation60_spill] sm:$0xff] }
 0x495   :  { %2688 = vpow2.f32 %v2427_v59  ;;  %v1434_v56 = vadd.f32 %v1335_v63, %v45_v32 }
 0x497   :  { %v2426_v9 = vmul.f32 -1.442695, %v1434_v56  ;;  %v1374_v56 = vadd.f32 %v1373_v30, %v3689_v31 }
 0x4a0   :  { %v2687_v19 = vpop.eup %2686 }
 0x4a1   :  { %v1431_v55 = vadd.f32 1.0, %v2687_v19 }
 0x4a2   :  { %v2689_v36 = vpop.eup %2688 }
 0x4a3   :  { %2690 = vrcp.f32 %v1431_v55  ;;  %v1448_v54 = vadd.f32 1.0, %v2689_v36  ;;  %v47_v55 = vld [vmem:[%s5598_s0 + $0xa0] sm:$0xff] }
 0x4a4   :  { %2692 = vpow2.f32 %v2426_v9 }
 0x4a5   :  { %2694 = vrcp.f32 %v1448_v54 }
 0x4b0   :  { %v2691_v63 = vpop.eup %2690 }
 0x4b1   :  { %v2693_v32 = vpop.eup %2692  ;;  %v1441_v19 = vmul.f32 %v2691_v63, %v1374_v56 }
 0x4b2   :  { %v1438_v36 = vadd.f32 1.0, %v2693_v32 }
 0x4cc   :  { %v1414_v2 = vpop.f32.mrf.mxu1 }
 0x4cd   :  { %v1415_v34 = vadd.f32 %v1414_v2, %v5991_v60  ;;  %v2695_v2 = vpop.eup %2694  ;;  %v1442_v60 = vadd.f32 %v1441_v19, %v47_v55 }
 0x4ce   :  { %v1416_v61 = vpop.f32.mrf.mxu1 }
 0x4cf   :  { %v1451_v59 = vadd.f32 %v2306_v50, %v1415_v34  ;;  %v1417_v9 = vadd.f32 %v1416_v61, %v3692_v33 }
 0x4d0   :  { %v1418_v58 = vpop.f32.mrf.mxu1 }
 0x4d1   :  { %v2428_v52 = vmul.f32 -1.442695, %v1451_v59  ;;  %v1458_v54 = vmul.f32 %v2695_v2, %v1417_v9 }
 0x4d2   :  { %v1419_v26 = vpop.f32.mrf.mxu1 }
 0x4d3   :  { %2696 = vpow2.f32 %v2428_v52  ;;  %v2307_v26 = vld [vmem:[%s5599_s1 + $0xe8] sm:$0xff] }
 0x4d4   :  { %2698 = vrcp.f32 %v1438_v36  ;;  %v1459_v58 = vadd.f32 %v2307_v26, %v1458_v54  ;;  %v6013_v26 = vld [vmem:[#allocation25_spill] sm:$0xff] }
 0x4d5   :  { %2700 = vtanh.f32 %v1442_v60 }
 0x4e0   :  { %v2697_v52 = vpop.eup %2696 }
 0x4e1   :  { %v1455_v30 = vadd.f32 1.0, %v2697_v52  ;;  %v2699_v50 = vpop.eup %2698  ;;  %v6014_v52 = vld [vmem:[#allocation37_spill] sm:$0xff] }
 0x4e2   :  { %v2701_v34 = vpop.eup %2700  ;;  %v1461_v59 = vsub.f32 1.0, %v2699_v50  ;;  %v1463_v19 = vmul.f32 %v2699_v50, %v4231_v13  ;;  %v6010_v13 = vld [vmem:[#allocation22_spill] sm:$0xff]  ;;  %v6017_v50 = vld [vmem:[#allocation40_spill] sm:$0xff] }
 0x4e3   :  { %2702 = vrcp.f32 %v1455_v30  ;;  %v6015_v30 = vld [vmem:[#allocation38_spill] sm:$0xff] }
 0x4e4   :  { %2704 = vtanh.f32 %v1459_v58  ;;  %v1462_v61 = vmul.f32 %v2701_v34, %v1461_v59  ;;  %v6016_v58 = vld [vmem:[#allocation39_spill] sm:$0xff]  ;;  %v6018_v34 = vld [vmem:[#allocation41_spill] sm:$0xff]  ;;  %v6019_v59 = vld [vmem:[#allocation42_spill] sm:$0xff] }
 0x4e6   :  { %v4586_v36 = vadd.f32 %v1463_v19, %v1462_v61  ;;  %v6022_v61 = vld [vmem:[#allocation45_spill] sm:$0xff]  ;;  %v6025_v19 = vld [vmem:[#allocation48_spill] sm:$0xff] }
 0x4e8   :  { %v4594_v54 = vpack.c.bf16 %v4586_v36, %v4586_v36 }
 0x4f0   :  { %v2703_v63 = vpop.eup %2702 }
 0x4f1   :  { %v1465_v56 = vsub.f32 1.0, %v2703_v63  ;;  %v2705_v32 = vpop.eup %2704  ;;  %v1467_v9 = vmul.f32 %v2703_v63, %v4233_v42  ;;  %v6012_v42 = vld [vmem:[#allocation24_spill] sm:$0xff]  ;;  %v6020_v63 = vld [vmem:[#allocation43_spill] sm:$0xff] }
 0x4f3   :  { %v1466_v55 = vmul.f32 %v2705_v32, %v1465_v56  ;;  %v6023_v56 = vld [vmem:[#allocation46_spill] sm:$0xff]  ;;  %v6024_v32 = vld [vmem:[#allocation47_spill] sm:$0xff] }
 0x4f5   :  { %v4588_v2 = vadd.f32 %v1467_v9, %v1466_v55  ;;  %v6026_v55 = vld [vmem:[#allocation49_spill] sm:$0xff]  ;;  %v6027_v9 = vld [vmem:[#allocation50_spill] sm:$0xff] }
 0x4f7   :  { %v1470_v60 = vpack.c.bf16 %v4588_v2, %v4588_v2 }
 0x4f9   :  { %1503 = vmatprep.mubr.bf16.mxu0 %v1470_v60  ;;  %1544 = vmatprep.mubr.bf16.mxu1 %v1470_v60 }
 0x4fa   :  { %1504 = vmatmul.mubr.bf16.vlgmr.msra.gmra.mxu0 %v4594_v54  ;;  %1545 = vmatmul.mubr.bf16.vlgmr.msra.gmra.mxu1 %v4594_v54 }
 0x4fb   :  { %1554 = vmatpush1.bf16.msra.mxu0 %v4246_v16  ;;  %1585 = vmatprep.mubr.bf16.mxu0 %v1470_v60  ;;  %v6028_v60 = vld [vmem:[#allocation51_spill] sm:$0xff] }
 0x4fc   :  { %1555 = vmatprep.subr.bf16.mxu0 %v4252_v40  ;;  %1645 = vmatpush1.bf16.msra.mxu1 %v3858_v29  ;;  %v5992_v29 = vld [vmem:[#allocation10_spill] sm:$0xff] }
 0x4fd   :  { %1646 = vmatprep.subr.bf16.mxu1 %v3864_v57  ;;  %v5993_v57 = vld [vmem:[#allocation28_spill] sm:$0xff] }
 0x4ff   :  { %1556 = vmatpush1.bf16.msra.mxu0 %v4260_v12 }
 0x500   :  { %1557 = vmatprep.subr.bf16.mxu0 %v4266_v23  ;;  %1647 = vmatpush1.bf16.msra.mxu1 %v3872_v41  ;;  %v5994_v41 = vld [vmem:[#allocation11_spill] sm:$0xff] }
 0x501   :  { %1648 = vmatprep.subr.bf16.mxu1 %v3878_v47  ;;  %v5995_v47 = vld [vmem:[#allocation30_spill] sm:$0xff] }
 0x503   :  { %1558 = vmatpush1.bf16.msra.mxu0 %v4274_v21 }
 0x504   :  { %1559 = vmatprep.subr.bf16.mxu0 %v4280_v17  ;;  %1649 = vmatpush1.bf16.msra.mxu1 %v3886_v43  ;;  %v5996_v43 = vld [vmem:[#allocation12_spill] sm:$0xff] }
 0x505   :  { %1650 = vmatprep.subr.bf16.mxu1 %v3892_v62  ;;  %v5997_v62 = vld [vmem:[#allocation32_spill] sm:$0xff] }
 0x507   :  { %1560 = vmatpush1.bf16.msra.mxu0 %v4288_v44 }
 0x508   :  { %1561 = vmatprep.subr.bf16.mxu0 %v4294_v49  ;;  %1651 = vmatpush1.bf16.msra.mxu1 %v3900_v0  ;;  %v5998_v0 = vld [vmem:[#allocation13_spill] sm:$0xff] }
 0x509   :  { %1652 = vmatprep.subr.bf16.mxu1 %v3906_v45  ;;  %v5999_v45 = vld [vmem:[#allocation34_spill] sm:$0xff] }
 0x50b   :  { %1562 = vmatpush1.bf16.msra.mxu0 %v4302_v46 }
 0x50c   :  { %1563 = vmatprep.subr.bf16.mxu0 %v4308_v10  ;;  %1653 = vmatpush1.bf16.msra.mxu1 %v3914_v25  ;;  %v6000_v25 = vld [vmem:[#allocation14_spill] sm:$0xff] }
 0x50d   :  { %1654 = vmatprep.subr.bf16.mxu1 %v3920_v1  ;;  %v6001_v1 = vld [vmem:[#allocation35_spill] sm:$0xff] }
 0x50f   :  { %1564 = vmatpush1.bf16.msra.mxu0 %v4316_v39 }
 0x510   :  { %1565 = vmatprep.subr.bf16.mxu0 %v4322_v27  ;;  %1655 = vmatpush1.bf16.msra.mxu1 %v3928_v3  ;;  %v6002_v3 = vld [vmem:[#allocation15_spill] sm:$0xff] }
 0x511   :  { %1656 = vmatprep.subr.bf16.mxu1 %v3934_v4  ;;  %v6003_v4 = vld [vmem:[#allocation16_spill] sm:$0xff] }
 0x513   :  { %1566 = vmatpush1.bf16.msra.mxu0 %v4330_v35 }
 0x514   :  { %1567 = vmatprep.subr.bf16.mxu0 %v4336_v37  ;;  %1657 = vmatpush1.bf16.msra.mxu1 %v3942_v5  ;;  %v6004_v5 = vld [vmem:[#allocation36_spill] sm:$0xff] }
 0x515   :  { %1658 = vmatprep.subr.bf16.mxu1 %v3948_v6  ;;  %v6005_v6 = vld [vmem:[#allocation17_spill] sm:$0xff] }
 0x517   :  { %1568 = vmatpush1.bf16.msra.mxu0 %v5992_v29 }
 0x518   :  { %1569 = vmatprep.subr.bf16.mxu0 %v4350_v38  ;;  %1659 = vmatpush1.bf16.msra.mxu1 %v3956_v7  ;;  %v6006_v7 = vld [vmem:[#allocation18_spill] sm:$0xff] }
 0x519   :  { %1660 = vmatprep.subr.bf16.mxu1 %v5993_v57  ;;  %v6030_v57 = vld [vmem:[#allocation53_spill] sm:$0xff] }
 0x51b   :  { %1570 = vmatpush2.bf16.msra.mxu0 %v5994_v41 }
 0x51c   :  { %1571 = vmatprep.subr.bf16.mxu0 %v4364_v53  ;;  %1661 = vmatpush2.bf16.msra.mxu1 %v3970_v11  ;;  %v6007_v11 = vld [vmem:[#allocation19_spill] sm:$0xff] }
 0x51d   :  { %1662 = vmatprep.subr.bf16.mxu1 %v5995_v47  ;;  %v6031_v47 = vld [vmem:[#allocation54_spill] sm:$0xff] }
 0x51f   :  { %1572 = vmatpush2.bf16.msra.mxu0 %v5996_v43 }
 0x520   :  { %1573 = vmatprep.subr.bf16.mxu0 %v4378_v51  ;;  %1663 = vmatpush2.bf16.msra.mxu1 %v3984_v15  ;;  %v6008_v15 = vld [vmem:[#allocation20_spill] sm:$0xff] }
 0x521   :  { %1664 = vmatprep.subr.bf16.mxu1 %v5997_v62  ;;  %v6032_v62 = vld [vmem:[#allocation55_spill] sm:$0xff] }
 0x523   :  { %1574 = vmatpush2.bf16.msra.mxu0 %v5998_v0 }
 0x524   :  { %1575 = vmatprep.subr.bf16.mxu0 %v4392_v8  ;;  %1665 = vmatpush2.bf16.msra.mxu1 %v3998_v20  ;;  %v6009_v20 = vld [vmem:[#allocation21_spill] sm:$0xff] }
 0x525   :  { %1666 = vmatprep.subr.bf16.mxu1 %v5999_v45  ;;  %v6033_v45 = vld [vmem:[#allocation56_spill] sm:$0xff] }
 0x527   :  { %1576 = vmatpush2.bf16.msra.mxu0 %v6000_v25 }
 0x528   :  { %1577 = vmatprep.subr.bf16.mxu0 %v4406_v14  ;;  %1667 = vmatpush2.bf16.msra.mxu1 %v4012_v24  ;;  %v6011_v24 = vld [vmem:[#allocation23_spill] sm:$0xff] }
 0x529   :  { %1668 = vmatprep.subr.bf16.mxu1 %v6001_v1  ;;  %v6034_v1 = vld [vmem:[#allocation5_spill] sm:$0xff] }
 0x52b   :  { %1578 = vmatpush2.bf16.msra.mxu0 %v6002_v3 }
 0x52c   :  { %1579 = vmatprep.subr.bf16.mxu0 %v6003_v4  ;;  %1669 = vmatpush2.bf16.msra.mxu1 %v6004_v5  ;;  %v6035_v5 = vld [vmem:[#allocation6_spill] sm:$0xff] }
 0x52d   :  { %1670 = vmatprep.subr.bf16.mxu1 %v6005_v6 }
 0x52f   :  { %1580 = vmatpush2.bf16.msra.mxu0 %v6006_v7 }
 0x530   :  { %1581 = vmatprep.subr.bf16.mxu0 %v6007_v11  ;;  %1671 = vmatpush2.bf16.msra.mxu1 %v6008_v15 }
 0x531   :  { %1672 = vmatprep.subr.bf16.mxu1 %v6009_v20 }
 0x533   :  { %1582 = vmatpush2.bf16.msra.mxu0 %v6010_v13 }
 0x534   :  { %1583 = vmatprep.subr.bf16.mxu0 %v4463_v18  ;;  %1673 = vmatpush2.bf16.msra.mxu1 %v6011_v24 }
 0x535   :  { %1674 = vmatprep.subr.bf16.mxu1 %v6012_v42 }
 0x537   :  { %1584 = vmatpush2.bf16.msra.mxu0 %v4481_v22 }
 0x538   :  { %1685 = vmatprep.subr.bf16.mxu0 %v4042_v48  ;;  %1675 = vmatpush2.bf16.msra.mxu1 %v4488_v28  ;;  %v6021_v48 = vld [vmem:[#allocation44_spill] sm:$0xff] }
 0x539   :  { %1726 = vmatprep.subr.bf16.mxu1 %v6013_v26 }
 0x53a   :  { %1586 = vmatmul.mubr.bf16.vlgmr.msra.gmra.mxu0 %v4594_v54  ;;  %v6029_v54 = vld [vmem:[#allocation52_spill] sm:$0xff] }
 0x53b   :  { %1686 = vmatpush1.bf16.msra.mxu0 %v6014_v52  ;;  %v6036_v52 = vld [vmem:[#allocation7_spill] sm:$0xff] }
 0x53c   :  { %1687 = vmatprep.subr.bf16.mxu0 %v6015_v30  ;;  %v6037_v30 = vld [vmem:[#allocation8_spill] sm:$0xff] }
 0x53f   :  { %1688 = vmatpush1.bf16.msra.mxu0 %v6016_v58  ;;  %v6038_v58 = vld [vmem:[#allocation9_spill] sm:$0xff] }
 0x540   :  { %1689 = vmatprep.subr.bf16.mxu0 %v6017_v50  ;;  %v6039_v50 = vld [vmem:[#allocation27_spill] sm:$0xff] }
 0x543   :  { %1690 = vmatpush1.bf16.msra.mxu0 %v6018_v34  ;;  %v6040_v34 = vld [vmem:[#allocation29_spill] sm:$0xff] }
 0x544   :  { %1691 = vmatprep.subr.bf16.mxu0 %v6019_v59  ;;  %v6041_v59 = vld [vmem:[#allocation31_spill] sm:$0xff] }
 0x547   :  { %1692 = vmatpush1.bf16.msra.mxu0 %v6020_v63  ;;  %v6042_v63 = vld [vmem:[#allocation33_spill] sm:$0xff] }
 0x548   :  { %1693 = vmatprep.subr.bf16.mxu0 %v6021_v48  ;;  %v6043_v48 = vld [vmem:[#allocation61_spill] sm:$0xff] }
 0x54b   :  { %1694 = vmatpush1.bf16.msra.mxu0 %v6022_v61  ;;  %v6044_v61 = vld [vmem:[#allocation62_spill] sm:$0xff] }
 0x54c   :  { %1695 = vmatprep.subr.bf16.mxu0 %v6023_v56  ;;  %v4697_v56 = vld [vmem:[%s5600_s2 + $0x154] ss:$24 sps:$4 sm:$0xff]  }
 0x54d   :  { %6045 = vst [vmem:[#allocation26_spill] sm:$0xff] %v4697_v56 }
 0x54f   :  { %1696 = vmatpush1.bf16.msra.mxu0 %v6024_v32 }
 0x550   :  { %1697 = vmatprep.subr.bf16.mxu0 %v6025_v19 }
 0x553   :  { %1698 = vmatpush1.bf16.msra.mxu0 %v6026_v55 }
 0x554   :  { %1699 = vmatprep.subr.bf16.mxu0 %v6027_v9 }
 0x557   :  { %1700 = vmatpush1.bf16.msra.mxu0 %v6028_v60 }
 0x558   :  { %1701 = vmatprep.subr.bf16.mxu0 %v6029_v54 }
 0x55b   :  { %1702 = vmatpush2.bf16.msra.mxu0 %v6030_v57 }
 0x55c   :  { %1703 = vmatprep.subr.bf16.mxu0 %v6031_v47 }
 0x55f   :  { %1704 = vmatpush2.bf16.msra.mxu0 %v6032_v62  ;;  %v6046_v62 = vld [vmem:[#allocation57_spill] sm:$0xff] }
 0x560   :  { %1705 = vmatprep.subr.bf16.mxu0 %v6033_v45 }
 0x563   :  { %1706 = vmatpush2.bf16.msra.mxu0 %v6034_v1  ;;  %v49_v1 = vld [vmem:[%s5598_s0 + $0xc0] sm:$0xff] }
 0x564   :  { %1707 = vmatprep.subr.bf16.mxu0 %v6035_v5 }
 0x567   :  { %1708 = vmatpush2.bf16.msra.mxu0 %v6036_v52  ;;  %v6047_v52 = vld [vmem:[#allocation58_spill] sm:$0xff] }
 0x568   :  { %1709 = vmatprep.subr.bf16.mxu0 %v6037_v30 }
 0x56b   :  { %1710 = vmatpush2.bf16.msra.mxu0 %v6038_v58 }
 0x56c   :  { %1711 = vmatprep.subr.bf16.mxu0 %v6039_v50 }
 0x56f   :  { %1712 = vmatpush2.bf16.msra.mxu0 %v6040_v34 }
 0x570   :  { %1713 = vmatprep.subr.bf16.mxu0 %v6041_v59 }
 0x573   :  { %1714 = vmatpush2.bf16.msra.mxu0 %v6042_v63 }
 0x574   :  { %1715 = vmatprep.subr.bf16.mxu0 %v6043_v48 }
 0x577   :  { %1716 = vmatpush2.bf16.msra.mxu0 %v6044_v61 }
 0x578   :  { %1817 = vmatprep.subr.bf16.mxu0 %v4697_v56  ;;  %v2302_v56 = vld [vmem:[%s5599_s1 + $0xa8] sm:$0xff] }
 0x5ba   :  { %v1505_v32 = vpop.f32.mrf.mxu0  ;;  %v1546_v19 = vpop.f32.mrf.mxu1 }
 0x5bb   :  { %v1506_v45 = vadd.f32 %v1505_v32, %v6046_v62  ;;  %v51_v32 = vld [vmem:[%s5598_s0 + $0xc8] sm:$0xff] }
 0x5bc   :  { %v1507_v55 = vpop.f32.mrf.mxu0  ;;  %v1548_v9 = vpop.f32.mrf.mxu1 }
 0x5bd   :  { %v1600_v5 = vadd.f32 %v1506_v45, %v49_v1  ;;  %v1549_v30 = vadd.f32 %v1548_v9, %v6047_v52 }
 0x5be   :  { %v1509_v60 = vpop.f32.mrf.mxu0  ;;  %v1550_v54 = vpop.f32.mrf.mxu1 }
 0x5bf   :  { %v2429_v58 = vmul.f32 -1.442695, %v1600_v5  ;;  %v1617_v61 = vadd.f32 %v2302_v56, %v1549_v30  ;;  %v6048_v54 = vld [vmem:[#allocation59_spill] sm:$0xff]  ;;  %v6049_v30 = vld [vmem:[#allocation60_spill] sm:$0xff] }
 0x5c0   :  { %v1510_v57 = vpop.f32.mrf.mxu0  ;;  %v1551_v47 = vpop.f32.mrf.mxu1  ;;  %v2303_v56 = vld [vmem:[%s5599_s1 + $0xb0] sm:$0xff] }
 0x5c1   :  { %2706 = vpow2.f32 %v2429_v58  ;;  %v2431_v60 = vmul.f32 -1.442695, %v1617_v61  ;;  %v1508_v57 = vadd.f32 %v1507_v55, %v6048_v54 }
 0x5c3   :  { %2708 = vpow2.f32 %v2431_v60  ;;  %v1607_v62 = vadd.f32 %v1508_v57, %v51_v32 }
 0x5c5   :  { %v2430_v1 = vmul.f32 -1.442695, %v1607_v62  ;;  %v1547_v62 = vadd.f32 %v1546_v19, %v3689_v31 }
 0x5ce   :  { %v2707_v47 = vpop.eup %2706 }
 0x5cf   :  { %v1604_v45 = vadd.f32 1.0, %v2707_v47 }
 0x5d0   :  { %v2709_v9 = vpop.eup %2708 }
 0x5d1   :  { %2710 = vrcp.f32 %v1604_v45  ;;  %v1621_v5 = vadd.f32 1.0, %v2709_v9  ;;  %v53_v45 = vld [vmem:[%s5598_s0 + $0xd0] sm:$0xff] }
 0x5d2   :  { %2712 = vpow2.f32 %v2430_v1 }
 0x5d3   :  { %2714 = vrcp.f32 %v1621_v5 }
 0x5de   :  { %v2711_v57 = vpop.eup %2710 }
 0x5df   :  { %v2713_v32 = vpop.eup %2712  ;;  %v1614_v47 = vmul.f32 %v2711_v57, %v1547_v62 }
 0x5e0   :  { %v1611_v9 = vadd.f32 1.0, %v2713_v32 }
 0x5fa   :  { %v1587_v61 = vpop.f32.mrf.mxu0 }
 0x5fb   :  { %v1588_v58 = vadd.f32 %v1587_v61, %v6049_v30  ;;  %v2715_v61 = vpop.eup %2714  ;;  %v1615_v30 = vadd.f32 %v1614_v47, %v53_v45 }
 0x5fc   :  { %v1589_v55 = vpop.f32.mrf.mxu0 }
 0x5fd   :  { %v1624_v60 = vadd.f32 %v2303_v56, %v1588_v58  ;;  %v1590_v1 = vadd.f32 %v1589_v55, %v3692_v33 }
 0x5fe   :  { %v1591_v54 = vpop.f32.mrf.mxu0 }
 0x5ff   :  { %v2432_v52 = vmul.f32 -1.442695, %v1624_v60  ;;  %v1631_v5 = vmul.f32 %v2715_v61, %v1590_v1 }
 0x600   :  { %v1592_v48 = vpop.f32.mrf.mxu0 }
 0x601   :  { %2716 = vpow2.f32 %v2432_v52  ;;  %v2304_v48 = vld [vmem:[%s5599_s1 + $0xb8] sm:$0xff] }
 0x602   :  { %2718 = vrcp.f32 %v1611_v9  ;;  %v1632_v54 = vadd.f32 %v2304_v48, %v1631_v5  ;;  %v5020_v48 = vld [vmem:[%s5600_s2 + $0x8] ss:$24 sps:$4 sm:$0xff]  }
 0x603   :  { %2720 = vtanh.f32 %v1615_v30 }
 0x60e   :  { %v2717_v52 = vpop.eup %2716 }
 0x60f   :  { %v1628_v19 = vadd.f32 1.0, %v2717_v52  ;;  %v2719_v56 = vpop.eup %2718  ;;  %v5026_v52 = vld [vmem:[%s5600_s2 + $0x2dc] ss:$24 sps:$4 sm:$0xff]  }
 0x610   :  { %v2721_v58 = vpop.eup %2720  ;;  %v1634_v60 = vsub.f32 1.0, %v2719_v56  ;;  %v1636_v47 = vmul.f32 %v2719_v56, %v4586_v36  ;;  %v4743_v36 = vld [vmem:[%s5600_s2 + $0x150] ss:$24 sps:$4 sm:$0xff]  }
 0x611   :  { %2722 = vrcp.f32 %v1628_v19  ;;  %v5032_v19 = vld [vmem:[%s5600_s2 + $0x2d8] ss:$24 sps:$4 sm:$0xff]   ;;  %v5044_v56 = vld [vmem:[%s5600_s2 + $0x2a8] ss:$24 sps:$4 sm:$0xff]  }
 0x612   :  { %2724 = vtanh.f32 %v1632_v54  ;;  %v1635_v55 = vmul.f32 %v2721_v58, %v1634_v60  ;;  %6050 = vst [vmem:[#allocation10_spill] sm:$0xff] %v5032_v19  ;;  %v5038_v54 = vld [vmem:[%s5600_s2 + $0x2ac] ss:$24 sps:$4 sm:$0xff]   ;;  %6052 = vst [vmem:[#allocation11_spill] sm:$0xff] %v5044_v56  ;;  %v5050_v58 = vld [vmem:[%s5600_s2 + $0x27c] ss:$24 sps:$4 sm:$0xff]  }
 0x613   :  { %6051 = vst [vmem:[#allocation28_spill] sm:$0xff] %v5038_v54  ;;  %6053 = vst [vmem:[#allocation30_spill] sm:$0xff] %v5050_v58  ;;  %v5056_v60 = vld [vmem:[%s5600_s2 + $0x278] ss:$24 sps:$4 sm:$0xff]  }
 0x614   :  { %v4726_v9 = vadd.f32 %v1636_v47, %v1635_v55  ;;  %6054 = vst [vmem:[#allocation12_spill] sm:$0xff] %v5056_v60  ;;  %v5068_v55 = vld [vmem:[%s5600_s2 + $0x248] ss:$24 sps:$4 sm:$0xff]  }
 0x615   :  { %6056 = vst [vmem:[#allocation13_spill] sm:$0xff] %v5068_v55  ;;  %v6059_v47 = vld [vmem:[#allocation61_spill] sm:$0xff] }
 0x616   :  { %v4734_v5 = vpack.c.bf16 %v4726_v9, %v4726_v9 }
 0x61e   :  { %v2723_v57 = vpop.eup %2722 }
 0x61f   :  { %v1638_v62 = vsub.f32 1.0, %v2723_v57  ;;  %v2725_v32 = vpop.eup %2724  ;;  %v1640_v1 = vmul.f32 %v2723_v57, %v4588_v2  ;;  %v4749_v2 = vld [vmem:[%s5600_s2 + $0x124] ss:$24 sps:$4 sm:$0xff]  }
 0x620   :  { %v5062_v57 = vld [vmem:[%s5600_s2 + $0x24c] ss:$24 sps:$4 sm:$0xff]  }
 0x621   :  { %v1639_v45 = vmul.f32 %v2725_v32, %v1638_v62  ;;  %6055 = vst [vmem:[#allocation32_spill] sm:$0xff] %v5062_v57  ;;  %v5074_v62 = vld [vmem:[%s5600_s2 + $0x21c] ss:$24 sps:$4 sm:$0xff]   ;;  %v5080_v32 = vld [vmem:[%s5600_s2 + $0x218] ss:$24 sps:$4 sm:$0xff]  }
 0x622   :  { %6057 = vst [vmem:[#allocation34_spill] sm:$0xff] %v5074_v62  ;;  %6058 = vst [vmem:[#allocation14_spill] sm:$0xff] %v5080_v32 }
 0x623   :  { %v4728_v61 = vadd.f32 %v1640_v1, %v1639_v45  ;;  %v6060_v45 = vld [vmem:[#allocation62_spill] sm:$0xff] }
 0x624   :  { %v6061_v1 = vld [vmem:[#allocation26_spill] sm:$0xff] }
 0x625   :  { %v1643_v30 = vpack.c.bf16 %v4728_v61, %v4728_v61 }
 0x627   :  { %1676 = vmatprep.mubr.bf16.mxu1 %v1643_v30  ;;  %1717 = vmatprep.mubr.bf16.mxu0 %v1643_v30 }
 0x628   :  { %1677 = vmatmul.mubr.bf16.vlgmr.msra.gmra.mxu1 %v4734_v5  ;;  %1718 = vmatmul.mubr.bf16.vlgmr.msra.gmra.mxu0 %v4734_v5 }
 0x629   :  { %1727 = vmatpush1.bf16.msra.mxu1 %v4246_v16  ;;  %1758 = vmatprep.mubr.bf16.mxu1 %v1643_v30  ;;  %v4757_v16 = vld [vmem:[%s5600_s2 + $0x120] ss:$24 sps:$4 sm:$0xff]  }
 0x62a   :  { %1728 = vmatprep.subr.bf16.mxu1 %v4252_v40  ;;  %1818 = vmatpush1.bf16.msra.mxu0 %v4743_v36  ;;  %v4763_v40 = vld [vmem:[%s5600_s2 + $0xf4] ss:$24 sps:$4 sm:$0xff]  }
 0x62b   :  { %1819 = vmatprep.subr.bf16.mxu0 %v4749_v2 }
 0x62d   :  { %1729 = vmatpush1.bf16.msra.mxu1 %v4260_v12  ;;  %v4771_v12 = vld [vmem:[%s5600_s2 + $0xf0] ss:$24 sps:$4 sm:$0xff]  }
 0x62e   :  { %1730 = vmatprep.subr.bf16.mxu1 %v4266_v23  ;;  %1820 = vmatpush1.bf16.msra.mxu0 %v4757_v16  ;;  %v4777_v23 = vld [vmem:[%s5600_s2 + $0xc4] ss:$24 sps:$4 sm:$0xff]  }
 0x62f   :  { %1821 = vmatprep.subr.bf16.mxu0 %v4763_v40 }
 0x631   :  { %1731 = vmatpush1.bf16.msra.mxu1 %v4274_v21  ;;  %v4785_v21 = vld [vmem:[%s5600_s2 + $0xc0] ss:$24 sps:$4 sm:$0xff]  }
 0x632   :  { %1732 = vmatprep.subr.bf16.mxu1 %v4280_v17  ;;  %1822 = vmatpush1.bf16.msra.mxu0 %v4771_v12  ;;  %v4791_v17 = vld [vmem:[%s5600_s2 + $0x94] ss:$24 sps:$4 sm:$0xff]  }
 0x633   :  { %1823 = vmatprep.subr.bf16.mxu0 %v4777_v23 }
 0x635   :  { %1733 = vmatpush1.bf16.msra.mxu1 %v4288_v44  ;;  %v4799_v44 = vld [vmem:[%s5600_s2 + $0x90] ss:$24 sps:$4 sm:$0xff]  }
 0x636   :  { %1734 = vmatprep.subr.bf16.mxu1 %v4294_v49  ;;  %1824 = vmatpush1.bf16.msra.mxu0 %v4785_v21  ;;  %v4805_v49 = vld [vmem:[%s5600_s2 + $0x64] ss:$24 sps:$4 sm:$0xff]  }
 0x637   :  { %1825 = vmatprep.subr.bf16.mxu0 %v4791_v17 }
 0x639   :  { %1735 = vmatpush1.bf16.msra.mxu1 %v4302_v46  ;;  %v4813_v46 = vld [vmem:[%s5600_s2 + $0x60] ss:$24 sps:$4 sm:$0xff]  }
 0x63a   :  { %1736 = vmatprep.subr.bf16.mxu1 %v4308_v10  ;;  %1826 = vmatpush1.bf16.msra.mxu0 %v4799_v44  ;;  %v4819_v10 = vld [vmem:[%s5600_s2 + $0x34] ss:$24 sps:$4 sm:$0xff]  }
 0x63b   :  { %1827 = vmatprep.subr.bf16.mxu0 %v4805_v49 }
 0x63d   :  { %1737 = vmatpush1.bf16.msra.mxu1 %v4316_v39  ;;  %v4827_v39 = vld [vmem:[%s5600_s2 + $0x30] ss:$24 sps:$4 sm:$0xff]  }
 0x63e   :  { %1738 = vmatprep.subr.bf16.mxu1 %v4322_v27  ;;  %1828 = vmatpush1.bf16.msra.mxu0 %v4813_v46  ;;  %v4833_v27 = vld [vmem:[%s5600_s2 + $0x4] ss:$24 sps:$4 sm:$0xff]  }
 0x63f   :  { %1829 = vmatprep.subr.bf16.mxu0 %v4819_v10 }
 0x641   :  { %1739 = vmatpush1.bf16.msra.mxu1 %v4330_v35  ;;  %v4841_v35 = vld [vmem:[%s5600_s2] ss:$24 sps:$4 sm:$0xff]  }
 0x642   :  { %1740 = vmatprep.subr.bf16.mxu1 %v4336_v37  ;;  %1830 = vmatpush1.bf16.msra.mxu0 %v4827_v39  ;;  %v4847_v37 = vld [vmem:[%s5600_s2 + $0x2d4] ss:$24 sps:$4 sm:$0xff]  }
 0x643   :  { %1831 = vmatprep.subr.bf16.mxu0 %v4833_v27 }
 0x645   :  { %1741 = vmatpush1.bf16.msra.mxu1 %v5992_v29  ;;  %v4861_v29 = vld [vmem:[%s5600_s2 + $0x2a4] ss:$24 sps:$4 sm:$0xff]  }
 0x646   :  { %1742 = vmatprep.subr.bf16.mxu1 %v4350_v38  ;;  %1832 = vmatpush1.bf16.msra.mxu0 %v4841_v35  ;;  %v4855_v38 = vld [vmem:[%s5600_s2 + $0x2d0] ss:$24 sps:$4 sm:$0xff]  }
 0x647   :  { %1833 = vmatprep.subr.bf16.mxu0 %v4847_v37 }
 0x649   :  { %1743 = vmatpush2.bf16.msra.mxu1 %v5994_v41  ;;  %v4875_v41 = vld [vmem:[%s5600_s2 + $0x274] ss:$24 sps:$4 sm:$0xff]  }
 0x64a   :  { %1744 = vmatprep.subr.bf16.mxu1 %v4364_v53  ;;  %1834 = vmatpush2.bf16.msra.mxu0 %v4855_v38  ;;  %v4869_v53 = vld [vmem:[%s5600_s2 + $0x2a0] ss:$24 sps:$4 sm:$0xff]  }
 0x64b   :  { %1835 = vmatprep.subr.bf16.mxu0 %v4861_v29 }
 0x64d   :  { %1745 = vmatpush2.bf16.msra.mxu1 %v5996_v43  ;;  %v4889_v43 = vld [vmem:[%s5600_s2 + $0x244] ss:$24 sps:$4 sm:$0xff]  }
 0x64e   :  { %1746 = vmatprep.subr.bf16.mxu1 %v4378_v51  ;;  %1836 = vmatpush2.bf16.msra.mxu0 %v4869_v53  ;;  %v4883_v51 = vld [vmem:[%s5600_s2 + $0x270] ss:$24 sps:$4 sm:$0xff]  }
 0x64f   :  { %1837 = vmatprep.subr.bf16.mxu0 %v4875_v41 }
 0x651   :  { %1747 = vmatpush2.bf16.msra.mxu1 %v5998_v0  ;;  %v4903_v0 = vld [vmem:[%s5600_s2 + $0x214] ss:$24 sps:$4 sm:$0xff]  }
 0x652   :  { %1748 = vmatprep.subr.bf16.mxu1 %v4392_v8  ;;  %1838 = vmatpush2.bf16.msra.mxu0 %v4883_v51  ;;  %v4897_v8 = vld [vmem:[%s5600_s2 + $0x240] ss:$24 sps:$4 sm:$0xff]  }
 0x653   :  { %1839 = vmatprep.subr.bf16.mxu0 %v4889_v43 }
 0x655   :  { %1749 = vmatpush2.bf16.msra.mxu1 %v6000_v25  ;;  %v4927_v25 = vld [vmem:[%s5600_s2 + $0x15c] ss:$24 sps:$4 sm:$0xff]  }
 0x656   :  { %1750 = vmatprep.subr.bf16.mxu1 %v4406_v14  ;;  %1840 = vmatpush2.bf16.msra.mxu0 %v4897_v8  ;;  %v4911_v14 = vld [vmem:[%s5600_s2 + $0x210] ss:$24 sps:$4 sm:$0xff]  }
 0x657   :  { %1841 = vmatprep.subr.bf16.mxu0 %v4903_v0 }
 0x659   :  { %1751 = vmatpush2.bf16.msra.mxu1 %v6002_v3  ;;  %v4954_v3 = vld [vmem:[%s5600_s2 + $0xfc] ss:$24 sps:$4 sm:$0xff]  }
 0x65a   :  { %1752 = vmatprep.subr.bf16.mxu1 %v6003_v4  ;;  %1842 = vmatpush2.bf16.msra.mxu0 %v4911_v14  ;;  %v4960_v4 = vld [vmem:[%s5600_s2 + $0xf8] ss:$24 sps:$4 sm:$0xff]  }
 0x65b   :  { %1843 = vmatprep.subr.bf16.mxu0 %v6005_v6  ;;  %v4966_v6 = vld [vmem:[%s5600_s2 + $0xcc] ss:$24 sps:$4 sm:$0xff]  }
 0x65d   :  { %1753 = vmatpush2.bf16.msra.mxu1 %v6006_v7  ;;  %v4972_v7 = vld [vmem:[%s5600_s2 + $0xc8] ss:$24 sps:$4 sm:$0xff]  }
 0x65e   :  { %1754 = vmatprep.subr.bf16.mxu1 %v6007_v11  ;;  %1844 = vmatpush2.bf16.msra.mxu0 %v6008_v15  ;;  %v4978_v11 = vld [vmem:[%s5600_s2 + $0x9c] ss:$24 sps:$4 sm:$0xff]   ;;  %v4984_v15 = vld [vmem:[%s5600_s2 + $0x98] ss:$24 sps:$4 sm:$0xff]  }
 0x65f   :  { %1845 = vmatprep.subr.bf16.mxu0 %v6009_v20  ;;  %v4990_v20 = vld [vmem:[%s5600_s2 + $0x6c] ss:$24 sps:$4 sm:$0xff]  }
 0x661   :  { %1755 = vmatpush2.bf16.msra.mxu1 %v6010_v13  ;;  %v4996_v13 = vld [vmem:[%s5600_s2 + $0x68] ss:$24 sps:$4 sm:$0xff]  }
 0x662   :  { %1756 = vmatprep.subr.bf16.mxu1 %v4463_v18  ;;  %1846 = vmatpush2.bf16.msra.mxu0 %v6011_v24  ;;  %v4936_v18 = vld [vmem:[%s5600_s2 + $0x158] ss:$24 sps:$4 sm:$0xff]   ;;  %v5002_v24 = vld [vmem:[%s5600_s2 + $0x3c] ss:$24 sps:$4 sm:$0xff]  }
 0x663   :  { %1847 = vmatprep.subr.bf16.mxu0 %v6012_v42  ;;  %v5008_v42 = vld [vmem:[%s5600_s2 + $0x38] ss:$24 sps:$4 sm:$0xff]  }
 0x665   :  { %1757 = vmatpush2.bf16.msra.mxu1 %v4481_v22  ;;  %v4942_v22 = vld [vmem:[%s5600_s2 + $0x12c] ss:$24 sps:$4 sm:$0xff]  }
 0x666   :  { %1858 = vmatprep.subr.bf16.mxu1 %v4927_v25  ;;  %1848 = vmatpush2.bf16.msra.mxu0 %v4488_v28  ;;  %v4948_v28 = vld [vmem:[%s5600_s2 + $0x128] ss:$24 sps:$4 sm:$0xff]  }
 0x667   :  { %1899 = vmatprep.subr.bf16.mxu0 %v6013_v26  ;;  %v5014_v26 = vld [vmem:[%s5600_s2 + $0xc] ss:$24 sps:$4 sm:$0xff]  }
 0x668   :  { %1759 = vmatmul.mubr.bf16.vlgmr.msra.gmra.mxu1 %v4734_v5 }
 0x669   :  { %1859 = vmatpush1.bf16.msra.mxu1 %v4936_v18 }
 0x66a   :  { %1860 = vmatprep.subr.bf16.mxu1 %v4942_v22 }
 0x66d   :  { %1861 = vmatpush1.bf16.msra.mxu1 %v4948_v28 }
 0x66e   :  { %1862 = vmatprep.subr.bf16.mxu1 %v4954_v3 }
 0x671   :  { %1863 = vmatpush1.bf16.msra.mxu1 %v4960_v4 }
 0x672   :  { %1864 = vmatprep.subr.bf16.mxu1 %v4966_v6 }
 0x675   :  { %1865 = vmatpush1.bf16.msra.mxu1 %v4972_v7 }
 0x676   :  { %1866 = vmatprep.subr.bf16.mxu1 %v4978_v11 }
 0x679   :  { %1867 = vmatpush1.bf16.msra.mxu1 %v4984_v15 }
 0x67a   :  { %1868 = vmatprep.subr.bf16.mxu1 %v4990_v20 }
 0x67d   :  { %1869 = vmatpush1.bf16.msra.mxu1 %v4996_v13 }
 0x67e   :  { %1870 = vmatprep.subr.bf16.mxu1 %v5002_v24 }
 0x681   :  { %1871 = vmatpush1.bf16.msra.mxu1 %v5008_v42 }
 0x682   :  { %1872 = vmatprep.subr.bf16.mxu1 %v5014_v26 }
 0x685   :  { %1873 = vmatpush1.bf16.msra.mxu1 %v5020_v48 }
 0x686   :  { %1874 = vmatprep.subr.bf16.mxu1 %v5026_v52 }
 0x689   :  { %1875 = vmatpush2.bf16.msra.mxu1 %v5032_v19 }
 0x68a   :  { %1876 = vmatprep.subr.bf16.mxu1 %v5038_v54 }
 0x68d   :  { %1877 = vmatpush2.bf16.msra.mxu1 %v5044_v56 }
 0x68e   :  { %1878 = vmatprep.subr.bf16.mxu1 %v5050_v58  ;;  %v6062_v58 = vld [vmem:[#allocation57_spill] sm:$0xff] }
 0x691   :  { %1879 = vmatpush2.bf16.msra.mxu1 %v5056_v60 }
 0x692   :  { %1880 = vmatprep.subr.bf16.mxu1 %v5062_v57 }
 0x695   :  { %1881 = vmatpush2.bf16.msra.mxu1 %v5068_v55 }
 0x696   :  { %1882 = vmatprep.subr.bf16.mxu1 %v5074_v62 }
 0x699   :  { %1883 = vmatpush2.bf16.msra.mxu1 %v5080_v32 }
 0x69a   :  { %1884 = vmatprep.subr.bf16.mxu1 %v6039_v50 }
 0x69d   :  { %1885 = vmatpush2.bf16.msra.mxu1 %v6040_v34 }
 0x69e   :  { %1886 = vmatprep.subr.bf16.mxu1 %v6041_v59  ;;  %v55_v59 = vld [vmem:[%s5598_s0 + $0xf0] sm:$0xff] }
 0x6a1   :  { %1887 = vmatpush2.bf16.msra.mxu1 %v6042_v63 }
 0x6a2   :  { %1888 = vmatprep.subr.bf16.mxu1 %v6059_v47  ;;  %v6063_v47 = vld [vmem:[#allocation58_spill] sm:$0xff] }
 0x6a5   :  { %1889 = vmatpush2.bf16.msra.mxu1 %v6060_v45 }
 0x6a6   :  { %1990 = vmatprep.subr.bf16.mxu1 %v6061_v1  ;;  %v2299_v1 = vld [vmem:[%s5599_s1 + $0x78] sm:$0xff] }
 0x6e8   :  { %v1678_v30 = vpop.f32.mrf.mxu1  ;;  %v1719_v5 = vpop.f32.mrf.mxu0 }
 0x6e9   :  { %v1679_v34 = vadd.f32 %v1678_v30, %v6062_v58  ;;  %v57_v30 = vld [vmem:[%s5598_s0 + $0xf8] sm:$0xff] }
 0x6ea   :  { %v1680_v62 = vpop.f32.mrf.mxu1  ;;  %v1721_v55 = vpop.f32.mrf.mxu0 }
 0x6eb   :  { %v1773_v63 = vadd.f32 %v1679_v34, %v55_v59  ;;  %v1722_v56 = vadd.f32 %v1721_v55, %v6063_v47 }
 0x6ec   :  { %v1682_v57 = vpop.f32.mrf.mxu1  ;;  %v1723_v32 = vpop.f32.mrf.mxu0 }
 0x6ed   :  { %v2433_v45 = vmul.f32 -1.442695, %v1773_v63  ;;  %v1790_v54 = vadd.f32 %v2299_v1, %v1722_v56  ;;  %v2300_v56 = vld [vmem:[%s5599_s1 + $0x80] sm:$0xff] }
 0x6ee   :  { %v1683_v60 = vpop.f32.mrf.mxu1  ;;  %v1724_v50 = vpop.f32.mrf.mxu0 }
 0x6ef   :  { %2726 = vpow2.f32 %v2433_v45  ;;  %v2435_v57 = vmul.f32 -1.442695, %v1790_v54  ;;  %v6064_v60 = vld [vmem:[#allocation59_spill] sm:$0xff]  ;;  %v6065_v45 = vld [vmem:[#allocation60_spill] sm:$0xff] }
 0x6f0   :  { %v1681_v32 = vadd.f32 %v1680_v62, %v6064_v60 }
 0x6f1   :  { %2728 = vpow2.f32 %v2435_v57 }
 0x6f2   :  { %v1780_v58 = vadd.f32 %v1681_v32, %v57_v30 }
 0x6f4   :  { %v2434_v59 = vmul.f32 -1.442695, %v1780_v58  ;;  %v1720_v58 = vadd.f32 %v1719_v5, %v3689_v31 }
 0x6fc   :  { %v2727_v50 = vpop.eup %2726 }
 0x6fd   :  { %v1777_v34 = vadd.f32 1.0, %v2727_v50 }
 0x6fe   :  { %v2729_v55 = vpop.eup %2728 }
 0x6ff   :  { %2730 = vrcp.f32 %v1777_v34  ;;  %v1794_v63 = vadd.f32 1.0, %v2729_v55  ;;  %v59_v34 = vld [vmem:[%s5598_s0 + $0x100] sm:$0xff] }
 0x700   :  { %2732 = vpow2.f32 %v2434_v59 }
 0x701   :  { %2734 = vrcp.f32 %v1794_v63 }
 0x70c   :  { %v2731_v32 = vpop.eup %2730 }
 0x70d   :  { %v2733_v30 = vpop.eup %2732  ;;  %v1787_v50 = vmul.f32 %v2731_v32, %v1720_v58 }
 0x70e   :  { %v1784_v55 = vadd.f32 1.0, %v2733_v30 }
 0x728   :  { %v1760_v54 = vpop.f32.mrf.mxu1 }
 0x729   :  { %v1761_v1 = vadd.f32 %v1760_v54, %v6065_v45  ;;  %v2735_v54 = vpop.eup %2734  ;;  %v1788_v45 = vadd.f32 %v1787_v50, %v59_v34 }
 0x72a   :  { %v1762_v62 = vpop.f32.mrf.mxu1 }
 0x72b   :  { %v1797_v57 = vadd.f32 %v2300_v56, %v1761_v1  ;;  %v1763_v59 = vadd.f32 %v1762_v62, %v3692_v33 }
 0x72c   :  { %v1764_v60 = vpop.f32.mrf.mxu1 }
 0x72d   :  { %v2436_v47 = vmul.f32 -1.442695, %v1797_v57  ;;  %v1804_v63 = vmul.f32 %v2735_v54, %v1763_v59 }
 0x72e   :  { %v1765_v19 = vpop.f32.mrf.mxu1 }
 0x72f   :  { %2736 = vpow2.f32 %v2436_v47  ;;  %v2301_v19 = vld [vmem:[%s5599_s1 + $0x88] sm:$0xff] }
 0x730   :  { %2738 = vrcp.f32 %v1784_v55  ;;  %v1805_v60 = vadd.f32 %v2301_v19, %v1804_v63  ;;  %v5145_v19 = vld [vmem:[%s5600_s2 + $0x130] ss:$24 sps:$4 sm:$0xff]  }
 0x731   :  { %2740 = vtanh.f32 %v1788_v45 }
 0x73c   :  { %v2737_v47 = vpop.eup %2736 }
 0x73d   :  { %v1801_v5 = vadd.f32 1.0, %v2737_v47  ;;  %v2739_v56 = vpop.eup %2738  ;;  %v5151_v47 = vld [vmem:[%s5600_s2 + $0x104] ss:$24 sps:$4 sm:$0xff]  }
 0x73e   :  { %v2741_v1 = vpop.eup %2740  ;;  %v1807_v57 = vsub.f32 1.0, %v2739_v56  ;;  %v1809_v50 = vmul.f32 %v2739_v56, %v4726_v9  ;;  %v5131_v9 = vld [vmem:[%s5600_s2 + $0x160] ss:$24 sps:$4 sm:$0xff]  }
 0x73f   :  { %2742 = vrcp.f32 %v1801_v5  ;;  %v5321_v5 = vld [vmem:[%s5600_s2 + $0x1c4] ss:$24 sps:$4 sm:$0xff]   ;;  %v5333_v56 = vld [vmem:[%s5600_s2 + $0x1c0] ss:$24 sps:$4 sm:$0xff]  }
 0x740   :  { %2744 = vtanh.f32 %v1805_v60  ;;  %v1808_v62 = vmul.f32 %v2741_v1, %v1807_v57  ;;  %v2964_v60 = vld [vmem:[%s5600_s2 + $0x1b4] ss:$24 sps:$4 sm:$0xff]   ;;  %v2967_v57 = vld [vmem:[%s5600_s2 + $0x1b0] ss:$24 sps:$4 sm:$0xff]  }
 0x741   :  { %v5339_v1 = vld [vmem:[%s5600_s2 + $0x194] ss:$24 sps:$4 sm:$0xff]  }
 0x742   :  { %v5116_v55 = vadd.f32 %v1809_v50, %v1808_v62  ;;  %v5351_v62 = vld [vmem:[%s5600_s2 + $0x190] ss:$24 sps:$4 sm:$0xff]  }
 0x744   :  { %v5124_v63 = vpack.c.bf16 %v5116_v55, %v5116_v55 }
 0x74c   :  { %v2743_v32 = vpop.eup %2742 }
 0x74d   :  { %v1811_v58 = vsub.f32 1.0, %v2743_v32  ;;  %v2745_v30 = vpop.eup %2744  ;;  %v1813_v59 = vmul.f32 %v2743_v32, %v4728_v61  ;;  %v5137_v61 = vld [vmem:[%s5600_s2 + $0x134] ss:$24 sps:$4 sm:$0xff]   ;;  %v2968_v32 = vld [vmem:[%s5600_s2 + $0x184] ss:$24 sps:$4 sm:$0xff]  }
 0x74f   :  { %v1812_v34 = vmul.f32 %v2745_v30, %v1811_v58  ;;  %v2970_v58 = vld [vmem:[%s5600_s2 + $0x180] ss:$24 sps:$4 sm:$0xff]   ;;  %v2971_v30 = vld [vmem:[%s5600_s2 + $0x164] ss:$24 sps:$4 sm:$0xff]  }
 0x751   :  { %v5118_v54 = vadd.f32 %v1813_v59, %v1812_v34 }
 0x753   :  { %v1816_v45 = vpack.c.bf16 %v5118_v54, %v5118_v54 }
 0x755   :  { %1849 = vmatprep.mubr.bf16.mxu0 %v1816_v45  ;;  %1890 = vmatprep.mubr.bf16.mxu1 %v1816_v45 }
 0x756   :  { %1850 = vmatmul.mubr.bf16.vlgmr.msra.gmra.mxu0 %v5124_v63  ;;  %1891 = vmatmul.mubr.bf16.vlgmr.msra.gmra.mxu1 %v5124_v63 }
 0x757   :  { %1900 = vmatpush1.bf16.msra.mxu0 %v5131_v9  ;;  %1931 = vmatprep.mubr.bf16.mxu0 %v1816_v45 }
 0x758   :  { %1901 = vmatprep.subr.bf16.mxu0 %v5137_v61  ;;  %1991 = vmatpush1.bf16.msra.mxu1 %v4743_v36  ;;  %v5159_v36 = vld [vmem:[%s5600_s2 + $0x100] ss:$24 sps:$4 sm:$0xff]  }
 0x759   :  { %1992 = vmatprep.subr.bf16.mxu1 %v4749_v2  ;;  %v5165_v2 = vld [vmem:[%s5600_s2 + $0xd4] ss:$24 sps:$4 sm:$0xff]  }
 0x75b   :  { %1902 = vmatpush1.bf16.msra.mxu0 %v5145_v19 }
 0x75c   :  { %1903 = vmatprep.subr.bf16.mxu0 %v5151_v47  ;;  %1993 = vmatpush1.bf16.msra.mxu1 %v4757_v16  ;;  %v5173_v16 = vld [vmem:[%s5600_s2 + $0xd0] ss:$24 sps:$4 sm:$0xff]  }
 0x75d   :  { %1994 = vmatprep.subr.bf16.mxu1 %v4763_v40  ;;  %v5179_v40 = vld [vmem:[%s5600_s2 + $0xa4] ss:$24 sps:$4 sm:$0xff]  }
 0x75f   :  { %1904 = vmatpush1.bf16.msra.mxu0 %v5159_v36 }
 0x760   :  { %1905 = vmatprep.subr.bf16.mxu0 %v5165_v2  ;;  %1995 = vmatpush1.bf16.msra.mxu1 %v4771_v12  ;;  %v5187_v12 = vld [vmem:[%s5600_s2 + $0xa0] ss:$24 sps:$4 sm:$0xff]  }
 0x761   :  { %1996 = vmatprep.subr.bf16.mxu1 %v4777_v23  ;;  %v5193_v23 = vld [vmem:[%s5600_s2 + $0x74] ss:$24 sps:$4 sm:$0xff]  }
 0x763   :  { %1906 = vmatpush1.bf16.msra.mxu0 %v5173_v16 }
 0x764   :  { %1907 = vmatprep.subr.bf16.mxu0 %v5179_v40  ;;  %1997 = vmatpush1.bf16.msra.mxu1 %v4785_v21  ;;  %v5201_v21 = vld [vmem:[%s5600_s2 + $0x70] ss:$24 sps:$4 sm:$0xff]  }
 0x765   :  { %1998 = vmatprep.subr.bf16.mxu1 %v4791_v17  ;;  %v5207_v17 = vld [vmem:[%s5600_s2 + $0x44] ss:$24 sps:$4 sm:$0xff]  }
 0x767   :  { %1908 = vmatpush1.bf16.msra.mxu0 %v5187_v12 }
 0x768   :  { %1909 = vmatprep.subr.bf16.mxu0 %v5193_v23  ;;  %1999 = vmatpush1.bf16.msra.mxu1 %v4799_v44  ;;  %v5215_v44 = vld [vmem:[%s5600_s2 + $0x40] ss:$24 sps:$4 sm:$0xff]  }
 0x769   :  { %2000 = vmatprep.subr.bf16.mxu1 %v4805_v49  ;;  %v5221_v49 = vld [vmem:[%s5600_s2 + $0x14] ss:$24 sps:$4 sm:$0xff]  }
 0x76b   :  { %1910 = vmatpush1.bf16.msra.mxu0 %v5201_v21 }
 0x76c   :  { %1911 = vmatprep.subr.bf16.mxu0 %v5207_v17  ;;  %2001 = vmatpush1.bf16.msra.mxu1 %v4813_v46  ;;  %v5229_v46 = vld [vmem:[%s5600_s2 + $0x10] ss:$24 sps:$4 sm:$0xff]  }
 0x76d   :  { %2002 = vmatprep.subr.bf16.mxu1 %v4819_v10  ;;  %v5235_v10 = vld [vmem:[%s5600_s2 + $0x2e4] ss:$24 sps:$4 sm:$0xff]  }
 0x76f   :  { %1912 = vmatpush1.bf16.msra.mxu0 %v5215_v44 }
 0x770   :  { %1913 = vmatprep.subr.bf16.mxu0 %v5221_v49  ;;  %2003 = vmatpush1.bf16.msra.mxu1 %v4827_v39  ;;  %v5243_v39 = vld [vmem:[%s5600_s2 + $0x2e0] ss:$24 sps:$4 sm:$0xff]  }
 0x771   :  { %2004 = vmatprep.subr.bf16.mxu1 %v4833_v27  ;;  %v5249_v27 = vld [vmem:[%s5600_s2 + $0x2b4] ss:$24 sps:$4 sm:$0xff]  }
 0x773   :  { %1914 = vmatpush1.bf16.msra.mxu0 %v5229_v46 }
 0x774   :  { %1915 = vmatprep.subr.bf16.mxu0 %v5235_v10  ;;  %2005 = vmatpush1.bf16.msra.mxu1 %v4841_v35  ;;  %v5257_v35 = vld [vmem:[%s5600_s2 + $0x2b0] ss:$24 sps:$4 sm:$0xff]  }
 0x775   :  { %2006 = vmatprep.subr.bf16.mxu1 %v4847_v37  ;;  %v5263_v37 = vld [vmem:[%s5600_s2 + $0x284] ss:$24 sps:$4 sm:$0xff]  }
 0x777   :  { %1916 = vmatpush2.bf16.msra.mxu0 %v5243_v39 }
 0x778   :  { %1917 = vmatprep.subr.bf16.mxu0 %v5249_v27  ;;  %2007 = vmatpush2.bf16.msra.mxu1 %v4855_v38  ;;  %v5271_v38 = vld [vmem:[%s5600_s2 + $0x280] ss:$24 sps:$4 sm:$0xff]  }
 0x779   :  { %2008 = vmatprep.subr.bf16.mxu1 %v4861_v29  ;;  %v5277_v29 = vld [vmem:[%s5600_s2 + $0x254] ss:$24 sps:$4 sm:$0xff]  }
 0x77b   :  { %1918 = vmatpush2.bf16.msra.mxu0 %v5257_v35 }
 0x77c   :  { %1919 = vmatprep.subr.bf16.mxu0 %v5263_v37  ;;  %2009 = vmatpush2.bf16.msra.mxu1 %v4869_v53  ;;  %v5285_v53 = vld [vmem:[%s5600_s2 + $0x250] ss:$24 sps:$4 sm:$0xff]  }
 0x77d   :  { %2010 = vmatprep.subr.bf16.mxu1 %v4875_v41  ;;  %v5291_v41 = vld [vmem:[%s5600_s2 + $0x224] ss:$24 sps:$4 sm:$0xff]  }
 0x77f   :  { %1920 = vmatpush2.bf16.msra.mxu0 %v5271_v38 }
 0x780   :  { %1921 = vmatprep.subr.bf16.mxu0 %v5277_v29  ;;  %2011 = vmatpush2.bf16.msra.mxu1 %v4883_v51  ;;  %v5299_v51 = vld [vmem:[%s5600_s2 + $0x220] ss:$24 sps:$4 sm:$0xff]  }
 0x781   :  { %2012 = vmatprep.subr.bf16.mxu1 %v4889_v43  ;;  %v5305_v43 = vld [vmem:[%s5600_s2 + $0x1f4] ss:$24 sps:$4 sm:$0xff]  }
 0x783   :  { %1922 = vmatpush2.bf16.msra.mxu0 %v5285_v53 }
 0x784   :  { %1923 = vmatprep.subr.bf16.mxu0 %v5291_v41  ;;  %2013 = vmatpush2.bf16.msra.mxu1 %v4897_v8  ;;  %v2960_v8 = vld [vmem:[%s5600_s2 + $0x1e4] ss:$24 sps:$4 sm:$0xff]  }
 0x785   :  { %2014 = vmatprep.subr.bf16.mxu1 %v4903_v0  ;;  %v5315_v0 = vld [vmem:[%s5600_s2 + $0x1f0] ss:$24 sps:$4 sm:$0xff]  }
 0x787   :  { %1924 = vmatpush2.bf16.msra.mxu0 %v5299_v51 }
 0x788   :  { %1925 = vmatprep.subr.bf16.mxu0 %v5305_v43  ;;  %2015 = vmatpush2.bf16.msra.mxu1 %v4911_v14  ;;  %v2963_v14 = vld [vmem:[%s5600_s2 + $0x1e0] ss:$24 sps:$4 sm:$0xff]  }
 0x789   :  { %2016 = vmatprep.subr.bf16.mxu1 %v2960_v8 }
 0x78b   :  { %1926 = vmatpush2.bf16.msra.mxu0 %v5315_v0 }
 0x78c   :  { %1927 = vmatprep.subr.bf16.mxu0 %v5321_v5  ;;  %2017 = vmatpush2.bf16.msra.mxu1 %v2963_v14  ;;  %v6075_v14 = vld [vmem:[#allocation57_spill] sm:$0xff] }
 0x78d   :  { %2018 = vmatprep.subr.bf16.mxu1 %v2964_v60 }
 0x78f   :  { %1928 = vmatpush2.bf16.msra.mxu0 %v5333_v56 }
 0x790   :  { %1929 = vmatprep.subr.bf16.mxu0 %v5339_v1  ;;  %2019 = vmatpush2.bf16.msra.mxu1 %v2967_v57  ;;  %v61_v57 = vld [vmem:[%s5598_s0 + $0x120] sm:$0xff] }
 0x791   :  { %2020 = vmatprep.subr.bf16.mxu1 %v2968_v32 }
 0x793   :  { %1930 = vmatpush2.bf16.msra.mxu0 %v5351_v62 }
 0x794   :  { %2031 = vmatprep.subr.bf16.mxu0 %v4927_v25  ;;  %2021 = vmatpush2.bf16.msra.mxu1 %v2970_v58  ;;  %v6066_v25 = vld [vmem:[#allocation10_spill] sm:$0xff] }
 0x795   :  { %2072 = vmatprep.subr.bf16.mxu1 %v2971_v30  ;;  %v6076_v58 = vld [vmem:[#allocation58_spill] sm:$0xff] }
 0x796   :  { %1932 = vmatmul.mubr.bf16.vlgmr.msra.gmra.mxu0 %v5124_v63 }
 0x797   :  { %2032 = vmatpush1.bf16.msra.mxu0 %v4936_v18  ;;  %v6067_v18 = vld [vmem:[#allocation28_spill] sm:$0xff] }
 0x798   :  { %2033 = vmatprep.subr.bf16.mxu0 %v4942_v22  ;;  %v6068_v22 = vld [vmem:[#allocation11_spill] sm:$0xff] }
 0x79b   :  { %2034 = vmatpush1.bf16.msra.mxu0 %v4948_v28  ;;  %v6069_v28 = vld [vmem:[#allocation30_spill] sm:$0xff] }
 0x79c   :  { %2035 = vmatprep.subr.bf16.mxu0 %v4954_v3  ;;  %v6070_v3 = vld [vmem:[#allocation12_spill] sm:$0xff] }
 0x79f   :  { %2036 = vmatpush1.bf16.msra.mxu0 %v4960_v4  ;;  %v6071_v4 = vld [vmem:[#allocation32_spill] sm:$0xff] }
 0x7a0   :  { %2037 = vmatprep.subr.bf16.mxu0 %v4966_v6  ;;  %v6072_v6 = vld [vmem:[#allocation13_spill] sm:$0xff] }
 0x7a3   :  { %2038 = vmatpush1.bf16.msra.mxu0 %v4972_v7  ;;  %v6073_v7 = vld [vmem:[#allocation34_spill] sm:$0xff] }
 0x7a4   :  { %2039 = vmatprep.subr.bf16.mxu0 %v4978_v11  ;;  %v6074_v11 = vld [vmem:[#allocation14_spill] sm:$0xff] }
 0x7a7   :  { %2040 = vmatpush1.bf16.msra.mxu0 %v4984_v15  ;;  %v2972_v15 = vld [vmem:[%s5600_s2 + $0x1ec] ss:$24 sps:$4 sm:$0xff]  }
 0x7a8   :  { %2041 = vmatprep.subr.bf16.mxu0 %v4990_v20  ;;  %v2973_v20 = vld [vmem:[%s5600_s2 + $0x1e8] ss:$24 sps:$4 sm:$0xff]  }
 0x7ab   :  { %2042 = vmatpush1.bf16.msra.mxu0 %v4996_v13  ;;  %v2974_v13 = vld [vmem:[%s5600_s2 + $0x1bc] ss:$24 sps:$4 sm:$0xff]  }
 0x7ac   :  { %2043 = vmatprep.subr.bf16.mxu0 %v5002_v24  ;;  %v2975_v24 = vld [vmem:[%s5600_s2 + $0x1b8] ss:$24 sps:$4 sm:$0xff]  }
 0x7af   :  { %2044 = vmatpush1.bf16.msra.mxu0 %v5008_v42  ;;  %v2976_v42 = vld [vmem:[%s5600_s2 + $0x18c] ss:$24 sps:$4 sm:$0xff]  }
 0x7b0   :  { %2045 = vmatprep.subr.bf16.mxu0 %v5014_v26  ;;  %v2977_v26 = vld [vmem:[%s5600_s2 + $0x188] ss:$24 sps:$4 sm:$0xff]  }
 0x7b3   :  { %2046 = vmatpush1.bf16.msra.mxu0 %v5020_v48 }
 0x7b4   :  { %2047 = vmatprep.subr.bf16.mxu0 %v5026_v52 }
 0x7b7   :  { %2048 = vmatpush2.bf16.msra.mxu0 %v6066_v25 }
 0x7b8   :  { %2049 = vmatprep.subr.bf16.mxu0 %v6067_v18  ;;  %v2296_v18 = vld [vmem:[%s5599_s1 + $0x48] sm:$0xff] }
 0x7bb   :  { %2050 = vmatpush2.bf16.msra.mxu0 %v6068_v22 }
 0x7bc   :  { %2051 = vmatprep.subr.bf16.mxu0 %v6069_v28 }
 0x7bf   :  { %2052 = vmatpush2.bf16.msra.mxu0 %v6070_v3  ;;  %v6077_v3 = vld [vmem:[#allocation59_spill] sm:$0xff] }
 0x7c0   :  { %2053 = vmatprep.subr.bf16.mxu0 %v6071_v4 }
 0x7c3   :  { %2054 = vmatpush2.bf16.msra.mxu0 %v6072_v6  ;;  %v63_v6 = vld [vmem:[%s5598_s0 + $0x128] sm:$0xff] }
 0x7c4   :  { %2055 = vmatprep.subr.bf16.mxu0 %v6073_v7 }
 0x7c7   :  { %2056 = vmatpush2.bf16.msra.mxu0 %v6074_v11 }
 0x7c8   :  { %2057 = vmatprep.subr.bf16.mxu0 %v2972_v15 }
 0x7cb   :  { %2058 = vmatpush2.bf16.msra.mxu0 %v2973_v20 }
 0x7cc   :  { %2059 = vmatprep.subr.bf16.mxu0 %v2974_v13 }
 0x7cf   :  { %2060 = vmatpush2.bf16.msra.mxu0 %v2975_v24 }
 0x7d0   :  { %2061 = vmatprep.subr.bf16.mxu0 %v2976_v42  ;;  %v2297_v42 = vld [vmem:[%s5599_s1 + $0x50] sm:$0xff] }
 0x7d3   :  { %2062 = vmatpush2.bf16.msra.mxu0 %v2977_v26 }
 0x816   :  { %v1851_v48 = vpop.f32.mrf.mxu0  ;;  %v1892_v52 = vpop.f32.mrf.mxu1 }
 0x817   :  { %v1852_v60 = vadd.f32 %v1851_v48, %v6075_v14  ;;  %v6078_v48 = vld [vmem:[#allocation60_spill] sm:$0xff] }
 0x818   :  { %v1853_v50 = vpop.f32.mrf.mxu0  ;;  %v1894_v34 = vpop.f32.mrf.mxu1 }
 0x819   :  { %v1946_v32 = vadd.f32 %v1852_v60, %v61_v57  ;;  %v1895_v30 = vadd.f32 %v1894_v34, %v6076_v58  ;;  %v1854_v4 = vadd.f32 %v1853_v50, %v6077_v3  ;;  %v1893_v57 = vadd.f32 %v1892_v52, %v3689_v31 }
 0x81a   :  { %v1855_v59 = vpop.f32.mrf.mxu0  ;;  %v1896_v45 = vpop.f32.mrf.mxu1 }
 0x81b   :  { %v2437_v25 = vmul.f32 -1.442695, %v1946_v32  ;;  %v1963_v22 = vadd.f32 %v2296_v18, %v1895_v30  ;;  %v1953_v11 = vadd.f32 %v1854_v4, %v63_v6 }
 0x81c   :  { %v1856_v63 = vpop.f32.mrf.mxu0  ;;  %v1897_v8 = vpop.f32.mrf.mxu1 }
 0x81d   :  { %2746 = vpow2.f32 %v2437_v25  ;;  %v2439_v28 = vmul.f32 -1.442695, %v1963_v22  ;;  %v2438_v20 = vmul.f32 -1.442695, %v1953_v11  ;;  %v65_v25 = vld [vmem:[%s5598_s0 + $0x130] sm:$0xff] }
 0x81f   :  { %2748 = vpow2.f32 %v2439_v28 }
 0x82a   :  { %v2747_v7 = vpop.eup %2746 }
 0x82b   :  { %v1950_v15 = vadd.f32 1.0, %v2747_v7  ;;  %v2298_v7 = vld [vmem:[%s5599_s1 + $0x58] sm:$0xff] }
 0x82c   :  { %v2749_v13 = vpop.eup %2748 }
 0x82d   :  { %2750 = vrcp.f32 %v1950_v15  ;;  %v1967_v24 = vadd.f32 1.0, %v2749_v13 }
 0x82e   :  { %2752 = vpow2.f32 %v2438_v20 }
 0x82f   :  { %2754 = vrcp.f32 %v1967_v24 }
 0x83a   :  { %v2751_v60 = vpop.eup %2750 }
 0x83b   :  { %v2753_v32 = vpop.eup %2752  ;;  %v1960_v30 = vmul.f32 %v2751_v60, %v1893_v57 }
 0x83c   :  { %v1957_v22 = vadd.f32 1.0, %v2753_v32  ;;  %v2755_v28 = vpop.eup %2754 }
 0x83d   :  { %v1961_v4 = vadd.f32 %v1960_v30, %v65_v25 }
 0x856   :  { %v1933_v26 = vpop.f32.mrf.mxu0 }
 0x857   :  { %v1934_v34 = vadd.f32 %v1933_v26, %v6078_v48 }
 0x858   :  { %v1935_v50 = vpop.f32.mrf.mxu0 }
 0x859   :  { %v1970_v59 = vadd.f32 %v2297_v42, %v1934_v34  ;;  %v1936_v18 = vadd.f32 %v1935_v50, %v3692_v33 }
 0x85a   :  { %v1937_v45 = vpop.f32.mrf.mxu0 }
 0x85b   :  { %v2440_v63 = vmul.f32 -1.442695, %v1970_v59  ;;  %v1977_v6 = vmul.f32 %v2755_v28, %v1936_v18 }
 0x85c   :  { %v1938_v8 = vpop.f32.mrf.mxu0 }
 0x85d   :  { %2756 = vpow2.f32 %v2440_v63  ;;  %v1978_v15 = vadd.f32 %v2298_v7, %v1977_v6 }
 0x85e   :  { %2758 = vrcp.f32 %v1957_v22 }
 0x85f   :  { %2760 = vtanh.f32 %v1961_v4 }
 0x86a   :  { %v2757_v11 = vpop.eup %2756 }
 0x86b   :  { %v1974_v52 = vadd.f32 1.0, %v2757_v11  ;;  %v2759_v20 = vpop.eup %2758  ;;  %v67_v11 = vld [vmem:[%s5598_s0 + $0x150] sm:$0xff] }
 0x86c   :  { %v2761_v13 = vpop.eup %2760  ;;  %v1980_v24 = vsub.f32 1.0, %v2759_v20  ;;  %v1982_v59 = vmul.f32 %v2759_v20, %v5116_v55  ;;  %v2197_v55 = vld [vmem:[%s5602_s4 + $0xf8] sm:$0xff] }
 0x86d   :  { %2762 = vrcp.f32 %v1974_v52  ;;  %2446 = vmatprep.subr.mxu0 %v2197_v55  ;;  %v2293_v20 = vld [vmem:[%s5599_s1 + $0x18] sm:$0xff] }
 0x86e   :  { %2764 = vtanh.f32 %v1978_v15  ;;  %v1981_v26 = vmul.f32 %v2761_v13, %v1980_v24 }
 0x870   :  { %v5431_v8 = vadd.f32 %v1982_v59, %v1981_v26 }
 0x872   :  { %v1988_v32 = vpack.c.bf16 %v5431_v8, %v5431_v8 }
 0x87a   :  { %v2763_v42 = vpop.eup %2762 }
 0x87b   :  { %v1984_v34 = vsub.f32 1.0, %v2763_v42  ;;  %v2765_v50 = vpop.eup %2764  ;;  %v1986_v63 = vmul.f32 %v2763_v42, %v5118_v54  ;;  %v2181_v54 = vld [vmem:[%s5602_s4 + $0x78] sm:$0xff] }
 0x87d   :  { %v1985_v45 = vmul.f32 %v2765_v50, %v1984_v34 }
 0x87f   :  { %v5433_v60 = vadd.f32 %v1986_v63, %v1985_v45 }
 0x881   :  { %v1989_v57 = vpack.c.bf16 %v5433_v60, %v5433_v60 }
 0x883   :  { %2022 = vmatprep.mubr.bf16.mxu1 %v1989_v57  ;;  %2063 = vmatprep.mubr.bf16.mxu0 %v1989_v57 }
 0x884   :  { %2023 = vmatmul.mubr.bf16.vlgmr.msra.gmra.mxu1 %v1988_v32  ;;  %2064 = vmatmul.mubr.bf16.vlgmr.msra.gmra.mxu0 %v1988_v32 }
 0x885   :  { %2073 = vmatpush1.bf16.msra.mxu1 %v5131_v9  ;;  %2104 = vmatprep.mubr.bf16.mxu1 %v1989_v57  ;;  %v2196_v9 = vld [vmem:[%s5602_s4 + $0xf0] sm:$0xff]  ;;  %v2294_v57 = vld [vmem:[%s5599_s1 + $0x20] sm:$0xff] }
 0x886   :  { %2074 = vmatprep.subr.bf16.mxu1 %v5137_v61  ;;  %2447 = vmatpush3.msra.mxu0 %v2181_v54  ;;  %v2180_v61 = vld [vmem:[%s5602_s4 + $0x70] sm:$0xff] }
 0x887   :  { %2448 = vmatprep.subr.mxu0 %v2196_v9 }
 0x888   :  { %2449 = vmatpush3.msra.mxu0 %v2180_v61 }
 0x889   :  { %2075 = vmatpush1.bf16.msra.mxu1 %v5145_v19  ;;  %v2195_v19 = vld [vmem:[%s5602_s4 + $0xe8] sm:$0xff] }
 0x88a   :  { %2076 = vmatprep.subr.bf16.mxu1 %v5151_v47  ;;  %2450 = vmatprep.subr.mxu0 %v2195_v19  ;;  %v2179_v47 = vld [vmem:[%s5602_s4 + $0x68] sm:$0xff] }
 0x88b   :  { %2451 = vmatpush3.msra.mxu0 %v2179_v47 }
 0x88d   :  { %2077 = vmatpush1.bf16.msra.mxu1 %v5159_v36  ;;  %v2194_v36 = vld [vmem:[%s5602_s4 + $0xe0] sm:$0xff] }
 0x88e   :  { %2078 = vmatprep.subr.bf16.mxu1 %v5165_v2  ;;  %2452 = vmatprep.subr.mxu0 %v2194_v36  ;;  %v2178_v2 = vld [vmem:[%s5602_s4 + $0x60] sm:$0xff] }
 0x88f   :  { %2453 = vmatpush3.msra.mxu0 %v2178_v2 }
 0x891   :  { %2079 = vmatpush1.bf16.msra.mxu1 %v5173_v16  ;;  %v2193_v16 = vld [vmem:[%s5602_s4 + $0xd8] sm:$0xff] }
 0x892   :  { %2080 = vmatprep.subr.bf16.mxu1 %v5179_v40  ;;  %2454 = vmatprep.subr.mxu0 %v2193_v16  ;;  %v2177_v40 = vld [vmem:[%s5602_s4 + $0x58] sm:$0xff] }
 0x893   :  { %2455 = vmatpush3.msra.mxu0 %v2177_v40 }
 0x895   :  { %2081 = vmatpush1.bf16.msra.mxu1 %v5187_v12  ;;  %v2192_v12 = vld [vmem:[%s5602_s4 + $0xd0] sm:$0xff] }
 0x896   :  { %2082 = vmatprep.subr.bf16.mxu1 %v5193_v23  ;;  %2456 = vmatprep.subr.mxu0 %v2192_v12  ;;  %v2176_v23 = vld [vmem:[%s5602_s4 + $0x50] sm:$0xff]  ;;  %v71_v12 = vld [vmem:[%s5598_s0 + $0x160] sm:$0xff] }
 0x897   :  { %2457 = vmatpush3.msra.mxu0 %v2176_v23 }
 0x899   :  { %2083 = vmatpush1.bf16.msra.mxu1 %v5201_v21  ;;  %v2191_v21 = vld [vmem:[%s5602_s4 + $0xc8] sm:$0xff] }
 0x89a   :  { %2084 = vmatprep.subr.bf16.mxu1 %v5207_v17  ;;  %v2175_v17 = vld [vmem:[%s5602_s4 + $0x48] sm:$0xff]  ;;  %2458 = vmatprep.subr.mxu0 %v2191_v21 }
 0x89b   :  { %2459 = vmatpush3.msra.mxu0 %v2175_v17 }
 0x89d   :  { %2085 = vmatpush1.bf16.msra.mxu1 %v5215_v44  ;;  %v2190_v44 = vld [vmem:[%s5602_s4 + $0xc0] sm:$0xff] }
 0x89e   :  { %2086 = vmatprep.subr.bf16.mxu1 %v5221_v49  ;;  %v2174_v49 = vld [vmem:[%s5602_s4 + $0x40] sm:$0xff]  ;;  %2460 = vmatprep.subr.mxu0 %v2190_v44  ;;  %v2295_v44 = vld [vmem:[%s5599_s1 + $0x28] sm:$0xff] }
 0x89f   :  { %2461 = vmatpush3.msra.mxu0 %v2174_v49 }
 0x8a1   :  { %2087 = vmatpush1.bf16.msra.mxu1 %v5229_v46  ;;  %v2189_v46 = vld [vmem:[%s5602_s4 + $0xb8] sm:$0xff] }
 0x8a2   :  { %2088 = vmatprep.subr.bf16.mxu1 %v5235_v10  ;;  %v2173_v10 = vld [vmem:[%s5602_s4 + $0x38] sm:$0xff]  ;;  %2462 = vmatprep.subr.mxu0 %v2189_v46 }
 0x8a3   :  { %2463 = vmatpush3.msra.mxu0 %v2173_v10 }
 0x8a5   :  { %2089 = vmatpush2.bf16.msra.mxu1 %v5243_v39  ;;  %v2188_v39 = vld [vmem:[%s5602_s4 + $0xb0] sm:$0xff] }
 0x8a6   :  { %2090 = vmatprep.subr.bf16.mxu1 %v5249_v27  ;;  %v2172_v27 = vld [vmem:[%s5602_s4 + $0x30] sm:$0xff]  ;;  %2464 = vmatprep.subr.mxu0 %v2188_v39 }
 0x8a7   :  { %2465 = vmatpush3.msra.mxu0 %v2172_v27 }
 0x8a9   :  { %2091 = vmatpush2.bf16.msra.mxu1 %v5257_v35  ;;  %v2187_v35 = vld [vmem:[%s5602_s4 + $0xa8] sm:$0xff] }
 0x8aa   :  { %2092 = vmatprep.subr.bf16.mxu1 %v5263_v37  ;;  %v2171_v37 = vld [vmem:[%s5602_s4 + $0x28] sm:$0xff]  ;;  %2466 = vmatprep.subr.mxu0 %v2187_v35 }
 0x8ab   :  { %2467 = vmatpush3.msra.mxu0 %v2171_v37 }
 0x8ad   :  { %2093 = vmatpush2.bf16.msra.mxu1 %v5271_v38  ;;  %v2186_v38 = vld [vmem:[%s5602_s4 + $0xa0] sm:$0xff] }
 0x8ae   :  { %2094 = vmatprep.subr.bf16.mxu1 %v5277_v29  ;;  %v2170_v29 = vld [vmem:[%s5602_s4 + $0x20] sm:$0xff]  ;;  %2468 = vmatprep.subr.mxu0 %v2186_v38 }
 0x8af   :  { %2469 = vmatpush3.msra.mxu0 %v2170_v29 }
 0x8b1   :  { %2095 = vmatpush2.bf16.msra.mxu1 %v5285_v53  ;;  %v2185_v53 = vld [vmem:[%s5602_s4 + $0x98] sm:$0xff] }
 0x8b2   :  { %2096 = vmatprep.subr.bf16.mxu1 %v5291_v41  ;;  %v2169_v41 = vld [vmem:[%s5602_s4 + $0x18] sm:$0xff]  ;;  %2470 = vmatprep.subr.mxu0 %v2185_v53 }
 0x8b3   :  { %2471 = vmatpush3.msra.mxu0 %v2169_v41 }
 0x8b5   :  { %2097 = vmatpush2.bf16.msra.mxu1 %v5299_v51  ;;  %v2184_v51 = vld [vmem:[%s5602_s4 + $0x90] sm:$0xff] }
 0x8b6   :  { %2098 = vmatprep.subr.bf16.mxu1 %v5305_v43  ;;  %v2168_v43 = vld [vmem:[%s5602_s4 + $0x10] sm:$0xff]  ;;  %2472 = vmatprep.subr.mxu0 %v2184_v51 }
 0x8b7   :  { %2473 = vmatpush3.msra.mxu0 %v2168_v43 }
 0x8b9   :  { %2099 = vmatpush2.bf16.msra.mxu1 %v5315_v0  ;;  %v2183_v0 = vld [vmem:[%s5602_s4 + $0x88] sm:$0xff] }
 0x8ba   :  { %2100 = vmatprep.subr.bf16.mxu1 %v5321_v5  ;;  %v2167_v5 = vld [vmem:[%s5602_s4 + $0x8] sm:$0xff]  ;;  %2474 = vmatprep.subr.mxu0 %v2183_v0 }
 0x8bb   :  { %2475 = vmatpush3.msra.mxu0 %v2167_v5  ;;  %v2445_v5 = vld [vmem:[%s5603_s5] ss:$0 sm:$0xff] }
 0x8bd   :  { %2101 = vmatpush2.bf16.msra.mxu1 %v5333_v56  ;;  %v2182_v56 = vld [vmem:[%s5602_s4 + $0x80] sm:$0xff] }
 0x8be   :  { %2102 = vmatprep.subr.bf16.mxu1 %v5339_v1  ;;  %v2166_v1 = vld [vmem:[%s5602_s4] sm:$0xff]  ;;  %2476 = vmatprep.subr.mxu0 %v2182_v56 }
 0x8bf   :  { %2477 = vmatpush3.msra.mxu0 %v2166_v1 }
 0x8c1   :  { %2103 = vmatpush2.bf16.msra.mxu1 %v5351_v62 }
 0x8c4   :  { %2105 = vmatmul.mubr.bf16.vlgmr.msra.gmra.mxu1 %v1988_v32 }
 0x944   :  { %v2024_v62 = vpop.f32.mrf.mxu1  ;;  %v2065_v30 = vpop.f32.mrf.mxu0 }
 0x945   :  { %v2025_v7 = vadd.f32 %v2024_v62, %v6075_v14  ;;  %v69_v14 = vld [vmem:[%s5598_s0 + $0x158] sm:$0xff]  ;;  %v2066_v36 = vadd.f32 %v2065_v30, %v3689_v31 }
 0x946   :  { %v2026_v25 = vpop.f32.mrf.mxu1  ;;  %v2067_v18 = vpop.f32.mrf.mxu0 }
 0x947   :  { %v2119_v52 = vadd.f32 %v2025_v7, %v67_v11  ;;  %v2068_v15 = vadd.f32 %v2067_v18, %v6076_v58  ;;  %v2027_v26 = vadd.f32 %v2026_v25, %v6077_v3 }
 0x948   :  { %v2028_v22 = vpop.f32.mrf.mxu1  ;;  %v2069_v28 = vpop.f32.mrf.mxu0 }
 0x949   :  { %v2441_v13 = vmul.f32 -1.442695, %v2119_v52  ;;  %v2136_v24 = vadd.f32 %v2293_v20, %v2068_v15  ;;  %v2126_v50 = vadd.f32 %v2027_v26, %v69_v14 }
 0x94a   :  { %v2029_v4 = vpop.f32.mrf.mxu1  ;;  %v2070_v6 = vpop.f32.mrf.mxu0 }
 0x94b   :  { %2766 = vpow2.f32 %v2441_v13  ;;  %v2443_v42 = vmul.f32 -1.442695, %v2136_v24  ;;  %v2442_v58 = vmul.f32 -1.442695, %v2126_v50 }
 0x94d   :  { %2768 = vpow2.f32 %v2443_v42 }
 0x958   :  { %v2767_v34 = vpop.eup %2766 }
 0x959   :  { %v2123_v59 = vadd.f32 1.0, %v2767_v34 }
 0x95a   :  { %v2769_v45 = vpop.eup %2768 }
 0x95b   :  { %2770 = vrcp.f32 %v2123_v59  ;;  %v2140_v63 = vadd.f32 1.0, %v2769_v45 }
 0x95c   :  { %2772 = vpow2.f32 %v2442_v58 }
 0x95d   :  { %2774 = vrcp.f32 %v2140_v63 }
 0x968   :  { %v2771_v47 = vpop.eup %2770 }
 0x969   :  { %v2773_v2 = vpop.eup %2772  ;;  %v2133_v40 = vmul.f32 %v2771_v47, %v2066_v36 }
 0x96a   :  { %v2775_v23 = vpop.eup %2774 }
 0x96b   :  { %v2134_v17 = vadd.f32 %v2133_v40, %v71_v12 }
 0x984   :  { %v2106_v32 = vpop.f32.mrf.mxu1 }
 0x985   :  { %v2107_v55 = vadd.f32 %v2106_v32, %v6078_v48  ;;  %v2130_v48 = vadd.f32 1.0, %v2773_v2 }
 0x986   :  { %v2108_v3 = vpop.f32.mrf.mxu1 }
 0x987   :  { %v2143_v54 = vadd.f32 %v2294_v57, %v2107_v55  ;;  %v2109_v16 = vadd.f32 %v2108_v3, %v3692_v33 }
 0x988   :  { %v2110_v9 = vpop.f32.mrf.mxu1 }
 0x989   :  { %v2444_v61 = vmul.f32 -1.442695, %v2143_v54  ;;  %v2150_v21 = vmul.f32 %v2775_v23, %v2109_v16 }
 0x98a   :  { %v2111_v19 = vpop.f32.mrf.mxu1 }
 0x98b   :  { %2776 = vpow2.f32 %v2444_v61  ;;  %v2151_v31 = vadd.f32 %v2295_v44, %v2150_v21 }
 0x98c   :  { %2778 = vrcp.f32 %v2130_v48 }
 0x98d   :  { %2780 = vtanh.f32 %v2134_v17 }
 0x998   :  { %v2777_v49 = vpop.eup %2776 }
 0x999   :  { %v2147_v46 = vadd.f32 1.0, %v2777_v49  ;;  %v2779_v33 = vpop.eup %2778 }
 0x99a   :  { %v2781_v10 = vpop.eup %2780  ;;  %v2153_v27 = vsub.f32 1.0, %v2779_v33  ;;  %v2155_v41 = vmul.f32 %v2779_v33, %v5431_v8 }
 0x99b   :  { %2782 = vrcp.f32 %v2147_v46 }
 0x99c   :  { %2784 = vtanh.f32 %v2151_v31  ;;  %v2154_v38 = vmul.f32 %v2781_v10, %v2153_v27 }
 0x99e   :  { %v2156_v43 = vadd.f32 %v2155_v41, %v2154_v38 }
 0x9a8   :  { %v2783_v39 = vpop.eup %2782 }
 0x9a9   :  { %v2157_v35 = vsub.f32 1.0, %v2783_v39  ;;  %v2785_v37 = vpop.eup %2784  ;;  %v2159_v53 = vmul.f32 %v2783_v39, %v5433_v60 }
 0x9ab   :  { %v2158_v29 = vmul.f32 %v2785_v37, %v2157_v35 }
 0x9ad   :  { %v2160_v51 = vadd.f32 %v2159_v53, %v2158_v29 }
 0x9af   :  { %2269 = vmatprep.mubr.f32.mxu0 %v2160_v51 }
 0x9b0   :  { %2270 = vmatmul.mubr.f32.vlgmr.msra.gmra.mxu0 %v2156_v43 }
 0xa70   :  { %v2478_v0 = vpop.f32.mrf.mxu0 }
 0xa72   :  { %v2479_v56 = vpop.f32.mrf.mxu0 }
 0xa73   :  { %v2480_v1 = vadd.f32 %v2479_v56, %v2478_v0 }
 0xa75   :  { %v2272_v62 = vadd.f32 %v2480_v1, %v2445_v5 }
 0xa77   :  { %2276 = vst.msk [vmem:[%s5604_s6] sm:$0xff] %vm2275_vm0, %v2272_v62 }

</bundles_post_ra>
